<compile_context>
chip_gen: v7x
topology: tpu7x:2x2x1
jax: 0.10.0
libtpu: 0.0.40
codegen_flags: <defaults>
</compile_context>

<pallas_src>
import math

import jax
import jax.numpy as jnp
from jax.experimental import pallas as pl
from jax.experimental.pallas import tpu as pltpu

# ---------------------------- small synthetic config ----------------------------
B = 2                      # batch
T_RAW = 400                # raw audio samples
K1, S1, C1 = 10, 5, 32     # conv1 kernel / stride / out-channels (c_in = 1)
K2, S2, C2 = 3, 2, 32      # conv2 kernel / stride / out-channels
CONV_LAYERS = [(1, C1, K1, S1), (C1, C2, K2, S2)]
HIDDEN = 32
N_HEADS = 4
HEAD_DIM = HIDDEN // N_HEADS
FFN = 64
N_LAYERS = 2
VOCAB = 32                 # CTC vocab size
VOCAB_PAD = 128            # lane-dense store width for the CTC head
EPS = 1e-5
FINE_TUNE_STRENGTH = 0.1

T1 = (T_RAW - K1) // S1 + 1          # 79 conv1 output frames
T2 = (T1 - K2) // S2 + 1             # 39 conv2 output frames
T2P = ((T2 + 7) // 8) * 8            # 40 padded sequence length (sublane multiple)
ROWS = B * T2P                       # 80 folded rows for the encoder
assert K1 == 2 * S1 and T_RAW % S1 == 0, "in-kernel conv1 assumes kernel == 2*stride"


# ------------------------------- in-kernel helpers -------------------------------
def _gelu(x):
    # TODO(synk): HF wav2vec2 uses exact (erf) GELU; tanh approximation used here.
    return jax.nn.gelu(x, approximate=True)


def _layer_norm(x, g, b, eps=EPS):
    mu = jnp.mean(x, axis=-1, keepdims=True)
    var = jnp.mean(jnp.square(x - mu), axis=-1, keepdims=True)
    return (x - mu) * jax.lax.rsqrt(var + eps) * g + b


def _mm(a_bf16, w_bf16, bias=None):
    """bf16 MXU matmul with f32 accumulation; bias add in f32."""
    y = jnp.dot(a_bf16, w_bf16, preferred_element_type=jnp.float32)
    if bias is not None:
        y = y + bias
    return y


# ------------------------------ the single fused kernel ------------------------------
def _wav2vec2_kernel(xr_ref, w1a_ref, w1b_ref, b1_ref, gng_ref, gnb_ref,
                     w2_ref, b2_ref,
                     fplng_ref, fplnb_ref, fpw_ref, fpb_ref,
                     elng_ref, elnb_ref,
                     wqkv_ref, bqkv_ref, wo_ref, bo_ref,
                     ln1g_ref, ln1b_ref, wf1_ref, bf1_ref, wf2_ref, bf2_ref,
                     ln2g_ref, ln2b_ref,
                     lmw_ref, lmb_ref,
                     o_ref):
    scale = 1.0 / math.sqrt(HEAD_DIM)

    # conv2 row-selection matrices: sel_r[j, t] = (t == S2*j + r). Built once (constants).
    row = jax.lax.broadcasted_iota(jnp.int32, (T2P, T1), 0)
    col = jax.lax.broadcasted_iota(jnp.int32, (T2P, T1), 1)
    sels = [(col == S2 * row + r).astype(jnp.bfloat16) for r in range(K2)]

    # ----- convolutional feature extractor (static loop over the B=2 sequences) -----
    feats = []
    for b in range(B):
        xb = xr_ref[b].astype(jnp.bfloat16)                       # (T_RAW//S1, S1) = (80, 5)
        ya = _mm(xb, w1a_ref[...])                                # taps 0..S1-1
        yb = _mm(xb, w1b_ref[...])                                # taps S1..K1-1
        y1 = ya[0:T1, :] + yb[1:T1 + 1, :] + b1_ref[...]          # (79, 32) conv1 output
        # GroupNorm with num_groups == num_channels: per-channel stats over time.
        mu = jnp.mean(y1, axis=0, keepdims=True)
        var = jnp.mean(jnp.square(y1 - mu), axis=0, keepdims=True)
        y1 = (y1 - mu) * jax.lax.rsqrt(var + EPS) * gng_ref[...] + gnb_ref[...]
        y1 = _gelu(y1).astype(jnp.bfloat16)
        # conv2 (kernel 3, stride 2): out[j] = sum_r y1[2j+r] @ W2_r via selection matmuls.
        h = _mm(y1, w2_ref[...]).astype(jnp.bfloat16)             # (79, 3*C2) = y1 @ [W2_0|W2_1|W2_2]
        x2 = b2_ref[...]
        for r in range(K2):
            x2 = x2 + _mm(sels[r], h[:, r * C2:(r + 1) * C2])     # (T2P, C2); row T2..T2P-1 is pad/junk
        feats.append(_gelu(x2))

    x = jnp.concatenate(feats, axis=0)                            # (B*T2P, H) = (80, 32), f32

    # ----- feature projection + encoder input layer norm -----
    # TODO(synk): wav2vec2 convolutional positional embedding omitted (synthetic config).
    x = _layer_norm(x, fplng_ref[...], fplnb_ref[...])
    x = _mm(x.astype(jnp.bfloat16), fpw_ref[...], fpb_ref[...])
    x = _layer_norm(x, elng_ref[...], elnb_ref[...])

    # Mask for the padded key position (time index >= T2 within each sequence).
    key_bias = jnp.where(
        jax.lax.broadcasted_iota(jnp.int32, (1, 1, T2P), 2) < T2, 0.0, -1e30)

    # ----- transformer encoder layers (static unroll) -----
    for l in range(N_LAYERS):
        xb16 = x.astype(jnp.bfloat16)
        qkv = _mm(xb16, wqkv_ref[l], bqkv_ref[l])                 # (B*S, 3H) fused Q|K|V
        # (B*S, 3H) -> (B, 3H, S): one batched minor-dims transpose; head split is
        # pure leading-dim reshapes (no lane slicing, no concatenate).
        qkv_t = jnp.transpose(qkv.reshape(B, T2P, 3 * HIDDEN), (0, 2, 1))
        qkv_t = qkv_t.astype(jnp.bfloat16)                        # (B, 3H, S)
        q_t = qkv_t[:, 0:HIDDEN, :].reshape(B * N_HEADS, HEAD_DIM, T2P)
        k_t = qkv_t[:, HIDDEN:2 * HIDDEN, :].reshape(B * N_HEADS, HEAD_DIM, T2P)
        v_t = qkv_t[:, 2 * HIDDEN:3 * HIDDEN, :].reshape(B * N_HEADS, HEAD_DIM, T2P)

        # scores[g, i, j] = sum_d q_t[g, d, i] * k_t[g, d, j]    (g = batch*head)
        s = jax.lax.dot_general(q_t, k_t, (((1,), (1,)), ((0,), (0,))),
                                preferred_element_type=jnp.float32) * scale
        s = s + key_bias                                           # (B*NH, S, S)
        m = jnp.max(s, axis=-1, keepdims=True)
        p = jnp.exp(s - m)
        p = p * pl.reciprocal(jnp.sum(p, axis=-1, keepdims=True), approx=True)
        # ctx_t[g, d, i] = sum_j v_t[g, d, j] * p[g, i, j]
        ctx_t = jax.lax.dot_general(v_t, p.astype(jnp.bfloat16),
                                    (((2,), (2,)), ((0,), (0,))),
                                    preferred_element_type=jnp.float32)  # (B*NH, HD, S)
        ctx = jnp.transpose(ctx_t.reshape(B, HIDDEN, T2P), (0, 2, 1)).reshape(ROWS, HIDDEN)
        attn = _mm(ctx.astype(jnp.bfloat16), wo_ref[l], bo_ref[l])

        x = _layer_norm(x + attn, ln1g_ref[l], ln1b_ref[l])
        f = _gelu(_mm(x.astype(jnp.bfloat16), wf1_ref[l], bf1_ref[l]))
        f = _mm(f.astype(jnp.bfloat16), wf2_ref[l], bf2_ref[l])
        x = _layer_norm(x + f, ln2g_ref[l], ln2b_ref[l])

    # ----- CTC head, lane-dense (VOCAB padded to 128); (80, 128) fully aligned store -----
    o_ref[...] = _mm(x.astype(jnp.bfloat16), lmw_ref[...], lmb_ref[...]).astype(o_ref.dtype)


def _full_spec(a):
    nd = a.ndim
    return pl.BlockSpec(a.shape, lambda i, _nd=nd: (0,) * _nd)


def fused_wav2vec2(xr, packed):
    args = [
        xr,
        packed["w1a"], packed["w1b"], packed["b1"], packed["gn_g"], packed["gn_b"],
        packed["w2"], packed["b2"],
        packed["fp_ln_g"], packed["fp_ln_b"], packed["fp_w"], packed["fp_b"],
        packed["enc_ln_g"], packed["enc_ln_b"],
        packed["wqkv"], packed["bqkv"], packed["wo"], packed["bo"],
        packed["ln1_g"], packed["ln1_b"], packed["w1f"], packed["b1f"],
        packed["w2f"], packed["b2f"], packed["ln2_g"], packed["ln2_b"],
        packed["lm_w"], packed["lm_b"],
    ]
    return pl.pallas_call(
        _wav2vec2_kernel,
        out_shape=jax.ShapeDtypeStruct((ROWS, VOCAB_PAD), jnp.float32),
        grid=(1,),
        in_specs=[_full_spec(a) for a in args],
        out_specs=pl.BlockSpec((ROWS, VOCAB_PAD), lambda i: (0, 0)),
        compiler_params=pltpu.CompilerParams(dimension_semantics=("arbitrary",)),
    )(*args)


# ------------------------------ weight packing ------------------------------
def pack_params(params):
    """Stack per-layer weights on a leading axis, fuse Q|K|V, pre-split conv weights,
    pre-cast matmul weights to bf16, pad the CTC head to a 128-wide lane-dense output."""
    def stack(name):
        return jnp.stack([lyr[name] for lyr in params["layers"]])

    conv1, conv2 = params["conv"]
    w1 = conv1["w"]                                                       # (K1, C1), c_in == 1
    w2 = conv2["w"]                                                       # (K2*C1, C2)
    w2cat = jnp.concatenate([w2[r * C1:(r + 1) * C1, :] for r in range(K2)], axis=1)  # (C1, K2*C2)

    wqkv = jnp.concatenate([stack("wq"), stack("wk"), stack("wv")], axis=-1)   # (L, H, 3H)
    bqkv = jnp.concatenate([stack("bq"), stack("bk"), stack("bv")], axis=-1)   # (L, 3H)

    pad = VOCAB_PAD - params["lm_w"].shape[1]
    lm_w = jnp.pad(params["lm_w"], ((0, 0), (0, pad)))
    lm_b = jnp.pad(params["lm_b"], ((0, pad),))

    return {
        "w1a": w1[0:S1].astype(jnp.bfloat16), "w1b": w1[S1:K1].astype(jnp.bfloat16),
        "b1": conv1["b"][None, :],
        "gn_g": conv1["gn_g"][None, :], "gn_b": conv1["gn_b"][None, :],
        "w2": w2cat.astype(jnp.bfloat16), "b2": conv2["b"][None, :],
        "fp_ln_g": params["fp_ln_g"][None, :], "fp_ln_b": params["fp_ln_b"][None, :],
        "fp_w": params["fp_w"].astype(jnp.bfloat16), "fp_b": params["fp_b"][None, :],
        "enc_ln_g": params["enc_ln_g"][None, :], "enc_ln_b": params["enc_ln_b"][None, :],
        "wqkv": wqkv.astype(jnp.bfloat16), "bqkv": bqkv[:, None, :],
        "wo": stack("wo").astype(jnp.bfloat16), "bo": stack("bo")[:, None, :],
        "ln1_g": stack("ln1_g")[:, None, :], "ln1_b": stack("ln1_b")[:, None, :],
        "w1f": stack("w1").astype(jnp.bfloat16), "b1f": stack("b1")[:, None, :],
        "w2f": stack("w2").astype(jnp.bfloat16), "b2f": stack("b2")[:, None, :],
        "ln2_g": stack("ln2_g")[:, None, :], "ln2_b": stack("ln2_b")[:, None, :],
        "lm_w": lm_w.astype(jnp.bfloat16), "lm_b": lm_b[None, :],
    }


# ---------------------------------- forward ----------------------------------
def fine_tuned_wav2vec2_forward(params, input_values, attention_mask=None):
    """FineTunedWav2Vec2.forward: delegates to the (fine-tuned) wav2vec2-for-CTC forward."""
    # TODO(synk): attention_mask-based padding mask not implemented (None supported, as in main()).
    bsz, t_raw = input_values.shape
    # Stride-5 reshape of the raw audio (pure reshape, no gather); conv1 runs in-kernel.
    xr = input_values.reshape(bsz, t_raw // S1, S1)
    packed = pack_params(params)
    out = fused_wav2vec2(xr, packed)                               # (B*T2P, VOCAB_PAD)
    return out.reshape(bsz, T2P, VOCAB_PAD)[:, :T2, :VOCAB]


# ------------------------------- parameter init -------------------------------
def init_params(key):
    kit = iter(jax.random.split(key, 128))

    def dense(shape, std=0.02):
        return jax.random.normal(next(kit), shape, jnp.float32) * std

    conv_params = []
    for i, (c_in, c_out, kern, _) in enumerate(CONV_LAYERS):
        layer = {"w": dense((kern * c_in, c_out), std=1.0 / math.sqrt(kern * c_in)),
                 "b": jnp.zeros((c_out,), jnp.float32)}
        if i == 0:
            layer["gn_g"] = jnp.ones((c_out,), jnp.float32)
            layer["gn_b"] = jnp.zeros((c_out,), jnp.float32)
        conv_params.append(layer)

    layers = []
    for _ in range(N_LAYERS):
        layers.append({
            "wq": dense((HIDDEN, HIDDEN)), "bq": jnp.zeros((HIDDEN,), jnp.float32),
            "wk": dense((HIDDEN, HIDDEN)), "bk": jnp.zeros((HIDDEN,), jnp.float32),
            "wv": dense((HIDDEN, HIDDEN)), "bv": jnp.zeros((HIDDEN,), jnp.float32),
            "wo": dense((HIDDEN, HIDDEN)), "bo": jnp.zeros((HIDDEN,), jnp.float32),
            "ln1_g": jnp.ones((HIDDEN,), jnp.float32), "ln1_b": jnp.zeros((HIDDEN,), jnp.float32),
            "w1": dense((HIDDEN, FFN)), "b1": jnp.zeros((FFN,), jnp.float32),
            "w2": dense((FFN, HIDDEN)), "b2": jnp.zeros((HIDDEN,), jnp.float32),
            "ln2_g": jnp.ones((HIDDEN,), jnp.float32), "ln2_b": jnp.zeros((HIDDEN,), jnp.float32),
        })

    c_last = CONV_LAYERS[-1][1]
    return {
        "conv": conv_params,
        "fp_ln_g": jnp.ones((c_last,), jnp.float32), "fp_ln_b": jnp.zeros((c_last,), jnp.float32),
        "fp_w": dense((c_last, HIDDEN)), "fp_b": jnp.zeros((HIDDEN,), jnp.float32),
        "enc_ln_g": jnp.ones((HIDDEN,), jnp.float32), "enc_ln_b": jnp.zeros((HIDDEN,), jnp.float32),
        "layers": layers,
        "lm_w": dense((HIDDEN, VOCAB)), "lm_b": jnp.zeros((VOCAB,), jnp.float32),
    }


def apply_finetune_noise(params, key, strength=FINE_TUNE_STRENGTH):
    """FineTunedWav2Vec2.__init__: for every param with dim > 1,
    param += randn_like(param) * strength * param.std() (torch std => ddof=1)."""
    leaves, treedef = jax.tree_util.tree_flatten(params)
    keys = jax.random.split(key, len(leaves))
    new_leaves = []
    for p, k in zip(leaves, keys):
        if hasattr(p, "ndim") and p.ndim > 1:
            p = p + jax.random.normal(k, p.shape, p.dtype) * strength * jnp.std(p, ddof=1)
        new_leaves.append(p)
    return jax.tree_util.tree_unflatten(treedef, new_leaves)


# ------------------------------------ main ------------------------------------
if __name__ == "__main__":
    key = jax.random.PRNGKey(0)
    k_param, k_noise, k_input = jax.random.split(key, 3)

    params = init_params(k_param)
    params = apply_finetune_noise(params, k_noise, FINE_TUNE_STRENGTH)

    input_values = jax.random.normal(k_input, (B, T_RAW), jnp.float32)

    fwd = jax.jit(fine_tuned_wav2vec2_forward)
    logits = fwd(params, input_values)
    jax.block_until_ready(logits)

    assert logits.shape == (B, T2, VOCAB), logits.shape
    assert bool(jnp.all(jnp.isfinite(logits)))
    print("KERNEL_OK")
</pallas_src>

<mosaic_0001>
module attributes {stable_mosaic.version = 11 : i64} {
  func.func @_wav2vec2_kernel(%arg0: i32, %arg1: memref<2x80x5xf32, #tpu.memory_space<vmem>>, %arg2: memref<5x32xbf16, #tpu.memory_space<vmem>>, %arg3: memref<5x32xbf16, #tpu.memory_space<vmem>>, %arg4: memref<1x32xf32, #tpu.memory_space<vmem>>, %arg5: memref<1x32xf32, #tpu.memory_space<vmem>>, %arg6: memref<1x32xf32, #tpu.memory_space<vmem>>, %arg7: memref<32x96xbf16, #tpu.memory_space<vmem>>, %arg8: memref<1x32xf32, #tpu.memory_space<vmem>>, %arg9: memref<1x32xf32, #tpu.memory_space<vmem>>, %arg10: memref<1x32xf32, #tpu.memory_space<vmem>>, %arg11: memref<32x32xbf16, #tpu.memory_space<vmem>>, %arg12: memref<1x32xf32, #tpu.memory_space<vmem>>, %arg13: memref<1x32xf32, #tpu.memory_space<vmem>>, %arg14: memref<1x32xf32, #tpu.memory_space<vmem>>, %arg15: memref<2x32x96xbf16, #tpu.memory_space<vmem>>, %arg16: memref<2x1x96xf32, #tpu.memory_space<vmem>>, %arg17: memref<2x32x32xbf16, #tpu.memory_space<vmem>>, %arg18: memref<2x1x32xf32, #tpu.memory_space<vmem>>, %arg19: memref<2x1x32xf32, #tpu.memory_space<vmem>>, %arg20: memref<2x1x32xf32, #tpu.memory_space<vmem>>, %arg21: memref<2x32x64xbf16, #tpu.memory_space<vmem>>, %arg22: memref<2x1x64xf32, #tpu.memory_space<vmem>>, %arg23: memref<2x64x32xbf16, #tpu.memory_space<vmem>>, %arg24: memref<2x1x32xf32, #tpu.memory_space<vmem>>, %arg25: memref<2x1x32xf32, #tpu.memory_space<vmem>>, %arg26: memref<2x1x32xf32, #tpu.memory_space<vmem>>, %arg27: memref<32x128xbf16, #tpu.memory_space<vmem>>, %arg28: memref<1x128xf32, #tpu.memory_space<vmem>>, %arg29: memref<80x128xf32, #tpu.memory_space<vmem>>) attributes {dimension_semantics = [#tpu.dimension_semantics<arbitrary>], iteration_bounds = array<i64: 1>, scalar_prefetch = 0 : i64, scratch_operands = 0 : i64, tpu.core_type = #tpu.core_type<tc>, window_params = [{pipeline_mode = #tpu.pipeline_mode<synchronous>, transform_indices = @transform_0, window_bounds = array<i64: 2, 80, 5>}, {pipeline_mode = #tpu.pipeline_mode<synchronous>, transform_indices = @transform_1, window_bounds = array<i64: 5, 32>}, {pipeline_mode = #tpu.pipeline_mode<synchronous>, transform_indices = @transform_2, window_bounds = array<i64: 5, 32>}, {pipeline_mode = #tpu.pipeline_mode<synchronous>, transform_indices = @transform_3, window_bounds = array<i64: 1, 32>}, {pipeline_mode = #tpu.pipeline_mode<synchronous>, transform_indices = @transform_4, window_bounds = array<i64: 1, 32>}, {pipeline_mode = #tpu.pipeline_mode<synchronous>, transform_indices = @transform_5, window_bounds = array<i64: 1, 32>}, {pipeline_mode = #tpu.pipeline_mode<synchronous>, transform_indices = @transform_6, window_bounds = array<i64: 32, 96>}, {pipeline_mode = #tpu.pipeline_mode<synchronous>, transform_indices = @transform_7, window_bounds = array<i64: 1, 32>}, {pipeline_mode = #tpu.pipeline_mode<synchronous>, transform_indices = @transform_8, window_bounds = array<i64: 1, 32>}, {pipeline_mode = #tpu.pipeline_mode<synchronous>, transform_indices = @transform_9, window_bounds = array<i64: 1, 32>}, {pipeline_mode = #tpu.pipeline_mode<synchronous>, transform_indices = @transform_10, window_bounds = array<i64: 32, 32>}, {pipeline_mode = #tpu.pipeline_mode<synchronous>, transform_indices = @transform_11, window_bounds = array<i64: 1, 32>}, {pipeline_mode = #tpu.pipeline_mode<synchronous>, transform_indices = @transform_12, window_bounds = array<i64: 1, 32>}, {pipeline_mode = #tpu.pipeline_mode<synchronous>, transform_indices = @transform_13, window_bounds = array<i64: 1, 32>}, {pipeline_mode = #tpu.pipeline_mode<synchronous>, transform_indices = @transform_14, window_bounds = array<i64: 2, 32, 96>}, {pipeline_mode = #tpu.pipeline_mode<synchronous>, transform_indices = @transform_15, window_bounds = array<i64: 2, 1, 96>}, {pipeline_mode = #tpu.pipeline_mode<synchronous>, transform_indices = @transform_16, window_bounds = array<i64: 2, 32, 32>}, {pipeline_mode = #tpu.pipeline_mode<synchronous>, transform_indices = @transform_17, window_bounds = array<i64: 2, 1, 32>}, {pipeline_mode = #tpu.pipeline_mode<synchronous>, transform_indices = @transform_18, window_bounds = array<i64: 2, 1, 32>}, {pipeline_mode = #tpu.pipeline_mode<synchronous>, transform_indices = @transform_19, window_bounds = array<i64: 2, 1, 32>}, {pipeline_mode = #tpu.pipeline_mode<synchronous>, transform_indices = @transform_20, window_bounds = array<i64: 2, 32, 64>}, {pipeline_mode = #tpu.pipeline_mode<synchronous>, transform_indices = @transform_21, window_bounds = array<i64: 2, 1, 64>}, {pipeline_mode = #tpu.pipeline_mode<synchronous>, transform_indices = @transform_22, window_bounds = array<i64: 2, 64, 32>}, {pipeline_mode = #tpu.pipeline_mode<synchronous>, transform_indices = @transform_23, window_bounds = array<i64: 2, 1, 32>}, {pipeline_mode = #tpu.pipeline_mode<synchronous>, transform_indices = @transform_24, window_bounds = array<i64: 2, 1, 32>}, {pipeline_mode = #tpu.pipeline_mode<synchronous>, transform_indices = @transform_25, window_bounds = array<i64: 2, 1, 32>}, {pipeline_mode = #tpu.pipeline_mode<synchronous>, transform_indices = @transform_26, window_bounds = array<i64: 32, 128>}, {pipeline_mode = #tpu.pipeline_mode<synchronous>, transform_indices = @transform_27, window_bounds = array<i64: 1, 128>}, {pipeline_mode = #tpu.pipeline_mode<synchronous>, transform_indices = @transform_28, window_bounds = array<i64: 80, 128>}]} {
    %0 = tpu.iota {dimensions = array<i32: 0>} : vector<40x79xi32>
    %1 = tpu.iota {dimensions = array<i32: 1>} : vector<40x79xi32>
    %c2_i32 = arith.constant 2 : i32
    %2 = vector.broadcast %c2_i32 : i32 to vector<40x79xi32>
    %3 = arith.muli %2, %0 : vector<40x79xi32>
    %c0_i32 = arith.constant 0 : i32
    %4 = vector.broadcast %c0_i32 : i32 to vector<40x79xi32>
    %5 = arith.addi %3, %4 : vector<40x79xi32>
    %6 = arith.cmpi eq, %1, %5 : vector<40x79xi32>
    %7 = arith.extui %6 : vector<40x79xi1> to vector<40x79xi32>
    %8 = arith.sitofp %7 : vector<40x79xi32> to vector<40x79xf32>
    %9 = arith.truncf %8 : vector<40x79xf32> to vector<40x79xbf16>
    %c2_i32_0 = arith.constant 2 : i32
    %10 = vector.broadcast %c2_i32_0 : i32 to vector<40x79xi32>
    %11 = arith.muli %10, %0 : vector<40x79xi32>
    %c1_i32 = arith.constant 1 : i32
    %12 = vector.broadcast %c1_i32 : i32 to vector<40x79xi32>
    %13 = arith.addi %11, %12 : vector<40x79xi32>
    %14 = arith.cmpi eq, %1, %13 : vector<40x79xi32>
    %15 = arith.extui %14 : vector<40x79xi1> to vector<40x79xi32>
    %16 = arith.sitofp %15 : vector<40x79xi32> to vector<40x79xf32>
    %17 = arith.truncf %16 : vector<40x79xf32> to vector<40x79xbf16>
    %c2_i32_1 = arith.constant 2 : i32
    %18 = vector.broadcast %c2_i32_1 : i32 to vector<40x79xi32>
    %19 = arith.muli %18, %0 : vector<40x79xi32>
    %c2_i32_2 = arith.constant 2 : i32
    %20 = vector.broadcast %c2_i32_2 : i32 to vector<40x79xi32>
    %21 = arith.addi %19, %20 : vector<40x79xi32>
    %22 = arith.cmpi eq, %1, %21 : vector<40x79xi32>
    %23 = arith.extui %22 : vector<40x79xi1> to vector<40x79xi32>
    %24 = arith.sitofp %23 : vector<40x79xi32> to vector<40x79xf32>
    %25 = arith.truncf %24 : vector<40x79xf32> to vector<40x79xbf16>
    %c0 = arith.constant 0 : index
    %c0_3 = arith.constant 0 : index
    %c0_4 = arith.constant 0 : index
    %26 = vector.load %arg1[%c0, %c0_3, %c0_4] : memref<2x80x5xf32, #tpu.memory_space<vmem>>, vector<1x80x5xf32>
    %27 = vector.shape_cast %26 : vector<1x80x5xf32> to vector<80x5xf32>
    %28 = arith.truncf %27 : vector<80x5xf32> to vector<80x5xbf16>
    %c0_5 = arith.constant 0 : index
    %c0_6 = arith.constant 0 : index
    %29 = vector.load %arg2[%c0_5, %c0_6] : memref<5x32xbf16, #tpu.memory_space<vmem>>, vector<5x32xbf16>
    %cst = arith.constant dense<0.000000e+00> : vector<80x32xf32>
    %30 = tpu.matmul %28, %29, %cst {dimension_numbers = #tpu.dot_dimension_numbers<[1], [0], [0], [1], [0, 0, 1, 1], [], []>} : vector<80x5xbf16>, vector<5x32xbf16>, vector<80x32xf32> -> vector<80x32xf32>
    %c0_7 = arith.constant 0 : index
    %c0_8 = arith.constant 0 : index
    %31 = vector.load %arg3[%c0_7, %c0_8] : memref<5x32xbf16, #tpu.memory_space<vmem>>, vector<5x32xbf16>
    %cst_9 = arith.constant dense<0.000000e+00> : vector<80x32xf32>
    %32 = tpu.matmul %28, %31, %cst_9 {dimension_numbers = #tpu.dot_dimension_numbers<[1], [0], [0], [1], [0, 0, 1, 1], [], []>} : vector<80x5xbf16>, vector<5x32xbf16>, vector<80x32xf32> -> vector<80x32xf32>
    %33 = vector.extract_strided_slice %30 {offsets = [0, 0], sizes = [79, 32], strides = [1, 1]} : vector<80x32xf32> to vector<79x32xf32>
    %34 = vector.extract_strided_slice %32 {offsets = [1, 0], sizes = [79, 32], strides = [1, 1]} : vector<80x32xf32> to vector<79x32xf32>
    %35 = arith.addf %33, %34 : vector<79x32xf32>
    %c0_10 = arith.constant 0 : index
    %c0_11 = arith.constant 0 : index
    %36 = vector.load %arg4[%c0_10, %c0_11] : memref<1x32xf32, #tpu.memory_space<vmem>>, vector<1x32xf32>
    %37 = vector.broadcast %36 : vector<1x32xf32> to vector<79x32xf32>
    %38 = arith.addf %35, %37 : vector<79x32xf32>
    %cst_12 = arith.constant dense<0.000000e+00> : vector<32xf32>
    %39 = vector.multi_reduction <add>, %38, %cst_12 [0] : vector<79x32xf32> to vector<32xf32>
    %40 = vector.shape_cast %39 : vector<32xf32> to vector<1x32xf32>
    %cst_13 = arith.constant 7.900000e+01 : f32
    %41 = vector.broadcast %cst_13 : f32 to vector<1x32xf32>
    %42 = arith.divf %40, %41 : vector<1x32xf32>
    %43 = vector.broadcast %42 : vector<1x32xf32> to vector<79x32xf32>
    %44 = arith.subf %38, %43 : vector<79x32xf32>
    %45 = arith.mulf %44, %44 : vector<79x32xf32>
    %cst_14 = arith.constant dense<0.000000e+00> : vector<32xf32>
    %46 = vector.multi_reduction <add>, %45, %cst_14 [0] : vector<79x32xf32> to vector<32xf32>
    %47 = vector.shape_cast %46 : vector<32xf32> to vector<1x32xf32>
    %cst_15 = arith.constant 7.900000e+01 : f32
    %48 = vector.broadcast %cst_15 : f32 to vector<1x32xf32>
    %49 = arith.divf %47, %48 : vector<1x32xf32>
    %50 = vector.broadcast %42 : vector<1x32xf32> to vector<79x32xf32>
    %51 = arith.subf %38, %50 : vector<79x32xf32>
    %cst_16 = arith.constant 9.99999974E-6 : f32
    %52 = vector.broadcast %cst_16 : f32 to vector<1x32xf32>
    %53 = arith.addf %49, %52 : vector<1x32xf32>
    %54 = math.rsqrt %53 : vector<1x32xf32>
    %55 = vector.broadcast %54 : vector<1x32xf32> to vector<79x32xf32>
    %56 = arith.mulf %51, %55 : vector<79x32xf32>
    %c0_17 = arith.constant 0 : index
    %c0_18 = arith.constant 0 : index
    %57 = vector.load %arg5[%c0_17, %c0_18] : memref<1x32xf32, #tpu.memory_space<vmem>>, vector<1x32xf32>
    %58 = vector.broadcast %57 : vector<1x32xf32> to vector<79x32xf32>
    %59 = arith.mulf %56, %58 : vector<79x32xf32>
    %c0_19 = arith.constant 0 : index
    %c0_20 = arith.constant 0 : index
    %60 = vector.load %arg6[%c0_19, %c0_20] : memref<1x32xf32, #tpu.memory_space<vmem>>, vector<1x32xf32>
    %61 = vector.broadcast %60 : vector<1x32xf32> to vector<79x32xf32>
    %62 = arith.addf %59, %61 : vector<79x32xf32>
    %63 = arith.mulf %62, %62 : vector<79x32xf32>
    %64 = arith.mulf %62, %63 : vector<79x32xf32>
    %cst_21 = arith.constant 4.471500e-02 : f32
    %65 = vector.broadcast %cst_21 : f32 to vector<79x32xf32>
    %66 = arith.mulf %65, %64 : vector<79x32xf32>
    %67 = arith.addf %62, %66 : vector<79x32xf32>
    %cst_22 = arith.constant 0.797884583 : f32
    %68 = vector.broadcast %cst_22 : f32 to vector<79x32xf32>
    %69 = arith.mulf %68, %67 : vector<79x32xf32>
    %70 = math.tanh %69 : vector<79x32xf32>
    %cst_23 = arith.constant 1.000000e+00 : f32
    %71 = vector.broadcast %cst_23 : f32 to vector<79x32xf32>
    %72 = arith.addf %71, %70 : vector<79x32xf32>
    %cst_24 = arith.constant 5.000000e-01 : f32
    %73 = vector.broadcast %cst_24 : f32 to vector<79x32xf32>
    %74 = arith.mulf %73, %72 : vector<79x32xf32>
    %75 = arith.mulf %62, %74 : vector<79x32xf32>
    %76 = arith.truncf %75 : vector<79x32xf32> to vector<79x32xbf16>
    %c0_25 = arith.constant 0 : index
    %c0_26 = arith.constant 0 : index
    %77 = vector.load %arg7[%c0_25, %c0_26] : memref<32x96xbf16, #tpu.memory_space<vmem>>, vector<32x96xbf16>
    %cst_27 = arith.constant dense<0.000000e+00> : vector<79x96xf32>
    %78 = tpu.matmul %76, %77, %cst_27 {dimension_numbers = #tpu.dot_dimension_numbers<[1], [0], [0], [1], [0, 0, 1, 1], [], []>} : vector<79x32xbf16>, vector<32x96xbf16>, vector<79x96xf32> -> vector<79x96xf32>
    %79 = arith.truncf %78 : vector<79x96xf32> to vector<79x96xbf16>
    %c0_28 = arith.constant 0 : index
    %c0_29 = arith.constant 0 : index
    %80 = vector.load %arg8[%c0_28, %c0_29] : memref<1x32xf32, #tpu.memory_space<vmem>>, vector<1x32xf32>
    %81 = vector.extract_strided_slice %79 {offsets = [0, 0], sizes = [79, 32], strides = [1, 1]} : vector<79x96xbf16> to vector<79x32xbf16>
    %cst_30 = arith.constant dense<0.000000e+00> : vector<40x32xf32>
    %82 = tpu.matmul %9, %81, %cst_30 {dimension_numbers = #tpu.dot_dimension_numbers<[1], [0], [0], [1], [0, 0, 1, 1], [], []>} : vector<40x79xbf16>, vector<79x32xbf16>, vector<40x32xf32> -> vector<40x32xf32>
    %83 = vector.broadcast %80 : vector<1x32xf32> to vector<40x32xf32>
    %84 = arith.addf %83, %82 : vector<40x32xf32>
    %85 = vector.extract_strided_slice %79 {offsets = [0, 32], sizes = [79, 32], strides = [1, 1]} : vector<79x96xbf16> to vector<79x32xbf16>
    %cst_31 = arith.constant dense<0.000000e+00> : vector<40x32xf32>
    %86 = tpu.matmul %17, %85, %cst_31 {dimension_numbers = #tpu.dot_dimension_numbers<[1], [0], [0], [1], [0, 0, 1, 1], [], []>} : vector<40x79xbf16>, vector<79x32xbf16>, vector<40x32xf32> -> vector<40x32xf32>
    %87 = arith.addf %84, %86 : vector<40x32xf32>
    %88 = vector.extract_strided_slice %79 {offsets = [0, 64], sizes = [79, 32], strides = [1, 1]} : vector<79x96xbf16> to vector<79x32xbf16>
    %cst_32 = arith.constant dense<0.000000e+00> : vector<40x32xf32>
    %89 = tpu.matmul %25, %88, %cst_32 {dimension_numbers = #tpu.dot_dimension_numbers<[1], [0], [0], [1], [0, 0, 1, 1], [], []>} : vector<40x79xbf16>, vector<79x32xbf16>, vector<40x32xf32> -> vector<40x32xf32>
    %90 = arith.addf %87, %89 : vector<40x32xf32>
    %91 = arith.mulf %90, %90 : vector<40x32xf32>
    %92 = arith.mulf %90, %91 : vector<40x32xf32>
    %cst_33 = arith.constant 4.471500e-02 : f32
    %93 = vector.broadcast %cst_33 : f32 to vector<40x32xf32>
    %94 = arith.mulf %93, %92 : vector<40x32xf32>
    %95 = arith.addf %90, %94 : vector<40x32xf32>
    %cst_34 = arith.constant 0.797884583 : f32
    %96 = vector.broadcast %cst_34 : f32 to vector<40x32xf32>
    %97 = arith.mulf %96, %95 : vector<40x32xf32>
    %98 = math.tanh %97 : vector<40x32xf32>
    %cst_35 = arith.constant 1.000000e+00 : f32
    %99 = vector.broadcast %cst_35 : f32 to vector<40x32xf32>
    %100 = arith.addf %99, %98 : vector<40x32xf32>
    %cst_36 = arith.constant 5.000000e-01 : f32
    %101 = vector.broadcast %cst_36 : f32 to vector<40x32xf32>
    %102 = arith.mulf %101, %100 : vector<40x32xf32>
    %103 = arith.mulf %90, %102 : vector<40x32xf32>
    %c1 = arith.constant 1 : index
    %c0_37 = arith.constant 0 : index
    %c0_38 = arith.constant 0 : index
    %104 = vector.load %arg1[%c1, %c0_37, %c0_38] : memref<2x80x5xf32, #tpu.memory_space<vmem>>, vector<1x80x5xf32>
    %105 = vector.shape_cast %104 : vector<1x80x5xf32> to vector<80x5xf32>
    %106 = arith.truncf %105 : vector<80x5xf32> to vector<80x5xbf16>
    %c0_39 = arith.constant 0 : index
    %c0_40 = arith.constant 0 : index
    %107 = vector.load %arg2[%c0_39, %c0_40] : memref<5x32xbf16, #tpu.memory_space<vmem>>, vector<5x32xbf16>
    %cst_41 = arith.constant dense<0.000000e+00> : vector<80x32xf32>
    %108 = tpu.matmul %106, %107, %cst_41 {dimension_numbers = #tpu.dot_dimension_numbers<[1], [0], [0], [1], [0, 0, 1, 1], [], []>} : vector<80x5xbf16>, vector<5x32xbf16>, vector<80x32xf32> -> vector<80x32xf32>
    %c0_42 = arith.constant 0 : index
    %c0_43 = arith.constant 0 : index
    %109 = vector.load %arg3[%c0_42, %c0_43] : memref<5x32xbf16, #tpu.memory_space<vmem>>, vector<5x32xbf16>
    %cst_44 = arith.constant dense<0.000000e+00> : vector<80x32xf32>
    %110 = tpu.matmul %106, %109, %cst_44 {dimension_numbers = #tpu.dot_dimension_numbers<[1], [0], [0], [1], [0, 0, 1, 1], [], []>} : vector<80x5xbf16>, vector<5x32xbf16>, vector<80x32xf32> -> vector<80x32xf32>
    %111 = vector.extract_strided_slice %108 {offsets = [0, 0], sizes = [79, 32], strides = [1, 1]} : vector<80x32xf32> to vector<79x32xf32>
    %112 = vector.extract_strided_slice %110 {offsets = [1, 0], sizes = [79, 32], strides = [1, 1]} : vector<80x32xf32> to vector<79x32xf32>
    %113 = arith.addf %111, %112 : vector<79x32xf32>
    %c0_45 = arith.constant 0 : index
    %c0_46 = arith.constant 0 : index
    %114 = vector.load %arg4[%c0_45, %c0_46] : memref<1x32xf32, #tpu.memory_space<vmem>>, vector<1x32xf32>
    %115 = vector.broadcast %114 : vector<1x32xf32> to vector<79x32xf32>
    %116 = arith.addf %113, %115 : vector<79x32xf32>
    %cst_47 = arith.constant dense<0.000000e+00> : vector<32xf32>
    %117 = vector.multi_reduction <add>, %116, %cst_47 [0] : vector<79x32xf32> to vector<32xf32>
    %118 = vector.shape_cast %117 : vector<32xf32> to vector<1x32xf32>
    %cst_48 = arith.constant 7.900000e+01 : f32
    %119 = vector.broadcast %cst_48 : f32 to vector<1x32xf32>
    %120 = arith.divf %118, %119 : vector<1x32xf32>
    %121 = vector.broadcast %120 : vector<1x32xf32> to vector<79x32xf32>
    %122 = arith.subf %116, %121 : vector<79x32xf32>
    %123 = arith.mulf %122, %122 : vector<79x32xf32>
    %cst_49 = arith.constant dense<0.000000e+00> : vector<32xf32>
    %124 = vector.multi_reduction <add>, %123, %cst_49 [0] : vector<79x32xf32> to vector<32xf32>
    %125 = vector.shape_cast %124 : vector<32xf32> to vector<1x32xf32>
    %cst_50 = arith.constant 7.900000e+01 : f32
    %126 = vector.broadcast %cst_50 : f32 to vector<1x32xf32>
    %127 = arith.divf %125, %126 : vector<1x32xf32>
    %128 = vector.broadcast %120 : vector<1x32xf32> to vector<79x32xf32>
    %129 = arith.subf %116, %128 : vector<79x32xf32>
    %cst_51 = arith.constant 9.99999974E-6 : f32
    %130 = vector.broadcast %cst_51 : f32 to vector<1x32xf32>
    %131 = arith.addf %127, %130 : vector<1x32xf32>
    %132 = math.rsqrt %131 : vector<1x32xf32>
    %133 = vector.broadcast %132 : vector<1x32xf32> to vector<79x32xf32>
    %134 = arith.mulf %129, %133 : vector<79x32xf32>
    %c0_52 = arith.constant 0 : index
    %c0_53 = arith.constant 0 : index
    %135 = vector.load %arg5[%c0_52, %c0_53] : memref<1x32xf32, #tpu.memory_space<vmem>>, vector<1x32xf32>
    %136 = vector.broadcast %135 : vector<1x32xf32> to vector<79x32xf32>
    %137 = arith.mulf %134, %136 : vector<79x32xf32>
    %c0_54 = arith.constant 0 : index
    %c0_55 = arith.constant 0 : index
    %138 = vector.load %arg6[%c0_54, %c0_55] : memref<1x32xf32, #tpu.memory_space<vmem>>, vector<1x32xf32>
    %139 = vector.broadcast %138 : vector<1x32xf32> to vector<79x32xf32>
    %140 = arith.addf %137, %139 : vector<79x32xf32>
    %141 = arith.mulf %140, %140 : vector<79x32xf32>
    %142 = arith.mulf %140, %141 : vector<79x32xf32>
    %cst_56 = arith.constant 4.471500e-02 : f32
    %143 = vector.broadcast %cst_56 : f32 to vector<79x32xf32>
    %144 = arith.mulf %143, %142 : vector<79x32xf32>
    %145 = arith.addf %140, %144 : vector<79x32xf32>
    %cst_57 = arith.constant 0.797884583 : f32
    %146 = vector.broadcast %cst_57 : f32 to vector<79x32xf32>
    %147 = arith.mulf %146, %145 : vector<79x32xf32>
    %148 = math.tanh %147 : vector<79x32xf32>
    %cst_58 = arith.constant 1.000000e+00 : f32
    %149 = vector.broadcast %cst_58 : f32 to vector<79x32xf32>
    %150 = arith.addf %149, %148 : vector<79x32xf32>
    %cst_59 = arith.constant 5.000000e-01 : f32
    %151 = vector.broadcast %cst_59 : f32 to vector<79x32xf32>
    %152 = arith.mulf %151, %150 : vector<79x32xf32>
    %153 = arith.mulf %140, %152 : vector<79x32xf32>
    %154 = arith.truncf %153 : vector<79x32xf32> to vector<79x32xbf16>
    %c0_60 = arith.constant 0 : index
    %c0_61 = arith.constant 0 : index
    %155 = vector.load %arg7[%c0_60, %c0_61] : memref<32x96xbf16, #tpu.memory_space<vmem>>, vector<32x96xbf16>
    %cst_62 = arith.constant dense<0.000000e+00> : vector<79x96xf32>
    %156 = tpu.matmul %154, %155, %cst_62 {dimension_numbers = #tpu.dot_dimension_numbers<[1], [0], [0], [1], [0, 0, 1, 1], [], []>} : vector<79x32xbf16>, vector<32x96xbf16>, vector<79x96xf32> -> vector<79x96xf32>
    %157 = arith.truncf %156 : vector<79x96xf32> to vector<79x96xbf16>
    %c0_63 = arith.constant 0 : index
    %c0_64 = arith.constant 0 : index
    %158 = vector.load %arg8[%c0_63, %c0_64] : memref<1x32xf32, #tpu.memory_space<vmem>>, vector<1x32xf32>
    %159 = vector.extract_strided_slice %157 {offsets = [0, 0], sizes = [79, 32], strides = [1, 1]} : vector<79x96xbf16> to vector<79x32xbf16>
    %cst_65 = arith.constant dense<0.000000e+00> : vector<40x32xf32>
    %160 = tpu.matmul %9, %159, %cst_65 {dimension_numbers = #tpu.dot_dimension_numbers<[1], [0], [0], [1], [0, 0, 1, 1], [], []>} : vector<40x79xbf16>, vector<79x32xbf16>, vector<40x32xf32> -> vector<40x32xf32>
    %161 = vector.broadcast %158 : vector<1x32xf32> to vector<40x32xf32>
    %162 = arith.addf %161, %160 : vector<40x32xf32>
    %163 = vector.extract_strided_slice %157 {offsets = [0, 32], sizes = [79, 32], strides = [1, 1]} : vector<79x96xbf16> to vector<79x32xbf16>
    %cst_66 = arith.constant dense<0.000000e+00> : vector<40x32xf32>
    %164 = tpu.matmul %17, %163, %cst_66 {dimension_numbers = #tpu.dot_dimension_numbers<[1], [0], [0], [1], [0, 0, 1, 1], [], []>} : vector<40x79xbf16>, vector<79x32xbf16>, vector<40x32xf32> -> vector<40x32xf32>
    %165 = arith.addf %162, %164 : vector<40x32xf32>
    %166 = vector.extract_strided_slice %157 {offsets = [0, 64], sizes = [79, 32], strides = [1, 1]} : vector<79x96xbf16> to vector<79x32xbf16>
    %cst_67 = arith.constant dense<0.000000e+00> : vector<40x32xf32>
    %167 = tpu.matmul %25, %166, %cst_67 {dimension_numbers = #tpu.dot_dimension_numbers<[1], [0], [0], [1], [0, 0, 1, 1], [], []>} : vector<40x79xbf16>, vector<79x32xbf16>, vector<40x32xf32> -> vector<40x32xf32>
    %168 = arith.addf %165, %167 : vector<40x32xf32>
    %169 = arith.mulf %168, %168 : vector<40x32xf32>
    %170 = arith.mulf %168, %169 : vector<40x32xf32>
    %cst_68 = arith.constant 4.471500e-02 : f32
    %171 = vector.broadcast %cst_68 : f32 to vector<40x32xf32>
    %172 = arith.mulf %171, %170 : vector<40x32xf32>
    %173 = arith.addf %168, %172 : vector<40x32xf32>
    %cst_69 = arith.constant 0.797884583 : f32
    %174 = vector.broadcast %cst_69 : f32 to vector<40x32xf32>
    %175 = arith.mulf %174, %173 : vector<40x32xf32>
    %176 = math.tanh %175 : vector<40x32xf32>
    %cst_70 = arith.constant 1.000000e+00 : f32
    %177 = vector.broadcast %cst_70 : f32 to vector<40x32xf32>
    %178 = arith.addf %177, %176 : vector<40x32xf32>
    %cst_71 = arith.constant 5.000000e-01 : f32
    %179 = vector.broadcast %cst_71 : f32 to vector<40x32xf32>
    %180 = arith.mulf %179, %178 : vector<40x32xf32>
    %181 = arith.mulf %168, %180 : vector<40x32xf32>
    %182 = tpu.concatenate %103, %181 in 0 : vector<40x32xf32>, vector<40x32xf32> -> vector<80x32xf32>
    %c0_72 = arith.constant 0 : index
    %c0_73 = arith.constant 0 : index
    %183 = vector.load %arg9[%c0_72, %c0_73] : memref<1x32xf32, #tpu.memory_space<vmem>>, vector<1x32xf32>
    %c0_74 = arith.constant 0 : index
    %c0_75 = arith.constant 0 : index
    %184 = vector.load %arg10[%c0_74, %c0_75] : memref<1x32xf32, #tpu.memory_space<vmem>>, vector<1x32xf32>
    %cst_76 = arith.constant dense<0.000000e+00> : vector<80xf32>
    %185 = vector.multi_reduction <add>, %182, %cst_76 [1] : vector<80x32xf32> to vector<80xf32>
    %186 = vector.shape_cast %185 : vector<80xf32> to vector<80x1xf32>
    %cst_77 = arith.constant 3.200000e+01 : f32
    %187 = vector.broadcast %cst_77 : f32 to vector<80x1xf32>
    %188 = arith.divf %186, %187 : vector<80x1xf32>
    %189 = vector.broadcast %188 : vector<80x1xf32> to vector<80x32xf32>
    %190 = arith.subf %182, %189 : vector<80x32xf32>
    %191 = arith.mulf %190, %190 : vector<80x32xf32>
    %cst_78 = arith.constant dense<0.000000e+00> : vector<80xf32>
    %192 = vector.multi_reduction <add>, %191, %cst_78 [1] : vector<80x32xf32> to vector<80xf32>
    %193 = vector.shape_cast %192 : vector<80xf32> to vector<80x1xf32>
    %cst_79 = arith.constant 3.200000e+01 : f32
    %194 = vector.broadcast %cst_79 : f32 to vector<80x1xf32>
    %195 = arith.divf %193, %194 : vector<80x1xf32>
    %196 = vector.broadcast %188 : vector<80x1xf32> to vector<80x32xf32>
    %197 = arith.subf %182, %196 : vector<80x32xf32>
    %cst_80 = arith.constant 9.99999974E-6 : f32
    %198 = vector.broadcast %cst_80 : f32 to vector<80x1xf32>
    %199 = arith.addf %195, %198 : vector<80x1xf32>
    %200 = math.rsqrt %199 : vector<80x1xf32>
    %201 = vector.broadcast %200 : vector<80x1xf32> to vector<80x32xf32>
    %202 = arith.mulf %197, %201 : vector<80x32xf32>
    %203 = vector.broadcast %183 : vector<1x32xf32> to vector<80x32xf32>
    %204 = arith.mulf %202, %203 : vector<80x32xf32>
    %205 = vector.broadcast %184 : vector<1x32xf32> to vector<80x32xf32>
    %206 = arith.addf %204, %205 : vector<80x32xf32>
    %207 = arith.truncf %206 : vector<80x32xf32> to vector<80x32xbf16>
    %c0_81 = arith.constant 0 : index
    %c0_82 = arith.constant 0 : index
    %208 = vector.load %arg11[%c0_81, %c0_82] : memref<32x32xbf16, #tpu.memory_space<vmem>>, vector<32x32xbf16>
    %c0_83 = arith.constant 0 : index
    %c0_84 = arith.constant 0 : index
    %209 = vector.load %arg12[%c0_83, %c0_84] : memref<1x32xf32, #tpu.memory_space<vmem>>, vector<1x32xf32>
    %cst_85 = arith.constant dense<0.000000e+00> : vector<80x32xf32>
    %210 = tpu.matmul %207, %208, %cst_85 {dimension_numbers = #tpu.dot_dimension_numbers<[1], [0], [0], [1], [0, 0, 1, 1], [], []>} : vector<80x32xbf16>, vector<32x32xbf16>, vector<80x32xf32> -> vector<80x32xf32>
    %211 = vector.broadcast %209 : vector<1x32xf32> to vector<80x32xf32>
    %212 = arith.addf %210, %211 : vector<80x32xf32>
    %c0_86 = arith.constant 0 : index
    %c0_87 = arith.constant 0 : index
    %213 = vector.load %arg13[%c0_86, %c0_87] : memref<1x32xf32, #tpu.memory_space<vmem>>, vector<1x32xf32>
    %c0_88 = arith.constant 0 : index
    %c0_89 = arith.constant 0 : index
    %214 = vector.load %arg14[%c0_88, %c0_89] : memref<1x32xf32, #tpu.memory_space<vmem>>, vector<1x32xf32>
    %cst_90 = arith.constant dense<0.000000e+00> : vector<80xf32>
    %215 = vector.multi_reduction <add>, %212, %cst_90 [1] : vector<80x32xf32> to vector<80xf32>
    %216 = vector.shape_cast %215 : vector<80xf32> to vector<80x1xf32>
    %cst_91 = arith.constant 3.200000e+01 : f32
    %217 = vector.broadcast %cst_91 : f32 to vector<80x1xf32>
    %218 = arith.divf %216, %217 : vector<80x1xf32>
    %219 = vector.broadcast %218 : vector<80x1xf32> to vector<80x32xf32>
    %220 = arith.subf %212, %219 : vector<80x32xf32>
    %221 = arith.mulf %220, %220 : vector<80x32xf32>
    %cst_92 = arith.constant dense<0.000000e+00> : vector<80xf32>
    %222 = vector.multi_reduction <add>, %221, %cst_92 [1] : vector<80x32xf32> to vector<80xf32>
    %223 = vector.shape_cast %222 : vector<80xf32> to vector<80x1xf32>
    %cst_93 = arith.constant 3.200000e+01 : f32
    %224 = vector.broadcast %cst_93 : f32 to vector<80x1xf32>
    %225 = arith.divf %223, %224 : vector<80x1xf32>
    %226 = vector.broadcast %218 : vector<80x1xf32> to vector<80x32xf32>
    %227 = arith.subf %212, %226 : vector<80x32xf32>
    %cst_94 = arith.constant 9.99999974E-6 : f32
    %228 = vector.broadcast %cst_94 : f32 to vector<80x1xf32>
    %229 = arith.addf %225, %228 : vector<80x1xf32>
    %230 = math.rsqrt %229 : vector<80x1xf32>
    %231 = vector.broadcast %230 : vector<80x1xf32> to vector<80x32xf32>
    %232 = arith.mulf %227, %231 : vector<80x32xf32>
    %233 = vector.broadcast %213 : vector<1x32xf32> to vector<80x32xf32>
    %234 = arith.mulf %232, %233 : vector<80x32xf32>
    %235 = vector.broadcast %214 : vector<1x32xf32> to vector<80x32xf32>
    %236 = arith.addf %234, %235 : vector<80x32xf32>
    %237 = tpu.iota {dimensions = array<i32: 2>} : vector<1x1x40xi32>
    %c39_i32 = arith.constant 39 : i32
    %238 = vector.broadcast %c39_i32 : i32 to vector<1x1x40xi32>
    %239 = arith.cmpi slt, %237, %238 : vector<1x1x40xi32>
    %cst_95 = arith.constant 0.000000e+00 : f32
    %cst_96 = arith.constant -1.000000e+30 : f32
    %240 = vector.broadcast %cst_95 : f32 to vector<1x1x40xf32>
    %241 = vector.broadcast %cst_96 : f32 to vector<1x1x40xf32>
    %242 = arith.select %239, %240, %241 : vector<1x1x40xi1>, vector<1x1x40xf32>
    %243 = arith.truncf %236 : vector<80x32xf32> to vector<80x32xbf16>
    %c0_97 = arith.constant 0 : index
    %c0_98 = arith.constant 0 : index
    %c0_99 = arith.constant 0 : index
    %244 = vector.load %arg15[%c0_97, %c0_98, %c0_99] : memref<2x32x96xbf16, #tpu.memory_space<vmem>>, vector<1x32x96xbf16>
    %245 = vector.shape_cast %244 : vector<1x32x96xbf16> to vector<32x96xbf16>
    %c0_100 = arith.constant 0 : index
    %c0_101 = arith.constant 0 : index
    %c0_102 = arith.constant 0 : index
    %246 = vector.load %arg16[%c0_100, %c0_101, %c0_102] : memref<2x1x96xf32, #tpu.memory_space<vmem>>, vector<1x1x96xf32>
    %247 = vector.shape_cast %246 : vector<1x1x96xf32> to vector<1x96xf32>
    %cst_103 = arith.constant dense<0.000000e+00> : vector<80x96xf32>
    %248 = tpu.matmul %243, %245, %cst_103 {dimension_numbers = #tpu.dot_dimension_numbers<[1], [0], [0], [1], [0, 0, 1, 1], [], []>} : vector<80x32xbf16>, vector<32x96xbf16>, vector<80x96xf32> -> vector<80x96xf32>
    %249 = vector.broadcast %247 : vector<1x96xf32> to vector<80x96xf32>
    %250 = arith.addf %248, %249 : vector<80x96xf32>
    %251 = vector.shape_cast %250 : vector<80x96xf32> to vector<2x40x96xf32>
    %252 = tpu.transpose %251, [0, 2, 1] : vector<2x40x96xf32> -> vector<2x96x40xf32>
    %253 = arith.truncf %252 : vector<2x96x40xf32> to vector<2x96x40xbf16>
    %254 = vector.extract_strided_slice %253 {offsets = [0, 0, 0], sizes = [2, 32, 40], strides = [1, 1, 1]} : vector<2x96x40xbf16> to vector<2x32x40xbf16>
    %255 = vector.shape_cast %254 : vector<2x32x40xbf16> to vector<8x8x40xbf16>
    %256 = vector.extract_strided_slice %253 {offsets = [0, 32, 0], sizes = [2, 32, 40], strides = [1, 1, 1]} : vector<2x96x40xbf16> to vector<2x32x40xbf16>
    %257 = vector.shape_cast %256 : vector<2x32x40xbf16> to vector<8x8x40xbf16>
    %258 = vector.extract_strided_slice %253 {offsets = [0, 64, 0], sizes = [2, 32, 40], strides = [1, 1, 1]} : vector<2x96x40xbf16> to vector<2x32x40xbf16>
    %259 = vector.shape_cast %258 : vector<2x32x40xbf16> to vector<8x8x40xbf16>
    %cst_104 = arith.constant dense<0.000000e+00> : vector<8x40x40xf32>
    %260 = tpu.matmul %255, %257, %cst_104 {dimension_numbers = #tpu.dot_dimension_numbers<[1], [1], [2], [2], [0, 0, 0, 2, 1, 2], [0], [0]>} : vector<8x8x40xbf16>, vector<8x8x40xbf16>, vector<8x40x40xf32> -> vector<8x40x40xf32>
    %cst_105 = arith.constant 0.353553385 : f32
    %261 = vector.broadcast %cst_105 : f32 to vector<8x40x40xf32>
    %262 = arith.mulf %260, %261 : vector<8x40x40xf32>
    %263 = vector.broadcast %242 : vector<1x1x40xf32> to vector<8x40x40xf32>
    %264 = arith.addf %262, %263 : vector<8x40x40xf32>
    %cst_106 = arith.constant dense<0xFF800000> : vector<8x40xf32>
    %265 = vector.multi_reduction <maximumf>, %264, %cst_106 [2] : vector<8x40x40xf32> to vector<8x40xf32>
    %266 = vector.shape_cast %265 : vector<8x40xf32> to vector<8x40x1xf32>
    %267 = vector.broadcast %266 : vector<8x40x1xf32> to vector<8x40x40xf32>
    %268 = arith.subf %264, %267 : vector<8x40x40xf32>
    %269 = math.exp %268 : vector<8x40x40xf32>
    %cst_107 = arith.constant dense<0.000000e+00> : vector<8x40xf32>
    %270 = vector.multi_reduction <add>, %269, %cst_107 [2] : vector<8x40x40xf32> to vector<8x40xf32>
    %271 = vector.shape_cast %270 : vector<8x40xf32> to vector<8x40x1xf32>
    %272 = tpu.reciprocal %271 {approx = true} : vector<8x40x1xf32> -> vector<8x40x1xf32>
    %273 = vector.broadcast %272 : vector<8x40x1xf32> to vector<8x40x40xf32>
    %274 = arith.mulf %269, %273 : vector<8x40x40xf32>
    %275 = arith.truncf %274 : vector<8x40x40xf32> to vector<8x40x40xbf16>
    %cst_108 = arith.constant dense<0.000000e+00> : vector<8x8x40xf32>
    %276 = tpu.matmul %259, %275, %cst_108 {dimension_numbers = #tpu.dot_dimension_numbers<[2], [2], [1], [1], [0, 0, 0, 1, 1, 1], [0], [0]>} : vector<8x8x40xbf16>, vector<8x40x40xbf16>, vector<8x8x40xf32> -> vector<8x8x40xf32>
    %277 = vector.shape_cast %276 : vector<8x8x40xf32> to vector<2x32x40xf32>
    %278 = tpu.transpose %277, [0, 2, 1] : vector<2x32x40xf32> -> vector<2x40x32xf32>
    %279 = vector.shape_cast %278 : vector<2x40x32xf32> to vector<80x32xf32>
    %280 = arith.truncf %279 : vector<80x32xf32> to vector<80x32xbf16>
    %c0_109 = arith.constant 0 : index
    %c0_110 = arith.constant 0 : index
    %c0_111 = arith.constant 0 : index
    %281 = vector.load %arg17[%c0_109, %c0_110, %c0_111] : memref<2x32x32xbf16, #tpu.memory_space<vmem>>, vector<1x32x32xbf16>
    %282 = vector.shape_cast %281 : vector<1x32x32xbf16> to vector<32x32xbf16>
    %c0_112 = arith.constant 0 : index
    %c0_113 = arith.constant 0 : index
    %c0_114 = arith.constant 0 : index
    %283 = vector.load %arg18[%c0_112, %c0_113, %c0_114] : memref<2x1x32xf32, #tpu.memory_space<vmem>>, vector<1x1x32xf32>
    %284 = vector.shape_cast %283 : vector<1x1x32xf32> to vector<1x32xf32>
    %cst_115 = arith.constant dense<0.000000e+00> : vector<80x32xf32>
    %285 = tpu.matmul %280, %282, %cst_115 {dimension_numbers = #tpu.dot_dimension_numbers<[1], [0], [0], [1], [0, 0, 1, 1], [], []>} : vector<80x32xbf16>, vector<32x32xbf16>, vector<80x32xf32> -> vector<80x32xf32>
    %286 = vector.broadcast %284 : vector<1x32xf32> to vector<80x32xf32>
    %287 = arith.addf %285, %286 : vector<80x32xf32>
    %288 = arith.addf %236, %287 : vector<80x32xf32>
    %c0_116 = arith.constant 0 : index
    %c0_117 = arith.constant 0 : index
    %c0_118 = arith.constant 0 : index
    %289 = vector.load %arg19[%c0_116, %c0_117, %c0_118] : memref<2x1x32xf32, #tpu.memory_space<vmem>>, vector<1x1x32xf32>
    %290 = vector.shape_cast %289 : vector<1x1x32xf32> to vector<1x32xf32>
    %c0_119 = arith.constant 0 : index
    %c0_120 = arith.constant 0 : index
    %c0_121 = arith.constant 0 : index
    %291 = vector.load %arg20[%c0_119, %c0_120, %c0_121] : memref<2x1x32xf32, #tpu.memory_space<vmem>>, vector<1x1x32xf32>
    %292 = vector.shape_cast %291 : vector<1x1x32xf32> to vector<1x32xf32>
    %cst_122 = arith.constant dense<0.000000e+00> : vector<80xf32>
    %293 = vector.multi_reduction <add>, %288, %cst_122 [1] : vector<80x32xf32> to vector<80xf32>
    %294 = vector.shape_cast %293 : vector<80xf32> to vector<80x1xf32>
    %cst_123 = arith.constant 3.200000e+01 : f32
    %295 = vector.broadcast %cst_123 : f32 to vector<80x1xf32>
    %296 = arith.divf %294, %295 : vector<80x1xf32>
    %297 = vector.broadcast %296 : vector<80x1xf32> to vector<80x32xf32>
    %298 = arith.subf %288, %297 : vector<80x32xf32>
    %299 = arith.mulf %298, %298 : vector<80x32xf32>
    %cst_124 = arith.constant dense<0.000000e+00> : vector<80xf32>
    %300 = vector.multi_reduction <add>, %299, %cst_124 [1] : vector<80x32xf32> to vector<80xf32>
    %301 = vector.shape_cast %300 : vector<80xf32> to vector<80x1xf32>
    %cst_125 = arith.constant 3.200000e+01 : f32
    %302 = vector.broadcast %cst_125 : f32 to vector<80x1xf32>
    %303 = arith.divf %301, %302 : vector<80x1xf32>
    %304 = vector.broadcast %296 : vector<80x1xf32> to vector<80x32xf32>
    %305 = arith.subf %288, %304 : vector<80x32xf32>
    %cst_126 = arith.constant 9.99999974E-6 : f32
    %306 = vector.broadcast %cst_126 : f32 to vector<80x1xf32>
    %307 = arith.addf %303, %306 : vector<80x1xf32>
    %308 = math.rsqrt %307 : vector<80x1xf32>
    %309 = vector.broadcast %308 : vector<80x1xf32> to vector<80x32xf32>
    %310 = arith.mulf %305, %309 : vector<80x32xf32>
    %311 = vector.broadcast %290 : vector<1x32xf32> to vector<80x32xf32>
    %312 = arith.mulf %310, %311 : vector<80x32xf32>
    %313 = vector.broadcast %292 : vector<1x32xf32> to vector<80x32xf32>
    %314 = arith.addf %312, %313 : vector<80x32xf32>
    %315 = arith.truncf %314 : vector<80x32xf32> to vector<80x32xbf16>
    %c0_127 = arith.constant 0 : index
    %c0_128 = arith.constant 0 : index
    %c0_129 = arith.constant 0 : index
    %316 = vector.load %arg21[%c0_127, %c0_128, %c0_129] : memref<2x32x64xbf16, #tpu.memory_space<vmem>>, vector<1x32x64xbf16>
    %317 = vector.shape_cast %316 : vector<1x32x64xbf16> to vector<32x64xbf16>
    %c0_130 = arith.constant 0 : index
    %c0_131 = arith.constant 0 : index
    %c0_132 = arith.constant 0 : index
    %318 = vector.load %arg22[%c0_130, %c0_131, %c0_132] : memref<2x1x64xf32, #tpu.memory_space<vmem>>, vector<1x1x64xf32>
    %319 = vector.shape_cast %318 : vector<1x1x64xf32> to vector<1x64xf32>
    %cst_133 = arith.constant dense<0.000000e+00> : vector<80x64xf32>
    %320 = tpu.matmul %315, %317, %cst_133 {dimension_numbers = #tpu.dot_dimension_numbers<[1], [0], [0], [1], [0, 0, 1, 1], [], []>} : vector<80x32xbf16>, vector<32x64xbf16>, vector<80x64xf32> -> vector<80x64xf32>
    %321 = vector.broadcast %319 : vector<1x64xf32> to vector<80x64xf32>
    %322 = arith.addf %320, %321 : vector<80x64xf32>
    %323 = arith.mulf %322, %322 : vector<80x64xf32>
    %324 = arith.mulf %322, %323 : vector<80x64xf32>
    %cst_134 = arith.constant 4.471500e-02 : f32
    %325 = vector.broadcast %cst_134 : f32 to vector<80x64xf32>
    %326 = arith.mulf %325, %324 : vector<80x64xf32>
    %327 = arith.addf %322, %326 : vector<80x64xf32>
    %cst_135 = arith.constant 0.797884583 : f32
    %328 = vector.broadcast %cst_135 : f32 to vector<80x64xf32>
    %329 = arith.mulf %328, %327 : vector<80x64xf32>
    %330 = math.tanh %329 : vector<80x64xf32>
    %cst_136 = arith.constant 1.000000e+00 : f32
    %331 = vector.broadcast %cst_136 : f32 to vector<80x64xf32>
    %332 = arith.addf %331, %330 : vector<80x64xf32>
    %cst_137 = arith.constant 5.000000e-01 : f32
    %333 = vector.broadcast %cst_137 : f32 to vector<80x64xf32>
    %334 = arith.mulf %333, %332 : vector<80x64xf32>
    %335 = arith.mulf %322, %334 : vector<80x64xf32>
    %336 = arith.truncf %335 : vector<80x64xf32> to vector<80x64xbf16>
    %c0_138 = arith.constant 0 : index
    %c0_139 = arith.constant 0 : index
    %c0_140 = arith.constant 0 : index
    %337 = vector.load %arg23[%c0_138, %c0_139, %c0_140] : memref<2x64x32xbf16, #tpu.memory_space<vmem>>, vector<1x64x32xbf16>
    %338 = vector.shape_cast %337 : vector<1x64x32xbf16> to vector<64x32xbf16>
    %c0_141 = arith.constant 0 : index
    %c0_142 = arith.constant 0 : index
    %c0_143 = arith.constant 0 : index
    %339 = vector.load %arg24[%c0_141, %c0_142, %c0_143] : memref<2x1x32xf32, #tpu.memory_space<vmem>>, vector<1x1x32xf32>
    %340 = vector.shape_cast %339 : vector<1x1x32xf32> to vector<1x32xf32>
    %cst_144 = arith.constant dense<0.000000e+00> : vector<80x32xf32>
    %341 = tpu.matmul %336, %338, %cst_144 {dimension_numbers = #tpu.dot_dimension_numbers<[1], [0], [0], [1], [0, 0, 1, 1], [], []>} : vector<80x64xbf16>, vector<64x32xbf16>, vector<80x32xf32> -> vector<80x32xf32>
    %342 = vector.broadcast %340 : vector<1x32xf32> to vector<80x32xf32>
    %343 = arith.addf %341, %342 : vector<80x32xf32>
    %344 = arith.addf %314, %343 : vector<80x32xf32>
    %c0_145 = arith.constant 0 : index
    %c0_146 = arith.constant 0 : index
    %c0_147 = arith.constant 0 : index
    %345 = vector.load %arg25[%c0_145, %c0_146, %c0_147] : memref<2x1x32xf32, #tpu.memory_space<vmem>>, vector<1x1x32xf32>
    %346 = vector.shape_cast %345 : vector<1x1x32xf32> to vector<1x32xf32>
    %c0_148 = arith.constant 0 : index
    %c0_149 = arith.constant 0 : index
    %c0_150 = arith.constant 0 : index
    %347 = vector.load %arg26[%c0_148, %c0_149, %c0_150] : memref<2x1x32xf32, #tpu.memory_space<vmem>>, vector<1x1x32xf32>
    %348 = vector.shape_cast %347 : vector<1x1x32xf32> to vector<1x32xf32>
    %cst_151 = arith.constant dense<0.000000e+00> : vector<80xf32>
    %349 = vector.multi_reduction <add>, %344, %cst_151 [1] : vector<80x32xf32> to vector<80xf32>
    %350 = vector.shape_cast %349 : vector<80xf32> to vector<80x1xf32>
    %cst_152 = arith.constant 3.200000e+01 : f32
    %351 = vector.broadcast %cst_152 : f32 to vector<80x1xf32>
    %352 = arith.divf %350, %351 : vector<80x1xf32>
    %353 = vector.broadcast %352 : vector<80x1xf32> to vector<80x32xf32>
    %354 = arith.subf %344, %353 : vector<80x32xf32>
    %355 = arith.mulf %354, %354 : vector<80x32xf32>
    %cst_153 = arith.constant dense<0.000000e+00> : vector<80xf32>
    %356 = vector.multi_reduction <add>, %355, %cst_153 [1] : vector<80x32xf32> to vector<80xf32>
    %357 = vector.shape_cast %356 : vector<80xf32> to vector<80x1xf32>
    %cst_154 = arith.constant 3.200000e+01 : f32
    %358 = vector.broadcast %cst_154 : f32 to vector<80x1xf32>
    %359 = arith.divf %357, %358 : vector<80x1xf32>
    %360 = vector.broadcast %352 : vector<80x1xf32> to vector<80x32xf32>
    %361 = arith.subf %344, %360 : vector<80x32xf32>
    %cst_155 = arith.constant 9.99999974E-6 : f32
    %362 = vector.broadcast %cst_155 : f32 to vector<80x1xf32>
    %363 = arith.addf %359, %362 : vector<80x1xf32>
    %364 = math.rsqrt %363 : vector<80x1xf32>
    %365 = vector.broadcast %364 : vector<80x1xf32> to vector<80x32xf32>
    %366 = arith.mulf %361, %365 : vector<80x32xf32>
    %367 = vector.broadcast %346 : vector<1x32xf32> to vector<80x32xf32>
    %368 = arith.mulf %366, %367 : vector<80x32xf32>
    %369 = vector.broadcast %348 : vector<1x32xf32> to vector<80x32xf32>
    %370 = arith.addf %368, %369 : vector<80x32xf32>
    %371 = arith.truncf %370 : vector<80x32xf32> to vector<80x32xbf16>
    %c1_156 = arith.constant 1 : index
    %c0_157 = arith.constant 0 : index
    %c0_158 = arith.constant 0 : index
    %372 = vector.load %arg15[%c1_156, %c0_157, %c0_158] : memref<2x32x96xbf16, #tpu.memory_space<vmem>>, vector<1x32x96xbf16>
    %373 = vector.shape_cast %372 : vector<1x32x96xbf16> to vector<32x96xbf16>
    %c1_159 = arith.constant 1 : index
    %c0_160 = arith.constant 0 : index
    %c0_161 = arith.constant 0 : index
    %374 = vector.load %arg16[%c1_159, %c0_160, %c0_161] : memref<2x1x96xf32, #tpu.memory_space<vmem>>, vector<1x1x96xf32>
    %375 = vector.shape_cast %374 : vector<1x1x96xf32> to vector<1x96xf32>
    %cst_162 = arith.constant dense<0.000000e+00> : vector<80x96xf32>
    %376 = tpu.matmul %371, %373, %cst_162 {dimension_numbers = #tpu.dot_dimension_numbers<[1], [0], [0], [1], [0, 0, 1, 1], [], []>} : vector<80x32xbf16>, vector<32x96xbf16>, vector<80x96xf32> -> vector<80x96xf32>
    %377 = vector.broadcast %375 : vector<1x96xf32> to vector<80x96xf32>
    %378 = arith.addf %376, %377 : vector<80x96xf32>
    %379 = vector.shape_cast %378 : vector<80x96xf32> to vector<2x40x96xf32>
    %380 = tpu.transpose %379, [0, 2, 1] : vector<2x40x96xf32> -> vector<2x96x40xf32>
    %381 = arith.truncf %380 : vector<2x96x40xf32> to vector<2x96x40xbf16>
    %382 = vector.extract_strided_slice %381 {offsets = [0, 0, 0], sizes = [2, 32, 40], strides = [1, 1, 1]} : vector<2x96x40xbf16> to vector<2x32x40xbf16>
    %383 = vector.shape_cast %382 : vector<2x32x40xbf16> to vector<8x8x40xbf16>
    %384 = vector.extract_strided_slice %381 {offsets = [0, 32, 0], sizes = [2, 32, 40], strides = [1, 1, 1]} : vector<2x96x40xbf16> to vector<2x32x40xbf16>
    %385 = vector.shape_cast %384 : vector<2x32x40xbf16> to vector<8x8x40xbf16>
    %386 = vector.extract_strided_slice %381 {offsets = [0, 64, 0], sizes = [2, 32, 40], strides = [1, 1, 1]} : vector<2x96x40xbf16> to vector<2x32x40xbf16>
    %387 = vector.shape_cast %386 : vector<2x32x40xbf16> to vector<8x8x40xbf16>
    %cst_163 = arith.constant dense<0.000000e+00> : vector<8x40x40xf32>
    %388 = tpu.matmul %383, %385, %cst_163 {dimension_numbers = #tpu.dot_dimension_numbers<[1], [1], [2], [2], [0, 0, 0, 2, 1, 2], [0], [0]>} : vector<8x8x40xbf16>, vector<8x8x40xbf16>, vector<8x40x40xf32> -> vector<8x40x40xf32>
    %cst_164 = arith.constant 0.353553385 : f32
    %389 = vector.broadcast %cst_164 : f32 to vector<8x40x40xf32>
    %390 = arith.mulf %388, %389 : vector<8x40x40xf32>
    %391 = vector.broadcast %242 : vector<1x1x40xf32> to vector<8x40x40xf32>
    %392 = arith.addf %390, %391 : vector<8x40x40xf32>
    %cst_165 = arith.constant dense<0xFF800000> : vector<8x40xf32>
    %393 = vector.multi_reduction <maximumf>, %392, %cst_165 [2] : vector<8x40x40xf32> to vector<8x40xf32>
    %394 = vector.shape_cast %393 : vector<8x40xf32> to vector<8x40x1xf32>
    %395 = vector.broadcast %394 : vector<8x40x1xf32> to vector<8x40x40xf32>
    %396 = arith.subf %392, %395 : vector<8x40x40xf32>
    %397 = math.exp %396 : vector<8x40x40xf32>
    %cst_166 = arith.constant dense<0.000000e+00> : vector<8x40xf32>
    %398 = vector.multi_reduction <add>, %397, %cst_166 [2] : vector<8x40x40xf32> to vector<8x40xf32>
    %399 = vector.shape_cast %398 : vector<8x40xf32> to vector<8x40x1xf32>
    %400 = tpu.reciprocal %399 {approx = true} : vector<8x40x1xf32> -> vector<8x40x1xf32>
    %401 = vector.broadcast %400 : vector<8x40x1xf32> to vector<8x40x40xf32>
    %402 = arith.mulf %397, %401 : vector<8x40x40xf32>
    %403 = arith.truncf %402 : vector<8x40x40xf32> to vector<8x40x40xbf16>
    %cst_167 = arith.constant dense<0.000000e+00> : vector<8x8x40xf32>
    %404 = tpu.matmul %387, %403, %cst_167 {dimension_numbers = #tpu.dot_dimension_numbers<[2], [2], [1], [1], [0, 0, 0, 1, 1, 1], [0], [0]>} : vector<8x8x40xbf16>, vector<8x40x40xbf16>, vector<8x8x40xf32> -> vector<8x8x40xf32>
    %405 = vector.shape_cast %404 : vector<8x8x40xf32> to vector<2x32x40xf32>
    %406 = tpu.transpose %405, [0, 2, 1] : vector<2x32x40xf32> -> vector<2x40x32xf32>
    %407 = vector.shape_cast %406 : vector<2x40x32xf32> to vector<80x32xf32>
    %408 = arith.truncf %407 : vector<80x32xf32> to vector<80x32xbf16>
    %c1_168 = arith.constant 1 : index
    %c0_169 = arith.constant 0 : index
    %c0_170 = arith.constant 0 : index
    %409 = vector.load %arg17[%c1_168, %c0_169, %c0_170] : memref<2x32x32xbf16, #tpu.memory_space<vmem>>, vector<1x32x32xbf16>
    %410 = vector.shape_cast %409 : vector<1x32x32xbf16> to vector<32x32xbf16>
    %c1_171 = arith.constant 1 : index
    %c0_172 = arith.constant 0 : index
    %c0_173 = arith.constant 0 : index
    %411 = vector.load %arg18[%c1_171, %c0_172, %c0_173] : memref<2x1x32xf32, #tpu.memory_space<vmem>>, vector<1x1x32xf32>
    %412 = vector.shape_cast %411 : vector<1x1x32xf32> to vector<1x32xf32>
    %cst_174 = arith.constant dense<0.000000e+00> : vector<80x32xf32>
    %413 = tpu.matmul %408, %410, %cst_174 {dimension_numbers = #tpu.dot_dimension_numbers<[1], [0], [0], [1], [0, 0, 1, 1], [], []>} : vector<80x32xbf16>, vector<32x32xbf16>, vector<80x32xf32> -> vector<80x32xf32>
    %414 = vector.broadcast %412 : vector<1x32xf32> to vector<80x32xf32>
    %415 = arith.addf %413, %414 : vector<80x32xf32>
    %416 = arith.addf %370, %415 : vector<80x32xf32>
    %c1_175 = arith.constant 1 : index
    %c0_176 = arith.constant 0 : index
    %c0_177 = arith.constant 0 : index
    %417 = vector.load %arg19[%c1_175, %c0_176, %c0_177] : memref<2x1x32xf32, #tpu.memory_space<vmem>>, vector<1x1x32xf32>
    %418 = vector.shape_cast %417 : vector<1x1x32xf32> to vector<1x32xf32>
    %c1_178 = arith.constant 1 : index
    %c0_179 = arith.constant 0 : index
    %c0_180 = arith.constant 0 : index
    %419 = vector.load %arg20[%c1_178, %c0_179, %c0_180] : memref<2x1x32xf32, #tpu.memory_space<vmem>>, vector<1x1x32xf32>
    %420 = vector.shape_cast %419 : vector<1x1x32xf32> to vector<1x32xf32>
    %cst_181 = arith.constant dense<0.000000e+00> : vector<80xf32>
    %421 = vector.multi_reduction <add>, %416, %cst_181 [1] : vector<80x32xf32> to vector<80xf32>
    %422 = vector.shape_cast %421 : vector<80xf32> to vector<80x1xf32>
    %cst_182 = arith.constant 3.200000e+01 : f32
    %423 = vector.broadcast %cst_182 : f32 to vector<80x1xf32>
    %424 = arith.divf %422, %423 : vector<80x1xf32>
    %425 = vector.broadcast %424 : vector<80x1xf32> to vector<80x32xf32>
    %426 = arith.subf %416, %425 : vector<80x32xf32>
    %427 = arith.mulf %426, %426 : vector<80x32xf32>
    %cst_183 = arith.constant dense<0.000000e+00> : vector<80xf32>
    %428 = vector.multi_reduction <add>, %427, %cst_183 [1] : vector<80x32xf32> to vector<80xf32>
    %429 = vector.shape_cast %428 : vector<80xf32> to vector<80x1xf32>
    %cst_184 = arith.constant 3.200000e+01 : f32
    %430 = vector.broadcast %cst_184 : f32 to vector<80x1xf32>
    %431 = arith.divf %429, %430 : vector<80x1xf32>
    %432 = vector.broadcast %424 : vector<80x1xf32> to vector<80x32xf32>
    %433 = arith.subf %416, %432 : vector<80x32xf32>
    %cst_185 = arith.constant 9.99999974E-6 : f32
    %434 = vector.broadcast %cst_185 : f32 to vector<80x1xf32>
    %435 = arith.addf %431, %434 : vector<80x1xf32>
    %436 = math.rsqrt %435 : vector<80x1xf32>
    %437 = vector.broadcast %436 : vector<80x1xf32> to vector<80x32xf32>
    %438 = arith.mulf %433, %437 : vector<80x32xf32>
    %439 = vector.broadcast %418 : vector<1x32xf32> to vector<80x32xf32>
    %440 = arith.mulf %438, %439 : vector<80x32xf32>
    %441 = vector.broadcast %420 : vector<1x32xf32> to vector<80x32xf32>
    %442 = arith.addf %440, %441 : vector<80x32xf32>
    %443 = arith.truncf %442 : vector<80x32xf32> to vector<80x32xbf16>
    %c1_186 = arith.constant 1 : index
    %c0_187 = arith.constant 0 : index
    %c0_188 = arith.constant 0 : index
    %444 = vector.load %arg21[%c1_186, %c0_187, %c0_188] : memref<2x32x64xbf16, #tpu.memory_space<vmem>>, vector<1x32x64xbf16>
    %445 = vector.shape_cast %444 : vector<1x32x64xbf16> to vector<32x64xbf16>
    %c1_189 = arith.constant 1 : index
    %c0_190 = arith.constant 0 : index
    %c0_191 = arith.constant 0 : index
    %446 = vector.load %arg22[%c1_189, %c0_190, %c0_191] : memref<2x1x64xf32, #tpu.memory_space<vmem>>, vector<1x1x64xf32>
    %447 = vector.shape_cast %446 : vector<1x1x64xf32> to vector<1x64xf32>
    %cst_192 = arith.constant dense<0.000000e+00> : vector<80x64xf32>
    %448 = tpu.matmul %443, %445, %cst_192 {dimension_numbers = #tpu.dot_dimension_numbers<[1], [0], [0], [1], [0, 0, 1, 1], [], []>} : vector<80x32xbf16>, vector<32x64xbf16>, vector<80x64xf32> -> vector<80x64xf32>
    %449 = vector.broadcast %447 : vector<1x64xf32> to vector<80x64xf32>
    %450 = arith.addf %448, %449 : vector<80x64xf32>
    %451 = arith.mulf %450, %450 : vector<80x64xf32>
    %452 = arith.mulf %450, %451 : vector<80x64xf32>
    %cst_193 = arith.constant 4.471500e-02 : f32
    %453 = vector.broadcast %cst_193 : f32 to vector<80x64xf32>
    %454 = arith.mulf %453, %452 : vector<80x64xf32>
    %455 = arith.addf %450, %454 : vector<80x64xf32>
    %cst_194 = arith.constant 0.797884583 : f32
    %456 = vector.broadcast %cst_194 : f32 to vector<80x64xf32>
    %457 = arith.mulf %456, %455 : vector<80x64xf32>
    %458 = math.tanh %457 : vector<80x64xf32>
    %cst_195 = arith.constant 1.000000e+00 : f32
    %459 = vector.broadcast %cst_195 : f32 to vector<80x64xf32>
    %460 = arith.addf %459, %458 : vector<80x64xf32>
    %cst_196 = arith.constant 5.000000e-01 : f32
    %461 = vector.broadcast %cst_196 : f32 to vector<80x64xf32>
    %462 = arith.mulf %461, %460 : vector<80x64xf32>
    %463 = arith.mulf %450, %462 : vector<80x64xf32>
    %464 = arith.truncf %463 : vector<80x64xf32> to vector<80x64xbf16>
    %c1_197 = arith.constant 1 : index
    %c0_198 = arith.constant 0 : index
    %c0_199 = arith.constant 0 : index
    %465 = vector.load %arg23[%c1_197, %c0_198, %c0_199] : memref<2x64x32xbf16, #tpu.memory_space<vmem>>, vector<1x64x32xbf16>
    %466 = vector.shape_cast %465 : vector<1x64x32xbf16> to vector<64x32xbf16>
    %c1_200 = arith.constant 1 : index
    %c0_201 = arith.constant 0 : index
    %c0_202 = arith.constant 0 : index
    %467 = vector.load %arg24[%c1_200, %c0_201, %c0_202] : memref<2x1x32xf32, #tpu.memory_space<vmem>>, vector<1x1x32xf32>
    %468 = vector.shape_cast %467 : vector<1x1x32xf32> to vector<1x32xf32>
    %cst_203 = arith.constant dense<0.000000e+00> : vector<80x32xf32>
    %469 = tpu.matmul %464, %466, %cst_203 {dimension_numbers = #tpu.dot_dimension_numbers<[1], [0], [0], [1], [0, 0, 1, 1], [], []>} : vector<80x64xbf16>, vector<64x32xbf16>, vector<80x32xf32> -> vector<80x32xf32>
    %470 = vector.broadcast %468 : vector<1x32xf32> to vector<80x32xf32>
    %471 = arith.addf %469, %470 : vector<80x32xf32>
    %472 = arith.addf %442, %471 : vector<80x32xf32>
    %c1_204 = arith.constant 1 : index
    %c0_205 = arith.constant 0 : index
    %c0_206 = arith.constant 0 : index
    %473 = vector.load %arg25[%c1_204, %c0_205, %c0_206] : memref<2x1x32xf32, #tpu.memory_space<vmem>>, vector<1x1x32xf32>
    %474 = vector.shape_cast %473 : vector<1x1x32xf32> to vector<1x32xf32>
    %c1_207 = arith.constant 1 : index
    %c0_208 = arith.constant 0 : index
    %c0_209 = arith.constant 0 : index
    %475 = vector.load %arg26[%c1_207, %c0_208, %c0_209] : memref<2x1x32xf32, #tpu.memory_space<vmem>>, vector<1x1x32xf32>
    %476 = vector.shape_cast %475 : vector<1x1x32xf32> to vector<1x32xf32>
    %cst_210 = arith.constant dense<0.000000e+00> : vector<80xf32>
    %477 = vector.multi_reduction <add>, %472, %cst_210 [1] : vector<80x32xf32> to vector<80xf32>
    %478 = vector.shape_cast %477 : vector<80xf32> to vector<80x1xf32>
    %cst_211 = arith.constant 3.200000e+01 : f32
    %479 = vector.broadcast %cst_211 : f32 to vector<80x1xf32>
    %480 = arith.divf %478, %479 : vector<80x1xf32>
    %481 = vector.broadcast %480 : vector<80x1xf32> to vector<80x32xf32>
    %482 = arith.subf %472, %481 : vector<80x32xf32>
    %483 = arith.mulf %482, %482 : vector<80x32xf32>
    %cst_212 = arith.constant dense<0.000000e+00> : vector<80xf32>
    %484 = vector.multi_reduction <add>, %483, %cst_212 [1] : vector<80x32xf32> to vector<80xf32>
    %485 = vector.shape_cast %484 : vector<80xf32> to vector<80x1xf32>
    %cst_213 = arith.constant 3.200000e+01 : f32
    %486 = vector.broadcast %cst_213 : f32 to vector<80x1xf32>
    %487 = arith.divf %485, %486 : vector<80x1xf32>
    %488 = vector.broadcast %480 : vector<80x1xf32> to vector<80x32xf32>
    %489 = arith.subf %472, %488 : vector<80x32xf32>
    %cst_214 = arith.constant 9.99999974E-6 : f32
    %490 = vector.broadcast %cst_214 : f32 to vector<80x1xf32>
    %491 = arith.addf %487, %490 : vector<80x1xf32>
    %492 = math.rsqrt %491 : vector<80x1xf32>
    %493 = vector.broadcast %492 : vector<80x1xf32> to vector<80x32xf32>
    %494 = arith.mulf %489, %493 : vector<80x32xf32>
    %495 = vector.broadcast %474 : vector<1x32xf32> to vector<80x32xf32>
    %496 = arith.mulf %494, %495 : vector<80x32xf32>
    %497 = vector.broadcast %476 : vector<1x32xf32> to vector<80x32xf32>
    %498 = arith.addf %496, %497 : vector<80x32xf32>
    %499 = arith.truncf %498 : vector<80x32xf32> to vector<80x32xbf16>
    %c0_215 = arith.constant 0 : index
    %c0_216 = arith.constant 0 : index
    %500 = vector.load %arg27[%c0_215, %c0_216] : memref<32x128xbf16, #tpu.memory_space<vmem>>, vector<32x128xbf16>
    %c0_217 = arith.constant 0 : index
    %c0_218 = arith.constant 0 : index
    %501 = vector.load %arg28[%c0_217, %c0_218] : memref<1x128xf32, #tpu.memory_space<vmem>>, vector<1x128xf32>
    %cst_219 = arith.constant dense<0.000000e+00> : vector<80x128xf32>
    %502 = tpu.matmul %499, %500, %cst_219 {dimension_numbers = #tpu.dot_dimension_numbers<[1], [0], [0], [1], [0, 0, 1, 1], [], []>} : vector<80x32xbf16>, vector<32x128xbf16>, vector<80x128xf32> -> vector<80x128xf32>
    %503 = vector.broadcast %501 : vector<1x128xf32> to vector<80x128xf32>
    %504 = arith.addf %502, %503 : vector<80x128xf32>
    %c0_220 = arith.constant 0 : index
    %c0_221 = arith.constant 0 : index
    %505 = vector.load %arg29[%c0_220, %c0_221] : memref<80x128xf32, #tpu.memory_space<vmem>>, vector<80x128xf32>
    tpu.vector_store %arg29[%c0_220, %c0_221], %504 {strides = array<i32>} : memref<80x128xf32, #tpu.memory_space<vmem>>, vector<80x128xf32>,
    return
  }
  func.func @transform_0(%arg0: i32) -> (i32, i32, i32) {
    %c0_i32 = arith.constant 0 : i32
    %c0_i32_0 = arith.constant 0 : i32
    %c0_i32_1 = arith.constant 0 : i32
    %c0_i32_2 = arith.constant 0 : i32
    return %c0_i32, %c0_i32_0, %c0_i32_1 : i32, i32, i32
  }
  func.func @transform_1(%arg0: i32) -> (i32, i32) {
    %c0_i32 = arith.constant 0 : i32
    %c0_i32_0 = arith.constant 0 : i32
    %c0_i32_1 = arith.constant 0 : i32
    return %c0_i32, %c0_i32_0 : i32, i32
  }
  func.func @transform_2(%arg0: i32) -> (i32, i32) {
    %c0_i32 = arith.constant 0 : i32
    %c0_i32_0 = arith.constant 0 : i32
    %c0_i32_1 = arith.constant 0 : i32
    return %c0_i32, %c0_i32_0 : i32, i32
  }
  func.func @transform_3(%arg0: i32) -> (i32, i32) {
    %c0_i32 = arith.constant 0 : i32
    %c0_i32_0 = arith.constant 0 : i32
    %c0_i32_1 = arith.constant 0 : i32
    return %c0_i32, %c0_i32_0 : i32, i32
  }
  func.func @transform_4(%arg0: i32) -> (i32, i32) {
    %c0_i32 = arith.constant 0 : i32
    %c0_i32_0 = arith.constant 0 : i32
    %c0_i32_1 = arith.constant 0 : i32
    return %c0_i32, %c0_i32_0 : i32, i32
  }
  func.func @transform_5(%arg0: i32) -> (i32, i32) {
    %c0_i32 = arith.constant 0 : i32
    %c0_i32_0 = arith.constant 0 : i32
    %c0_i32_1 = arith.constant 0 : i32
    return %c0_i32, %c0_i32_0 : i32, i32
  }
  func.func @transform_6(%arg0: i32) -> (i32, i32) {
    %c0_i32 = arith.constant 0 : i32
    %c0_i32_0 = arith.constant 0 : i32
    %c0_i32_1 = arith.constant 0 : i32
    return %c0_i32, %c0_i32_0 : i32, i32
  }
  func.func @transform_7(%arg0: i32) -> (i32, i32) {
    %c0_i32 = arith.constant 0 : i32
    %c0_i32_0 = arith.constant 0 : i32
    %c0_i32_1 = arith.constant 0 : i32
    return %c0_i32, %c0_i32_0 : i32, i32
  }
  func.func @transform_8(%arg0: i32) -> (i32, i32) {
    %c0_i32 = arith.constant 0 : i32
    %c0_i32_0 = arith.constant 0 : i32
    %c0_i32_1 = arith.constant 0 : i32
    return %c0_i32, %c0_i32_0 : i32, i32
  }
  func.func @transform_9(%arg0: i32) -> (i32, i32) {
    %c0_i32 = arith.constant 0 : i32
    %c0_i32_0 = arith.constant 0 : i32
    %c0_i32_1 = arith.constant 0 : i32
    return %c0_i32, %c0_i32_0 : i32, i32
  }
  func.func @transform_10(%arg0: i32) -> (i32, i32) {
    %c0_i32 = arith.constant 0 : i32
    %c0_i32_0 = arith.constant 0 : i32
    %c0_i32_1 = arith.constant 0 : i32
    return %c0_i32, %c0_i32_0 : i32, i32
  }
  func.func @transform_11(%arg0: i32) -> (i32, i32) {
    %c0_i32 = arith.constant 0 : i32
    %c0_i32_0 = arith.constant 0 : i32
    %c0_i32_1 = arith.constant 0 : i32
    return %c0_i32, %c0_i32_0 : i32, i32
  }
  func.func @transform_12(%arg0: i32) -> (i32, i32) {
    %c0_i32 = arith.constant 0 : i32
    %c0_i32_0 = arith.constant 0 : i32
    %c0_i32_1 = arith.constant 0 : i32
    return %c0_i32, %c0_i32_0 : i32, i32
  }
  func.func @transform_13(%arg0: i32) -> (i32, i32) {
    %c0_i32 = arith.constant 0 : i32
    %c0_i32_0 = arith.constant 0 : i32
    %c0_i32_1 = arith.constant 0 : i32
    return %c0_i32, %c0_i32_0 : i32, i32
  }
  func.func @transform_14(%arg0: i32) -> (i32, i32, i32) {
    %c0_i32 = arith.constant 0 : i32
    %c0_i32_0 = arith.constant 0 : i32
    %c0_i32_1 = arith.constant 0 : i32
    %c0_i32_2 = arith.constant 0 : i32
    return %c0_i32, %c0_i32_0, %c0_i32_1 : i32, i32, i32
  }
  func.func @transform_15(%arg0: i32) -> (i32, i32, i32) {
    %c0_i32 = arith.constant 0 : i32
    %c0_i32_0 = arith.constant 0 : i32
    %c0_i32_1 = arith.constant 0 : i32
    %c0_i32_2 = arith.constant 0 : i32
    return %c0_i32, %c0_i32_0, %c0_i32_1 : i32, i32, i32
  }
  func.func @transform_16(%arg0: i32) -> (i32, i32, i32) {
    %c0_i32 = arith.constant 0 : i32
    %c0_i32_0 = arith.constant 0 : i32
    %c0_i32_1 = arith.constant 0 : i32
    %c0_i32_2 = arith.constant 0 : i32
    return %c0_i32, %c0_i32_0, %c0_i32_1 : i32, i32, i32
  }
  func.func @transform_17(%arg0: i32) -> (i32, i32, i32) {
    %c0_i32 = arith.constant 0 : i32
    %c0_i32_0 = arith.constant 0 : i32
    %c0_i32_1 = arith.constant 0 : i32
    %c0_i32_2 = arith.constant 0 : i32
    return %c0_i32, %c0_i32_0, %c0_i32_1 : i32, i32, i32
  }
  func.func @transform_18(%arg0: i32) -> (i32, i32, i32) {
    %c0_i32 = arith.constant 0 : i32
    %c0_i32_0 = arith.constant 0 : i32
    %c0_i32_1 = arith.constant 0 : i32
    %c0_i32_2 = arith.constant 0 : i32
    return %c0_i32, %c0_i32_0, %c0_i32_1 : i32, i32, i32
  }
  func.func @transform_19(%arg0: i32) -> (i32, i32, i32) {
    %c0_i32 = arith.constant 0 : i32
    %c0_i32_0 = arith.constant 0 : i32
    %c0_i32_1 = arith.constant 0 : i32
    %c0_i32_2 = arith.constant 0 : i32
    return %c0_i32, %c0_i32_0, %c0_i32_1 : i32, i32, i32
  }
  func.func @transform_20(%arg0: i32) -> (i32, i32, i32) {
    %c0_i32 = arith.constant 0 : i32
    %c0_i32_0 = arith.constant 0 : i32
    %c0_i32_1 = arith.constant 0 : i32
    %c0_i32_2 = arith.constant 0 : i32
    return %c0_i32, %c0_i32_0, %c0_i32_1 : i32, i32, i32
  }
  func.func @transform_21(%arg0: i32) -> (i32, i32, i32) {
    %c0_i32 = arith.constant 0 : i32
    %c0_i32_0 = arith.constant 0 : i32
    %c0_i32_1 = arith.constant 0 : i32
    %c0_i32_2 = arith.constant 0 : i32
    return %c0_i32, %c0_i32_0, %c0_i32_1 : i32, i32, i32
  }
  func.func @transform_22(%arg0: i32) -> (i32, i32, i32) {
    %c0_i32 = arith.constant 0 : i32
    %c0_i32_0 = arith.constant 0 : i32
    %c0_i32_1 = arith.constant 0 : i32
    %c0_i32_2 = arith.constant 0 : i32
    return %c0_i32, %c0_i32_0, %c0_i32_1 : i32, i32, i32
  }
  func.func @transform_23(%arg0: i32) -> (i32, i32, i32) {
    %c0_i32 = arith.constant 0 : i32
    %c0_i32_0 = arith.constant 0 : i32
    %c0_i32_1 = arith.constant 0 : i32
    %c0_i32_2 = arith.constant 0 : i32
    return %c0_i32, %c0_i32_0, %c0_i32_1 : i32, i32, i32
  }
  func.func @transform_24(%arg0: i32) -> (i32, i32, i32) {
    %c0_i32 = arith.constant 0 : i32
    %c0_i32_0 = arith.constant 0 : i32
    %c0_i32_1 = arith.constant 0 : i32
    %c0_i32_2 = arith.constant 0 : i32
    return %c0_i32, %c0_i32_0, %c0_i32_1 : i32, i32, i32
  }
  func.func @transform_25(%arg0: i32) -> (i32, i32, i32) {
    %c0_i32 = arith.constant 0 : i32
    %c0_i32_0 = arith.constant 0 : i32
    %c0_i32_1 = arith.constant 0 : i32
    %c0_i32_2 = arith.constant 0 : i32
    return %c0_i32, %c0_i32_0, %c0_i32_1 : i32, i32, i32
  }
  func.func @transform_26(%arg0: i32) -> (i32, i32) {
    %c0_i32 = arith.constant 0 : i32
    %c0_i32_0 = arith.constant 0 : i32
    %c0_i32_1 = arith.constant 0 : i32
    return %c0_i32, %c0_i32_0 : i32, i32
  }
  func.func @transform_27(%arg0: i32) -> (i32, i32) {
    %c0_i32 = arith.constant 0 : i32
    %c0_i32_0 = arith.constant 0 : i32
    %c0_i32_1 = arith.constant 0 : i32
    return %c0_i32, %c0_i32_0 : i32, i32
  }
  func.func @transform_28(%arg0: i32) -> (i32, i32) {
    %c0_i32 = arith.constant 0 : i32
    %c0_i32_0 = arith.constant 0 : i32
    %c0_i32_1 = arith.constant 0 : i32
    return %c0_i32, %c0_i32_0 : i32, i32
  }
}

</mosaic_0001>

<bundles_post_ra>
// kernel: fine_tuned_wav2vec2_forward.1
= control target key start
LH: loop header
LB: loop body
LE: loop exit
PB: predicated region body
PF: predicated region fallthrough
CT: control target
= control target key end

     0   :  { %vm199_vm0 = vcmask 1041408   ;;  %vm200_vm1 = vcmask 1042432   ;;  %v13595_v0 = vmov 0.0   ;;  %v10155_v2 = vmov 65535   ;;  %s13559_s1 = inlined_call_operand.vmem [shape: bf16[5,32], index: 1, kind: input, shape index: {}]   ;;  %s13560_s2 = inlined_call_operand.vmem [shape: bf16[5,32], index: 2, kind: input, shape index: {}]   ;;  %s13561_s0 = inlined_call_operand.vmem [shape: f32[2,80,5], index: 0, kind: input, shape index: {}]   ;;  %s13562_s6 = inlined_call_operand.vmem [shape: bf16[32,96], index: 6, kind: input, shape index: {}]   ;;  %s13563_s3 = inlined_call_operand.vmem [shape: f32[1,32], index: 3, kind: input, shape index: {}]   ;;  %s13564_s4 = inlined_call_operand.vmem [shape: f32[1,32], index: 4, kind: input, shape index: {}]   ;;  %s13565_s5 = inlined_call_operand.vmem [shape: f32[1,32], index: 5, kind: input, shape index: {}]   ;;  %s13566_s7 = inlined_call_operand.vmem [shape: f32[1,32], index: 7, kind: input, shape index: {}]   ;;  %s13567_s10 = inlined_call_operand.vmem [shape: bf16[32,32], index: 10, kind: input, shape index: {}]   ;;  %s13568_s8 = inlined_call_operand.vmem [shape: f32[1,32], index: 8, kind: input, shape index: {}]   ;;  %s13569_s9 = inlined_call_operand.vmem [shape: f32[1,32], index: 9, kind: input, shape index: {}]   ;;  %s13570_s11 = inlined_call_operand.vmem [shape: f32[1,32], index: 11, kind: input, shape index: {}]   ;;  %s13571_s14 = inlined_call_operand.vmem [shape: bf16[2,32,96], index: 14, kind: input, shape index: {}]   ;;  %s13572_s12 = inlined_call_operand.vmem [shape: f32[1,32], index: 12, kind: input, shape index: {}]   ;;  %s13573_s13 = inlined_call_operand.vmem [shape: f32[1,32], index: 13, kind: input, shape index: {}]   ;;  %s13574_s15 = inlined_call_operand.vmem [shape: f32[2,1,96], index: 15, kind: input, shape index: {}]   ;;  %s13575_s16 = inlined_call_operand.vmem [shape: bf16[2,32,32], index: 16, kind: input, shape index: {}]   ;;  %s13576_s17 = inlined_call_operand.vmem [shape: f32[2,1,32], index: 17, kind: input, shape index: {}]   ;;  %s13577_s20 = inlined_call_operand.vmem [shape: bf16[2,32,64], index: 20, kind: input, shape index: {}]   ;;  %s13578_s18 = inlined_call_operand.vmem [shape: f32[2,1,32], index: 18, kind: input, shape index: {}]   ;;  %s13579_s19 = inlined_call_operand.vmem [shape: f32[2,1,32], index: 19, kind: input, shape index: {}]   ;;  %s13580_s22 = inlined_call_operand.vmem [shape: bf16[2,64,32], index: 22, kind: input, shape index: {}]   ;;  %s13581_s21 = inlined_call_operand.vmem [shape: f32[2,1,64], index: 21, kind: input, shape index: {}]   ;;  %s13582_s23 = inlined_call_operand.vmem [shape: f32[2,1,32], index: 23, kind: input, shape index: {}]   ;;  %s13583_s24 = inlined_call_operand.vmem [shape: f32[2,1,32], index: 24, kind: input, shape index: {}]   ;;  %s13584_s25 = inlined_call_operand.vmem [shape: f32[2,1,32], index: 25, kind: input, shape index: {}]   ;;  %s13585_s26 = inlined_call_operand.vmem [shape: bf16[32,128], index: 26, kind: input, shape index: {}]   ;;  %s13586_s27 = inlined_call_operand.vmem [shape: f32[1,128], index: 27, kind: input, shape index: {}]   ;;  %s13587_s28 = inlined_call_operand.vmem [shape: f32[80,128], index: 28, kind: output, shape index: {}]  }
   0x1   :  { %13619 = sst [smem:[#allocation14_spill]] %s13559_s1  ;;  %9514 = vmatprep.subr.bf16.mxu1 %v13595_v0  ;;  %v201_v3 = vsel %vm199_vm0, 4294967295, %v10155_v2  ;;  %8614 = vmatprep.subr.bf16.mxu0 %v13595_v0  ;;  %vm10156_vm2 = vmmov 0   ;;  %vm183_vm3 = vcmask 39936   ;;  %vm366_vm4 = vcmask 1046528  }
   0x2   :  { %13620 = sst [smem:[#allocation15_spill]] %s13560_s2  ;;  %v202_v4 = vsel %vm200_vm1, %v201_v3, 0  ;;  %8632 = vmatprep.mubr.msk.bf16.mxu1 %vm10156_vm2, %v13595_v0  ;;  %8616 = vmatprep.mubr.msk.bf16.mxu0 %vm10156_vm2, %v13595_v0  ;;  %vm423_vm5 = vcmask 261120   ;;  %vm441_vm6 = vcmask 260096   ;;  %s10157_s2 = smov 96   ;;  %vm759_vm7 = vcmask 1047552  }
   0x3   :  { %13621 = sst [smem:[#allocation16_spill]] %s13561_s0  ;;  %vm749_vm14 = vcmask 646144  }
   0x4   :  { %13622 = sst [smem:[#allocation17_spill]] %s13562_s6  ;;  %s13633_s6 = sld [smem:[#allocation15_spill]] }
   0x5   :  { %13623 = sst [smem:[#allocation18_spill]] %s13563_s3  ;;  %s10158_s3 = smov 64  }
   0x6   :  { %13624 = sst [smem:[#allocation19_spill]] %s13564_s4 }
   0x7   :  { %13625 = sst [smem:[#allocation20_spill]] %s13565_s5  ;;  %s13637_s29 = sld [smem:[#allocation19_spill]] }
   0x8   :  { %13626 = sst [smem:[#allocation21_spill]] %s13566_s7 }
   0x9   :  { %13627 = sst [smem:[#allocation22_spill]] %s13567_s10  ;;  %s13635_s10 = sld [smem:[#allocation17_spill]] }
   0xa   :  { %13628 = sst [smem:[#allocation23_spill]] %s13568_s8  ;;  %s13632_s8 = sld [smem:[#allocation14_spill]]  ;;  %v279_v5 = vld [vmem:[%s13633_s6] sm:$0x7] }
   0xb   :  { %13629 = sst [smem:[#allocation24_spill]] %s13569_s9  ;;  %v10333_v12 = vand.u32 %v279_v5, %v202_v4  ;;  %s13636_s6 = sld [smem:[#allocation18_spill]] }
   0xc   :  { %13630 = sst [smem:[#allocation25_spill]] %s13570_s11  ;;  %s13634_s11 = sld [smem:[#allocation16_spill]] }
   0xd   :  { %13631 = sst [smem:[#allocation26_spill]] %s13571_s14  ;;  %s13638_s14 = sld [smem:[#allocation20_spill]] }
   0xe   :  { %s13639_s0 = sld [smem:[#allocation21_spill]]  ;;  %s13640_s1 = sld [smem:[#allocation22_spill]] }
   0xf   :  { %v10391_v23 = vld [vmem:[%s13635_s10] sm:$0xff]   ;;  %v10397_v24 = vld [vmem:[%s13635_s10 + $0x8] sm:$0xff]   ;;  %s13642_s5 = sld [smem:[#allocation24_spill]] }
  0x10   :  { %v182_v1 = vld [vmem:[%s13632_s8] sm:$0x7]  ;;  %s13641_s8 = sld [smem:[#allocation23_spill]] }
  0x11   :  { %v10320_v8 = vand.u32 %v202_v4, %v182_v1  ;;  %v10410_v47 = vld [vmem:[%s13636_s6] ss:$0 sm:$0xff] }
  0x12   :  { %v175_v6 = vld [vmem:[%s13634_s11 + $0x40] sm:$0xff]  ;;  %v176_v7 = vld [vmem:[%s13634_s11 + $0x48] sm:$0xff]  ;;  %v169_v14 = vld [vmem:[%s13634_s11 + $0x10] sm:$0xff] }
  0x13   :  { %v167_v9 = vld [vmem:[%s13634_s11] sm:$0xff]  ;;  %v168_v10 = vld [vmem:[%s13634_s11 + $0x8] sm:$0xff]  ;;  %v181_v11 = vpack.c.bf16 %v176_v7, %v175_v6  ;;  %9515 = vmatpush3.bf16.msra.mxu1 %v10320_v8  ;;  %8615 = vmatpush3.bf16.msra.mxu0 %v10320_v8  ;;  %v170_v15 = vld [vmem:[%s13634_s11 + $0x18] sm:$0xff] }
  0x14   :  { %8636 = vmatprep.subr.bf16.mxu1 %v13595_v0  ;;  %v177_v13 = vpack.c.bf16 %v168_v10, %v167_v9  ;;  %8658 = vmatprep.subr.bf16.mxu0 %v13595_v0  ;;  %v178_v16 = vpack.c.bf16 %v170_v15, %v169_v14  ;;  %v171_v17 = vld [vmem:[%s13634_s11 + $0x20] sm:$0xff]  ;;  %v172_v18 = vld [vmem:[%s13634_s11 + $0x28] sm:$0xff]  ;;  %v173_v20 = vld [vmem:[%s13634_s11 + $0x30] sm:$0xff] }
  0x15   :  { %v179_v19 = vpack.c.bf16 %v172_v18, %v171_v17  ;;  %v174_v21 = vld [vmem:[%s13634_s11 + $0x38] sm:$0xff] }
  0x16   :  { %8633 = vmatmul.mubr.msk.bf16.vlgmr.msra.gmra.mrb[0].mxu1 %vm183_vm3, %v181_v11  ;;  %8617 = vmatmul.mubr.msk.bf16.vlgmr.msra.gmra.mrb[0].mxu0 %vm183_vm3, %v177_v13  ;;  %v180_v22 = vpack.c.bf16 %v174_v21, %v173_v20 }
  0x17   :  { %8637 = vmatpush3.bf16.msra.mxu1 %v10333_v12  ;;  %8638 = vmatprep.mubr.msk.bf16.mxu1 %vm10156_vm2, %v13595_v0 }
  0x18   :  { %8620 = vmatprep.mubr.msk.bf16.mxu0 %vm10156_vm2, %v13595_v0  ;;  %8682 = vmatprep.subr.bf16.mxu1 %v13595_v0 }
  0x19   :  { %8659 = vmatpush3.bf16.msra.mxu0 %v10391_v23 }
  0x1a   :  { %8660 = vmatprep.subr.bf16.mxu0 %v13595_v0 }
  0x1d   :  { %8661 = vmatpush3.bf16.msra.mxu0 %v10397_v24 }
  0x1e   :  { %8639 = vmatmul.mubr.msk.bf16.vlgmr.msra.gmra.mrb[4].mxu1 %vm183_vm3, %v177_v13  ;;  %8621 = vmatmul.mubr.msk.bf16.gmra.mrb[4].mxu0 %vm183_vm3, %v178_v16 }
  0x1f   :  { %8642 = vmatprep.mubr.msk.bf16.mxu1 %vm10156_vm2, %v13595_v0  ;;  %8624 = vmatprep.mubr.msk.bf16.mxu0 %vm10156_vm2, %v13595_v0 }
  0x20   :  { %8748 = vmatprep.subr.bf16.mxu0 %v13595_v0 }
  0x26   :  { %8643 = vmatmul.mubr.msk.bf16.gmra.mrb[8].mxu1 %vm183_vm3, %v178_v16  ;;  %8625 = vmatmul.mubr.msk.bf16.gmra.mrb[8].mxu0 %vm183_vm3, %v179_v19 }
  0x27   :  { %8646 = vmatprep.mubr.msk.bf16.mxu1 %vm10156_vm2, %v13595_v0  ;;  %8628 = vmatprep.mubr.msk.bf16.mxu0 %vm10156_vm2, %v13595_v0 }
  0x2e   :  { %8647 = vmatmul.mubr.msk.bf16.gmra.mrb[12].mxu1 %vm183_vm3, %v179_v19  ;;  %8629 = vmatmul.mubr.msk.bf16.gmra.mrb[12].mxu0 %vm183_vm3, %v180_v22 }
  0x2f   :  { %8650 = vmatprep.mubr.msk.bf16.mxu1 %vm10156_vm2, %v13595_v0  ;;  %8662 = vmatprep.mubr.msk.bf16.mxu0 %vm10156_vm2, %v13595_v0 }
  0x36   :  { %8651 = vmatmul.mubr.msk.bf16.gmra.mrb[16].mxu1 %vm183_vm3, %v180_v22 }
  0x37   :  { %8654 = vmatprep.mubr.msk.bf16.mxu1 %vm10156_vm2, %v13595_v0 }
  0x3e   :  { %8655 = vmatmul.mubr.msk.bf16.gmra.mrb[20].mxu1 %vm183_vm3, %v181_v11 }
  0x3f   :  { %8692 = vmatprep.mubr.msk.bf16.mxu1 %vm10156_vm2, %v13595_v0 }
  0xe9   :  { %v10399_v25 = vpop.f32.mrb[0].mxu1  ;;  %v240_v26 = vpop.f32.mrb[0].mxu0 }
  0xea   :  { %v8634_v27 = vpop.f32.mrb[1].mxu1  ;;  %v8618_v28 = vpop.f32.mrb[1].mxu0 }
  0xeb   :  { %v10402_v29 = vpop.f32.mrb[2].mxu1  ;;  %v243_v30 = vpop.f32.mrb[2].mxu0 }
  0xec   :  { %v8635_v31 = vpop.f32.mrb[3].mxu1  ;;  %v8619_v32 = vpop.f32.mrb[3].mxu0 }
  0xf1   :  { %v317_v33 = vpop.f32.mrb[4].mxu1  ;;  %v248_v34 = vpop.f32.mrb[4].mxu0 }
  0xf2   :  { %v8640_v35 = vpop.f32.mrb[5].mxu1  ;;  %v8622_v36 = vpop.f32.mrb[5].mxu0  ;;  %v367_v39 = vrot.slane %v317_v33, 1 }
  0xf3   :  { %v320_v37 = vpop.f32.mrb[6].mxu1  ;;  %v251_v38 = vpop.f32.mrb[6].mxu0 }
  0xf4   :  { %v368_v40 = vrot.slane %v320_v37, 1  ;;  %v8641_v41 = vpop.f32.mrb[7].mxu1  ;;  %v8623_v42 = vpop.f32.mrb[7].mxu0 }
  0xf6   :  { %v369_v43 = vsel %vm366_vm4, %v367_v39, %v368_v40 }
  0xf7   :  { %v396_v44 = vadd.f32 %v369_v43, %v240_v26 }
  0xf9   :  { %v325_v45 = vpop.f32.mrb[8].mxu1  ;;  %v256_v46 = vpop.f32.mrb[8].mxu0  ;;  %v10414_v57 = vadd.f32 %v10410_v47, %v396_v44 }
  0xfa   :  { %v370_v48 = vrot.slane %v325_v45, 1  ;;  %v8644_v49 = vpop.f32.mrb[9].mxu1  ;;  %v8626_v50 = vpop.f32.mrb[9].mxu0 }
  0xfb   :  { %v328_v51 = vpop.f32.mrb[10].mxu1  ;;  %v259_v52 = vpop.f32.mrb[10].mxu0  ;;  %v424_v62 = vsel %vm423_vm5, %v10414_v57, 0.0 }
  0xfc   :  { %v371_v53 = vsel %vm366_vm4, %v368_v40, %v370_v48  ;;  %v372_v54 = vrot.slane %v328_v51, 1  ;;  %v8645_v55 = vpop.f32.mrb[11].mxu1  ;;  %v8627_v56 = vpop.f32.mrb[11].mxu0 }
  0xfd   :  { %v397_v58 = vadd.f32 %v371_v53, %v243_v30 }
  0xfe   :  { %v373_v59 = vsel %vm366_vm4, %v370_v48, %v372_v54 }
  0xff   :  { %v10418_v60 = vadd.f32 %v10410_v47, %v397_v58  ;;  %v398_v61 = vadd.f32 %v373_v59, %v248_v34 }
 0x101   :  { %v10423_v63 = vadd.f32 %v10410_v47, %v398_v61  ;;  %v425_v1 = vsel %vm423_vm5, %v10418_v60, 0.0  ;;  %v333_v3 = vpop.f32.mrb[12].mxu1  ;;  %v264_v4 = vpop.f32.mrb[12].mxu0 }
 0x102   :  { %v426_v5 = vadd.f32 %v425_v1, %v424_v62  ;;  %v374_v6 = vrot.slane %v333_v3, 1  ;;  %v8648_v7 = vpop.f32.mrb[13].mxu1  ;;  %v8630_v9 = vpop.f32.mrb[13].mxu0 }
 0x103   :  { %v427_v10 = vsel %vm423_vm5, %v10423_v63, 0.0  ;;  %v336_v11 = vpop.f32.mrb[14].mxu1  ;;  %v267_v13 = vpop.f32.mrb[14].mxu0 }
 0x104   :  { %v428_v14 = vadd.f32 %v427_v10, %v426_v5  ;;  %v375_v15 = vsel %vm366_vm4, %v372_v54, %v374_v6  ;;  %v376_v16 = vrot.slane %v336_v11, 1  ;;  %v8649_v17 = vpop.f32.mrb[15].mxu1  ;;  %v8631_v18 = vpop.f32.mrb[15].mxu0 }
 0x105   :  { %v399_v19 = vadd.f32 %v375_v15, %v251_v38 }
 0x106   :  { %v377_v20 = vsel %vm366_vm4, %v374_v6, %v376_v16 }
 0x107   :  { %v416_v21 = vadd.f32 %v10410_v47, %v399_v19  ;;  %v400_v22 = vadd.f32 %v377_v20, %v256_v46 }
 0x109   :  { %v417_v26 = vadd.f32 %v10410_v47, %v400_v22  ;;  %v429_v27 = vsel %vm423_vm5, %v416_v21, 0.0  ;;  %v341_v28 = vpop.f32.mrb[16].mxu1 }
 0x10a   :  { %v430_v30 = vadd.f32 %v429_v27, %v428_v14  ;;  %v378_v31 = vrot.slane %v341_v28, 1  ;;  %v8652_v32 = vpop.f32.mrb[17].mxu1 }
 0x10b   :  { %v431_v33 = vsel %vm423_vm5, %v417_v26, 0.0  ;;  %v344_v34 = vpop.f32.mrb[18].mxu1 }
 0x10c   :  { %v432_v35 = vadd.f32 %v431_v33, %v430_v30  ;;  %v379_v36 = vsel %vm366_vm4, %v376_v16, %v378_v31  ;;  %v380_v37 = vrot.slane %v344_v34, 1  ;;  %v8653_v38 = vpop.f32.mrb[19].mxu1 }
 0x10d   :  { %v401_v39 = vadd.f32 %v379_v36, %v259_v52 }
 0x10e   :  { %v381_v40 = vsel %vm366_vm4, %v378_v31, %v380_v37 }
 0x10f   :  { %v418_v41 = vadd.f32 %v10410_v47, %v401_v39  ;;  %v402_v42 = vadd.f32 %v381_v40, %v264_v4 }
 0x111   :  { %v419_v43 = vadd.f32 %v10410_v47, %v402_v42  ;;  %v433_v44 = vsel %vm423_vm5, %v418_v41, 0.0  ;;  %v349_v45 = vpop.f32.mrb[20].mxu1 }
 0x112   :  { %v434_v46 = vadd.f32 %v433_v44, %v432_v35  ;;  %v382_v48 = vrot.slane %v349_v45, 1  ;;  %v8656_v49 = vpop.f32.mrb[21].mxu1 }
 0x113   :  { %v435_v50 = vsel %vm423_vm5, %v419_v43, 0.0  ;;  %v352_v51 = vpop.f32.mrb[22].mxu1 }
 0x114   :  { %v436_v53 = vadd.f32 %v435_v50, %v434_v46  ;;  %v383_v54 = vsel %vm366_vm4, %v380_v37, %v382_v48  ;;  %v384_v52 = vrot.slane %v352_v51, 1  ;;  %v8657_v55 = vpop.f32.mrb[23].mxu1 }
 0x115   :  { %v403_v56 = vadd.f32 %v383_v54, %v267_v13 }
 0x116   :  { %v385_v58 = vsel %vm366_vm4, %v382_v48, %v384_v52  ;;  %v405_v59 = vadd.f32 %v384_v52, %v10402_v29 }
 0x117   :  { %v420_v61 = vadd.f32 %v10410_v47, %v403_v56  ;;  %v404_v62 = vadd.f32 %v385_v58, %v10399_v25 }
 0x118   :  { %v422_v4 = vadd.f32 %v10410_v47, %v405_v59 }
 0x119   :  { %v437_v1 = vsel %vm423_vm5, %v420_v61, 0.0  ;;  %v421_v3 = vadd.f32 %v10410_v47, %v404_v62 }
 0x11a   :  { %v438_v5 = vadd.f32 %v437_v1, %v436_v53  ;;  %v442_v9 = vsel %vm441_vm6, %v422_v4, 0.0 }
 0x11b   :  { %v439_v6 = vsel %vm423_vm5, %v421_v3, 0.0 }
 0x11c   :  { %v440_v7 = vadd.f32 %v439_v6, %v438_v5 }
 0x11e   :  { %v443_v10 = vadd.f32 %v442_v9, %v440_v7  ;;  %v7989_v7 = vld [vmem:[%s13637_s29] ss:$0 sm:$0xff] }
 0x120   :  { %v444_v11 = vrot.slane %v443_v10, 4 }
 0x122   :  { %v445_v29 = vadd.f32 %v444_v11, %v443_v10 }
 0x124   :  { %v446_v13 = vrot.slane %v445_v29, 2 }
 0x126   :  { %v447_v14 = vadd.f32 %v446_v13, %v445_v29  ;;  %v7990_v13 = vld [vmem:[%s13638_s14] ss:$0 sm:$0xff] }
 0x128   :  { %v448_v15 = vrot.slane %v447_v14, 1 }
 0x12a   :  { %v449_v25 = vadd.f32 %v448_v15, %v447_v14 }
 0x12c   :  { %v451_v16 = vmul.f32 0.012658228, %v449_v25 }
 0x12e   :  { %v452_v17 = vsub.f32 %v10414_v57, %v451_v16  ;;  %v453_v18 = vsub.f32 %v10418_v60, %v451_v16  ;;  %v454_v47 = vsub.f32 %v10423_v63, %v451_v16  ;;  %v455_v19 = vsub.f32 %v416_v21, %v451_v16 }
 0x12f   :  { %v456_v20 = vsub.f32 %v417_v26, %v451_v16  ;;  %v457_v22 = vsub.f32 %v418_v41, %v451_v16  ;;  %v10454_v27 = vsub.f32 %v419_v43, %v451_v16  ;;  %v10456_v28 = vsub.f32 %v420_v61, %v451_v16 }
 0x130   :  { %v460_v30 = vsub.f32 %v421_v3, %v451_v16  ;;  %v461_v31 = vsub.f32 %v422_v4, %v451_v16  ;;  %v462_v32 = vmul.f32 %v452_v17, %v452_v17  ;;  %v463_v33 = vmul.f32 %v453_v18, %v453_v18 }
 0x131   :  { %v464_v34 = vmul.f32 %v454_v47, %v454_v47  ;;  %v465_v35 = vmul.f32 %v455_v19, %v455_v19  ;;  %v466_v37 = vmul.f32 %v456_v20, %v456_v20  ;;  %v467_v26 = vmul.f32 %v457_v22, %v457_v22 }
 0x132   :  { %v472_v36 = vsel %vm423_vm5, %v462_v32, 0.0  ;;  %v473_v57 = vsel %vm423_vm5, %v463_v33, 0.0  ;;  %v468_v40 = vmul.f32 %v10454_v27, %v10454_v27  ;;  %v469_v43 = vmul.f32 %v10456_v28, %v10456_v28 }
 0x133   :  { %v474_v60 = vadd.f32 %v473_v57, %v472_v36  ;;  %v475_v63 = vsel %vm423_vm5, %v464_v34, 0.0  ;;  %v477_v38 = vsel %vm423_vm5, %v465_v35, 0.0  ;;  %v479_v41 = vsel %vm423_vm5, %v466_v37, 0.0 }
 0x134   :  { %v481_v44 = vsel %vm423_vm5, %v467_v26, 0.0  ;;  %v470_v46 = vmul.f32 %v460_v30, %v460_v30  ;;  %v483_v48 = vsel %vm423_vm5, %v468_v40, 0.0  ;;  %v471_v50 = vmul.f32 %v461_v31, %v461_v31 }
 0x135   :  { %v476_v21 = vadd.f32 %v475_v63, %v474_v60  ;;  %v485_v51 = vsel %vm423_vm5, %v469_v43, 0.0 }
 0x136   :  { %v487_v54 = vsel %vm423_vm5, %v470_v46, 0.0  ;;  %v489_v55 = vsel %vm441_vm6, %v471_v50, 0.0 }
 0x137   :  { %v478_v39 = vadd.f32 %v477_v38, %v476_v21 }
 0x139   :  { %v480_v42 = vadd.f32 %v479_v41, %v478_v39 }
 0x13b   :  { %v482_v45 = vadd.f32 %v481_v44, %v480_v42 }
 0x13d   :  { %v484_v49 = vadd.f32 %v483_v48, %v482_v45 }
 0x13f   :  { %v486_v53 = vadd.f32 %v485_v51, %v484_v49 }
 0x141   :  { %v488_v52 = vadd.f32 %v487_v54, %v486_v53 }
 0x143   :  { %v490_v56 = vadd.f32 %v489_v55, %v488_v52 }
 0x145   :  { %v491_v58 = vrot.slane %v490_v56, 4 }
 0x147   :  { %v492_v59 = vadd.f32 %v491_v58, %v490_v56 }
 0x149   :  { %v493_v61 = vrot.slane %v492_v59, 2 }
 0x14b   :  { %v494_v62 = vadd.f32 %v493_v61, %v492_v59 }
 0x14d   :  { %v495_v1 = vrot.slane %v494_v62, 1 }
 0x14f   :  { %v496_v3 = vadd.f32 %v495_v1, %v494_v62 }
 0x151   :  { %v497_v4 = vmul.f32 0.012658228, %v496_v3 }
 0x153   :  { %v498_v5 = vadd.f32 1e-05, %v497_v4 }
 0x155   :  { %9607 = vrsqrt.f32 %v498_v5 }
 0x15f   :  { %v9608_v6 = vpop.eup %9607 }
 0x160   :  { %v508_v9 = vmul.f32 %v9608_v6, %v460_v30  ;;  %v509_v10 = vmul.f32 %v9608_v6, %v461_v31  ;;  %v500_v11 = vmul.f32 %v9608_v6, %v452_v17  ;;  %v501_v29 = vmul.f32 %v9608_v6, %v453_v18 }
 0x161   :  { %v502_v14 = vmul.f32 %v9608_v6, %v454_v47  ;;  %v503_v15 = vmul.f32 %v9608_v6, %v455_v19  ;;  %v504_v25 = vmul.f32 %v9608_v6, %v456_v20  ;;  %v505_v16 = vmul.f32 %v9608_v6, %v457_v22 }
 0x162   :  { %v525_v32 = vmul.f32 %v7989_v7, %v508_v9  ;;  %v526_v33 = vmul.f32 %v7989_v7, %v509_v10  ;;  %v517_v34 = vmul.f32 %v7989_v7, %v500_v11  ;;  %v518_v35 = vmul.f32 %v7989_v7, %v501_v29 }
 0x163   :  { %v519_v36 = vmul.f32 %v7989_v7, %v502_v14  ;;  %v520_v57 = vmul.f32 %v7989_v7, %v503_v15  ;;  %v521_v60 = vmul.f32 %v7989_v7, %v504_v25  ;;  %v522_v37 = vmul.f32 %v7989_v7, %v505_v16 }
 0x164   :  { %v10478_v30 = vadd.f32 %v7990_v13, %v525_v32  ;;  %v10480_v17 = vadd.f32 %v7990_v13, %v526_v33  ;;  %v10482_v18 = vadd.f32 %v7990_v13, %v517_v34  ;;  %v10484_v31 = vadd.f32 %v7990_v13, %v518_v35 }
 0x165   :  { %v10486_v47 = vadd.f32 %v7990_v13, %v519_v36  ;;  %v10488_v19 = vadd.f32 %v7990_v13, %v520_v57  ;;  %v10490_v20 = vadd.f32 %v7990_v13, %v521_v60  ;;  %v10492_v22 = vadd.f32 %v7990_v13, %v522_v37 }
 0x166   :  { %v544_v63 = vmul.f32 %v10482_v18, %v10482_v18  ;;  %v545_v21 = vmul.f32 %v10484_v31, %v10484_v31  ;;  %v506_v26 = vmul.f32 %v9608_v6, %v10454_v27  ;;  %v507_v38 = vmul.f32 %v9608_v6, %v10456_v28 }
 0x167   :  { %v546_v39 = vmul.f32 %v10486_v47, %v10486_v47  ;;  %v547_v40 = vmul.f32 %v10488_v19, %v10488_v19  ;;  %v548_v41 = vmul.f32 %v10490_v20, %v10490_v20  ;;  %v549_v42 = vmul.f32 %v10492_v22, %v10492_v22 }
 0x168   :  { %v554_v43 = vmul.f32 %v544_v63, %v10482_v18  ;;  %v555_v44 = vmul.f32 %v545_v21, %v10484_v31  ;;  %v523_v45 = vmul.f32 %v7989_v7, %v506_v26  ;;  %v524_v27 = vmul.f32 %v7989_v7, %v507_v38 }
 0x169   :  { %v556_v28 = vmul.f32 %v546_v39, %v10486_v47  ;;  %v557_v46 = vmul.f32 %v547_v40, %v10488_v19  ;;  %v558_v48 = vmul.f32 %v548_v41, %v10490_v20  ;;  %v559_v49 = vmul.f32 %v549_v42, %v10492_v22 }
 0x16a   :  { %v564_v50 = vmul.f32 0.044715, %v554_v43  ;;  %v565_v51 = vmul.f32 0.044715, %v555_v44  ;;  %v10514_v53 = vadd.f32 %v7990_v13, %v523_v45  ;;  %v10516_v54 = vadd.f32 %v7990_v13, %v524_v27 }
 0x16b   :  { %v566_v52 = vmul.f32 0.044715, %v556_v28  ;;  %v567_v55 = vmul.f32 0.044715, %v557_v46  ;;  %v568_v56 = vmul.f32 0.044715, %v558_v48  ;;  %v552_v58 = vmul.f32 %v10478_v30, %v10478_v30 }
 0x16c   :  { %v574_v59 = vadd.f32 %v564_v50, %v10482_v18  ;;  %v575_v61 = vadd.f32 %v565_v51, %v10484_v31  ;;  %v569_v62 = vmul.f32 0.044715, %v559_v49  ;;  %v550_v1 = vmul.f32 %v10514_v53, %v10514_v53 }
 0x16d   :  { %v576_v3 = vadd.f32 %v566_v52, %v10486_v47  ;;  %v577_v4 = vadd.f32 %v567_v55, %v10488_v19  ;;  %v578_v5 = vadd.f32 %v568_v56, %v10490_v20  ;;  %v551_v6 = vmul.f32 %v10516_v54, %v10516_v54 }
 0x16e   :  { %v584_v7 = vmul.f32 0.7978846, %v574_v59  ;;  %v585_v9 = vmul.f32 0.7978846, %v575_v61  ;;  %v579_v10 = vadd.f32 %v569_v62, %v10492_v22  ;;  %v560_v11 = vmul.f32 %v550_v1, %v10514_v53 }
 0x16f   :  { %v586_v29 = vmul.f32 0.7978846, %v576_v3  ;;  %v587_v13 = vmul.f32 0.7978846, %v577_v4  ;;  %v561_v14 = vmul.f32 %v551_v6, %v10516_v54  ;;  %v588_v15 = vmul.f32 0.7978846, %v578_v5 }
 0x170   :  { %9609 = vtanh.f32 %v584_v7  ;;  %v570_v25 = vmul.f32 0.044715, %v560_v11  ;;  %v553_v16 = vmul.f32 %v10480_v17, %v10480_v17  ;;  %v589_v32 = vmul.f32 0.7978846, %v579_v10 }
 0x171   :  { %9611 = vtanh.f32 %v585_v9  ;;  %v571_v33 = vmul.f32 0.044715, %v561_v14  ;;  %v562_v34 = vmul.f32 %v552_v58, %v10478_v30 }
 0x172   :  { %9613 = vtanh.f32 %v586_v29  ;;  %v580_v35 = vadd.f32 %v570_v25, %v10514_v53  ;;  %v563_v36 = vmul.f32 %v553_v16, %v10480_v17 }
 0x173   :  { %9615 = vtanh.f32 %v587_v13  ;;  %v581_v57 = vadd.f32 %v571_v33, %v10516_v54  ;;  %v572_v60 = vmul.f32 0.044715, %v562_v34 }
 0x174   :  { %9617 = vtanh.f32 %v588_v15  ;;  %v590_v37 = vmul.f32 0.7978846, %v580_v35  ;;  %v573_v63 = vmul.f32 0.044715, %v563_v36 }
 0x175   :  { %9619 = vtanh.f32 %v589_v32  ;;  %v591_v21 = vmul.f32 0.7978846, %v581_v57  ;;  %v582_v26 = vadd.f32 %v572_v60, %v10478_v30 }
 0x176   :  { %9621 = vtanh.f32 %v590_v37  ;;  %v583_v38 = vadd.f32 %v573_v63, %v10480_v17 }
 0x177   :  { %9623 = vtanh.f32 %v591_v21  ;;  %v592_v39 = vmul.f32 0.7978846, %v582_v26  ;;  %v90_v26 = vlaneseq }
 0x178   :  { %v593_v40 = vmul.f32 0.7978846, %v583_v38 }
 0x179   :  { %9625 = vtanh.f32 %v592_v39 }
 0x17a   :  { %v9610_v41 = vpop.eup %9609  ;;  %9627 = vtanh.f32 %v593_v40 }
 0x17b   :  { %v9612_v42 = vpop.eup %9611  ;;  %v604_v43 = vadd.f32 1.0, %v9610_v41  ;;  %v91_v41 = vshrl.u32 %v90_v26, 7 }
 0x17c   :  { %v9614_v44 = vpop.eup %9613  ;;  %v605_v45 = vadd.f32 1.0, %v9612_v42 }
 0x17d   :  { %v9616_v27 = vpop.eup %9615  ;;  %v614_v28 = vmul.f32 0.5, %v604_v43  ;;  %v606_v46 = vadd.f32 1.0, %v9614_v44  ;;  %v92_v44 = vadd.s32 8, %v91_v41 }
 0x17e   :  { %v9618_v48 = vpop.eup %9617  ;;  %v615_v49 = vmul.f32 0.5, %v605_v45  ;;  %v607_v50 = vadd.f32 1.0, %v9616_v27 }
 0x17f   :  { %v9620_v51 = vpop.eup %9619  ;;  %v624_v52 = vmul.f32 %v614_v28, %v10482_v18  ;;  %v616_v55 = vmul.f32 0.5, %v606_v46  ;;  %v608_v56 = vadd.f32 1.0, %v9618_v48  ;;  %v98_v46 = vmul.u32 2, %v91_v41 }
 0x180   :  { %v9622_v58 = vpop.eup %9621  ;;  %v625_v59 = vmul.f32 %v615_v49, %v10484_v31  ;;  %v617_v61 = vmul.f32 0.5, %v607_v50  ;;  %v609_v62 = vadd.f32 1.0, %v9620_v51  ;;  %v99_v48 = vmul.u32 2, %v92_v44 }
 0x181   :  { %v9624_v1 = vpop.eup %9623  ;;  %v626_v3 = vmul.f32 %v616_v55, %v10486_v47  ;;  %v618_v4 = vmul.f32 0.5, %v608_v56  ;;  %v610_v5 = vadd.f32 1.0, %v9622_v58  ;;  %v10577_v51 = vand.u32 127, %v90_v26 }
 0x182   :  { %v634_v6 = vpack.c.bf16 %v625_v59, %v624_v52  ;;  %v627_v7 = vmul.f32 %v617_v61, %v10488_v19  ;;  %v619_v9 = vmul.f32 0.5, %v609_v62  ;;  %v611_v10 = vadd.f32 1.0, %v9624_v1 }
 0x183   :  { %v9626_v11 = vpop.eup %9625  ;;  %v628_v18 = vmul.f32 %v618_v4, %v10490_v20  ;;  %v620_v29 = vmul.f32 0.5, %v610_v5  ;;  %v93_v52 = vadd.s32 16, %v91_v41  ;;  %v94_v55 = vadd.s32 24, %v91_v41 }
 0x184   :  { %v9628_v13 = vpop.eup %9627  ;;  %8663 = vmatmul.mubr.msk.bf16.vlgmr.msra.gmra.mrb[16].mxu0 %vm423_vm5, %v634_v6  ;;  %v635_v31 = vpack.c.bf16 %v627_v7, %v626_v3  ;;  %v629_v14 = vmul.f32 %v619_v9, %v10492_v22  ;;  %v621_v15 = vmul.f32 0.5, %v611_v10  ;;  %v612_v25 = vadd.f32 1.0, %v9626_v11 }
 0x185   :  { %8666 = vmatprep.mubr.msk.bf16.mxu0 %vm10156_vm2, %v13595_v0  ;;  %v630_v47 = vmul.f32 %v620_v29, %v10514_v53  ;;  %v613_v19 = vadd.f32 1.0, %v9628_v13  ;;  %8749 = vmatpush3.bf16.msra.mxu0 %v10320_v8  ;;  %v121_v56 = vadd.s32 1, %v98_v46  ;;  %v122_v58 = vadd.s32 1, %v99_v48 }
 0x186   :  { %v636_v16 = vpack.c.bf16 %v629_v14, %v628_v18  ;;  %v631_v20 = vmul.f32 %v621_v15, %v10516_v54  ;;  %v622_v32 = vmul.f32 0.5, %v612_v25  ;;  %8792 = vmatprep.subr.bf16.mxu0 %v13595_v0  ;;  %v760_v59 = vsel %vm366_vm4, 4294967295, %v10155_v2 }
 0x187   :  { %v623_v33 = vmul.f32 0.5, %v613_v19  ;;  %vm126_vm8 = vcmp.eq.s32.totalorder %v10577_v51, %v121_v56  ;;  %vm127_vm9 = vcmp.eq.s32.totalorder %v10577_v51, %v122_v58  ;;  %vm103_vm10 = vcmp.eq.s32.totalorder %v10577_v51, %v98_v46 }
 0x188   :  { %v637_v34 = vpack.c.bf16 %v631_v20, %v630_v47  ;;  %v632_v22 = vmul.f32 %v622_v32, %v10478_v30  ;;  %v7968_v61 = vsel %vm126_vm8, 1.0, %v13595_v0  ;;  %v7969_v62 = vsel %vm127_vm9, 1.0, %v13595_v0 }
 0x189   :  { %v633_v35 = vmul.f32 %v623_v33, %v10480_v17  ;;  %vm104_vm11 = vcmp.eq.s32.totalorder %v10577_v51, %v99_v48  ;;  %v100_v3 = vmul.u32 2, %v93_v52  ;;  %v101_v4 = vmul.u32 2, %v94_v55 }
 0x18a   :  { %v10589_v5 = vpack.c.bf16 %v7969_v62, %v7968_v61  ;;  %v10593_v7 = vsel %vm759_vm7, %v760_v59, 0  ;;  %v7963_v29 = vsel %vm103_vm10, 1.0, %v13595_v0  ;;  %v7964_v13 = vsel %vm104_vm11, 1.0, %v13595_v0 }
 0x18b   :  { %v638_v36 = vpack.c.bf16 %v633_v35, %v632_v22  ;;  %v123_v9 = vadd.s32 1, %v100_v3  ;;  %v124_v10 = vadd.s32 1, %v101_v4  ;;  %v10606_v25 = vpack.c.bf16 %v7964_v13, %v7963_v29 }
 0x18c   :  { %8667 = vmatmul.mubr.msk.bf16.gmra.mrb[20].mxu0 %vm423_vm5, %v635_v31  ;;  %vm105_vm15 = vcmp.eq.s32.totalorder %v10577_v51, %v100_v3  ;;  %vm106_vm0 = vcmp.eq.s32.totalorder %v10577_v51, %v101_v4  ;;  %v95_v19 = vadd.s32 32, %v91_v41  ;;  %v145_v22 = vadd.s32 2, %v99_v48  ;;  %v8013_v41 = vld [vmem:[%s13634_s11 + $0x78] sm:$0xff] }
 0x18d   :  { %8670 = vmatprep.mubr.msk.bf16.mxu0 %vm10156_vm2, %v13595_v0  ;;  %vm128_vm12 = vcmp.eq.s32.totalorder %v10577_v51, %v123_v9  ;;  %vm129_vm13 = vcmp.eq.s32.totalorder %v10577_v51, %v124_v10  ;;  %v7966_v20 = vsel %vm106_vm0, 1.0, %v13595_v0 }
 0x18e   :  { %v7970_v14 = vsel %vm128_vm12, 1.0, %v13595_v0  ;;  %v7971_v15 = vsel %vm129_vm13, 1.0, %v13595_v0  ;;  %v10622_v32 = vmul.u32 2, %v95_v19  ;;  %vm150_vm8 = vcmp.eq.s32.totalorder %v10577_v51, %v145_v22 }
 0x18f   :  { %v10608_v47 = vpack.c.bf16 %v7971_v15, %v7970_v14  ;;  %vm3315_vm13 = vcmask 326656  }
 0x190   :  { %vm107_vm1 = vcmp.eq.s32.totalorder %v10577_v51, %v10622_v32  ;;  %v125_v58 = vadd.s32 1, %v10622_v32 }
 0x192   :  { %vm130_vm11 = vcmp.eq.s32.totalorder %v10577_v51, %v125_v58 }
 0x193   :  { %v7972_v62 = vsel %vm130_vm11, 1.0, %v13595_v0 }
 0x194   :  { %8671 = vmatmul.mubr.msk.bf16.gmra.mrb[24].mxu0 %vm423_vm5, %v636_v16  ;;  %v7965_v16 = vsel %vm105_vm15, 1.0, %v13595_v0 }
 0x195   :  { %8674 = vmatprep.mubr.msk.bf16.mxu0 %vm10156_vm2, %v13595_v0  ;;  %v10625_v33 = vpack.c.bf16 %v7966_v20, %v7965_v16 }
 0x19c   :  { %8675 = vmatmul.mubr.msk.bf16.gmra.mrb[28].mxu0 %vm423_vm5, %v637_v34  ;;  %v144_v34 = vadd.s32 2, %v98_v46 }
 0x19d   :  { %8678 = vmatprep.mubr.msk.bf16.mxu0 %vm10156_vm2, %v13595_v0 }
 0x19e   :  { %vm149_vm7 = vcmp.eq.s32.totalorder %v10577_v51, %v144_v34 }
 0x19f   :  { %v7973_v35 = vsel %vm149_vm7, 1.0, %v13595_v0 }
 0x1a4   :  { %8679 = vmatmul.mubr.msk.bf16.gmra.mrb[32].mxu0 %vm423_vm5, %v638_v36  ;;  %v7974_v36 = vsel %vm150_vm8, 1.0, %v13595_v0 }
 0x1a5   :  { %8750 = vmatprep.mubr.msk.bf16.mxu0 %vm10156_vm2, %v13595_v0 }
 0x257   :  { %v704_v8 = vpop.f32.mrb[16].mxu0 }
 0x258   :  { %v8664_v30 = vpop.f32.mrb[17].mxu0 }
 0x259   :  { %v707_v17 = vpop.f32.mrb[18].mxu0  ;;  %v7967_v30 = vsel %vm107_vm1, 1.0, %v13595_v0 }
 0x25a   :  { %v743_v53 = vpack.c.bf16 %v707_v17, %v704_v8  ;;  %v8665_v54 = vpop.f32.mrb[19].mxu0  ;;  %v10635_v8 = vpack.c.bf16 %v7974_v36, %v7973_v35  ;;  %v10640_v17 = vpack.c.bf16 %v7967_v30, %v7967_v30 }
 0x25b   :  { %v147_v54 = vadd.s32 2, %v101_v4  ;;  %v10736_v4 = vpack.c.bf16 %v7972_v62, %v7972_v62 }
 0x25c   :  { %837 = vrot.lane.b32.xlu0 %v743_v53, %s10157_s2  ;;  %8683 = vmatpush3.bf16.msra.mxu1 %v743_v53 }
 0x25d   :  { %8684 = vmatprep.subr.bf16.mxu1 %v13595_v0  ;;  %vm152_vm10 = vcmp.eq.s32.totalorder %v10577_v51, %v147_v54 }
 0x25f   :  { %v712_v57 = vpop.f32.mrb[20].mxu0 }
 0x260   :  { %v8668_v60 = vpop.f32.mrb[21].mxu0 }
 0x261   :  { %v715_v37 = vpop.f32.mrb[22].mxu0  ;;  %v7976_v60 = vsel %vm152_vm10, 1.0, %v13595_v0 }
 0x262   :  { %v10569_v63 = vpack.c.bf16 %v715_v37, %v712_v57  ;;  %v8669_v21 = vpop.f32.mrb[23].mxu0 }
 0x263   :  { %v8009_v21 = vld [vmem:[%s13634_s11 + $0x58] sm:$0xff] }
 0x264   :  { %839 = vrot.lane.b32.xlu0 %v10569_v63, %s10157_s2  ;;  %8685 = vmatpush3.bf16.msra.mxu1 %v10569_v63 }
 0x265   :  { %8686 = vmatprep.subr.bf16.mxu1 %v13595_v0 }
 0x267   :  { %v720_v38 = vpop.f32.mrb[24].mxu0 }
 0x268   :  { %v8672_v39 = vpop.f32.mrb[25].mxu0 }
 0x269   :  { %v723_v40 = vpop.f32.mrb[26].mxu0  ;;  %v8011_v39 = vld [vmem:[%s13634_s11 + $0x68] sm:$0xff] }
 0x26a   :  { %v745_v42 = vpack.c.bf16 %v723_v40, %v720_v38  ;;  %v8673_v43 = vpop.f32.mrb[27].mxu0  ;;  %v8010_v38 = vld [vmem:[%s13634_s11 + $0x60] sm:$0xff] }
 0x26b   :  { %v10673_v40 = vpack.c.bf16 %v8011_v39, %v8010_v38  ;;  %v8015_v43 = vld [vmem:[%s13634_s11 + $0x88] sm:$0xff] }
 0x26c   :  { %841 = vrot.lane.b32.xlu1 %v745_v42, %s10157_s2  ;;  %8687 = vmatpush3.bf16.msra.mxu1 %v745_v42 }
 0x26d   :  { %8688 = vmatprep.subr.bf16.mxu1 %v13595_v0 }
 0x26f   :  { %v728_v45 = vpop.f32.mrb[28].mxu0 }
 0x270   :  { %v8676_v27 = vpop.f32.mrb[29].mxu0 }
 0x271   :  { %v731_v28 = vpop.f32.mrb[30].mxu0  ;;  %v8017_v27 = vld [vmem:[%s13634_s11 + $0x98] sm:$0xff] }
 0x272   :  { %v746_v49 = vpack.c.bf16 %v731_v28, %v728_v45  ;;  %v8677_v50 = vpop.f32.mrb[31].mxu0  ;;  %v8016_v45 = vld [vmem:[%s13634_s11 + $0x90] sm:$0xff] }
 0x273   :  { %v10710_v28 = vpack.c.bf16 %v8017_v27, %v8016_v45 }
 0x274   :  { %843 = vrot.lane.b32.xlu1 %v746_v49, %s10157_s2  ;;  %8689 = vmatpush3.bf16.msra.mxu1 %v746_v49 }
 0x275   :  { %8690 = vmatprep.subr.bf16.mxu1 %v13595_v0 }
 0x277   :  { %v736_v1 = vpop.f32.mrb[32].mxu0 }
 0x278   :  { %924 = vrot.lane.b32.xlu1 %v743_v53, %s10158_s3  ;;  %v8680_v6 = vpop.f32.mrb[33].mxu0  ;;  %v146_v53 = vadd.s32 2, %v100_v3 }
 0x279   :  { %v739_v2 = vpop.f32.mrb[34].mxu0 }
 0x27a   :  { %v747_v11 = vpack.c.bf16 %v739_v2, %v736_v1  ;;  %v8681_v18 = vpop.f32.mrb[35].mxu0  ;;  %vm151_vm9 = vcmp.eq.s32.totalorder %v10577_v51, %v146_v53  ;;  %v148_v2 = vadd.s32 2, %v10622_v32 }
 0x27b   :  { %v7975_v57 = vsel %vm151_vm9, 1.0, %v13595_v0 }
 0x27c   :  { %928 = vrot.lane.b32.xlu1 %v745_v42, %s10158_s3  ;;  %845 = vrot.lane.b32.xlu0 %v747_v11, %s10157_s2  ;;  %v763_v31 = vand.u32 %v10593_v7, %v747_v11  ;;  %v10648_v37 = vpack.c.bf16 %v7976_v60, %v7975_v57  ;;  %vm153_vm12 = vcmp.eq.s32.totalorder %v10577_v51, %v148_v2 }
 0x27d   :  { %v7977_v9 = vsel %vm153_vm12, 1.0, %v13595_v0 }
 0x27e   :  { %8691 = vmatpush3.bf16.msra.mxu1 %v763_v31  ;;  %v10758_v10 = vpack.c.bf16 %v7977_v9, %v7977_v9 }
 0x27f   :  { %8704 = vmatprep.subr.bf16.mxu1 %v13595_v0 }
 0x280   :  { %932 = vrot.lane.b32.xlu1 %v747_v11, %s10158_s3  ;;  %926 = vrot.lane.b32.xlu0 %v10569_v63, %s10158_s3  ;;  %v8008_v63 = vld [vmem:[%s13634_s11 + $0x50] sm:$0xff] }
 0x281   :  { %8693 = vmatmul.mubr.msk.bf16.vlgmr.msra.gmra.mrb[24].mxu1 %vm749_vm14, %v10606_v25  ;;  %v10658_v26 = vpack.c.bf16 %v8009_v21, %v8008_v63 }
 0x282   :  { %8696 = vmatprep.mubr.msk.bf16.mxu1 %vm10156_vm2, %v13595_v0 }
 0x283   :  { %8751 = vmatmul.mubr.msk.bf16.vlgmr.msra.gmra.mrb[36].mxu0 %vm183_vm3, %v10658_v26 }
 0x284   :  { %930 = vrot.lane.b32.xlu0 %v746_v49, %s10158_s3  ;;  %8754 = vmatprep.mubr.msk.bf16.mxu0 %vm10156_vm2, %v13595_v0 }
 0x285   :  { %8793 = vmatpush3.bf16.msra.mxu0 %v10391_v23  ;;  %v8012_v23 = vld [vmem:[%s13634_s11 + $0x70] sm:$0xff] }
 0x286   :  { %8794 = vmatprep.subr.bf16.mxu0 %v13595_v0  ;;  %v10686_v42 = vpack.c.bf16 %v8013_v41, %v8012_v23 }
 0x289   :  { %8697 = vmatmul.mubr.msk.bf16.gmra.mrb[28].mxu1 %vm749_vm14, %v10625_v33  ;;  %8795 = vmatpush3.bf16.msra.mxu0 %v10397_v24  ;;  %v8014_v24 = vld [vmem:[%s13634_s11 + $0x80] sm:$0xff] }
 0x28a   :  { %8700 = vmatprep.mubr.msk.bf16.mxu1 %vm10156_vm2, %v13595_v0  ;;  %8882 = vmatprep.subr.bf16.mxu0 %v13595_v0  ;;  %v10698_v44 = vpack.c.bf16 %v8015_v43, %v8014_v24 }
 0x28b   :  { %8755 = vmatmul.mubr.msk.bf16.gmra.mrb[40].mxu0 %vm183_vm3, %v10673_v40 }
 0x28c   :  { %8758 = vmatprep.mubr.msk.bf16.mxu0 %vm10156_vm2, %v13595_v0 }
 0x291   :  { %8701 = vmatmul.mubr.msk.bf16.gmra.mrb[32].mxu1 %vm749_vm14, %v10640_v17 }
 0x292   :  { %8714 = vmatprep.mubr.msk.bf16.mxu1 %vm10156_vm2, %v13595_v0 }
 0x293   :  { %8759 = vmatmul.mubr.msk.bf16.gmra.mrb[44].mxu0 %vm183_vm3, %v10686_v42 }
 0x294   :  { %8762 = vmatprep.mubr.msk.bf16.mxu0 %vm10156_vm2, %v13595_v0 }
 0x29b   :  { %8763 = vmatmul.mubr.msk.bf16.gmra.mrb[48].mxu0 %vm183_vm3, %v10698_v44 }
 0x29c   :  { %8766 = vmatprep.mubr.msk.bf16.mxu0 %vm10156_vm2, %v13595_v0 }
 0x2a3   :  { %8767 = vmatmul.mubr.msk.bf16.gmra.mrb[52].mxu0 %vm183_vm3, %v10710_v28 }
 0x2a4   :  { %8796 = vmatprep.mubr.msk.bf16.mxu0 %vm10156_vm2, %v13595_v0 }
 0x2ce   :  { %v838_v46 = vpop.permute.xlu0 %837 }
 0x2cf   :  { %8705 = vmatpush3.bf16.msra.mxu1 %v838_v46 }
 0x2d0   :  { %8706 = vmatprep.subr.bf16.mxu1 %v13595_v0 }
 0x2d6   :  { %v840_v48 = vpop.permute.xlu0 %839 }
 0x2d7   :  { %8707 = vmatpush3.bf16.msra.mxu1 %v840_v48 }
 0x2d8   :  { %8708 = vmatprep.subr.bf16.mxu1 %v13595_v0 }
 0x2de   :  { %v842_v49 = vpop.permute.xlu1 %841 }
 0x2df   :  { %8709 = vmatpush3.bf16.msra.mxu1 %v842_v49 }
 0x2e0   :  { %8710 = vmatprep.subr.bf16.mxu1 %v13595_v0 }
 0x2e6   :  { %v844_v50 = vpop.permute.xlu1 %843 }
 0x2e7   :  { %8711 = vmatpush3.bf16.msra.mxu1 %v844_v50 }
 0x2e8   :  { %8712 = vmatprep.subr.bf16.mxu1 %v13595_v0 }
 0x2ea   :  { %v925_v56 = vpop.permute.xlu1 %924 }
 0x2ee   :  { %v846_v52 = vpop.permute.xlu0 %845  ;;  %v929_v61 = vpop.permute.xlu1 %928 }
 0x2ef   :  { %v861_v55 = vand.u32 %v846_v52, %v10593_v7 }
 0x2f1   :  { %8713 = vmatpush3.bf16.msra.mxu1 %v861_v55 }
 0x2f2   :  { %8726 = vmatprep.subr.bf16.mxu1 %v13595_v0  ;;  %v927_v59 = vpop.permute.xlu0 %926  ;;  %v933_v1 = vpop.permute.xlu1 %932 }
 0x2f3   :  { %v948_v6 = vand.u32 %v933_v1, %v10593_v7  ;;  %v10151_v1 = vld [vmem:[%s13636_s6] ss:$0 sm:$0xff] }
 0x2f4   :  { %8715 = vmatmul.mubr.msk.bf16.vlgmr.msra.gmra.mrb[24].mxu1 %vm749_vm14, %v10589_v5 }
 0x2f5   :  { %8727 = vmatpush3.bf16.msra.mxu1 %v925_v56  ;;  %8718 = vmatprep.mubr.msk.bf16.mxu1 %vm10156_vm2, %v13595_v0 }
 0x2f6   :  { %8728 = vmatprep.subr.bf16.mxu1 %v13595_v0  ;;  %v931_v3 = vpop.permute.xlu0 %930 }
 0x2f9   :  { %8729 = vmatpush3.bf16.msra.mxu1 %v927_v59 }
 0x2fa   :  { %8730 = vmatprep.subr.bf16.mxu1 %v13595_v0 }
 0x2fc   :  { %8719 = vmatmul.mubr.msk.bf16.gmra.mrb[28].mxu1 %vm749_vm14, %v10608_v47 }
 0x2fd   :  { %8731 = vmatpush3.bf16.msra.mxu1 %v929_v61  ;;  %8722 = vmatprep.mubr.msk.bf16.mxu1 %vm10156_vm2, %v13595_v0 }
 0x2fe   :  { %8732 = vmatprep.subr.bf16.mxu1 %v13595_v0 }
 0x301   :  { %8733 = vmatpush3.bf16.msra.mxu1 %v931_v3 }
 0x302   :  { %8734 = vmatprep.subr.bf16.mxu1 %v13595_v0 }
 0x304   :  { %8723 = vmatmul.mubr.msk.bf16.gmra.mrb[32].mxu1 %vm749_vm14, %v10736_v4 }
 0x305   :  { %8735 = vmatpush3.bf16.msra.mxu1 %v948_v6  ;;  %8736 = vmatprep.mubr.msk.bf16.mxu1 %vm10156_vm2, %v13595_v0 }
 0x306   :  { %8770 = vmatprep.subr.bf16.mxu1 %v13595_v0 }
 0x30c   :  { %8737 = vmatmul.mubr.msk.bf16.vlgmr.msra.gmra.mrb[24].mxu1 %vm749_vm14, %v10635_v8 }
 0x30d   :  { %8771 = vmatpush3.bf16.msra.mxu1 %v10333_v12  ;;  %8740 = vmatprep.mubr.msk.bf16.mxu1 %vm10156_vm2, %v13595_v0 }
 0x30e   :  { %8816 = vmatprep.subr.bf16.mxu1 %v13595_v0 }
 0x314   :  { %8741 = vmatmul.mubr.msk.bf16.gmra.mrb[28].mxu1 %vm749_vm14, %v10648_v37 }
 0x315   :  { %8744 = vmatprep.mubr.msk.bf16.mxu1 %vm10156_vm2, %v13595_v0 }
 0x31c   :  { %8745 = vmatmul.mubr.msk.bf16.gmra.mrb[32].mxu1 %vm749_vm14, %v10758_v10 }
 0x31d   :  { %8772 = vmatprep.mubr.msk.bf16.mxu1 %vm10156_vm2, %v13595_v0 }
 0x324   :  { %8773 = vmatmul.mubr.msk.bf16.vlgmr.msra.gmra.mrb[36].mxu1 %vm183_vm3, %v10658_v26 }
 0x325   :  { %8776 = vmatprep.mubr.msk.bf16.mxu1 %vm10156_vm2, %v13595_v0 }
 0x32c   :  { %8777 = vmatmul.mubr.msk.bf16.gmra.mrb[40].mxu1 %vm183_vm3, %v10673_v40 }
 0x32d   :  { %8780 = vmatprep.mubr.msk.bf16.mxu1 %vm10156_vm2, %v13595_v0 }
 0x334   :  { %8781 = vmatmul.mubr.msk.bf16.gmra.mrb[44].mxu1 %vm183_vm3, %v10686_v42 }
 0x335   :  { %8784 = vmatprep.mubr.msk.bf16.mxu1 %vm10156_vm2, %v13595_v0 }
 0x33c   :  { %8785 = vmatmul.mubr.msk.bf16.gmra.mrb[48].mxu1 %vm183_vm3, %v10698_v44 }
 0x33d   :  { %8788 = vmatprep.mubr.msk.bf16.mxu1 %vm10156_vm2, %v13595_v0 }
 0x344   :  { %8789 = vmatmul.mubr.msk.bf16.gmra.mrb[52].mxu1 %vm183_vm3, %v10710_v28  ;;  %vm2587_vm3 = vcmask 1043456  }
 0x345   :  { %8826 = vmatprep.mubr.msk.bf16.mxu1 %vm10156_vm2, %v13595_v0 }
 0x356   :  { %v1121_v12 = vpop.f32.mrb[36].mxu0 }
 0x357   :  { %v8752_v11 = vpop.f32.mrb[37].mxu0 }
 0x358   :  { %v1124_v18 = vpop.f32.mrb[38].mxu0 }
 0x359   :  { %v8753_v29 = vpop.f32.mrb[39].mxu0 }
 0x35e   :  { %v1129_v13 = vpop.f32.mrb[40].mxu0 }
 0x35f   :  { %v8756_v31 = vpop.f32.mrb[41].mxu0 }
 0x360   :  { %v1132_v14 = vpop.f32.mrb[42].mxu0 }
 0x361   :  { %v8757_v15 = vpop.f32.mrb[43].mxu0 }
 0x366   :  { %v1137_v19 = vpop.f32.mrb[44].mxu0 }
 0x367   :  { %v8760_v16 = vpop.f32.mrb[45].mxu0 }
 0x368   :  { %v10784_v20 = vpop.f32.mrb[46].mxu0 }
 0x369   :  { %v8761_v32 = vpop.f32.mrb[47].mxu0 }
 0x36e   :  { %v10786_v34 = vpop.f32.mrb[48].mxu0 }
 0x36f   :  { %v8764_v22 = vpop.f32.mrb[49].mxu0 }
 0x370   :  { %v10788_v35 = vpop.f32.mrb[50].mxu0 }
 0x371   :  { %v8765_v36 = vpop.f32.mrb[51].mxu0 }
 0x376   :  { %v10790_v30 = vpop.f32.mrb[52].mxu0 }
 0x377   :  { %v8768_v53 = vpop.f32.mrb[53].mxu0 }
 0x378   :  { %v10792_v54 = vpop.f32.mrb[54].mxu0 }
 0x379   :  { %v8769_v57 = vpop.f32.mrb[55].mxu0 }
 0x3df   :  { %v10794_v60 = vpop.f32.mrb[24].mxu1 }
 0x3e0   :  { %v8738_v63 = vpop.f32.mrb[25].mxu1 }
 0x3e1   :  { %v10796_v21 = vpop.f32.mrb[26].mxu1 }
 0x3e2   :  { %v8739_v26 = vpop.f32.mrb[27].mxu1 }
 0x3e7   :  { %v10798_v38 = vpop.f32.mrb[28].mxu1 }
 0x3e8   :  { %v8742_v39 = vpop.f32.mrb[29].mxu1 }
 0x3e9   :  { %v10800_v40 = vpop.f32.mrb[30].mxu1 }
 0x3ea   :  { %v8743_v23 = vpop.f32.mrb[31].mxu1 }
 0x3ef   :  { %v10802_v41 = vpop.f32.mrb[32].mxu1 }
 0x3f0   :  { %v8746_v42 = vpop.f32.mrb[33].mxu1 }
 0x3f1   :  { %v1003_v24 = vpop.f32.mrb[34].mxu1 }
 0x3f2   :  { %v8747_v43 = vpop.f32.mrb[35].mxu1 }
 0x3f7   :  { %v1194_v44 = vpop.f32.mrb[36].mxu1 }
 0x3f8   :  { %v8774_v45 = vpop.f32.mrb[37].mxu1  ;;  %v1243_v28 = vrot.slane %v1194_v44, 1 }
 0x3f9   :  { %v1197_v27 = vpop.f32.mrb[38].mxu1 }
 0x3fa   :  { %v1244_v46 = vrot.slane %v1197_v27, 1  ;;  %v8775_v48 = vpop.f32.mrb[39].mxu1 }
 0x3fc   :  { %v1245_v49 = vsel %vm366_vm4, %v1243_v28, %v1244_v46 }
 0x3fd   :  { %v1272_v50 = vadd.f32 %v1245_v49, %v1121_v12 }
 0x3ff   :  { %v1202_v52 = vpop.f32.mrb[40].mxu1  ;;  %v10809_v3 = vadd.f32 %v10151_v1, %v1272_v50 }
 0x400   :  { %v1246_v55 = vrot.slane %v1202_v52, 1  ;;  %v8778_v56 = vpop.f32.mrb[41].mxu1 }
 0x401   :  { %v1205_v58 = vpop.f32.mrb[42].mxu1  ;;  %v1292_v11 = vsel %vm423_vm5, %v10809_v3, 0.0 }
 0x402   :  { %v1247_v59 = vsel %vm366_vm4, %v1244_v46, %v1246_v55  ;;  %v1248_v61 = vrot.slane %v1205_v58, 1  ;;  %v8779_v62 = vpop.f32.mrb[43].mxu1 }
 0x403   :  { %v1273_v6 = vadd.f32 %v1247_v59, %v1124_v18 }
 0x404   :  { %v1249_v2 = vsel %vm366_vm4, %v1246_v55, %v1248_v61 }
 0x405   :  { %v10812_v9 = vadd.f32 %v10151_v1, %v1273_v6  ;;  %v1274_v12 = vadd.f32 %v1249_v2, %v1129_v13 }
 0x407   :  { %v1293_v29 = vsel %vm423_vm5, %v10812_v9, 0.0  ;;  %v10818_v31 = vadd.f32 %v10151_v1, %v1274_v12  ;;  %v1210_v15 = vpop.f32.mrb[44].mxu1 }
 0x408   :  { %v1294_v16 = vadd.f32 %v1293_v29, %v1292_v11  ;;  %v1250_v32 = vrot.slane %v1210_v15, 1  ;;  %v8782_v22 = vpop.f32.mrb[45].mxu1 }
 0x409   :  { %v1295_v18 = vsel %vm423_vm5, %v10818_v31, 0.0  ;;  %v1213_v36 = vpop.f32.mrb[46].mxu1 }
 0x40a   :  { %v1296_v53 = vadd.f32 %v1295_v18, %v1294_v16  ;;  %v1251_v57 = vsel %vm366_vm4, %v1248_v61, %v1250_v32  ;;  %v1252_v13 = vrot.slane %v1213_v36, 1  ;;  %v8783_v63 = vpop.f32.mrb[47].mxu1 }
 0x40b   :  { %v1275_v26 = vadd.f32 %v1251_v57, %v1132_v14 }
 0x40c   :  { %v1253_v39 = vsel %vm366_vm4, %v1250_v32, %v1252_v13 }
 0x40d   :  { %v1285_v23 = vadd.f32 %v10151_v1, %v1275_v26  ;;  %v1276_v42 = vadd.f32 %v1253_v39, %v1137_v19 }
 0x40f   :  { %v1297_v24 = vsel %vm423_vm5, %v1285_v23, 0.0  ;;  %v1286_v43 = vadd.f32 %v10151_v1, %v1276_v42  ;;  %v1218_v44 = vpop.f32.mrb[48].mxu1 }
 0x410   :  { %v1298_v45 = vadd.f32 %v1297_v24, %v1296_v53  ;;  %v1254_v27 = vrot.slane %v1218_v44, 1  ;;  %v8786_v28 = vpop.f32.mrb[49].mxu1 }
 0x411   :  { %v1299_v46 = vsel %vm423_vm5, %v1286_v43, 0.0  ;;  %v1221_v48 = vpop.f32.mrb[50].mxu1 }
 0x412   :  { %v1300_v49 = vadd.f32 %v1299_v46, %v1298_v45  ;;  %v1255_v50 = vsel %vm366_vm4, %v1252_v13, %v1254_v27  ;;  %v1256_v52 = vrot.slane %v1221_v48, 1  ;;  %v8787_v55 = vpop.f32.mrb[51].mxu1 }
 0x413   :  { %v1277_v14 = vadd.f32 %v1255_v50, %v10784_v20 }
 0x414   :  { %v1257_v56 = vsel %vm366_vm4, %v1254_v27, %v1256_v52 }
 0x415   :  { %v1287_v19 = vadd.f32 %v10151_v1, %v1277_v14  ;;  %v1278_v58 = vadd.f32 %v1257_v56, %v10786_v34 }
 0x417   :  { %v1301_v59 = vsel %vm423_vm5, %v1287_v19, 0.0  ;;  %v1288_v61 = vadd.f32 %v10151_v1, %v1278_v58  ;;  %v1226_v62 = vpop.f32.mrb[52].mxu1 }
 0x418   :  { %v1302_v6 = vadd.f32 %v1301_v59, %v1300_v49  ;;  %v1258_v2 = vrot.slane %v1226_v62, 1  ;;  %v8790_v12 = vpop.f32.mrb[53].mxu1 }
 0x419   :  { %v1303_v11 = vsel %vm423_vm5, %v1288_v61, 0.0  ;;  %v1229_v29 = vpop.f32.mrb[54].mxu1 }
 0x41a   :  { %v1304_v15 = vadd.f32 %v1303_v11, %v1302_v6  ;;  %v1259_v16 = vsel %vm366_vm4, %v1256_v52, %v1258_v2  ;;  %v1260_v32 = vrot.slane %v1229_v29, 1  ;;  %v8791_v20 = vpop.f32.mrb[55].mxu1 }
 0x41b   :  { %v1279_v22 = vadd.f32 %v1259_v16, %v10788_v35 }
 0x41c   :  { %v1261_v18 = vsel %vm366_vm4, %v1258_v2, %v1260_v32  ;;  %v1281_v34 = vadd.f32 %v1260_v32, %v10792_v54  ;;  %vm2577_vm4 = vcmask 64512  }
 0x41d   :  { %v1289_v36 = vadd.f32 %v10151_v1, %v1279_v22  ;;  %v1280_v53 = vadd.f32 %v1261_v18, %v10790_v30 }
 0x41e   :  { %v1291_v63 = vadd.f32 %v10151_v1, %v1281_v34 }
 0x41f   :  { %v1305_v57 = vsel %vm423_vm5, %v1289_v36, 0.0  ;;  %v1290_v13 = vadd.f32 %v10151_v1, %v1280_v53 }
 0x420   :  { %v1306_v26 = vadd.f32 %v1305_v57, %v1304_v15  ;;  %v1309_v24 = vsel %vm441_vm6, %v1291_v63, 0.0 }
 0x421   :  { %v1307_v39 = vsel %vm423_vm5, %v1290_v13, 0.0 }
 0x422   :  { %v1308_v42 = vadd.f32 %v1307_v39, %v1306_v26 }
 0x424   :  { %v1310_v44 = vadd.f32 %v1309_v24, %v1308_v42 }
 0x426   :  { %v1311_v45 = vrot.slane %v1310_v44, 4 }
 0x428   :  { %v1312_v35 = vadd.f32 %v1311_v45, %v1310_v44 }
 0x42a   :  { %v1313_v27 = vrot.slane %v1312_v35, 2 }
 0x42c   :  { %v1314_v28 = vadd.f32 %v1313_v27, %v1312_v35 }
 0x42e   :  { %v1315_v46 = vrot.slane %v1314_v28, 1 }
 0x430   :  { %v1316_v54 = vadd.f32 %v1315_v46, %v1314_v28 }
 0x432   :  { %v1317_v48 = vmul.f32 0.012658228, %v1316_v54 }
 0x434   :  { %v1318_v30 = vsub.f32 %v10809_v3, %v1317_v48  ;;  %v1319_v49 = vsub.f32 %v10812_v9, %v1317_v48  ;;  %v1320_v1 = vsub.f32 %v10818_v31, %v1317_v48  ;;  %v1321_v50 = vsub.f32 %v1285_v23, %v1317_v48 }
 0x435   :  { %v1322_v52 = vsub.f32 %v1286_v43, %v1317_v48  ;;  %v1323_v55 = vsub.f32 %v1287_v19, %v1317_v48  ;;  %v1324_v14 = vsub.f32 %v1288_v61, %v1317_v48  ;;  %v1325_v56 = vsub.f32 %v1289_v36, %v1317_v48 }
 0x436   :  { %v10843_v58 = vsub.f32 %v1290_v13, %v1317_v48  ;;  %v1327_v59 = vsub.f32 %v1291_v63, %v1317_v48  ;;  %v1328_v62 = vmul.f32 %v1318_v30, %v1318_v30  ;;  %v1329_v6 = vmul.f32 %v1319_v49, %v1319_v49 }
 0x437   :  { %v1330_v2 = vmul.f32 %v1320_v1, %v1320_v1  ;;  %v1331_v12 = vmul.f32 %v1321_v50, %v1321_v50  ;;  %v1332_v9 = vmul.f32 %v1322_v52, %v1322_v52  ;;  %v1333_v43 = vmul.f32 %v1323_v55, %v1323_v55 }
 0x438   :  { %v1338_v11 = vsel %vm423_vm5, %v1328_v62, 0.0  ;;  %v1339_v3 = vsel %vm423_vm5, %v1329_v6, 0.0  ;;  %v1334_v15 = vmul.f32 %v1324_v14, %v1324_v14  ;;  %v1335_v20 = vmul.f32 %v1325_v56, %v1325_v56 }
 0x439   :  { %v1340_v29 = vadd.f32 %v1339_v3, %v1338_v11  ;;  %v1341_v31 = vsel %vm423_vm5, %v1330_v2, 0.0  ;;  %v1343_v19 = vsel %vm423_vm5, %v1331_v12, 0.0  ;;  %v1345_v16 = vsel %vm423_vm5, %v1332_v9, 0.0 }
 0x43a   :  { %v1347_v22 = vsel %vm423_vm5, %v1333_v43, 0.0  ;;  %v1336_v34 = vmul.f32 %v10843_v58, %v10843_v58  ;;  %v1349_v36 = vsel %vm423_vm5, %v1334_v15, 0.0  ;;  %v1337_v57 = vmul.f32 %v1327_v59, %v1327_v59 }
 0x43b   :  { %v1342_v23 = vadd.f32 %v1341_v31, %v1340_v29  ;;  %v1351_v13 = vsel %vm423_vm5, %v1335_v20, 0.0 }
 0x43c   :  { %v1353_v26 = vsel %vm423_vm5, %v1336_v34, 0.0  ;;  %v1355_v42 = vsel %vm441_vm6, %v1337_v57, 0.0  ;;  %vm2299_vm6 = vcmp.lt.s32.totalorder %v10577_v51, 39 }
 0x43d   :  { %v1344_v61 = vadd.f32 %v1343_v19, %v1342_v23  ;;  %v10152_v23 = vld [vmem:[%s13637_s29] ss:$0 sm:$0xff] }
 0x43f   :  { %v1346_v32 = vadd.f32 %v1345_v16, %v1344_v61 }
 0x441   :  { %v1348_v18 = vadd.f32 %v1347_v22, %v1346_v32 }
 0x443   :  { %v1350_v53 = vadd.f32 %v1349_v36, %v1348_v18 }
 0x445   :  { %v1352_v63 = vadd.f32 %v1351_v13, %v1350_v53 }
 0x447   :  { %v1354_v39 = vadd.f32 %v1353_v26, %v1352_v63 }
 0x449   :  { %v1356_v24 = vadd.f32 %v1355_v42, %v1354_v39 }
 0x44b   :  { %v1357_v44 = vrot.slane %v1356_v24, 4 }
 0x44d   :  { %v1358_v45 = vadd.f32 %v1357_v44, %v1356_v24 }
 0x44f   :  { %v1359_v35 = vrot.slane %v1358_v45, 2 }
 0x451   :  { %v1360_v27 = vadd.f32 %v1359_v35, %v1358_v45 }
 0x453   :  { %v1361_v28 = vrot.slane %v1360_v27, 1 }
 0x455   :  { %v1362_v46 = vadd.f32 %v1361_v28, %v1360_v27 }
 0x457   :  { %v1363_v54 = vmul.f32 0.012658228, %v1362_v46 }
 0x459   :  { %v1364_v48 = vadd.f32 1e-05, %v1363_v54 }
 0x45b   :  { %9629 = vrsqrt.f32 %v1364_v48 }
 0x465   :  { %v9630_v62 = vpop.eup %9629 }
 0x466   :  { %v1375_v6 = vmul.f32 %v9630_v62, %v1327_v59  ;;  %v1366_v2 = vmul.f32 %v9630_v62, %v1318_v30  ;;  %v1367_v12 = vmul.f32 %v9630_v62, %v1319_v49  ;;  %v1368_v11 = vmul.f32 %v9630_v62, %v1320_v1  ;;  %v10153_v30 = vld [vmem:[%s13638_s14] ss:$0 sm:$0xff]  ;;  %s13643_s14 = sld [smem:[#allocation25_spill]] }
 0x467   :  { %v1369_v3 = vmul.f32 %v9630_v62, %v1321_v50  ;;  %v1370_v29 = vmul.f32 %v9630_v62, %v1322_v52  ;;  %v1371_v9 = vmul.f32 %v9630_v62, %v1323_v55  ;;  %v1372_v31 = vmul.f32 %v9630_v62, %v1324_v14 }
 0x468   :  { %v1385_v43 = vmul.f32 %v10152_v23, %v1375_v6  ;;  %v1376_v19 = vmul.f32 %v10152_v23, %v1366_v2  ;;  %v1377_v61 = vmul.f32 %v10152_v23, %v1367_v12  ;;  %v1378_v15 = vmul.f32 %v10152_v23, %v1368_v11 }
 0x469   :  { %v1379_v16 = vmul.f32 %v10152_v23, %v1369_v3  ;;  %v1380_v32 = vmul.f32 %v10152_v23, %v1370_v29  ;;  %v1381_v20 = vmul.f32 %v10152_v23, %v1371_v9  ;;  %v1373_v22 = vmul.f32 %v9630_v62, %v1325_v56 }
 0x46a   :  { %v10863_v49 = vadd.f32 %v10153_v30, %v1385_v43  ;;  %v10865_v1 = vadd.f32 %v10153_v30, %v1376_v19  ;;  %v10867_v50 = vadd.f32 %v10153_v30, %v1377_v61  ;;  %v10869_v52 = vadd.f32 %v10153_v30, %v1378_v15 }
 0x46b   :  { %v10871_v55 = vadd.f32 %v10153_v30, %v1379_v16  ;;  %v10873_v14 = vadd.f32 %v10153_v30, %v1380_v32  ;;  %v10875_v59 = vadd.f32 %v10153_v30, %v1381_v20  ;;  %v1382_v18 = vmul.f32 %v10152_v23, %v1372_v31 }
 0x46c   :  { %v1396_v56 = vmul.f32 %v10865_v1, %v10865_v1  ;;  %v1397_v34 = vmul.f32 %v10867_v50, %v10867_v50  ;;  %v1398_v36 = vmul.f32 %v10869_v52, %v10869_v52  ;;  %v1383_v53 = vmul.f32 %v10152_v23, %v1373_v22 }
 0x46d   :  { %v1399_v57 = vmul.f32 %v10871_v55, %v10871_v55  ;;  %v1400_v13 = vmul.f32 %v10873_v14, %v10873_v14  ;;  %v1401_v63 = vmul.f32 %v10875_v59, %v10875_v59  ;;  %v10889_v26 = vadd.f32 %v10153_v30, %v1382_v18 }
 0x46e   :  { %v1406_v39 = vmul.f32 %v1396_v56, %v10865_v1  ;;  %v1407_v42 = vmul.f32 %v1397_v34, %v10867_v50  ;;  %v1408_v24 = vmul.f32 %v1398_v36, %v10869_v52  ;;  %v10894_v44 = vadd.f32 %v10153_v30, %v1383_v53 }
 0x46f   :  { %v1409_v45 = vmul.f32 %v1399_v57, %v10871_v55  ;;  %v1410_v35 = vmul.f32 %v1400_v13, %v10873_v14  ;;  %v1411_v27 = vmul.f32 %v1401_v63, %v10875_v59  ;;  %v1402_v28 = vmul.f32 %v10889_v26, %v10889_v26 }
 0x470   :  { %v1416_v46 = vmul.f32 0.044715, %v1406_v39  ;;  %v1417_v54 = vmul.f32 0.044715, %v1407_v42  ;;  %v1418_v48 = vmul.f32 0.044715, %v1408_v24  ;;  %v1403_v6 = vmul.f32 %v10894_v44, %v10894_v44 }
 0x471   :  { %v1419_v2 = vmul.f32 0.044715, %v1409_v45  ;;  %v1420_v12 = vmul.f32 0.044715, %v1410_v35  ;;  %v1421_v11 = vmul.f32 0.044715, %v1411_v27  ;;  %v1412_v3 = vmul.f32 %v1402_v28, %v10889_v26 }
 0x472   :  { %v1426_v29 = vadd.f32 %v1416_v46, %v10865_v1  ;;  %v1427_v9 = vadd.f32 %v1417_v54, %v10867_v50  ;;  %v1428_v31 = vadd.f32 %v1418_v48, %v10869_v52  ;;  %v1413_v43 = vmul.f32 %v1403_v6, %v10894_v44 }
 0x473   :  { %v1429_v19 = vadd.f32 %v1419_v2, %v10871_v55  ;;  %v1430_v61 = vadd.f32 %v1420_v12, %v10873_v14  ;;  %v1431_v15 = vadd.f32 %v1421_v11, %v10875_v59  ;;  %v1422_v16 = vmul.f32 0.044715, %v1412_v3 }
 0x474   :  { %v1436_v32 = vmul.f32 0.7978846, %v1426_v29  ;;  %v1437_v20 = vmul.f32 0.7978846, %v1427_v9  ;;  %v1438_v22 = vmul.f32 0.7978846, %v1428_v31  ;;  %v1374_v18 = vmul.f32 %v9630_v62, %v10843_v58 }
 0x475   :  { %v1439_v56 = vmul.f32 0.7978846, %v1429_v19  ;;  %v1440_v34 = vmul.f32 0.7978846, %v1430_v61  ;;  %v1432_v36 = vadd.f32 %v1422_v16, %v10889_v26  ;;  %v1423_v53 = vmul.f32 0.044715, %v1413_v43 }
 0x476   :  { %9631 = vtanh.f32 %v1436_v32  ;;  %v1384_v57 = vmul.f32 %v10152_v23, %v1374_v18  ;;  %v1405_v13 = vmul.f32 %v10863_v49, %v10863_v49  ;;  %v1441_v63 = vmul.f32 0.7978846, %v1431_v15 }
 0x477   :  { %9633 = vtanh.f32 %v1437_v20  ;;  %v1442_v39 = vmul.f32 0.7978846, %v1432_v36  ;;  %v1433_v42 = vadd.f32 %v1423_v53, %v10894_v44 }
 0x478   :  { %9635 = vtanh.f32 %v1438_v22  ;;  %v10916_v24 = vadd.f32 %v10153_v30, %v1384_v57  ;;  %v1415_v58 = vmul.f32 %v1405_v13, %v10863_v49 }
 0x479   :  { %9637 = vtanh.f32 %v1439_v56  ;;  %v1443_v62 = vmul.f32 0.7978846, %v1433_v42 }
 0x47a   :  { %9639 = vtanh.f32 %v1440_v34  ;;  %v1404_v45 = vmul.f32 %v10916_v24, %v10916_v24  ;;  %v1425_v23 = vmul.f32 0.044715, %v1415_v58 }
 0x47b   :  { %9641 = vtanh.f32 %v1441_v63 }
 0x47c   :  { %9643 = vtanh.f32 %v1442_v39  ;;  %v1414_v35 = vmul.f32 %v1404_v45, %v10916_v24  ;;  %v1435_v27 = vadd.f32 %v1425_v23, %v10863_v49 }
 0x47d   :  { %9645 = vtanh.f32 %v1443_v62 }
 0x47e   :  { %v1424_v28 = vmul.f32 0.044715, %v1414_v35  ;;  %v1445_v46 = vmul.f32 0.7978846, %v1435_v27 }
 0x480   :  { %v9632_v30 = vpop.eup %9631  ;;  %v1434_v54 = vadd.f32 %v1424_v28, %v10916_v24  ;;  %9647 = vtanh.f32 %v1445_v46 }
 0x481   :  { %v9634_v48 = vpop.eup %9633  ;;  %v1456_v6 = vadd.f32 1.0, %v9632_v30 }
 0x482   :  { %v9636_v2 = vpop.eup %9635  ;;  %v1457_v12 = vadd.f32 1.0, %v9634_v48  ;;  %v1444_v11 = vmul.f32 0.7978846, %v1434_v54 }
 0x483   :  { %v9638_v3 = vpop.eup %9637  ;;  %v1466_v29 = vmul.f32 0.5, %v1456_v6  ;;  %v1458_v9 = vadd.f32 1.0, %v9636_v2 }
 0x484   :  { %v9640_v31 = vpop.eup %9639  ;;  %v1467_v43 = vmul.f32 0.5, %v1457_v12  ;;  %v1459_v19 = vadd.f32 1.0, %v9638_v3  ;;  %9649 = vtanh.f32 %v1444_v11 }
 0x485   :  { %v9642_v61 = vpop.eup %9641  ;;  %v1476_v15 = vmul.f32 %v1466_v29, %v10865_v1  ;;  %v1468_v16 = vmul.f32 0.5, %v1458_v9  ;;  %v1460_v32 = vadd.f32 1.0, %v9640_v31 }
 0x486   :  { %v9644_v20 = vpop.eup %9643  ;;  %v1477_v22 = vmul.f32 %v1467_v43, %v10867_v50  ;;  %v1469_v18 = vmul.f32 0.5, %v1459_v19  ;;  %v1461_v56 = vadd.f32 1.0, %v9642_v61 }
 0x487   :  { %v9646_v34 = vpop.eup %9645  ;;  %v1478_v36 = vmul.f32 %v1468_v16, %v10869_v52  ;;  %v1470_v53 = vmul.f32 0.5, %v1460_v32  ;;  %v1462_v57 = vadd.f32 1.0, %v9644_v20  ;;  %v10958_v16 = vld [vmem:[%s13639_s0] ss:$0 sm:$0xff] }
 0x488   :  { %v1486_v13 = vpack.c.bf16 %v1477_v22, %v1476_v15  ;;  %v1479_v63 = vmul.f32 %v1469_v18, %v10871_v55  ;;  %v1471_v39 = vmul.f32 0.5, %v1461_v56  ;;  %v1463_v42 = vadd.f32 1.0, %v9646_v34 }
 0x489   :  { %v1480_v58 = vmul.f32 %v1470_v53, %v10873_v14  ;;  %v1472_v1 = vmul.f32 0.5, %v1462_v57  ;;  %v10962_v22 = vadd.f32 %v10958_v16, %v10794_v60  ;;  %v10966_v56 = vadd.f32 %v10958_v16, %v10796_v21 }
 0x48a   :  { %v9648_v62 = vpop.eup %9647  ;;  %8797 = vmatmul.mubr.msk.bf16.vlgmr.msra.gmra.mrb[56].mxu0 %vm423_vm5, %v1486_v13  ;;  %v1487_v45 = vpack.c.bf16 %v1479_v63, %v1478_v36  ;;  %v1481_v50 = vmul.f32 %v1471_v39, %v10875_v59  ;;  %v1473_v23 = vmul.f32 0.5, %v1463_v42  ;;  %v10973_v57 = vadd.f32 %v10958_v16, %v10798_v38 }
 0x48b   :  { %8800 = vmatprep.mubr.msk.bf16.mxu0 %vm10156_vm2, %v13595_v0  ;;  %v1482_v52 = vmul.f32 %v1472_v1, %v10889_v26  ;;  %v1465_v35 = vadd.f32 1.0, %v9648_v62  ;;  %v1011_v53 = vmul.f32 %v10962_v22, %v10962_v22  ;;  %v1012_v60 = vmul.f32 %v10966_v56, %v10966_v56 }
 0x48c   :  { %v1488_v27 = vpack.c.bf16 %v1481_v50, %v1480_v58  ;;  %v1483_v55 = vmul.f32 %v1473_v23, %v10894_v44  ;;  %v10980_v21 = vadd.f32 %v10958_v16, %v10802_v41  ;;  %v1013_v42 = vmul.f32 %v10973_v57, %v10973_v57 }
 0x48d   :  { %v1475_v28 = vmul.f32 0.5, %v1465_v35  ;;  %v1016_v39 = vmul.f32 %v10962_v22, %v1011_v53  ;;  %v10988_v38 = vadd.f32 %v10958_v16, %v10800_v40  ;;  %v1017_v1 = vmul.f32 %v10966_v56, %v1012_v60 }
 0x48e   :  { %v9650_v46 = vpop.eup %9649  ;;  %v1489_v14 = vpack.c.bf16 %v1483_v55, %v1482_v52  ;;  %v1015_v41 = vmul.f32 %v10980_v21, %v10980_v21  ;;  %v1018_v52 = vmul.f32 %v10973_v57, %v1013_v42 }
 0x48f   :  { %v1464_v30 = vadd.f32 1.0, %v9650_v46  ;;  %v1485_v48 = vmul.f32 %v1475_v28, %v10863_v49  ;;  %v1021_v23 = vmul.f32 0.044715, %v1016_v39  ;;  %v1014_v40 = vmul.f32 %v10988_v38, %v10988_v38 }
 0x490   :  { %v1022_v35 = vmul.f32 0.044715, %v1017_v1  ;;  %v1023_v28 = vmul.f32 0.044715, %v1018_v52 }
 0x491   :  { %v1474_v54 = vmul.f32 0.5, %v1464_v30  ;;  %v1026_v55 = vadd.f32 %v10962_v22, %v1021_v23  ;;  %v1019_v46 = vmul.f32 %v10988_v38, %v1014_v40 }
 0x492   :  { %8801 = vmatmul.mubr.msk.bf16.gmra.mrb[60].mxu0 %vm423_vm5, %v1487_v45 }
 0x493   :  { %8804 = vmatprep.mubr.msk.bf16.mxu0 %vm10156_vm2, %v13595_v0  ;;  %v1484_v59 = vmul.f32 %v1474_v54, %v10916_v24  ;;  %v1028_v54 = vadd.f32 %v10973_v57, %v1023_v28 }
 0x495   :  { %v1490_v6 = vpack.c.bf16 %v1485_v48, %v1484_v59  ;;  %v1024_v48 = vmul.f32 0.044715, %v1019_v46  ;;  %v1031_v59 = vmul.f32 0.7978846, %v1026_v55 }
 0x497   :  { %9651 = vtanh.f32 %v1031_v59 }
 0x49a   :  { %8805 = vmatmul.mubr.msk.bf16.gmra.mrb[64].mxu0 %vm423_vm5, %v1488_v27  ;;  %v1020_v27 = vmul.f32 %v10980_v21, %v1015_v41 }
 0x49b   :  { %8808 = vmatprep.mubr.msk.bf16.mxu0 %vm10156_vm2, %v13595_v0 }
 0x49c   :  { %v1025_v30 = vmul.f32 0.044715, %v1020_v27 }
 0x4a2   :  { %8809 = vmatmul.mubr.msk.bf16.gmra.mrb[68].mxu0 %vm423_vm5, %v1489_v14  ;;  %v1027_v14 = vadd.f32 %v10966_v56, %v1022_v35 }
 0x4a3   :  { %8812 = vmatprep.mubr.msk.bf16.mxu0 %vm10156_vm2, %v13595_v0 }
 0x4aa   :  { %8813 = vmatmul.mubr.msk.bf16.gmra.mrb[72].mxu0 %vm423_vm5, %v1490_v6  ;;  %v1030_v6 = vadd.f32 %v10980_v21, %v1025_v30 }
 0x4ab   :  { %8886 = vmatprep.mubr.msk.bf16.mxu0 %vm10156_vm2, %v13595_v0 }
 0x55d   :  { %v1540_v49 = vpop.f32.mrb[56].mxu0 }
 0x55e   :  { %v8798_v26 = vpop.f32.mrb[57].mxu0 }
 0x55f   :  { %v1543_v44 = vpop.f32.mrb[58].mxu0  ;;  %v1029_v26 = vadd.f32 %v10988_v38, %v1024_v48 }
 0x560   :  { %v1579_v24 = vpack.c.bf16 %v1543_v44, %v1540_v49  ;;  %v8799_v2 = vpop.f32.mrb[59].mxu0  ;;  %v1032_v49 = vmul.f32 0.7978846, %v1027_v14  ;;  %v1033_v44 = vmul.f32 0.7978846, %v1028_v54 }
 0x561   :  { %v9652_v2 = vpop.eup %9651 }
 0x562   :  { %1653 = vrot.lane.b32.xlu0 %v1579_v24, %s10157_s2  ;;  %8817 = vmatpush3.bf16.msra.mxu1 %v1579_v24  ;;  %9653 = vtanh.f32 %v1032_v49 }
 0x563   :  { %8818 = vmatprep.subr.bf16.mxu1 %v13595_v0  ;;  %9655 = vtanh.f32 %v1033_v44 }
 0x565   :  { %v1548_v12 = vpop.f32.mrb[60].mxu0 }
 0x566   :  { %v8802_v11 = vpop.f32.mrb[61].mxu0 }
 0x567   :  { %v1551_v3 = vpop.f32.mrb[62].mxu0  ;;  %v1041_v11 = vadd.f32 1.0, %v9652_v2 }
 0x568   :  { %v1580_v29 = vpack.c.bf16 %v1551_v3, %v1548_v12  ;;  %v8803_v9 = vpop.f32.mrb[63].mxu0 }
 0x569   :  { %v1046_v9 = vmul.f32 0.5, %v1041_v11 }
 0x56a   :  { %1655 = vrot.lane.b32.xlu1 %v1580_v29, %s10157_s2  ;;  %8819 = vmatpush3.bf16.msra.mxu1 %v1580_v29 }
 0x56b   :  { %8820 = vmatprep.subr.bf16.mxu1 %v13595_v0 }
 0x56c   :  { %v9654_v12 = vpop.eup %9653 }
 0x56d   :  { %v1556_v31 = vpop.f32.mrb[64].mxu0  ;;  %v9656_v3 = vpop.eup %9655 }
 0x56e   :  { %v8806_v43 = vpop.f32.mrb[65].mxu0 }
 0x56f   :  { %v1559_v19 = vpop.f32.mrb[66].mxu0 }
 0x570   :  { %v1581_v61 = vpack.c.bf16 %v1559_v19, %v1556_v31  ;;  %v8807_v15 = vpop.f32.mrb[67].mxu0  ;;  %v1043_v31 = vadd.f32 1.0, %v9656_v3 }
 0x571   :  { %v11023_v15 = vmul.f32 %v10962_v22, %v1046_v9 }
 0x572   :  { %1657 = vrot.lane.b32.xlu0 %v1581_v61, %s10157_s2  ;;  %8821 = vmatpush3.bf16.msra.mxu1 %v1581_v61 }
 0x573   :  { %8822 = vmatprep.subr.bf16.mxu1 %v13595_v0 }
 0x575   :  { %v1564_v32 = vpop.f32.mrb[68].mxu0 }
 0x576   :  { %v8810_v20 = vpop.f32.mrb[69].mxu0 }
 0x577   :  { %v1567_v18 = vpop.f32.mrb[70].mxu0 }
 0x578   :  { %v1582_v34 = vpack.c.bf16 %v1567_v18, %v1564_v32  ;;  %v8811_v36 = vpop.f32.mrb[71].mxu0  ;;  %v1048_v32 = vmul.f32 0.5, %v1043_v31 }
 0x57a   :  { %1659 = vrot.lane.b32.xlu1 %v1582_v34, %s10157_s2  ;;  %8823 = vmatpush3.bf16.msra.mxu1 %v1582_v34  ;;  %v11031_v36 = vmul.f32 %v10973_v57, %v1048_v32 }
 0x57b   :  { %8824 = vmatprep.subr.bf16.mxu1 %v13595_v0 }
 0x57d   :  { %v1572_v13 = vpop.f32.mrb[72].mxu0 }
 0x57e   :  { %1731 = vrot.lane.b32.xlu1 %v1579_v24, %s10158_s3  ;;  %v8814_v63 = vpop.f32.mrb[73].mxu0  ;;  %v1034_v24 = vmul.f32 0.7978846, %v1029_v26 }
 0x57f   :  { %v1575_v58 = vpop.f32.mrb[74].mxu0 }
 0x580   :  { %v1583_v62 = vpack.c.bf16 %v1575_v58, %v1572_v13  ;;  %v8815_v45 = vpop.f32.mrb[75].mxu0 }
 0x582   :  { %v1585_v50 = vand.u32 %v1583_v62, %v10593_v7  ;;  %1735 = vrot.lane.b32.xlu1 %v1581_v61, %s10158_s3  ;;  %1661 = vrot.lane.b32.xlu0 %v1583_v62, %s10157_s2 }
 0x584   :  { %8825 = vmatpush3.bf16.msra.mxu1 %v1585_v50 }
 0x585   :  { %8838 = vmatprep.subr.bf16.mxu1 %v13595_v0 }
 0x586   :  { %1739 = vrot.lane.b32.xlu1 %v1583_v62, %s10158_s3  ;;  %1733 = vrot.lane.b32.xlu0 %v1580_v29, %s10158_s3 }
 0x587   :  { %8827 = vmatmul.mubr.msk.bf16.vlgmr.msra.gmra.mrb[56].mxu1 %vm749_vm14, %v10606_v25  ;;  %v1035_v25 = vmul.f32 0.7978846, %v1030_v6 }
 0x588   :  { %8830 = vmatprep.mubr.msk.bf16.mxu1 %vm10156_vm2, %v13595_v0 }
 0x589   :  { %9657 = vtanh.f32 %v1035_v25 }
 0x58a   :  { %1737 = vrot.lane.b32.xlu0 %v1582_v34, %s10158_s3  ;;  %9659 = vtanh.f32 %v1034_v24  ;;  %v1856_v34 = vsel %vm423_vm5, %v11023_v15, 0.0  ;;  %s13644_s3 = sld [smem:[#allocation26_spill]] }
 0x58f   :  { %8831 = vmatmul.mubr.msk.bf16.gmra.mrb[60].mxu1 %vm749_vm14, %v10625_v33  ;;  %v1042_v33 = vadd.f32 1.0, %v9654_v12 }
 0x590   :  { %8834 = vmatprep.mubr.msk.bf16.mxu1 %vm10156_vm2, %v13595_v0 }
 0x591   :  { %v1047_v19 = vmul.f32 0.5, %v1042_v33 }
 0x593   :  { %v9658_v29 = vpop.eup %9657 }
 0x594   :  { %v9660_v43 = vpop.eup %9659  ;;  %v1045_v61 = vadd.f32 1.0, %v9658_v29 }
 0x595   :  { %v1044_v20 = vadd.f32 1.0, %v9660_v43 }
 0x596   :  { %v1050_v18 = vmul.f32 0.5, %v1045_v61 }
 0x597   :  { %8835 = vmatmul.mubr.msk.bf16.gmra.mrb[64].mxu1 %vm749_vm14, %v10640_v17  ;;  %v11026_v17 = vmul.f32 %v10966_v56, %v1047_v19  ;;  %v1049_v53 = vmul.f32 0.5, %v1044_v20  ;;  %v1862_v56 = vsel %vm423_vm5, %v11031_v36, 0.0 }
 0x598   :  { %8848 = vmatprep.mubr.msk.bf16.mxu1 %vm10156_vm2, %v13595_v0  ;;  %v11036_v22 = vmul.f32 %v10980_v21, %v1050_v18 }
 0x599   :  { %v1859_v60 = vsel %vm423_vm5, %v11026_v17, 0.0  ;;  %v11041_v13 = vmul.f32 %v10988_v38, %v1049_v53 }
 0x59a   :  { %v1868_v57 = vsel %vm423_vm5, %v11036_v22, 0.0 }
 0x59b   :  { %v1865_v63 = vsel %vm423_vm5, %v11041_v13, 0.0 }
 0x5a9   :  { %1857 = vadd.xlane.f32.xlu0 %v1856_v34 }
 0x5aa   :  { %1860 = vadd.xlane.f32.xlu1 %v1859_v60 }
 0x5ad   :  { %1863 = vadd.xlane.f32.xlu0 %v1862_v56 }
 0x5ae   :  { %1869 = vadd.xlane.f32.xlu1 %v1868_v57 }
 0x5b1   :  { %1866 = vadd.xlane.f32.xlu0 %v1865_v63 }
 0x5d4   :  { %v1654_v39 = vpop.permute.xlu0 %1653 }
 0x5d5   :  { %8839 = vmatpush3.bf16.msra.mxu1 %v1654_v39 }
 0x5d6   :  { %8840 = vmatprep.subr.bf16.mxu1 %v13595_v0 }
 0x5dc   :  { %v1656_v21 = vpop.permute.xlu1 %1655 }
 0x5dd   :  { %8841 = vmatpush3.bf16.msra.mxu1 %v1656_v21 }
 0x5de   :  { %8842 = vmatprep.subr.bf16.mxu1 %v13595_v0 }
 0x5e4   :  { %v1658_v42 = vpop.permute.xlu0 %1657 }
 0x5e5   :  { %8843 = vmatpush3.bf16.msra.mxu1 %v1658_v42 }
 0x5e6   :  { %8844 = vmatprep.subr.bf16.mxu1 %v13595_v0 }
 0x5ec   :  { %v1660_v38 = vpop.permute.xlu1 %1659 }
 0x5ed   :  { %8845 = vmatpush3.bf16.msra.mxu1 %v1660_v38 }
 0x5ee   :  { %8846 = vmatprep.subr.bf16.mxu1 %v13595_v0 }
 0x5f0   :  { %v1732_v41 = vpop.permute.xlu1 %1731 }
 0x5f4   :  { %v1662_v58 = vpop.permute.xlu0 %1661  ;;  %v1736_v45 = vpop.permute.xlu1 %1735 }
 0x5f5   :  { %v1668_v1 = vand.u32 %v1662_v58, %v10593_v7 }
 0x5f7   :  { %8847 = vmatpush3.bf16.msra.mxu1 %v1668_v1 }
 0x5f8   :  { %8860 = vmatprep.subr.bf16.mxu1 %v13595_v0  ;;  %v1734_v62 = vpop.permute.xlu0 %1733 }
 0x5fa   :  { %8849 = vmatmul.mubr.msk.bf16.vlgmr.msra.gmra.mrb[56].mxu1 %vm749_vm14, %v10589_v5  ;;  %v1740_v5 = vpop.permute.xlu1 %1739 }
 0x5fb   :  { %8861 = vmatpush3.bf16.msra.mxu1 %v1732_v41  ;;  %8852 = vmatprep.mubr.msk.bf16.mxu1 %vm10156_vm2, %v13595_v0  ;;  %v1746_v23 = vand.u32 %v1740_v5, %v10593_v7 }
 0x5fc   :  { %8862 = vmatprep.subr.bf16.mxu1 %v13595_v0  ;;  %v1738_v50 = vpop.permute.xlu0 %1737 }
 0x5ff   :  { %8863 = vmatpush3.bf16.msra.mxu1 %v1734_v62 }
 0x600   :  { %8864 = vmatprep.subr.bf16.mxu1 %v13595_v0 }
 0x602   :  { %8853 = vmatmul.mubr.msk.bf16.gmra.mrb[60].mxu1 %vm749_vm14, %v10608_v47 }
 0x603   :  { %8865 = vmatpush3.bf16.msra.mxu1 %v1736_v45  ;;  %8856 = vmatprep.mubr.msk.bf16.mxu1 %vm10156_vm2, %v13595_v0 }
 0x604   :  { %8866 = vmatprep.subr.bf16.mxu1 %v13595_v0 }
 0x607   :  { %8867 = vmatpush3.bf16.msra.mxu1 %v1738_v50 }
 0x608   :  { %8868 = vmatprep.subr.bf16.mxu1 %v13595_v0 }
 0x60a   :  { %8857 = vmatmul.mubr.msk.bf16.gmra.mrb[64].mxu1 %vm749_vm14, %v10736_v4 }
 0x60b   :  { %8869 = vmatpush3.bf16.msra.mxu1 %v1746_v23  ;;  %8870 = vmatprep.mubr.msk.bf16.mxu1 %vm10156_vm2, %v13595_v0 }
 0x60c   :  { %8930 = vmatprep.subr.bf16.mxu1 %v13595_v0 }
 0x612   :  { %8871 = vmatmul.mubr.msk.bf16.vlgmr.msra.gmra.mrb[56].mxu1 %vm749_vm14, %v10635_v8 }
 0x613   :  { %8874 = vmatprep.mubr.msk.bf16.mxu1 %vm10156_vm2, %v13595_v0 }
 0x61a   :  { %8875 = vmatmul.mubr.msk.bf16.gmra.mrb[60].mxu1 %vm749_vm14, %v10648_v37 }
 0x61b   :  { %8878 = vmatprep.mubr.msk.bf16.mxu1 %vm10156_vm2, %v13595_v0 }
 0x622   :  { %8879 = vmatmul.mubr.msk.bf16.gmra.mrb[64].mxu1 %vm749_vm14, %v10758_v10  ;;  %vm4800_vm14 = vcmask 523264  }
 0x623   :  { %8932 = vmatprep.mubr.msk.bf16.mxu1 %vm10156_vm2, %v13595_v0 }
 0x636   :  { %v1858_v42 = vpop.xlane.xlu0 %1857 }
 0x637   :  { %v1887_v45 = vmul.f32 0.03125, %v1858_v42  ;;  %v1861_v5 = vpop.xlane.xlu1 %1860 }
 0x6e5   :  { %v1782_v7 = vpop.f32.mrb[56].mxu1 }
 0x6e6   :  { %v9521_v47 = vadd.f32 %v10958_v16, %v1782_v7  ;;  %v8872_v4 = vpop.f32.mrb[57].mxu1 }
 0x6e7   :  { %v1785_v8 = vpop.f32.mrb[58].mxu1  ;;  %v1864_v4 = vpop.xlane.xlu0 %1863 }
 0x6e8   :  { %v1809_v52 = vmul.f32 %v9521_v47, %v9521_v47  ;;  %v9522_v40 = vadd.f32 %v10958_v16, %v1785_v8  ;;  %v8873_v35 = vpop.f32.mrb[59].mxu1 }
 0x6e9   :  { %v1889_v35 = vmul.f32 0.03125, %v1864_v4 }
 0x6ea   :  { %v1814_v27 = vmul.f32 %v9521_v47, %v1809_v52  ;;  %v1810_v37 = vmul.f32 %v9522_v40, %v9522_v40  ;;  %v11097_v52 = vsub.f32 %v11023_v15, %v1887_v45 }
 0x6ec   :  { %v1819_v55 = vmul.f32 0.044715, %v1814_v27  ;;  %v1815_v28 = vmul.f32 %v9522_v40, %v1810_v37  ;;  %v1870_v37 = vpop.xlane.xlu1 %1869 }
 0x6ed   :  { %v1790_v46 = vpop.f32.mrb[60].mxu1 }
 0x6ee   :  { %v1824_v14 = vadd.f32 %v9521_v47, %v1819_v55  ;;  %v1820_v30 = vmul.f32 0.044715, %v1815_v28  ;;  %v9523_v10 = vadd.f32 %v10958_v16, %v1790_v46  ;;  %v8876_v54 = vpop.f32.mrb[61].mxu1  ;;  %v1888_v55 = vmul.f32 0.03125, %v1861_v5 }
 0x6ef   :  { %v1793_v48 = vpop.f32.mrb[62].mxu1  ;;  %v1907_v54 = vmul.f32 %v11097_v52, %v11097_v52 }
 0x6f0   :  { %v1825_v59 = vadd.f32 %v9522_v40, %v1820_v30  ;;  %v1811_v6 = vmul.f32 %v9523_v10, %v9523_v10  ;;  %v9524_v49 = vadd.f32 %v10958_v16, %v1793_v48  ;;  %v8877_v26 = vpop.f32.mrb[63].mxu1  ;;  %v1829_v44 = vmul.f32 0.7978846, %v1824_v14  ;;  %v1867_v30 = vpop.xlane.xlu0 %1866 }
 0x6f1   :  { %v11103_v48 = vsub.f32 %v11031_v36, %v1889_v35  ;;  %v1890_v26 = vmul.f32 0.03125, %v1867_v30 }
 0x6f2   :  { %v1816_v25 = vmul.f32 %v9523_v10, %v1811_v6  ;;  %v1812_v24 = vmul.f32 %v9524_v49, %v9524_v49  ;;  %9661 = vtanh.f32 %v1829_v44  ;;  %v1830_v2 = vmul.f32 0.7978846, %v1825_v59 }
 0x6f3   :  { %v1891_v59 = vmul.f32 0.03125, %v1870_v37  ;;  %v1909_v36 = vmul.f32 %v11103_v48, %v11103_v48 }
 0x6f4   :  { %v1821_v12 = vmul.f32 0.044715, %v1816_v25  ;;  %v1817_v11 = vmul.f32 %v9524_v49, %v1812_v24  ;;  %9663 = vtanh.f32 %v1830_v2  ;;  %v1917_v25 = vsel %vm423_vm5, %v1907_v54, 0.0 }
 0x6f5   :  { %v1798_v3 = vpop.f32.mrb[64].mxu1  ;;  %v11116_v2 = vsub.f32 %v11041_v13, %v1890_v26 }
 0x6f6   :  { %v1826_v33 = vadd.f32 %v9523_v10, %v1821_v12  ;;  %v1822_v29 = vmul.f32 0.044715, %v1817_v11  ;;  %v9525_v9 = vadd.f32 %v10958_v16, %v1798_v3  ;;  %v8880_v31 = vpop.f32.mrb[65].mxu1  ;;  %v1923_v11 = vsel %vm423_vm5, %v1909_v36, 0.0 }
 0x6f7   :  { %v1801_v43 = vpop.f32.mrb[66].mxu1  ;;  %v9584_v31 = vld [vmem:[%s13640_s1 + $0x8] sm:$0xff]  }
 0x6f8   :  { %v1827_v19 = vadd.f32 %v9524_v49, %v1822_v29  ;;  %v1813_v61 = vmul.f32 %v9525_v9, %v9525_v9  ;;  %v8881_v32 = vpop.f32.mrb[67].mxu1  ;;  %v1831_v20 = vmul.f32 0.7978846, %v1826_v33  ;;  %v1910_v33 = vmul.f32 %v11116_v2, %v11116_v2 }
 0x6fa   :  { %v1818_v18 = vmul.f32 %v9525_v9, %v1813_v61  ;;  %9665 = vtanh.f32 %v1831_v20  ;;  %v1832_v34 = vmul.f32 0.7978846, %v1827_v19  ;;  %v1926_v29 = vsel %vm423_vm5, %v1910_v33, 0.0 }
 0x6fc   :  { %v9662_v53 = vpop.eup %9661  ;;  %v1823_v60 = vmul.f32 0.044715, %v1818_v18  ;;  %9667 = vtanh.f32 %v1832_v34 }
 0x6fd   :  { %v1839_v56 = vadd.f32 1.0, %v9662_v53 }
 0x6fe   :  { %v9664_v57 = vpop.eup %9663  ;;  %v1828_v63 = vadd.f32 %v9525_v9, %v1823_v60 }
 0x6ff   :  { %v1844_v39 = vmul.f32 0.5, %v1839_v56  ;;  %v1840_v21 = vadd.f32 1.0, %v9664_v57 }
 0x700   :  { %v1833_v38 = vmul.f32 0.7978846, %v1828_v63 }
 0x701   :  { %v11088_v16 = vmul.f32 %v9521_v47, %v1844_v39  ;;  %v1845_v58 = vmul.f32 0.5, %v1840_v21 }
 0x702   :  { %9669 = vtanh.f32 %v1833_v38 }
 0x703   :  { %v1871_v1 = vsel %vm423_vm5, %v11088_v16, 0.0  ;;  %v11092_v41 = vmul.f32 %v9522_v40, %v1845_v58 }
 0x704   :  { %v9666_v62 = vpop.eup %9665  ;;  %1872 = vadd.xlane.f32.xlu0 %v1871_v1 }
 0x705   :  { %v1874_v50 = vsel %vm423_vm5, %v11092_v41, 0.0  ;;  %v1841_v23 = vadd.f32 1.0, %v9666_v62 }
 0x706   :  { %v9668_v7 = vpop.eup %9667  ;;  %1875 = vadd.xlane.f32.xlu1 %v1874_v50 }
 0x707   :  { %v1846_v47 = vmul.f32 0.5, %v1841_v23  ;;  %v1842_v8 = vadd.f32 1.0, %v9668_v7 }
 0x709   :  { %v1851_v27 = vmul.f32 %v9523_v10, %v1846_v47  ;;  %v1847_v40 = vmul.f32 0.5, %v1842_v8  ;;  %v11107_v10 = vsub.f32 %v11026_v17, %v1888_v55 }
 0x70b   :  { %v1877_v28 = vsel %vm423_vm5, %v1851_v27, 0.0  ;;  %v1852_v46 = vmul.f32 %v9524_v49, %v1847_v40  ;;  %v11110_v49 = vsub.f32 %v11036_v22, %v1891_v59  ;;  %v1908_v17 = vmul.f32 %v11107_v10, %v11107_v10  ;;  %v11168_v59 = vld [vmem:[%s13641_s8] ss:$0 sm:$0xff] }
 0x70c   :  { %v9670_v14 = vpop.eup %9669  ;;  %1878 = vadd.xlane.f32.xlu0 %v1877_v28 }
 0x70d   :  { %v1880_v15 = vsel %vm423_vm5, %v1852_v46, 0.0  ;;  %v1843_v6 = vadd.f32 1.0, %v9670_v14  ;;  %v1911_v22 = vmul.f32 %v11110_v49, %v11110_v49  ;;  %v1920_v3 = vsel %vm423_vm5, %v1908_v17, 0.0 }
 0x70e   :  { %1881 = vadd.xlane.f32.xlu1 %v1880_v15 }
 0x70f   :  { %v1848_v44 = vmul.f32 0.5, %v1843_v6  ;;  %v1929_v13 = vsel %vm423_vm5, %v1911_v22, 0.0 }
 0x711   :  { %v1853_v24 = vmul.f32 %v9525_v9, %v1848_v44  ;;  %v9583_v9 = vld [vmem:[%s13640_s1] sm:$0xff]  }
 0x712   :  { %1918 = vadd.xlane.f32.xlu1 %v1917_v25  ;;  %8883 = vmatpush3.bf16.msra.mxu0 %v9583_v9  ;;  %v11175_v25 = vld [vmem:[%s13642_s5] ss:$0 sm:$0xff] }
 0x713   :  { %v1883_v12 = vsel %vm423_vm5, %v1853_v24, 0.0  ;;  %8884 = vmatprep.subr.bf16.mxu0 %v13595_v0 }
 0x714   :  { %1884 = vadd.xlane.f32.xlu0 %v1883_v12 }
 0x716   :  { %1924 = vadd.xlane.f32.xlu1 %v1923_v11  ;;  %8885 = vmatpush3.bf16.msra.mxu0 %v9584_v31 }
 0x717   :  { %8906 = vmatprep.subr.bf16.mxu0 %v13595_v0 }
 0x718   :  { %1921 = vadd.xlane.f32.xlu0 %v1920_v3 }
 0x71a   :  { %1930 = vadd.xlane.f32.xlu1 %v1929_v13 }
 0x71c   :  { %1927 = vadd.xlane.f32.xlu0 %v1926_v29 }
 0x791   :  { %v1873_v43 = vpop.xlane.xlu0 %1872 }
 0x792   :  { %v1892_v19 = vmul.f32 0.03125, %v1873_v43 }
 0x793   :  { %v1876_v61 = vpop.xlane.xlu1 %1875 }
 0x794   :  { %v11138_v32 = vsub.f32 %v11088_v16, %v1892_v19  ;;  %v1893_v20 = vmul.f32 0.03125, %v1876_v61 }
 0x796   :  { %v11141_v18 = vsub.f32 %v11092_v41, %v1893_v20  ;;  %v1912_v34 = vmul.f32 %v11138_v32, %v11138_v32 }
 0x798   :  { %v1932_v53 = vsel %vm423_vm5, %v1912_v34, 0.0  ;;  %v1913_v60 = vmul.f32 %v11141_v18, %v11141_v18 }
 0x799   :  { %v1879_v56 = vpop.xlane.xlu0 %1878  ;;  %1933 = vadd.xlane.f32.xlu0 %v1932_v53 }
 0x79a   :  { %v1894_v57 = vmul.f32 0.03125, %v1879_v56  ;;  %v1935_v63 = vsel %vm423_vm5, %v1913_v60, 0.0 }
 0x79b   :  { %1936 = vadd.xlane.f32.xlu1 %v1935_v63  ;;  %v1882_v39 = vpop.xlane.xlu1 %1881 }
 0x79c   :  { %v11149_v21 = vsub.f32 %v1851_v27, %v1894_v57  ;;  %v1895_v42 = vmul.f32 0.03125, %v1882_v39 }
 0x79e   :  { %v11151_v38 = vsub.f32 %v1852_v46, %v1895_v42  ;;  %v1914_v16 = vmul.f32 %v11149_v21, %v11149_v21 }
 0x79f   :  { %v1919_v58 = vpop.xlane.xlu1 %1918 }
 0x7a0   :  { %v1947_v1 = vmul.f32 0.03125, %v1919_v58  ;;  %v1938_v41 = vsel %vm423_vm5, %v1914_v16, 0.0  ;;  %v1915_v62 = vmul.f32 %v11151_v38, %v11151_v38 }
 0x7a1   :  { %1939 = vadd.xlane.f32.xlu0 %v1938_v41  ;;  %v1885_v45 = vpop.xlane.xlu0 %1884 }
 0x7a2   :  { %v1957_v5 = vadd.f32 1e-05, %v1947_v1  ;;  %v1896_v50 = vmul.f32 0.03125, %v1885_v45  ;;  %v1941_v23 = vsel %vm423_vm5, %v1915_v62, 0.0 }
 0x7a3   :  { %1942 = vadd.xlane.f32.xlu1 %v1941_v23  ;;  %v1925_v7 = vpop.xlane.xlu1 %1924 }
 0x7a4   :  { %9671 = vrsqrt.f32 %v1957_v5  ;;  %v11159_v4 = vsub.f32 %v1853_v24, %v1896_v50  ;;  %v1949_v47 = vmul.f32 0.03125, %v1925_v7 }
 0x7a5   :  { %v1922_v8 = vpop.xlane.xlu0 %1921 }
 0x7a6   :  { %v1948_v35 = vmul.f32 0.03125, %v1922_v8  ;;  %v1916_v27 = vmul.f32 %v11159_v4, %v11159_v4  ;;  %v1959_v40 = vadd.f32 1e-05, %v1949_v47 }
 0x7a8   :  { %v1958_v37 = vadd.f32 1e-05, %v1948_v35  ;;  %v1944_v55 = vsel %vm423_vm5, %v1916_v27, 0.0 }
 0x7a9   :  { %1945 = vadd.xlane.f32.xlu0 %v1944_v55  ;;  %v1928_v28 = vpop.xlane.xlu0 %1927 }
 0x7aa   :  { %9673 = vrsqrt.f32 %v1958_v37  ;;  %v1950_v46 = vmul.f32 0.03125, %v1928_v28 }
 0x7ab   :  { %9675 = vrsqrt.f32 %v1959_v40 }
 0x7ac   :  { %v1960_v14 = vadd.f32 1e-05, %v1950_v46 }
 0x7ae   :  { %v9672_v30 = vpop.eup %9671  ;;  %9677 = vrsqrt.f32 %v1960_v14 }
 0x7af   :  { %v1977_v54 = vmul.f32 %v9672_v30, %v11097_v52 }
 0x7b1   :  { %v1993_v6 = vmul.f32 %v11168_v59, %v1977_v54 }
 0x7b3   :  { %v2009_v52 = vadd.f32 %v11175_v25, %v1993_v6 }
 0x7b4   :  { %v9674_v15 = vpop.eup %9673 }
 0x7b5   :  { %v1978_v26 = vmul.f32 %v9674_v15, %v11107_v10  ;;  %v9676_v44 = vpop.eup %9675 }
 0x7b6   :  { %v1979_v17 = vmul.f32 %v9676_v44, %v11103_v48  ;;  %v1931_v48 = vpop.xlane.xlu1 %1930 }
 0x7b7   :  { %v1994_v24 = vmul.f32 %v11168_v59, %v1978_v26 }
 0x7b8   :  { %v9678_v36 = vpop.eup %9677  ;;  %v1995_v3 = vmul.f32 %v11168_v59, %v1979_v17 }
 0x7b9   :  { %v2010_v12 = vadd.f32 %v11175_v25, %v1994_v24  ;;  %v1980_v11 = vmul.f32 %v9678_v36, %v11116_v2  ;;  %v1951_v2 = vmul.f32 0.03125, %v1931_v48 }
 0x7ba   :  { %v2011_v13 = vadd.f32 %v11175_v25, %v1995_v3 }
 0x7bb   :  { %v2019_v22 = vpack.c.bf16 %v2010_v12, %v2009_v52  ;;  %v1996_v10 = vmul.f32 %v11168_v59, %v1980_v11  ;;  %v1961_v9 = vadd.f32 1e-05, %v1951_v2 }
 0x7bd   :  { %8887 = vmatmul.mubr.msk.bf16.vlgmr.msra.gmra.mrb[76].mxu0 %vm423_vm5, %v2019_v22  ;;  %v2012_v33 = vadd.f32 %v11175_v25, %v1996_v10  ;;  %9679 = vrsqrt.f32 %v1961_v9 }
 0x7be   :  { %8890 = vmatprep.mubr.msk.bf16.mxu0 %vm10156_vm2, %v13595_v0 }
 0x7bf   :  { %v2020_v29 = vpack.c.bf16 %v2012_v33, %v2011_v13 }
 0x7c5   :  { %8891 = vmatmul.mubr.msk.bf16.gmra.mrb[80].mxu0 %vm423_vm5, %v2020_v29 }
 0x7c6   :  { %8894 = vmatprep.mubr.msk.bf16.mxu0 %vm10156_vm2, %v13595_v0 }
 0x7c7   :  { %v9680_v60 = vpop.eup %9679 }
 0x7c8   :  { %v1981_v42 = vmul.f32 %v9680_v60, %v11110_v49 }
 0x7ca   :  { %v1997_v62 = vmul.f32 %v11168_v59, %v1981_v42 }
 0x7cc   :  { %v2013_v7 = vadd.f32 %v11175_v25, %v1997_v62 }
 0x826   :  { %v1934_v31 = vpop.xlane.xlu0 %1933 }
 0x827   :  { %v1952_v43 = vmul.f32 0.03125, %v1934_v31 }
 0x828   :  { %v1937_v19 = vpop.xlane.xlu1 %1936 }
 0x829   :  { %v1962_v61 = vadd.f32 1e-05, %v1952_v43  ;;  %v1953_v20 = vmul.f32 0.03125, %v1937_v19 }
 0x82b   :  { %9681 = vrsqrt.f32 %v1962_v61  ;;  %v1963_v34 = vadd.f32 1e-05, %v1953_v20 }
 0x82d   :  { %9683 = vrsqrt.f32 %v1963_v34 }
 0x82e   :  { %v1940_v53 = vpop.xlane.xlu0 %1939 }
 0x82f   :  { %v1954_v56 = vmul.f32 0.03125, %v1940_v53 }
 0x830   :  { %v1943_v57 = vpop.xlane.xlu1 %1942 }
 0x831   :  { %v1964_v63 = vadd.f32 1e-05, %v1954_v56  ;;  %v1955_v39 = vmul.f32 0.03125, %v1943_v57 }
 0x833   :  { %9685 = vrsqrt.f32 %v1964_v63  ;;  %v1965_v16 = vadd.f32 1e-05, %v1955_v39 }
 0x835   :  { %v9682_v58 = vpop.eup %9681  ;;  %9687 = vrsqrt.f32 %v1965_v16 }
 0x836   :  { %v1946_v1 = vpop.xlane.xlu0 %1945  ;;  %v1982_v41 = vmul.f32 %v9682_v58, %v11138_v32 }
 0x837   :  { %v9684_v45 = vpop.eup %9683  ;;  %v1956_v5 = vmul.f32 0.03125, %v1946_v1 }
 0x838   :  { %v1998_v50 = vmul.f32 %v11168_v59, %v1982_v41  ;;  %v1983_v49 = vmul.f32 %v9684_v45, %v11141_v18 }
 0x839   :  { %v1966_v23 = vadd.f32 1e-05, %v1956_v5 }
 0x83a   :  { %v2014_v47 = vadd.f32 %v11175_v25, %v1998_v50  ;;  %v1999_v27 = vmul.f32 %v11168_v59, %v1983_v49 }
 0x83b   :  { %9689 = vrsqrt.f32 %v1966_v23 }
 0x83c   :  { %v2021_v8 = vpack.c.bf16 %v2014_v47, %v2013_v7  ;;  %v2015_v55 = vadd.f32 %v11175_v25, %v1999_v27 }
 0x83d   :  { %v9686_v35 = vpop.eup %9685 }
 0x83e   :  { %8895 = vmatmul.mubr.msk.bf16.gmra.mrb[84].mxu0 %vm423_vm5, %v2021_v8  ;;  %v1984_v32 = vmul.f32 %v9686_v35, %v11149_v21 }
 0x83f   :  { %v9688_v40 = vpop.eup %9687  ;;  %8898 = vmatprep.mubr.msk.bf16.mxu0 %vm10156_vm2, %v13595_v0 }
 0x840   :  { %v2000_v37 = vmul.f32 %v11168_v59, %v1984_v32  ;;  %v1985_v18 = vmul.f32 %v9688_v40, %v11151_v38  ;;  %v8044_v38 = vld [vmem:[%s13643_s14] ss:$0 sm:$0xff] }
 0x842   :  { %v2016_v28 = vadd.f32 %v11175_v25, %v2000_v37  ;;  %v2001_v30 = vmul.f32 %v11168_v59, %v1985_v18 }
 0x844   :  { %v2022_v46 = vpack.c.bf16 %v2016_v28, %v2015_v55  ;;  %v2017_v15 = vadd.f32 %v11175_v25, %v2001_v30 }
 0x845   :  { %v9690_v14 = vpop.eup %9689 }
 0x846   :  { %8899 = vmatmul.mubr.msk.bf16.gmra.mrb[88].mxu0 %vm423_vm5, %v2022_v46  ;;  %v1986_v21 = vmul.f32 %v9690_v14, %v11159_v4 }
 0x847   :  { %8902 = vmatprep.mubr.msk.bf16.mxu0 %vm10156_vm2, %v13595_v0 }
 0x848   :  { %v2002_v54 = vmul.f32 %v11168_v59, %v1986_v21 }
 0x84a   :  { %v2018_v6 = vadd.f32 %v11175_v25, %v2002_v54 }
 0x84c   :  { %v2023_v26 = vpack.c.bf16 %v2018_v6, %v2017_v15 }
 0x84e   :  { %8903 = vmatmul.mubr.msk.bf16.gmra.mrb[92].mxu0 %vm423_vm5, %v2023_v26  ;;  %v9585_v26 = vld [vmem:[%s13644_s3] sm:$0xff]  }
 0x84f   :  { %8910 = vmatprep.mubr.msk.bf16.mxu0 %vm10156_vm2, %v13595_v0  ;;  %8907 = vmatpush3.bf16.msra.mxu0 %v9585_v26 }
 0x850   :  { %8908 = vmatprep.subr.bf16.mxu0 %v13595_v0 }
 0x890   :  { %v2096_v4 = vpop.f32.mrb[76].mxu0 }
 0x891   :  { %v2097_v44 = vadd.f32 %v8044_v38, %v2096_v4  ;;  %v8888_v24 = vpop.f32.mrb[77].mxu0 }
 0x892   :  { %v2099_v36 = vpop.f32.mrb[78].mxu0 }
 0x893   :  { %v2100_v52 = vadd.f32 %v8044_v38, %v2099_v36  ;;  %v8889_v59 = vpop.f32.mrb[79].mxu0  ;;  %v2137_v12 = vsel %vm423_vm5, %v2097_v44, 0.0 }
 0x894   :  { %2138 = vadd.xlane.f32.xlu1 %v2137_v12 }
 0x895   :  { %v2140_v25 = vsel %vm423_vm5, %v2100_v52, 0.0 }
 0x896   :  { %2141 = vadd.xlane.f32.xlu0 %v2140_v25 }
 0x898   :  { %v2104_v17 = vpop.f32.mrb[80].mxu0 }
 0x899   :  { %v2105_v11 = vadd.f32 %v8044_v38, %v2104_v17  ;;  %v8892_v22 = vpop.f32.mrb[81].mxu0 }
 0x89a   :  { %v2107_v10 = vpop.f32.mrb[82].mxu0 }
 0x89b   :  { %v2108_v3 = vadd.f32 %v8044_v38, %v2107_v10  ;;  %v8893_v33 = vpop.f32.mrb[83].mxu0  ;;  %v2143_v13 = vsel %vm423_vm5, %v2105_v11, 0.0 }
 0x89c   :  { %2144 = vadd.xlane.f32.xlu1 %v2143_v13 }
 0x89d   :  { %v2146_v29 = vsel %vm423_vm5, %v2108_v3, 0.0 }
 0x89e   :  { %2147 = vadd.xlane.f32.xlu0 %v2146_v29 }
 0x911   :  { %v2112_v48 = vpop.f32.mrb[84].mxu0 }
 0x912   :  { %v11226_v2 = vadd.f32 %v8044_v38, %v2112_v48  ;;  %v8896_v9 = vpop.f32.mrb[85].mxu0 }
 0x913   :  { %v2115_v31 = vpop.f32.mrb[86].mxu0 }
 0x914   :  { %v2116_v43 = vadd.f32 %v8044_v38, %v2115_v31  ;;  %v8897_v19 = vpop.f32.mrb[87].mxu0  ;;  %v2149_v61 = vsel %vm423_vm5, %v11226_v2, 0.0 }
 0x915   :  { %2150 = vadd.xlane.f32.xlu1 %v2149_v61 }
 0x916   :  { %v2152_v20 = vsel %vm423_vm5, %v2116_v43, 0.0 }
 0x917   :  { %2153 = vadd.xlane.f32.xlu0 %v2152_v20 }
 0x919   :  { %v2120_v34 = vpop.f32.mrb[88].mxu0 }
 0x91a   :  { %v11231_v53 = vadd.f32 %v8044_v38, %v2120_v34  ;;  %v8900_v60 = vpop.f32.mrb[89].mxu0 }
 0x91b   :  { %v2123_v56 = vpop.f32.mrb[90].mxu0 }
 0x91c   :  { %v11233_v57 = vadd.f32 %v8044_v38, %v2123_v56  ;;  %v8901_v63 = vpop.f32.mrb[91].mxu0  ;;  %v2155_v39 = vsel %vm423_vm5, %v11231_v53, 0.0 }
 0x91d   :  { %2156 = vadd.xlane.f32.xlu1 %v2155_v39 }
 0x91e   :  { %v2158_v42 = vsel %vm423_vm5, %v11233_v57, 0.0 }
 0x91f   :  { %2159 = vadd.xlane.f32.xlu0 %v2158_v42 }
 0x921   :  { %v2139_v16 = vpop.xlane.xlu1 %2138  ;;  %v2128_v58 = vpop.f32.mrb[92].mxu0 }
 0x922   :  { %v2167_v1 = vmul.f32 0.03125, %v2139_v16  ;;  %v11239_v41 = vadd.f32 %v8044_v38, %v2128_v58  ;;  %v8904_v62 = vpop.f32.mrb[93].mxu0 }
 0x923   :  { %v2142_v45 = vpop.xlane.xlu0 %2141  ;;  %v2131_v5 = vpop.f32.mrb[94].mxu0 }
 0x924   :  { %v11241_v50 = vsub.f32 %v2097_v44, %v2167_v1  ;;  %v2168_v23 = vmul.f32 0.03125, %v2142_v45  ;;  %v2132_v7 = vadd.f32 %v8044_v38, %v2131_v5  ;;  %v8905_v47 = vpop.f32.mrb[95].mxu0  ;;  %v2161_v49 = vsel %vm423_vm5, %v11239_v41, 0.0  ;;  %v9586_v38 = vld [vmem:[%s13644_s3 + $0x8] sm:$0xff]  }
 0x925   :  { %2162 = vadd.xlane.f32.xlu1 %v2161_v49  ;;  %8909 = vmatpush3.bf16.msra.mxu0 %v9586_v38 }
 0x926   :  { %v11245_v8 = vsub.f32 %v2100_v52, %v2168_v23  ;;  %v2164_v35 = vsel %vm423_vm5, %v2132_v7, 0.0  ;;  %v2187_v32 = vmul.f32 %v11241_v50, %v11241_v50  ;;  %8944 = vmatprep.subr.bf16.mxu0 %v13595_v0 }
 0x927   :  { %2165 = vadd.xlane.f32.xlu0 %v2164_v35  ;;  %v11309_v35 = vld [vmem:[%s13572_s12] ss:$0 sm:$0xff] }
 0x928   :  { %v2197_v27 = vsel %vm423_vm5, %v2187_v32, 0.0  ;;  %v2188_v40 = vmul.f32 %v11245_v8, %v11245_v8 }
 0x929   :  { %v2145_v37 = vpop.xlane.xlu1 %2144  ;;  %2198 = vadd.xlane.f32.xlu1 %v2197_v27 }
 0x92a   :  { %v2169_v55 = vmul.f32 0.03125, %v2145_v37  ;;  %v2200_v28 = vsel %vm423_vm5, %v2188_v40, 0.0 }
 0x92b   :  { %v2148_v18 = vpop.xlane.xlu0 %2147  ;;  %2201 = vadd.xlane.f32.xlu0 %v2200_v28 }
 0x92c   :  { %v11254_v46 = vsub.f32 %v2105_v11, %v2169_v55  ;;  %v2170_v14 = vmul.f32 0.03125, %v2148_v18  ;;  %v11317_v55 = vld [vmem:[%s13573_s13] ss:$0 sm:$0xff] }
 0x92e   :  { %v11256_v21 = vsub.f32 %v2108_v3, %v2170_v14  ;;  %v2189_v30 = vmul.f32 %v11254_v46, %v11254_v46 }
 0x930   :  { %v2203_v54 = vsel %vm423_vm5, %v2189_v30, 0.0  ;;  %v2190_v15 = vmul.f32 %v11256_v21, %v11256_v21 }
 0x931   :  { %2204 = vadd.xlane.f32.xlu1 %v2203_v54 }
 0x932   :  { %v2206_v6 = vsel %vm423_vm5, %v2190_v15, 0.0 }
 0x933   :  { %2207 = vadd.xlane.f32.xlu0 %v2206_v6 }
 0x9a2   :  { %v2151_v4 = vpop.xlane.xlu1 %2150 }
 0x9a3   :  { %v2171_v44 = vmul.f32 0.03125, %v2151_v4 }
 0x9a4   :  { %v2154_v24 = vpop.xlane.xlu0 %2153 }
 0x9a5   :  { %v11273_v36 = vsub.f32 %v11226_v2, %v2171_v44  ;;  %v2172_v52 = vmul.f32 0.03125, %v2154_v24 }
 0x9a7   :  { %v11275_v59 = vsub.f32 %v2116_v43, %v2172_v52  ;;  %v2191_v12 = vmul.f32 %v11273_v36, %v11273_v36 }
 0x9a9   :  { %v2209_v25 = vsel %vm423_vm5, %v2191_v12, 0.0  ;;  %v2192_v17 = vmul.f32 %v11275_v59, %v11275_v59 }
 0x9aa   :  { %v2157_v11 = vpop.xlane.xlu1 %2156  ;;  %2210 = vadd.xlane.f32.xlu1 %v2209_v25 }
 0x9ab   :  { %v2173_v22 = vmul.f32 0.03125, %v2157_v11  ;;  %v2212_v10 = vsel %vm423_vm5, %v2192_v17, 0.0 }
 0x9ac   :  { %v2160_v3 = vpop.xlane.xlu0 %2159  ;;  %2213 = vadd.xlane.f32.xlu0 %v2212_v10 }
 0x9ad   :  { %v11284_v33 = vsub.f32 %v11231_v53, %v2173_v22  ;;  %v2174_v13 = vmul.f32 0.03125, %v2160_v3 }
 0x9af   :  { %v11287_v29 = vsub.f32 %v11233_v57, %v2174_v13  ;;  %v2193_v48 = vmul.f32 %v11284_v33, %v11284_v33 }
 0x9b1   :  { %v2215_v2 = vsel %vm423_vm5, %v2193_v48, 0.0  ;;  %v2194_v9 = vmul.f32 %v11287_v29, %v11287_v29 }
 0x9b2   :  { %2216 = vadd.xlane.f32.xlu1 %v2215_v2  ;;  %v2163_v31 = vpop.xlane.xlu1 %2162 }
 0x9b3   :  { %v2175_v43 = vmul.f32 0.03125, %v2163_v31  ;;  %v2218_v19 = vsel %vm423_vm5, %v2194_v9, 0.0 }
 0x9b4   :  { %2219 = vadd.xlane.f32.xlu0 %v2218_v19  ;;  %v2166_v61 = vpop.xlane.xlu0 %2165 }
 0x9b5   :  { %v11296_v20 = vsub.f32 %v11239_v41, %v2175_v43  ;;  %v2176_v34 = vmul.f32 0.03125, %v2166_v61 }
 0x9b6   :  { %v2199_v53 = vpop.xlane.xlu1 %2198 }
 0x9b7   :  { %v11298_v60 = vsub.f32 %v2132_v7, %v2176_v34  ;;  %v2227_v56 = vmul.f32 0.03125, %v2199_v53  ;;  %v2195_v57 = vmul.f32 %v11296_v20, %v11296_v20 }
 0x9b8   :  { %v2202_v63 = vpop.xlane.xlu0 %2201 }
 0x9b9   :  { %v2237_v39 = vadd.f32 1e-05, %v2227_v56  ;;  %v2228_v42 = vmul.f32 0.03125, %v2202_v63  ;;  %v2221_v16 = vsel %vm423_vm5, %v2195_v57, 0.0  ;;  %v2196_v58 = vmul.f32 %v11298_v60, %v11298_v60 }
 0x9ba   :  { %2222 = vadd.xlane.f32.xlu1 %v2221_v16 }
 0x9bb   :  { %9691 = vrsqrt.f32 %v2237_v39  ;;  %v2238_v1 = vadd.f32 1e-05, %v2228_v42  ;;  %v2224_v41 = vsel %vm423_vm5, %v2196_v58, 0.0 }
 0x9bc   :  { %2225 = vadd.xlane.f32.xlu0 %v2224_v41 }
 0x9bd   :  { %9693 = vrsqrt.f32 %v2238_v1 }
 0x9be   :  { %v2205_v62 = vpop.xlane.xlu1 %2204 }
 0x9bf   :  { %v2229_v45 = vmul.f32 0.03125, %v2205_v62 }
 0x9c0   :  { %v2208_v5 = vpop.xlane.xlu0 %2207 }
 0x9c1   :  { %v2239_v23 = vadd.f32 1e-05, %v2229_v45  ;;  %v2230_v7 = vmul.f32 0.03125, %v2208_v5 }
 0x9c3   :  { %9695 = vrsqrt.f32 %v2239_v23  ;;  %v2240_v47 = vadd.f32 1e-05, %v2230_v7 }
 0x9c5   :  { %v9692_v49 = vpop.eup %9691  ;;  %9697 = vrsqrt.f32 %v2240_v47 }
 0x9c6   :  { %v2257_v32 = vmul.f32 %v9692_v49, %v11241_v50 }
 0x9c7   :  { %v9694_v27 = vpop.eup %9693 }
 0x9c8   :  { %v2273_v40 = vmul.f32 %v11309_v35, %v2257_v32  ;;  %v2258_v37 = vmul.f32 %v9694_v27, %v11245_v8 }
 0x9ca   :  { %v2274_v28 = vmul.f32 %v11309_v35, %v2258_v37  ;;  %v11321_v18 = vadd.f32 %v11317_v55, %v2273_v40 }
 0x9cc   :  { %13645 = vst [vmem:[#allocation2_spill] sm:$0xff] %v11321_v18  ;;  %v11324_v14 = vadd.f32 %v11317_v55, %v2274_v28 }
 0x9cd   :  { %v9696_v30 = vpop.eup %9695 }
 0x9ce   :  { %13646 = vst [vmem:[#allocation3_spill] sm:$0xff] %v11324_v14  ;;  %v2301_v50 = vpack.c.bf16 %v11324_v14, %v11321_v18  ;;  %v2259_v54 = vmul.f32 %v9696_v30, %v11254_v46 }
 0x9cf   :  { %v9698_v8 = vpop.eup %9697 }
 0x9d0   :  { %8911 = vmatmul.mubr.msk.bf16.vlgmr.msra.gmra.mrb[96].mxu0 %vm423_vm5, %v2301_v50  ;;  %v2260_v15 = vmul.f32 %v9698_v8, %v11256_v21  ;;  %v2275_v6 = vmul.f32 %v11309_v35, %v2259_v54 }
 0x9d1   :  { %8914 = vmatprep.mubr.msk.bf16.mxu0 %vm10156_vm2, %v13595_v0 }
 0x9d2   :  { %v2276_v26 = vmul.f32 %v11309_v35, %v2260_v15  ;;  %v11336_v38 = vadd.f32 %v11317_v55, %v2275_v6 }
 0x9d4   :  { %13647 = vst [vmem:[#allocation4_spill] sm:$0xff] %v11336_v38  ;;  %v11339_v4 = vadd.f32 %v11317_v55, %v2276_v26 }
 0x9d6   :  { %13648 = vst [vmem:[#allocation5_spill] sm:$0xff] %v11339_v4  ;;  %v2302_v46 = vpack.c.bf16 %v11339_v4, %v11336_v38 }
 0x9d8   :  { %8915 = vmatmul.mubr.msk.bf16.gmra.mrb[100].mxu0 %vm423_vm5, %v2302_v46 }
 0x9d9   :  { %8918 = vmatprep.mubr.msk.bf16.mxu0 %vm10156_vm2, %v13595_v0 }
 0xa37   :  { %v2211_v21 = vpop.xlane.xlu1 %2210 }
 0xa38   :  { %v2231_v44 = vmul.f32 0.03125, %v2211_v21 }
 0xa39   :  { %v2214_v24 = vpop.xlane.xlu0 %2213 }
 0xa3a   :  { %v2241_v52 = vadd.f32 1e-05, %v2231_v44  ;;  %v2232_v12 = vmul.f32 0.03125, %v2214_v24 }
 0xa3c   :  { %9699 = vrsqrt.f32 %v2241_v52  ;;  %v2242_v25 = vadd.f32 1e-05, %v2232_v12 }
 0xa3e   :  { %9701 = vrsqrt.f32 %v2242_v25 }
 0xa3f   :  { %v2217_v17 = vpop.xlane.xlu1 %2216 }
 0xa40   :  { %v2233_v11 = vmul.f32 0.03125, %v2217_v17 }
 0xa41   :  { %v2220_v22 = vpop.xlane.xlu0 %2219 }
 0xa42   :  { %v2243_v10 = vadd.f32 1e-05, %v2233_v11  ;;  %v2234_v3 = vmul.f32 0.03125, %v2220_v22 }
 0xa44   :  { %9703 = vrsqrt.f32 %v2243_v10  ;;  %v2244_v13 = vadd.f32 1e-05, %v2234_v3 }
 0xa46   :  { %v9700_v48 = vpop.eup %9699  ;;  %9705 = vrsqrt.f32 %v2244_v13 }
 0xa47   :  { %v2223_v2 = vpop.xlane.xlu1 %2222  ;;  %v2261_v9 = vmul.f32 %v9700_v48, %v11273_v36 }
 0xa48   :  { %v9702_v31 = vpop.eup %9701  ;;  %v2235_v43 = vmul.f32 0.03125, %v2223_v2 }
 0xa49   :  { %v2226_v19 = vpop.xlane.xlu0 %2225  ;;  %v2262_v61 = vmul.f32 %v9702_v31, %v11275_v59  ;;  %v2277_v34 = vmul.f32 %v11309_v35, %v2261_v9 }
 0xa4a   :  { %v2245_v53 = vadd.f32 1e-05, %v2235_v43  ;;  %v2236_v56 = vmul.f32 0.03125, %v2226_v19 }
 0xa4b   :  { %v2278_v57 = vmul.f32 %v11309_v35, %v2262_v61  ;;  %v11351_v39 = vadd.f32 %v11317_v55, %v2277_v34 }
 0xa4c   :  { %9707 = vrsqrt.f32 %v2245_v53  ;;  %v2246_v63 = vadd.f32 1e-05, %v2236_v56 }
 0xa4d   :  { %13649 = vst [vmem:[#allocation6_spill] sm:$0xff] %v11351_v39  ;;  %v11354_v42 = vadd.f32 %v11317_v55, %v2278_v57 }
 0xa4e   :  { %v9704_v36 = vpop.eup %9703  ;;  %9709 = vrsqrt.f32 %v2246_v63 }
 0xa4f   :  { %13650 = vst [vmem:[#allocation7_spill] sm:$0xff] %v11354_v42  ;;  %v2303_v16 = vpack.c.bf16 %v11354_v42, %v11351_v39  ;;  %v2263_v59 = vmul.f32 %v9704_v36, %v11284_v33 }
 0xa50   :  { %v9706_v58 = vpop.eup %9705 }
 0xa51   :  { %8919 = vmatmul.mubr.msk.bf16.gmra.mrb[104].mxu0 %vm423_vm5, %v2303_v16  ;;  %v2264_v1 = vmul.f32 %v9706_v58, %v11287_v29  ;;  %v2279_v41 = vmul.f32 %v11309_v35, %v2263_v59 }
 0xa52   :  { %8922 = vmatprep.mubr.msk.bf16.mxu0 %vm10156_vm2, %v13595_v0 }
 0xa53   :  { %v2280_v62 = vmul.f32 %v11309_v35, %v2264_v1  ;;  %v11366_v45 = vadd.f32 %v11317_v55, %v2279_v41 }
 0xa55   :  { %13651 = vst [vmem:[#allocation8_spill] sm:$0xff] %v11366_v45  ;;  %v11369_v5 = vadd.f32 %v11317_v55, %v2280_v62 }
 0xa56   :  { %v9708_v23 = vpop.eup %9707 }
 0xa57   :  { %13652 = vst [vmem:[#allocation9_spill] sm:$0xff] %v11369_v5  ;;  %v2304_v33 = vpack.c.bf16 %v11369_v5, %v11366_v45  ;;  %v2265_v7 = vmul.f32 %v9708_v23, %v11296_v20 }
 0xa58   :  { %v9710_v29 = vpop.eup %9709 }
 0xa59   :  { %8923 = vmatmul.mubr.msk.bf16.gmra.mrb[108].mxu0 %vm423_vm5, %v2304_v33  ;;  %v2266_v47 = vmul.f32 %v9710_v29, %v11298_v60  ;;  %v2281_v49 = vmul.f32 %v11309_v35, %v2265_v7  ;;  %v8054_v60 = vld [vmem:[%s13574_s15] ss:$0 sm:$0xff] }
 0xa5a   :  { %8926 = vmatprep.mubr.msk.bf16.mxu0 %vm10156_vm2, %v13595_v0 }
 0xa5b   :  { %v2282_v32 = vmul.f32 %v11309_v35, %v2266_v47  ;;  %v11381_v27 = vadd.f32 %v11317_v55, %v2281_v49 }
 0xa5d   :  { %13653 = vst [vmem:[#allocation10_spill] sm:$0xff] %v11381_v27  ;;  %v11384_v40 = vadd.f32 %v11317_v55, %v2282_v32 }
 0xa5f   :  { %13654 = vst [vmem:[#allocation11_spill] sm:$0xff] %v11384_v40  ;;  %v2305_v20 = vpack.c.bf16 %v11384_v40, %v11381_v27 }
 0xa61   :  { %8927 = vmatmul.mubr.msk.bf16.gmra.mrb[112].mxu0 %vm423_vm5, %v2305_v20 }
 0xa62   :  { %8946 = vmatprep.mubr.msk.bf16.mxu0 %vm10156_vm2, %v13595_v0 }
 0xaa3   :  { %v2378_v37 = vpop.f32.mrb[96].mxu0 }
 0xaa4   :  { %v2379_v35 = vadd.f32 %v8054_v60, %v2378_v37  ;;  %v8912_v28 = vpop.f32.mrb[97].mxu0 }
 0xaa5   :  { %v2381_v30 = vpop.f32.mrb[98].mxu0 }
 0xaa6   :  { %2417 = vxpose.xlu1.b32.start [1/5] (short) (narrow) %v2379_v35, 96  ;;  %v8913_v50 = vpop.f32.mrb[99].mxu0  ;;  %v2382_v55 = vadd.f32 %v8054_v60, %v2381_v30 }
 0xaaa   :  { %2418 = vxpose.xlu1.b32.cont [2/5] (short) (narrow) %v2382_v55, 96 }
 0xaab   :  { %v2386_v54 = vpop.f32.mrb[100].mxu0 }
 0xaac   :  { %v2387_v8 = vadd.f32 %v8054_v60, %v2386_v54  ;;  %v8916_v15 = vpop.f32.mrb[101].mxu0 }
 0xaad   :  { %v2389_v6 = vpop.f32.mrb[102].mxu0 }
 0xaae   :  { %2419 = vxpose.xlu1.b32.cont [3/5] (short) (narrow) %v2387_v8, 96  ;;  %v8917_v26 = vpop.f32.mrb[103].mxu0  ;;  %v2390_v46 = vadd.f32 %v8054_v60, %v2389_v6 }
 0xab2   :  { %2420 = vxpose.xlu1.b32.cont [4/5] (short) (narrow) %v2390_v46, 96 }
 0xb24   :  { %v2394_v21 = vpop.f32.mrb[104].mxu0 }
 0xb25   :  { %v2395_v44 = vadd.f32 %v8054_v60, %v2394_v21  ;;  %v8920_v24 = vpop.f32.mrb[105].mxu0 }
 0xb26   :  { %v2397_v52 = vpop.f32.mrb[106].mxu0 }
 0xb27   :  { %2421 = vxpose.xlu1.b32.end [5/5] (short) (narrow) %v2395_v44, 96  ;;  %v8921_v12 = vpop.f32.mrb[107].mxu0  ;;  %v2398_v16 = vadd.f32 %v8054_v60, %v2397_v52 }
 0xb2c   :  { %v2402_v25 = vpop.f32.mrb[108].mxu0 }
 0xb2d   :  { %v8924_v17 = vpop.f32.mrb[109].mxu0  ;;  %v2403_v58 = vadd.f32 %v8054_v60, %v2402_v25 }
 0xb2e   :  { %v2405_v11 = vpop.f32.mrb[110].mxu0 }
 0xb2f   :  { %v8925_v22 = vpop.f32.mrb[111].mxu0  ;;  %v2406_v1 = vadd.f32 %v8054_v60, %v2405_v11 }
 0xb34   :  { %v2410_v10 = vpop.f32.mrb[112].mxu0 }
 0xb35   :  { %v8928_v3 = vpop.f32.mrb[113].mxu0  ;;  %v2411_v41 = vadd.f32 %v8054_v60, %v2410_v10 }
 0xb36   :  { %v2413_v13 = vpop.f32.mrb[114].mxu0 }
 0xb37   :  { %v8929_v48 = vpop.f32.mrb[115].mxu0  ;;  %v2414_v62 = vadd.f32 %v8054_v60, %v2413_v13 }
 0xb97   :  { %v2433_v2 = vpop.trf.xlu1 }
 0xb98   :  { %v8278_v9 = vpack.c.bf16 %v2433_v2, %v2433_v2 }
 0xb9a   :  { %2561 = vxpose.xlu0.c.b16.start.end [1/1] (short) (narrow) %v8278_v9, 48 }
 0xb9b   :  { %v2434_v31 = vpop.trf.xlu1 }
 0xb9c   :  { %v8279_v43 = vpack.c.bf16 %v2434_v31, %v2434_v31 }
 0xb9f   :  { %v2435_v19 = vpop.trf.xlu1 }
 0xba0   :  { %v8280_v61 = vpack.c.bf16 %v2435_v19, %v2435_v19 }
 0xba2   :  { %2731 = vxpose.xlu1.c.b16.start.end [1/1] (short) (narrow) %v8280_v61, 48 }
 0xba3   :  { %2647 = vxpose.xlu0.c.b16.start.end [1/1] (short) (narrow) %v8279_v43, 48  ;;  %v2436_v34 = vpop.trf.xlu1 }
 0xba4   :  { %v8281_v7 = vpack.c.bf16 %v2436_v34, %v2436_v34 }
 0xba7   :  { %v2437_v53 = vpop.trf.xlu1 }
 0xba8   :  { %v8286_v56 = vpack.c.bf16 %v2437_v53, %v2437_v53 }
 0xbaa   :  { %v2589_v57 = vsel %vm2587_vm3, %v8286_v56, 0 }
 0xbab   :  { %8931 = vmatpush3.bf16.msra.mxu1 %v2589_v57  ;;  %v2438_v63 = vpop.trf.xlu1 }
 0xbac   :  { %v8287_v36 = vpack.c.bf16 %v2438_v63, %v2438_v63  ;;  %8958 = vmatprep.subr.bf16.mxu1 %v13595_v0 }
 0xbae   :  { %v2673_v59 = vsel %vm2587_vm3, %v8287_v36, 0 }
 0xbaf   :  { %2449 = vxpose.xlu0.b32.start [1/5] (short) (narrow) %v2398_v16, 96  ;;  %8945 = vmatpush3.bf16.msra.mxu0 %v2673_v59  ;;  %v2439_v23 = vpop.trf.xlu1 }
 0xbb0   :  { %8972 = vmatprep.subr.bf16.mxu0 %v13595_v0  ;;  %v8288_v29 = vpack.c.bf16 %v2439_v23, %v2439_v23 }
 0xbb2   :  { %v2757_v49 = vsel %vm2587_vm3, %v8288_v29, 0 }
 0xbb3   :  { %2450 = vxpose.xlu0.b32.cont [2/5] (short) (narrow) %v2403_v58, 96  ;;  %v2440_v33 = vpop.trf.xlu1 }
 0xbb4   :  { %v8289_v37 = vpack.c.bf16 %v2440_v33, %v2440_v33 }
 0xbb6   :  { %v2841_v30 = vsel %vm2587_vm3, %v8289_v37, 0  ;;  %v10159_v37 = vmov -1e+30  }
 0xbb7   :  { %2451 = vxpose.xlu0.b32.cont [3/5] (short) (narrow) %v2406_v1, 96  ;;  %v11398_v47 = vpop.trf.xlu1 }
 0xbbb   :  { %2452 = vxpose.xlu0.b32.cont [4/5] (short) (narrow) %v2411_v41, 96  ;;  %v11405_v60 = vpop.trf.xlu1 }
 0xbbf   :  { %2453 = vxpose.xlu0.b32.end [5/5] (short) (narrow) %v2414_v62, 96  ;;  %v11410_v28 = vpop.trf.xlu1 }
 0xbc3   :  { %v11417_v55 = vpop.trf.xlu1 }
 0xbff   :  { %2815 = vxpose.xlu0.c.b16.start.end [1/1] (short) (narrow) %v8281_v7, 48 }
 0xc00   :  { %v2569_v32 = vpop.trf.xlu0 }
 0xc01   :  { %8933 = vmatmul.mubr.msk.bf16.vlgmr.msra.gmra.mrb[68].mxu1 %vm2577_vm4, %v2569_v32 }
 0xc02   :  { %8936 = vmatprep.mubr.msk.bf16.mxu1 %vm10156_vm2, %v13595_v0  ;;  %8959 = vmatpush3.bf16.msra.mxu1 %v2757_v49 }
 0xc03   :  { %8986 = vmatprep.subr.bf16.mxu1 %v13595_v0 }
 0xc04   :  { %v2570_v20 = vpop.trf.xlu0 }
 0xc08   :  { %v2571_v35 = vpop.trf.xlu0  ;;  %v2739_v8 = vpop.trf.xlu1 }
 0xc09   :  { %8937 = vmatmul.mubr.msk.bf16.gmra.mrb[72].mxu1 %vm2577_vm4, %v2570_v20 }
 0xc0a   :  { %8940 = vmatprep.mubr.msk.bf16.mxu1 %vm10156_vm2, %v13595_v0 }
 0xc0c   :  { %v2655_v50 = vpop.trf.xlu0  ;;  %v2740_v6 = vpop.trf.xlu1 }
 0xc0d   :  { %8947 = vmatmul.mubr.msk.bf16.vlgmr.msra.gmra.mrb[116].mxu0 %vm2577_vm4, %v2655_v50 }
 0xc0e   :  { %8950 = vmatprep.mubr.msk.bf16.mxu0 %vm10156_vm2, %v13595_v0  ;;  %8973 = vmatpush3.bf16.msra.mxu0 %v2841_v30 }
 0xc0f   :  { %9000 = vmatprep.subr.bf16.mxu0 %v13595_v0 }
 0xc10   :  { %v2656_v54 = vpop.trf.xlu0  ;;  %v2741_v26 = vpop.trf.xlu1 }
 0xc11   :  { %8941 = vmatmul.mubr.msk.bf16.gmra.mrb[76].mxu1 %vm2577_vm4, %v2571_v35  ;;  %v11499_v35 = vsel %vm2299_vm6, 0.0, %v10159_v37 }
 0xc12   :  { %8960 = vmatprep.mubr.msk.bf16.mxu1 %vm10156_vm2, %v13595_v0  ;;  %13656 = vst [vmem:[#allocation13_spill] sm:$0xff] %v11499_v35 }
 0xc14   :  { %v2657_v15 = vpop.trf.xlu0 }
 0xc15   :  { %8951 = vmatmul.mubr.msk.bf16.gmra.mrb[120].mxu0 %vm2577_vm4, %v2656_v54 }
 0xc16   :  { %8954 = vmatprep.mubr.msk.bf16.mxu0 %vm10156_vm2, %v13595_v0 }
 0xc19   :  { %8961 = vmatmul.mubr.msk.bf16.vlgmr.msra.gmra.mrb[80].mxu1 %vm2577_vm4, %v2739_v8 }
 0xc1a   :  { %8964 = vmatprep.mubr.msk.bf16.mxu1 %vm10156_vm2, %v13595_v0 }
 0xc1d   :  { %8955 = vmatmul.mubr.msk.bf16.gmra.mrb[124].mxu0 %vm2577_vm4, %v2657_v15 }
 0xc1e   :  { %8974 = vmatprep.mubr.msk.bf16.mxu0 %vm10156_vm2, %v13595_v0 }
 0xc21   :  { %8965 = vmatmul.mubr.msk.bf16.gmra.mrb[84].mxu1 %vm2577_vm4, %v2740_v6 }
 0xc22   :  { %8968 = vmatprep.mubr.msk.bf16.mxu1 %vm10156_vm2, %v13595_v0 }
 0xc29   :  { %8969 = vmatmul.mubr.msk.bf16.gmra.mrb[88].mxu1 %vm2577_vm4, %v2741_v26 }
 0xc2a   :  { %8988 = vmatprep.mubr.msk.bf16.mxu1 %vm10156_vm2, %v13595_v0 }
 0xc2f   :  { %v2465_v46 = vpop.trf.xlu0 }
 0xc30   :  { %v8282_v21 = vpack.c.bf16 %v2465_v46, %v2465_v46 }
 0xc32   :  { %2899 = vxpose.xlu1.c.b16.start.end [1/1] (short) (narrow) %v8282_v21, 48 }
 0xc33   :  { %v2466_v44 = vpop.trf.xlu0 }
 0xc34   :  { %v8283_v24 = vpack.c.bf16 %v2466_v44, %v2466_v44 }
 0xc37   :  { %v2467_v52 = vpop.trf.xlu0 }
 0xc38   :  { %v8284_v11 = vpack.c.bf16 %v2467_v52, %v2467_v52 }
 0xc3b   :  { %2983 = vxpose.xlu1.c.b16.start.end [1/1] (short) (narrow) %v8283_v24, 48  ;;  %v2468_v12 = vpop.trf.xlu0 }
 0xc3c   :  { %v8285_v25 = vpack.c.bf16 %v2468_v12, %v2468_v12 }
 0xc3e   :  { %3151 = vxpose.xlu0.c.b16.start.end [1/1] (short) (narrow) %v8285_v25, 48 }
 0xc3f   :  { %v2469_v17 = vpop.trf.xlu0 }
 0xc40   :  { %v8290_v22 = vpack.c.bf16 %v2469_v17, %v2469_v17 }
 0xc42   :  { %v2925_v10 = vsel %vm2587_vm3, %v8290_v22, 0 }
 0xc43   :  { %v2470_v3 = vpop.trf.xlu0  ;;  %8987 = vmatpush3.bf16.msra.mxu1 %v2925_v10 }
 0xc44   :  { %3067 = vxpose.xlu1.c.b16.start.end [1/1] (short) (narrow) %v8284_v11, 48  ;;  %9014 = vmatprep.subr.bf16.mxu1 %v13595_v0  ;;  %v8291_v19 = vpack.c.bf16 %v2470_v3, %v2470_v3 }
 0xc46   :  { %v3009_v61 = vsel %vm2587_vm3, %v8291_v19, 0 }
 0xc47   :  { %v2471_v13 = vpop.trf.xlu0 }
 0xc48   :  { %v8292_v57 = vpack.c.bf16 %v2471_v13, %v2471_v13 }
 0xc4a   :  { %v3093_v36 = vsel %vm2587_vm3, %v8292_v57, 0 }
 0xc4b   :  { %v2472_v48 = vpop.trf.xlu0 }
 0xc4c   :  { %v8293_v58 = vpack.c.bf16 %v2472_v48, %v2472_v48 }
 0xc4e   :  { %v3177_v41 = vsel %vm2587_vm3, %v8293_v58, 0 }
 0xc4f   :  { %v11439_v2 = vpop.trf.xlu0 }
 0xc53   :  { %v11441_v9 = vpop.trf.xlu0 }
 0xc57   :  { %v11443_v31 = vpop.trf.xlu0 }
 0xc5b   :  { %v11445_v43 = vpop.trf.xlu0 }
 0xc5c   :  { %13655 = vst [vmem:[#allocation12_spill] sm:$0xff] %v11445_v43  ;;  %v13657_v43 = vmov 0.0  }
 0xc65   :  { %v2823_v34 = vpop.trf.xlu0 }
 0xc66   :  { %8975 = vmatmul.mubr.msk.bf16.vlgmr.msra.gmra.mrb[128].mxu0 %vm2577_vm4, %v2823_v34 }
 0xc67   :  { %8978 = vmatprep.mubr.msk.bf16.mxu0 %vm10156_vm2, %v13595_v0  ;;  %9001 = vmatpush3.bf16.msra.mxu0 %v3009_v61 }
 0xc68   :  { %9028 = vmatprep.subr.bf16.mxu0 %v13595_v0 }
 0xc69   :  { %v2824_v53 = vpop.trf.xlu0 }
 0xc6d   :  { %v2825_v56 = vpop.trf.xlu0 }
 0xc6e   :  { %8979 = vmatmul.mubr.msk.bf16.gmra.mrb[132].mxu0 %vm2577_vm4, %v2824_v53 }
 0xc6f   :  { %8982 = vmatprep.mubr.msk.bf16.mxu0 %vm10156_vm2, %v13595_v0 }
 0xc76   :  { %8983 = vmatmul.mubr.msk.bf16.gmra.mrb[136].mxu0 %vm2577_vm4, %v2825_v56 }
 0xc77   :  { %9002 = vmatprep.mubr.msk.bf16.mxu0 %vm10156_vm2, %v13595_v0 }
 0xc98   :  { %v2907_v63 = vpop.trf.xlu1 }
 0xc99   :  { %8989 = vmatmul.mubr.msk.bf16.vlgmr.msra.gmra.mrb[92].mxu1 %vm2577_vm4, %v2907_v63 }
 0xc9a   :  { %9015 = vmatpush3.bf16.msra.mxu1 %v3093_v36  ;;  %8992 = vmatprep.mubr.msk.bf16.mxu1 %vm10156_vm2, %v13595_v0 }
 0xc9b   :  { %9042 = vmatprep.subr.bf16.mxu1 %v13595_v0 }
 0xc9c   :  { %v2908_v16 = vpop.trf.xlu1 }
 0xca0   :  { %v2909_v59 = vpop.trf.xlu1 }
 0xca1   :  { %8993 = vmatmul.mubr.msk.bf16.gmra.mrb[96].mxu1 %vm2577_vm4, %v2908_v16 }
 0xca2   :  { %8996 = vmatprep.mubr.msk.bf16.mxu1 %vm10156_vm2, %v13595_v0 }
 0xca4   :  { %v2991_v1 = vpop.trf.xlu1  ;;  %v3159_v29 = vpop.trf.xlu0 }
 0xca5   :  { %9003 = vmatmul.mubr.msk.bf16.vlgmr.msra.gmra.mrb[140].mxu0 %vm2577_vm4, %v2991_v1 }
 0xca6   :  { %9029 = vmatpush3.bf16.msra.mxu0 %v3177_v41  ;;  %9006 = vmatprep.mubr.msk.bf16.mxu0 %vm10156_vm2, %v13595_v0 }
 0xca7   :  { %9052 = vmatprep.subr.bf16.mxu0 %v13595_v0 }
 0xca8   :  { %v2992_v62 = vpop.trf.xlu1  ;;  %v3160_v32 = vpop.trf.xlu0 }
 0xca9   :  { %8997 = vmatmul.mubr.msk.bf16.gmra.mrb[100].mxu1 %vm2577_vm4, %v2909_v59 }
 0xcaa   :  { %9016 = vmatprep.mubr.msk.bf16.mxu1 %vm10156_vm2, %v13595_v0 }
 0xcac   :  { %v2993_v23 = vpop.trf.xlu1  ;;  %v3161_v20 = vpop.trf.xlu0 }
 0xcad   :  { %9007 = vmatmul.mubr.msk.bf16.gmra.mrb[144].mxu0 %vm2577_vm4, %v2992_v62 }
 0xcae   :  { %9010 = vmatprep.mubr.msk.bf16.mxu0 %vm10156_vm2, %v13595_v0 }
 0xcb0   :  { %v3075_v33 = vpop.trf.xlu1 }
 0xcb1   :  { %9017 = vmatmul.mubr.msk.bf16.vlgmr.msra.gmra.mrb[104].mxu1 %vm2577_vm4, %v3075_v33 }
 0xcb2   :  { %9020 = vmatprep.mubr.msk.bf16.mxu1 %vm10156_vm2, %v13595_v0 }
 0xcb4   :  { %v3076_v7 = vpop.trf.xlu1 }
 0xcb5   :  { %9011 = vmatmul.mubr.msk.bf16.gmra.mrb[148].mxu0 %vm2577_vm4, %v2993_v23 }
 0xcb6   :  { %9030 = vmatprep.mubr.msk.bf16.mxu0 %vm10156_vm2, %v13595_v0 }
 0xcb8   :  { %v3077_v49 = vpop.trf.xlu1 }
 0xcb9   :  { %9021 = vmatmul.mubr.msk.bf16.gmra.mrb[108].mxu1 %vm2577_vm4, %v3076_v7 }
 0xcba   :  { %9024 = vmatprep.mubr.msk.bf16.mxu1 %vm10156_vm2, %v13595_v0 }
 0xcbd   :  { %9031 = vmatmul.mubr.msk.bf16.vlgmr.msra.gmra.mrb[152].mxu0 %vm2577_vm4, %v3159_v29 }
 0xcbe   :  { %9034 = vmatprep.mubr.msk.bf16.mxu0 %vm10156_vm2, %v13595_v0 }
 0xcc1   :  { %9025 = vmatmul.mubr.msk.bf16.gmra.mrb[112].mxu1 %vm2577_vm4, %v3077_v49 }
 0xcc2   :  { %9048 = vmatprep.mubr.msk.bf16.mxu1 %vm10156_vm2, %v13595_v0 }
 0xcc5   :  { %9035 = vmatmul.mubr.msk.bf16.gmra.mrb[156].mxu0 %vm2577_vm4, %v3160_v32 }
 0xcc6   :  { %9038 = vmatprep.mubr.msk.bf16.mxu0 %vm10156_vm2, %v13595_v0 }
 0xccd   :  { %9039 = vmatmul.mubr.msk.bf16.gmra.mrb[160].mxu0 %vm2577_vm4, %v3161_v20 }
 0xcce   :  { %9058 = vmatprep.mubr.msk.bf16.mxu0 %vm10156_vm2, %v13595_v0 }
 0xcd4   :  { %v2625_v30 = vpop.f32.mrb[68].mxu1 }
 0xcd5   :  { %v3235_v50 = vmul.f32 0.35355338, %v2625_v30  ;;  %v8934_v54 = vpop.f32.mrb[69].mxu1 }
 0xcd6   :  { %v2628_v8 = vpop.f32.mrb[70].mxu1 }
 0xcd7   :  { %v11502_v15 = vadd.f32 %v3235_v50, %v11499_v35  ;;  %v3236_v6 = vmul.f32 0.35355338, %v2628_v8  ;;  %v8935_v26 = vpop.f32.mrb[71].mxu1 }
 0xcd9   :  { %v11505_v46 = vadd.f32 %v3236_v6, %v11499_v35  ;;  %v3316_v21 = vsel %vm3315_vm13, %v11502_v15, -inf }
 0xcda   :  { %3317 = vmax.xlane.f32.xlu1 %v3316_v21 }
 0xcdb   :  { %v3319_v51 = vsel %vm3315_vm13, %v11505_v46, -inf }
 0xcdc   :  { %v2633_v44 = vpop.f32.mrb[72].mxu1  ;;  %3320 = vmax.xlane.f32.xlu0 %v3319_v51 }
 0xcdd   :  { %v3237_v24 = vmul.f32 0.35355338, %v2633_v44  ;;  %v8938_v52 = vpop.f32.mrb[73].mxu1 }
 0xcde   :  { %v2636_v12 = vpop.f32.mrb[74].mxu1 }
 0xcdf   :  { %v11512_v25 = vadd.f32 %v3237_v24, %v11499_v35  ;;  %v8939_v17 = vpop.f32.mrb[75].mxu1  ;;  %v3238_v34 = vmul.f32 0.35355338, %v2636_v12 }
 0xce0   :  { %v2709_v11 = vpop.f32.mrb[116].mxu0 }
 0xce1   :  { %v3240_v22 = vmul.f32 0.35355338, %v2709_v11  ;;  %v3322_v10 = vsel %vm3315_vm13, %v11512_v25, -inf  ;;  %v8948_v3 = vpop.f32.mrb[117].mxu0  ;;  %v11525_v16 = vadd.f32 %v3238_v34, %v11499_v35 }
 0xce2   :  { %3323 = vmax.xlane.f32.xlu0 %v3322_v10  ;;  %v2712_v13 = vpop.f32.mrb[118].mxu0 }
 0xce3   :  { %v11517_v48 = vadd.f32 %v3240_v22, %v11499_v35  ;;  %v3241_v19 = vmul.f32 0.35355338, %v2712_v13  ;;  %v8949_v61 = vpop.f32.mrb[119].mxu0  ;;  %v3325_v32 = vsel %vm3315_vm13, %v11525_v16, -inf }
 0xce4   :  { %v2641_v53 = vpop.f32.mrb[76].mxu1 }
 0xce5   :  { %v11520_v56 = vadd.f32 %v3241_v19, %v11499_v35  ;;  %v3331_v57 = vsel %vm3315_vm13, %v11517_v48, -inf  ;;  %v8942_v63 = vpop.f32.mrb[77].mxu1  ;;  %v3239_v58 = vmul.f32 0.35355338, %v2641_v53 }
 0xce6   :  { %3332 = vmax.xlane.f32.xlu1 %v3331_v57  ;;  %v2644_v36 = vpop.f32.mrb[78].mxu1 }
 0xce7   :  { %v3334_v59 = vsel %vm3315_vm13, %v11520_v56, -inf  ;;  %v8943_v1 = vpop.f32.mrb[79].mxu1  ;;  %v11533_v29 = vadd.f32 %v3239_v58, %v11499_v35 }
 0xce8   :  { %v2717_v41 = vpop.f32.mrb[120].mxu0 }
 0xce9   :  { %v3242_v62 = vmul.f32 0.35355338, %v2717_v41  ;;  %v8952_v23 = vpop.f32.mrb[121].mxu0  ;;  %v3328_v21 = vsel %vm3315_vm13, %v11533_v29, -inf }
 0xcea   :  { %3335 = vmax.xlane.f32.xlu1 %v3334_v59  ;;  %v2720_v33 = vpop.f32.mrb[122].mxu0 }
 0xceb   :  { %v11530_v7 = vadd.f32 %v3242_v62, %v11499_v35  ;;  %v3243_v49 = vmul.f32 0.35355338, %v2720_v33  ;;  %v8953_v20 = vpop.f32.mrb[123].mxu0 }
 0xcec   :  { %v2793_v37 = vpop.f32.mrb[80].mxu1 }
 0xced   :  { %v11538_v30 = vadd.f32 %v3243_v49, %v11499_v35  ;;  %v3337_v50 = vsel %vm3315_vm13, %v11530_v7, -inf  ;;  %v3245_v54 = vmul.f32 0.35355338, %v2793_v37  ;;  %v8962_v8 = vpop.f32.mrb[81].mxu1 }
 0xcee   :  { %3326 = vmax.xlane.f32.xlu1 %v3325_v32  ;;  %3338 = vmax.xlane.f32.xlu0 %v3337_v50  ;;  %v2796_v6 = vpop.f32.mrb[82].mxu1 }
 0xcef   :  { %v11543_v26 = vadd.f32 %v3245_v54, %v11499_v35  ;;  %v3340_v51 = vsel %vm3315_vm13, %v11538_v30, -inf  ;;  %v3246_v44 = vmul.f32 0.35355338, %v2796_v6  ;;  %v8963_v24 = vpop.f32.mrb[83].mxu1 }
 0xcf0   :  { %v2725_v52 = vpop.f32.mrb[124].mxu0 }
 0xcf1   :  { %v3244_v12 = vmul.f32 0.35355338, %v2725_v52  ;;  %v8956_v17 = vpop.f32.mrb[125].mxu0  ;;  %v11553_v10 = vadd.f32 %v3246_v44, %v11499_v35  ;;  %v3346_v3 = vsel %vm3315_vm13, %v11543_v26, -inf }
 0xcf2   :  { %3329 = vmax.xlane.f32.xlu0 %v3328_v21  ;;  %3341 = vmax.xlane.f32.xlu1 %v3340_v51  ;;  %v2728_v11 = vpop.f32.mrb[126].mxu0 }
 0xcf3   :  { %v11550_v22 = vadd.f32 %v3244_v12, %v11499_v35  ;;  %v8957_v13 = vpop.f32.mrb[127].mxu0  ;;  %v3349_v57 = vsel %vm3315_vm13, %v11553_v10, -inf }
 0xcf4   :  { %v2801_v19 = vpop.f32.mrb[84].mxu1 }
 0xcf5   :  { %v3343_v61 = vsel %vm3315_vm13, %v11550_v22, -inf  ;;  %v8966_v34 = vpop.f32.mrb[85].mxu1  ;;  %v3247_v41 = vmul.f32 0.35355338, %v2801_v19 }
 0xcf6   :  { %3347 = vmax.xlane.f32.xlu0 %v3346_v3  ;;  %3344 = vmax.xlane.f32.xlu1 %v3343_v61  ;;  %v2804_v53 = vpop.f32.mrb[86].mxu1 }
 0xcf7   :  { %v8967_v63 = vpop.f32.mrb[87].mxu1  ;;  %v3248_v49 = vmul.f32 0.35355338, %v2804_v53  ;;  %v11565_v50 = vadd.f32 %v3247_v41, %v11499_v35 }
 0xcf9   :  { %v11571_v6 = vadd.f32 %v3248_v49, %v11499_v35  ;;  %v3352_v44 = vsel %vm3315_vm13, %v11565_v50, -inf }
 0xcfa   :  { %3350 = vmax.xlane.f32.xlu1 %v3349_v57 }
 0xcfb   :  { %v3355_v11 = vsel %vm3315_vm13, %v11571_v6, -inf }
 0xcfc   :  { %v2809_v36 = vpop.f32.mrb[88].mxu1 }
 0xcfd   :  { %v8970_v59 = vpop.f32.mrb[89].mxu1  ;;  %v3249_v24 = vmul.f32 0.35355338, %v2809_v36 }
 0xcfe   :  { %v2812_v58 = vpop.f32.mrb[90].mxu1 }
 0xcff   :  { %v8971_v1 = vpop.f32.mrb[91].mxu1  ;;  %v11585_v61 = vadd.f32 %v3249_v24, %v11499_v35 }
 0xd01   :  { %v3358_v36 = vsel %vm3315_vm13, %v11585_v61, -inf }
 0xd39   :  { %v2877_v62 = vpop.f32.mrb[128].mxu0 }
 0xd3a   :  { %v3250_v23 = vmul.f32 0.35355338, %v2877_v62  ;;  %v8976_v33 = vpop.f32.mrb[129].mxu0 }
 0xd3b   :  { %v2880_v32 = vpop.f32.mrb[130].mxu0 }
 0xd3c   :  { %v11562_v20 = vadd.f32 %v3250_v23, %v11499_v35  ;;  %v3251_v37 = vmul.f32 0.35355338, %v2880_v32  ;;  %v8977_v54 = vpop.f32.mrb[131].mxu0 }
 0xd3e   :  { %v11568_v8 = vadd.f32 %v3251_v37, %v11499_v35  ;;  %v3361_v21 = vsel %vm3315_vm13, %v11562_v20, -inf }
 0xd3f   :  { %3362 = vmax.xlane.f32.xlu0 %v3361_v21 }
 0xd40   :  { %v3364_v51 = vsel %vm3315_vm13, %v11568_v8, -inf }
 0xd41   :  { %3365 = vmax.xlane.f32.xlu1 %v3364_v51  ;;  %v2885_v52 = vpop.f32.mrb[132].mxu0 }
 0xd42   :  { %v3252_v12 = vmul.f32 0.35355338, %v2885_v52  ;;  %v8980_v17 = vpop.f32.mrb[133].mxu0 }
 0xd43   :  { %3353 = vmax.xlane.f32.xlu0 %v3352_v44  ;;  %v2888_v3 = vpop.f32.mrb[134].mxu0 }
 0xd44   :  { %v11582_v13 = vadd.f32 %v3252_v12, %v11499_v35  ;;  %v3253_v19 = vmul.f32 0.35355338, %v2888_v3  ;;  %v8981_v34 = vpop.f32.mrb[135].mxu0 }
 0xd45   :  { %3356 = vmax.xlane.f32.xlu1 %v3355_v11 }
 0xd46   :  { %v11588_v53 = vadd.f32 %v3253_v19, %v11499_v35  ;;  %v3367_v57 = vsel %vm3315_vm13, %v11582_v13, -inf }
 0xd47   :  { %3368 = vmax.xlane.f32.xlu0 %v3367_v57 }
 0xd48   :  { %v3370_v63 = vsel %vm3315_vm13, %v11588_v53, -inf }
 0xd49   :  { %3371 = vmax.xlane.f32.xlu1 %v3370_v63  ;;  %v2893_v59 = vpop.f32.mrb[136].mxu0 }
 0xd4a   :  { %v3254_v58 = vmul.f32 0.35355338, %v2893_v59  ;;  %v8984_v1 = vpop.f32.mrb[137].mxu0 }
 0xd4b   :  { %3359 = vmax.xlane.f32.xlu0 %v3358_v36  ;;  %v2896_v41 = vpop.f32.mrb[138].mxu0 }
 0xd4c   :  { %v11597_v62 = vadd.f32 %v3254_v58, %v11499_v35  ;;  %v8985_v23 = vpop.f32.mrb[139].mxu0 }
 0xd4e   :  { %v3373_v33 = vsel %vm3315_vm13, %v11597_v62, -inf }
 0xd4f   :  { %3374 = vmax.xlane.f32.xlu1 %v3373_v33 }
 0xd6c   :  { %v2961_v49 = vpop.f32.mrb[92].mxu1 }
 0xd6d   :  { %v3255_v32 = vmul.f32 0.35355338, %v2961_v49  ;;  %v8990_v37 = vpop.f32.mrb[93].mxu1 }
 0xd6e   :  { %v2964_v54 = vpop.f32.mrb[94].mxu1 }
 0xd6f   :  { %v11602_v21 = vadd.f32 %v3255_v32, %v11499_v35  ;;  %v3256_v51 = vmul.f32 0.35355338, %v2964_v54  ;;  %v8991_v44 = vpop.f32.mrb[95].mxu1 }
 0xd71   :  { %v11605_v24 = vadd.f32 %v3256_v51, %v11499_v35  ;;  %v3376_v52 = vsel %vm3315_vm13, %v11602_v21, -inf }
 0xd72   :  { %3377 = vmax.xlane.f32.xlu0 %v3376_v52 }
 0xd73   :  { %v3379_v12 = vsel %vm3315_vm13, %v11605_v24, -inf }
 0xd74   :  { %v2969_v17 = vpop.f32.mrb[96].mxu1  ;;  %3380 = vmax.xlane.f32.xlu1 %v3379_v12 }
 0xd75   :  { %v8994_v11 = vpop.f32.mrb[97].mxu1  ;;  %v3257_v57 = vmul.f32 0.35355338, %v2969_v17 }
 0xd76   :  { %v2972_v3 = vpop.f32.mrb[98].mxu1 }
 0xd77   :  { %v8995_v19 = vpop.f32.mrb[99].mxu1  ;;  %v3258_v58 = vmul.f32 0.35355338, %v2972_v3  ;;  %v11615_v49 = vadd.f32 %v3257_v57, %v11499_v35 }
 0xd78   :  { %v3045_v34 = vpop.f32.mrb[140].mxu0 }
 0xd79   :  { %v3260_v63 = vmul.f32 0.35355338, %v3045_v34  ;;  %v9004_v36 = vpop.f32.mrb[141].mxu0  ;;  %v11623_v44 = vadd.f32 %v3258_v58, %v11499_v35  ;;  %v3382_v34 = vsel %vm3315_vm13, %v11615_v49, -inf }
 0xd7a   :  { %v3048_v59 = vpop.f32.mrb[142].mxu0 }
 0xd7b   :  { %v11612_v1 = vadd.f32 %v3260_v63, %v11499_v35  ;;  %v3261_v41 = vmul.f32 0.35355338, %v3048_v59  ;;  %v9005_v23 = vpop.f32.mrb[143].mxu0  ;;  %v3318_v63 = vpop.xlane.xlu1 %3317 }
 0xd7c   :  { %v2977_v33 = vpop.f32.mrb[100].mxu1  ;;  %v3436_v42 = vsub.f32 %v11502_v15, %v3318_v63 }
 0xd7d   :  { %v11618_v32 = vadd.f32 %v3261_v41, %v11499_v35  ;;  %v8998_v37 = vpop.f32.mrb[101].mxu1  ;;  %v3391_v54 = vsel %vm3315_vm13, %v11612_v1, -inf  ;;  %v3259_v11 = vmul.f32 0.35355338, %v2977_v33  ;;  %v3385_v41 = vsel %vm3315_vm13, %v11623_v44, -inf }
 0xd7e   :  { %v2980_v51 = vpop.f32.mrb[102].mxu1  ;;  %3392 = vmax.xlane.f32.xlu0 %v3391_v54 }
 0xd7f   :  { %v8999_v52 = vpop.f32.mrb[103].mxu1  ;;  %v3394_v12 = vsel %vm3315_vm13, %v11618_v32, -inf  ;;  %v11635_v33 = vadd.f32 %v3259_v11, %v11499_v35 }
 0xd80   :  { %3395 = vmax.xlane.f32.xlu1 %v3394_v12  ;;  %v3053_v17 = vpop.f32.mrb[144].mxu0 }
 0xd81   :  { %v3262_v3 = vmul.f32 0.35355338, %v3053_v17  ;;  %v9008_v19 = vpop.f32.mrb[145].mxu0  ;;  %v3333_v17 = vpop.xlane.xlu1 %3332 }
 0xd82   :  { %3383 = vmax.xlane.f32.xlu0 %v3382_v34  ;;  %v3056_v57 = vpop.f32.mrb[146].mxu0 }
 0xd83   :  { %v11630_v36 = vadd.f32 %v3262_v3, %v11499_v35  ;;  %v3263_v59 = vmul.f32 0.35355338, %v3056_v57  ;;  %v9009_v58 = vpop.f32.mrb[147].mxu0 }
 0xd84   :  { %3386 = vmax.xlane.f32.xlu1 %v3385_v41  ;;  %v3129_v23 = vpop.f32.mrb[104].mxu1  ;;  %v3388_v41 = vsel %vm3315_vm13, %v11635_v33, -inf }
 0xd85   :  { %v11638_v37 = vadd.f32 %v3263_v59, %v11499_v35  ;;  %v3397_v54 = vsel %vm3315_vm13, %v11630_v36, -inf  ;;  %v9018_v51 = vpop.f32.mrb[105].mxu1  ;;  %v3265_v52 = vmul.f32 0.35355338, %v3129_v23 }
 0xd86   :  { %3398 = vmax.xlane.f32.xlu0 %v3397_v54  ;;  %v3132_v12 = vpop.f32.mrb[106].mxu1 }
 0xd87   :  { %v3400_v3 = vsel %vm3315_vm13, %v11638_v37, -inf  ;;  %v3266_v19 = vmul.f32 0.35355338, %v3132_v12  ;;  %v9019_v34 = vpop.f32.mrb[107].mxu1  ;;  %v11645_v57 = vadd.f32 %v3265_v52, %v11499_v35  ;;  %v3321_v12 = vpop.xlane.xlu0 %3320 }
 0xd88   :  { %3401 = vmax.xlane.f32.xlu1 %v3400_v3  ;;  %v3061_v11 = vpop.f32.mrb[148].mxu0  ;;  %v3336_v34 = vpop.xlane.xlu1 %3335 }
 0xd89   :  { %v3264_v59 = vmul.f32 0.35355338, %v3061_v11  ;;  %v9012_v58 = vpop.f32.mrb[149].mxu0  ;;  %v11653_v0 = vadd.f32 %v3266_v19, %v11499_v35  ;;  %v3406_v52 = vsel %vm3315_vm13, %v11645_v57, -inf  ;;  %v3437_v19 = vsub.f32 %v11505_v46, %v3321_v12 }
 0xd8a   :  { %3389 = vmax.xlane.f32.xlu0 %v3388_v41  ;;  %v3064_v54 = vpop.f32.mrb[150].mxu0  ;;  %v3441_v46 = vsub.f32 %v11517_v48, %v3333_v17 }
 0xd8b   :  { %v11650_v23 = vadd.f32 %v3264_v59, %v11499_v35  ;;  %v9013_v51 = vpop.f32.mrb[151].mxu0  ;;  %v3409_v59 = vsel %vm3315_vm13, %v11653_v0, -inf  ;;  %v3324_v40 = vpop.xlane.xlu0 %3323  ;;  %v3478_v38 = vmul.f32 1.442695, %v3437_v19 }
 0xd8c   :  { %v3137_v3 = vpop.f32.mrb[108].mxu1  ;;  %v3327_v4 = vpop.xlane.xlu1 %3326 }
 0xd8d   :  { %v3403_v11 = vsel %vm3315_vm13, %v11650_v23, -inf  ;;  %v9022_v58 = vpop.f32.mrb[109].mxu1  ;;  %v3267_v54 = vmul.f32 0.35355338, %v3137_v3  ;;  %9711 = vpow2.f32 %v3478_v38 }
 0xd8e   :  { %3407 = vmax.xlane.f32.xlu0 %v3406_v52  ;;  %3404 = vmax.xlane.f32.xlu1 %v3403_v11  ;;  %v3140_v41 = vpop.f32.mrb[110].mxu1 }
 0xd8f   :  { %v9023_v51 = vpop.f32.mrb[111].mxu1  ;;  %v11667_v3 = vadd.f32 %v3267_v54, %v11499_v35  ;;  %v3339_v12 = vpop.xlane.xlu0 %3338 }
 0xd90   :  { %v3213_v27 = vpop.f32.mrb[152].mxu0  ;;  %v3268_v51 = vmul.f32 0.35355338, %v3140_v41 }
 0xd91   :  { %v3270_v5 = vmul.f32 0.35355338, %v3213_v27  ;;  %v9032_v45 = vpop.f32.mrb[153].mxu0  ;;  %v3412_v17 = vsel %vm3315_vm13, %v11667_v3, -inf }
 0xd92   :  { %3410 = vmax.xlane.f32.xlu1 %v3409_v59  ;;  %v3216_v39 = vpop.f32.mrb[154].mxu0  ;;  %v3438_v59 = vsub.f32 %v11512_v25, %v3324_v40  ;;  %v3342_v40 = vpop.xlane.xlu1 %3341 }
 0xd93   :  { %v11664_v52 = vadd.f32 %v3270_v5, %v11499_v35  ;;  %v3271_v11 = vmul.f32 0.35355338, %v3216_v39  ;;  %v9033_v58 = vpop.f32.mrb[155].mxu0  ;;  %v3476_v5 = vmul.f32 1.442695, %v3436_v42  ;;  %v11677_v39 = vadd.f32 %v3268_v51, %v11499_v35 }
 0xd94   :  { %v3145_v27 = vpop.f32.mrb[112].mxu1  ;;  %v3442_v58 = vsub.f32 %v11520_v56, %v3336_v34  ;;  %v3480_v51 = vmul.f32 1.442695, %v3438_v59 }
 0xd95   :  { %v11671_v45 = vadd.f32 %v3271_v11, %v11499_v35  ;;  %v3421_v15 = vsel %vm3315_vm13, %v11664_v52, -inf  ;;  %v9026_v63 = vpop.f32.mrb[113].mxu1  ;;  %v3269_v41 = vmul.f32 0.35355338, %v3145_v27  ;;  %v3486_v11 = vmul.f32 1.442695, %v3441_v46 }
 0xd96   :  { %3422 = vmax.xlane.f32.xlu0 %v3421_v15  ;;  %v3148_v54 = vpop.f32.mrb[114].mxu1  ;;  %9713 = vpow2.f32 %v3476_v5  ;;  %v3439_v63 = vsub.f32 %v11525_v16, %v3327_v4  ;;  %v3415_v56 = vsel %vm3315_vm13, %v11677_v39, -inf  ;;  %v3488_v34 = vmul.f32 1.442695, %v3442_v58 }
 0xd97   :  { %v3424_v48 = vsel %vm3315_vm13, %v11671_v45, -inf  ;;  %v9027_v19 = vpop.f32.mrb[115].mxu1  ;;  %v3330_v54 = vpop.xlane.xlu0 %3329  ;;  %v11689_v46 = vadd.f32 %v3269_v41, %v11499_v35  ;;  %9715 = vpow2.f32 %v3486_v11  ;;  %v3443_v5 = vsub.f32 %v11530_v7, %v3339_v12 }
 0xd98   :  { %3425 = vmax.xlane.f32.xlu1 %v3424_v48  ;;  %v3221_v42 = vpop.f32.mrb[156].mxu0  ;;  %9717 = vpow2.f32 %v3480_v51  ;;  %v3440_v59 = vsub.f32 %v11533_v29, %v3330_v54  ;;  %v3345_v48 = vpop.xlane.xlu1 %3344  ;;  %v3444_v12 = vsub.f32 %v11538_v30, %v3342_v40 }
 0xd99   :  { %v3272_v25 = vmul.f32 0.35355338, %v3221_v42  ;;  %v9036_v15 = vpop.f32.mrb[157].mxu0  ;;  %v3418_v41 = vsel %vm3315_vm13, %v11689_v46, -inf  ;;  %9719 = vpow2.f32 %v3488_v34  ;;  %v3490_v7 = vmul.f32 1.442695, %v3443_v5 }
 0xd9a   :  { %3413 = vmax.xlane.f32.xlu0 %v3412_v17  ;;  %v3224_v14 = vpop.f32.mrb[158].mxu0  ;;  %v3484_v15 = vmul.f32 1.442695, %v3440_v59  ;;  %v3492_v30 = vmul.f32 1.442695, %v3444_v12  ;;  %v3445_v40 = vsub.f32 %v11550_v22, %v3345_v48 }
 0xd9b   :  { %v11686_v18 = vadd.f32 %v3272_v25, %v11499_v35  ;;  %v3273_v27 = vmul.f32 0.35355338, %v3224_v14  ;;  %v9037_v38 = vpop.f32.mrb[159].mxu0  ;;  %v3482_v14 = vmul.f32 1.442695, %v3439_v63  ;;  %v3348_v19 = vpop.xlane.xlu0 %3347 }
 0xd9c   :  { %3416 = vmax.xlane.f32.xlu1 %v3415_v56  ;;  %v11705_v25 = vpop.eup %9711  ;;  %v3446_v51 = vsub.f32 %v11543_v26, %v3348_v19  ;;  %v3351_v38 = vpop.xlane.xlu1 %3350 }
 0xd9d   :  { %v11695_v4 = vadd.f32 %v3273_v27, %v11499_v35  ;;  %v3427_v16 = vsel %vm3315_vm13, %v11686_v18, -inf  ;;  %9721 = vpow2.f32 %v3482_v14  ;;  %v3559_v56 = vsel %vm3315_vm13, %v11705_v25, 0.0 }
 0xd9e   :  { %3428 = vmax.xlane.f32.xlu0 %v3427_v16  ;;  %9723 = vpow2.f32 %v3490_v7  ;;  %v3496_v26 = vmul.f32 1.442695, %v3446_v51  ;;  %v3494_v14 = vmul.f32 1.442695, %v3445_v40  ;;  %v3447_v59 = vsub.f32 %v11553_v10, %v3351_v38 }
 0xd9f   :  { %v3430_v17 = vsel %vm3315_vm13, %v11695_v4, -inf  ;;  %9725 = vpow2.f32 %v3484_v15 }
 0xda0   :  { %3431 = vmax.xlane.f32.xlu1 %v3430_v17  ;;  %v3229_v11 = vpop.f32.mrb[160].mxu0  ;;  %v11711_v27 = vpop.eup %9713  ;;  %9727 = vpow2.f32 %v3492_v30 }
 0xda1   :  { %v3274_v58 = vmul.f32 0.35355338, %v3229_v11  ;;  %v9040_v42 = vpop.f32.mrb[161].mxu0  ;;  %v11718_v5 = vpop.eup %9715  ;;  %v3556_v48 = vsel %vm3315_vm13, %v11711_v27, 0.0  ;;  %9729 = vpow2.f32 %v3496_v26 }
 0xda2   :  { %3419 = vmax.xlane.f32.xlu0 %v3418_v41  ;;  %v3232_v29 = vpop.f32.mrb[162].mxu0  ;;  %v11720_v16 = vpop.eup %9717  ;;  %v3571_v22 = vsel %vm3315_vm13, %v11718_v5, 0.0  ;;  %9731 = vpow2.f32 %v3494_v14  ;;  %v3498_v41 = vmul.f32 1.442695, %v3447_v59 }
 0xda3   :  { %v11709_v63 = vadd.f32 %v3274_v58, %v11499_v35  ;;  %v9041_v54 = vpop.f32.mrb[163].mxu0  ;;  %v11727_v17 = vpop.eup %9719  ;;  %v3562_v12 = vsel %vm3315_vm13, %v11720_v16, 0.0 }
 0xda4   :  { %v3574_v10 = vsel %vm3315_vm13, %v11727_v17, 0.0  ;;  %9733 = vpow2.f32 %v3498_v41 }
 0xda5   :  { %v3433_v34 = vsel %vm3315_vm13, %v11709_v63, -inf }
 0xda6   :  { %3560 = vadd.xlane.f32.xlu0 %v3559_v56  ;;  %3434 = vmax.xlane.f32.xlu1 %v3433_v34 }
 0xda7   :  { %v11729_v7 = vpop.eup %9721 }
 0xda8   :  { %v11735_v19 = vpop.eup %9723  ;;  %v3565_v42 = vsel %vm3315_vm13, %v11729_v7, 0.0 }
 0xda9   :  { %v11737_v11 = vpop.eup %9725  ;;  %v3577_v58 = vsel %vm3315_vm13, %v11735_v19, 0.0 }
 0xdaa   :  { %3572 = vadd.xlane.f32.xlu0 %v3571_v22  ;;  %3557 = vadd.xlane.f32.xlu1 %v3556_v48  ;;  %v11743_v29 = vpop.eup %9727  ;;  %v3568_v51 = vsel %vm3315_vm13, %v11737_v11, 0.0 }
 0xdab   :  { %v11745_v15 = vpop.eup %9729  ;;  %v3580_v54 = vsel %vm3315_vm13, %v11743_v29, 0.0 }
 0xdac   :  { %v11751_v30 = vpop.eup %9731  ;;  %v3586_v40 = vsel %vm3315_vm13, %v11745_v15, 0.0 }
 0xdad   :  { %v3583_v38 = vsel %vm3315_vm13, %v11751_v30, 0.0 }
 0xdae   :  { %3563 = vadd.xlane.f32.xlu0 %v3562_v12  ;;  %3575 = vadd.xlane.f32.xlu1 %v3574_v10  ;;  %v11757_v56 = vpop.eup %9733 }
 0xdaf   :  { %v3589_v34 = vsel %vm3315_vm13, %v11757_v56, 0.0 }
 0xdb2   :  { %3578 = vadd.xlane.f32.xlu0 %v3577_v58  ;;  %3566 = vadd.xlane.f32.xlu1 %v3565_v42 }
 0xdb6   :  { %3569 = vadd.xlane.f32.xlu0 %v3568_v51  ;;  %3581 = vadd.xlane.f32.xlu1 %v3580_v54 }
 0xdba   :  { %3587 = vadd.xlane.f32.xlu0 %v3586_v40  ;;  %3584 = vadd.xlane.f32.xlu1 %v3583_v38 }
 0xdbe   :  { %3590 = vadd.xlane.f32.xlu1 %v3589_v34 }
 0xdcc   :  { %v3363_v26 = vpop.xlane.xlu0 %3362 }
 0xdcd   :  { %v3451_v14 = vsub.f32 %v11562_v20, %v3363_v26 }
 0xdce   :  { %v3366_v59 = vpop.xlane.xlu1 %3365 }
 0xdcf   :  { %v3506_v22 = vmul.f32 1.442695, %v3451_v14  ;;  %v3452_v48 = vsub.f32 %v11568_v8, %v3366_v59 }
 0xdd0   :  { %v3354_v41 = vpop.xlane.xlu0 %3353 }
 0xdd1   :  { %9735 = vpow2.f32 %v3506_v22  ;;  %v3508_v12 = vmul.f32 1.442695, %v3452_v48  ;;  %v3448_v10 = vsub.f32 %v11565_v50, %v3354_v41 }
 0xdd2   :  { %v3357_v58 = vpop.xlane.xlu1 %3356 }
 0xdd3   :  { %9737 = vpow2.f32 %v3508_v12  ;;  %v3500_v42 = vmul.f32 1.442695, %v3448_v10  ;;  %v3449_v51 = vsub.f32 %v11571_v6, %v3357_v58 }
 0xdd4   :  { %v3369_v54 = vpop.xlane.xlu0 %3368 }
 0xdd5   :  { %9739 = vpow2.f32 %v3500_v42  ;;  %v3502_v40 = vmul.f32 1.442695, %v3449_v51  ;;  %v3453_v38 = vsub.f32 %v11582_v13, %v3369_v54 }
 0xdd6   :  { %v3372_v20 = vpop.xlane.xlu1 %3371 }
 0xdd7   :  { %9741 = vpow2.f32 %v3502_v40  ;;  %v3510_v34 = vmul.f32 1.442695, %v3453_v38  ;;  %v3454_v8 = vsub.f32 %v11588_v53, %v3372_v20 }
 0xdd8   :  { %v3360_v26 = vpop.xlane.xlu0 %3359 }
 0xdd9   :  { %9743 = vpow2.f32 %v3510_v34  ;;  %v3512_v14 = vmul.f32 1.442695, %v3454_v8  ;;  %v3450_v50 = vsub.f32 %v11585_v61, %v3360_v26 }
 0xddb   :  { %v11768_v59 = vpop.eup %9735  ;;  %9745 = vpow2.f32 %v3512_v14  ;;  %v3504_v22 = vmul.f32 1.442695, %v3450_v50 }
 0xddc   :  { %v3375_v6 = vpop.xlane.xlu1 %3374  ;;  %v3601_v48 = vsel %vm3315_vm13, %v11768_v59, 0.0 }
 0xddd   :  { %v11772_v41 = vpop.eup %9737  ;;  %9747 = vpow2.f32 %v3504_v22  ;;  %v3455_v13 = vsub.f32 %v11597_v62, %v3375_v6  ;;  %3602 = vadd.xlane.f32.xlu0 %v3601_v48 }
 0xdde   :  { %v3604_v53 = vsel %vm3315_vm13, %v11772_v41, 0.0 }
 0xddf   :  { %v11777_v12 = vpop.eup %9739  ;;  %v3514_v61 = vmul.f32 1.442695, %v3455_v13  ;;  %3605 = vadd.xlane.f32.xlu1 %v3604_v53 }
 0xde0   :  { %v3592_v10 = vsel %vm3315_vm13, %v11777_v12, 0.0 }
 0xde1   :  { %v11781_v58 = vpop.eup %9741  ;;  %9749 = vpow2.f32 %v3514_v61  ;;  %3593 = vadd.xlane.f32.xlu0 %v3592_v10 }
 0xde2   :  { %v3595_v42 = vsel %vm3315_vm13, %v11781_v58, 0.0 }
 0xde3   :  { %v11785_v51 = vpop.eup %9743  ;;  %3596 = vadd.xlane.f32.xlu1 %v3595_v42 }
 0xde4   :  { %v3607_v62 = vsel %vm3315_vm13, %v11785_v51, 0.0 }
 0xde5   :  { %v11789_v54 = vpop.eup %9745  ;;  %3608 = vadd.xlane.f32.xlu0 %v3607_v62 }
 0xde6   :  { %v3610_v40 = vsel %vm3315_vm13, %v11789_v54, 0.0 }
 0xde7   :  { %v11793_v38 = vpop.eup %9747  ;;  %3611 = vadd.xlane.f32.xlu1 %v3610_v40 }
 0xde8   :  { %v3598_v20 = vsel %vm3315_vm13, %v11793_v38, 0.0 }
 0xde9   :  { %3599 = vadd.xlane.f32.xlu0 %v3598_v20 }
 0xdeb   :  { %v11797_v34 = vpop.eup %9749 }
 0xdec   :  { %v3613_v8 = vsel %vm3315_vm13, %v11797_v34, 0.0 }
 0xded   :  { %3614 = vadd.xlane.f32.xlu1 %v3613_v8 }
 0xdff   :  { %v3378_v26 = vpop.xlane.xlu0 %3377 }
 0xe00   :  { %v3456_v14 = vsub.f32 %v11602_v21, %v3378_v26 }
 0xe01   :  { %v3381_v50 = vpop.xlane.xlu1 %3380 }
 0xe02   :  { %v3516_v22 = vmul.f32 1.442695, %v3456_v14  ;;  %v3457_v6 = vsub.f32 %v11605_v24, %v3381_v50 }
 0xe04   :  { %9751 = vpow2.f32 %v3516_v22  ;;  %v3518_v48 = vmul.f32 1.442695, %v3457_v6 }
 0xe06   :  { %9753 = vpow2.f32 %v3518_v48 }
 0xe0b   :  { %v3393_v13 = vpop.xlane.xlu0 %3392 }
 0xe0c   :  { %v3461_v53 = vsub.f32 %v11612_v1, %v3393_v13 }
 0xe0d   :  { %v3396_v61 = vpop.xlane.xlu1 %3395 }
 0xe0e   :  { %v11804_v10 = vpop.eup %9751  ;;  %v3526_v42 = vmul.f32 1.442695, %v3461_v53  ;;  %v3462_v62 = vsub.f32 %v11618_v32, %v3396_v61 }
 0xe0f   :  { %v3384_v40 = vpop.xlane.xlu0 %3383  ;;  %v3616_v21 = vsel %vm3315_vm13, %v11804_v10, 0.0 }
 0xe10   :  { %v11809_v20 = vpop.eup %9753  ;;  %9755 = vpow2.f32 %v3526_v42  ;;  %v3528_v24 = vmul.f32 1.442695, %v3462_v62  ;;  %v3458_v8 = vsub.f32 %v11615_v49, %v3384_v40  ;;  %3617 = vadd.xlane.f32.xlu0 %v3616_v21 }
 0xe11   :  { %v3387_v26 = vpop.xlane.xlu1 %3386  ;;  %v3619_v1 = vsel %vm3315_vm13, %v11809_v20, 0.0 }
 0xe12   :  { %9757 = vpow2.f32 %v3528_v24  ;;  %v3520_v14 = vmul.f32 1.442695, %v3458_v8  ;;  %v3459_v50 = vsub.f32 %v11623_v44, %v3387_v26  ;;  %3620 = vadd.xlane.f32.xlu1 %v3619_v1 }
 0xe13   :  { %v3399_v32 = vpop.xlane.xlu0 %3398 }
 0xe14   :  { %9759 = vpow2.f32 %v3520_v14  ;;  %v3522_v22 = vmul.f32 1.442695, %v3459_v50  ;;  %v3463_v6 = vsub.f32 %v11630_v36, %v3399_v32 }
 0xe15   :  { %v3402_v48 = vpop.xlane.xlu1 %3401 }
 0xe16   :  { %9761 = vpow2.f32 %v3522_v22  ;;  %v3530_v13 = vmul.f32 1.442695, %v3463_v6  ;;  %v3464_v49 = vsub.f32 %v11638_v37, %v3402_v48 }
 0xe17   :  { %v3390_v53 = vpop.xlane.xlu0 %3389 }
 0xe18   :  { %9763 = vpow2.f32 %v3530_v13  ;;  %v3532_v61 = vmul.f32 1.442695, %v3464_v49  ;;  %v3460_v42 = vsub.f32 %v11635_v33, %v3390_v53 }
 0xe1a   :  { %v11818_v62 = vpop.eup %9755  ;;  %9765 = vpow2.f32 %v3532_v61  ;;  %v3524_v44 = vmul.f32 1.442695, %v3460_v42 }
 0xe1b   :  { %v3408_v40 = vpop.xlane.xlu0 %3407  ;;  %v3405_v21 = vpop.xlane.xlu1 %3404  ;;  %v3631_v24 = vsel %vm3315_vm13, %v11818_v62, 0.0 }
 0xe1c   :  { %v11822_v36 = vpop.eup %9757  ;;  %9767 = vpow2.f32 %v3524_v44  ;;  %v3466_v8 = vsub.f32 %v11645_v57, %v3408_v40  ;;  %v3465_v37 = vsub.f32 %v11650_v23, %v3405_v21  ;;  %3632 = vadd.xlane.f32.xlu0 %v3631_v24 }
 0xe1d   :  { %v3634_v33 = vsel %vm3315_vm13, %v11822_v36, 0.0 }
 0xe1e   :  { %v11828_v26 = vpop.eup %9759  ;;  %v3536_v1 = vmul.f32 1.442695, %v3466_v8  ;;  %v3534_v14 = vmul.f32 1.442695, %v3465_v37  ;;  %3635 = vadd.xlane.f32.xlu1 %v3634_v33 }
 0xe1f   :  { %v3411_v50 = vpop.xlane.xlu1 %3410  ;;  %v3622_v32 = vsel %vm3315_vm13, %v11828_v26, 0.0 }
 0xe20   :  { %v11832_v22 = vpop.eup %9761  ;;  %9769 = vpow2.f32 %v3536_v1  ;;  %v3467_v57 = vsub.f32 %v11653_v0, %v3411_v50  ;;  %3623 = vadd.xlane.f32.xlu0 %v3622_v32 }
 0xe21   :  { %9771 = vpow2.f32 %v3534_v14  ;;  %v3625_v23 = vsel %vm3315_vm13, %v11832_v22, 0.0 }
 0xe22   :  { %v11837_v6 = vpop.eup %9763  ;;  %v3538_v48 = vmul.f32 1.442695, %v3467_v57  ;;  %3626 = vadd.xlane.f32.xlu1 %v3625_v23 }
 0xe23   :  { %v3423_v13 = vpop.xlane.xlu0 %3422  ;;  %v3637_v49 = vsel %vm3315_vm13, %v11837_v6, 0.0 }
 0xe24   :  { %v11841_v53 = vpop.eup %9765  ;;  %9773 = vpow2.f32 %v3538_v48  ;;  %v3471_v61 = vsub.f32 %v11664_v52, %v3423_v13  ;;  %3638 = vadd.xlane.f32.xlu0 %v3637_v49 }
 0xe25   :  { %v3426_v0 = vpop.xlane.xlu1 %3425  ;;  %v3640_v42 = vsel %vm3315_vm13, %v11841_v53, 0.0 }
 0xe26   :  { %v11846_v44 = vpop.eup %9767  ;;  %v3546_v40 = vmul.f32 1.442695, %v3471_v61  ;;  %v3472_v21 = vsub.f32 %v11671_v45, %v3426_v0  ;;  %3641 = vadd.xlane.f32.xlu1 %v3640_v42 }
 0xe27   :  { %v3414_v24 = vpop.xlane.xlu0 %3413  ;;  %v3628_v8 = vsel %vm3315_vm13, %v11846_v44, 0.0 }
 0xe28   :  { %9775 = vpow2.f32 %v3546_v40  ;;  %v3548_v37 = vmul.f32 1.442695, %v3472_v21  ;;  %v3468_v33 = vsub.f32 %v11667_v3, %v3414_v24  ;;  %3629 = vadd.xlane.f32.xlu0 %v3628_v8 }
 0xe29   :  { %v3417_v52 = vpop.xlane.xlu1 %3416 }
 0xe2a   :  { %v11852_v1 = vpop.eup %9769  ;;  %9777 = vpow2.f32 %v3548_v37  ;;  %v3540_v14 = vmul.f32 1.442695, %v3468_v33  ;;  %v3469_v50 = vsub.f32 %v11677_v39, %v3417_v52 }
 0xe2b   :  { %v11855_v32 = vpop.eup %9771  ;;  %v3429_v45 = vpop.xlane.xlu0 %3428  ;;  %v3646_v57 = vsel %vm3315_vm13, %v11852_v1, 0.0 }
 0xe2c   :  { %9779 = vpow2.f32 %v3540_v14  ;;  %v3542_v23 = vmul.f32 1.442695, %v3469_v50  ;;  %v3473_v48 = vsub.f32 %v11686_v18, %v3429_v45  ;;  %3647 = vadd.xlane.f32.xlu0 %v3646_v57  ;;  %v3643_v3 = vsel %vm3315_vm13, %v11855_v32, 0.0 }
 0xe2d   :  { %3644 = vadd.xlane.f32.xlu1 %v3643_v3  ;;  %v3432_v13 = vpop.xlane.xlu1 %3431 }
 0xe2e   :  { %v11862_v49 = vpop.eup %9773  ;;  %9781 = vpow2.f32 %v3542_v23  ;;  %v3550_v39 = vmul.f32 1.442695, %v3473_v48  ;;  %v3474_v61 = vsub.f32 %v11695_v4, %v3432_v13 }
 0xe2f   :  { %v3420_v0 = vpop.xlane.xlu0 %3419  ;;  %v3649_v42 = vsel %vm3315_vm13, %v11862_v49, 0.0 }
 0xe30   :  { %9783 = vpow2.f32 %v3550_v39  ;;  %v3552_v40 = vmul.f32 1.442695, %v3474_v61  ;;  %v3470_v18 = vsub.f32 %v11689_v46, %v3420_v0 }
 0xe31   :  { %3650 = vadd.xlane.f32.xlu1 %v3649_v42 }
 0xe32   :  { %v11868_v21 = vpop.eup %9775  ;;  %9785 = vpow2.f32 %v3552_v40  ;;  %v3544_v24 = vmul.f32 1.442695, %v3470_v18 }
 0xe33   :  { %v3561_v8 = vpop.xlane.xlu0 %3560  ;;  %v3435_v37 = vpop.xlane.xlu1 %3434  ;;  %v3661_v33 = vsel %vm3315_vm13, %v11868_v21, 0.0 }
 0xe34   :  { %v11872_v52 = vpop.eup %9777  ;;  %9787 = vpow2.f32 %v3544_v24  ;;  %v3475_v4 = vsub.f32 %v11709_v63, %v3435_v37  ;;  %3662 = vadd.xlane.f32.xlu0 %v3661_v33 }
 0xe35   :  { %v3664_v14 = vsel %vm3315_vm13, %v11872_v52, 0.0  ;;  %9789 = vrcp.f32 %v3561_v8 }
 0xe36   :  { %v11877_v46 = vpop.eup %9779  ;;  %v3554_v50 = vmul.f32 1.442695, %v3475_v4  ;;  %3665 = vadd.xlane.f32.xlu1 %v3664_v14 }
 0xe37   :  { %v3573_v45 = vpop.xlane.xlu0 %3572  ;;  %v3558_v57 = vpop.xlane.xlu1 %3557  ;;  %v3652_v23 = vsel %vm3315_vm13, %v11877_v46, 0.0 }
 0xe38   :  { %v11881_v48 = vpop.eup %9781  ;;  %9791 = vpow2.f32 %v3554_v50  ;;  %3653 = vadd.xlane.f32.xlu0 %v3652_v23 }
 0xe39   :  { %v3655_v63 = vsel %vm3315_vm13, %v11881_v48, 0.0  ;;  %9793 = vrcp.f32 %v3558_v57 }
 0xe3a   :  { %v11885_v3 = vpop.eup %9783  ;;  %3656 = vadd.xlane.f32.xlu1 %v3655_v63  ;;  %9795 = vrcp.f32 %v3573_v45 }
 0xe3b   :  { %v3564_v13 = vpop.xlane.xlu0 %3563  ;;  %v3576_v39 = vpop.xlane.xlu1 %3575  ;;  %v3667_v61 = vsel %vm3315_vm13, %v11885_v3, 0.0 }
 0xe3c   :  { %v11889_v0 = vpop.eup %9785  ;;  %3668 = vadd.xlane.f32.xlu0 %v3667_v61  ;;  %9797 = vrcp.f32 %v3576_v39 }
 0xe3d   :  { %v3670_v42 = vsel %vm3315_vm13, %v11889_v0, 0.0  ;;  %9799 = vrcp.f32 %v3564_v13 }
 0xe3e   :  { %v11893_v40 = vpop.eup %9787  ;;  %3671 = vadd.xlane.f32.xlu1 %v3670_v42 }
 0xe3f   :  { %v3579_v18 = vpop.xlane.xlu0 %3578  ;;  %v3567_v24 = vpop.xlane.xlu1 %3566  ;;  %v3658_v8 = vsel %vm3315_vm13, %v11893_v40, 0.0 }
 0xe40   :  { %3659 = vadd.xlane.f32.xlu0 %v3658_v8  ;;  %v9790_v37 = vpop.eup %9789  ;;  %9801 = vrcp.f32 %v3567_v24 }
 0xe41   :  { %9803 = vrcp.f32 %v3579_v18  ;;  %v3717_v63 = vmul.f32 %v9790_v37, %v11705_v25 }
 0xe42   :  { %v11897_v33 = vpop.eup %9791 }
 0xe43   :  { %v3570_v4 = vpop.xlane.xlu0 %3569  ;;  %v3582_v14 = vpop.xlane.xlu1 %3581  ;;  %v3673_v50 = vsel %vm3315_vm13, %v11897_v33, 0.0 }
 0xe44   :  { %v9794_v45 = vpop.eup %9793  ;;  %9805 = vrcp.f32 %v3570_v4  ;;  %3674 = vadd.xlane.f32.xlu1 %v3673_v50 }
 0xe45   :  { %v9796_v57 = vpop.eup %9795  ;;  %9807 = vrcp.f32 %v3582_v14  ;;  %v3716_v23 = vmul.f32 %v9794_v45, %v11711_v27 }
 0xe46   :  { %v9798_v13 = vpop.eup %9797  ;;  %v3721_v42 = vmul.f32 %v9796_v57, %v11718_v5 }
 0xe47   :  { %v3585_v39 = vpop.xlane.xlu1 %3584  ;;  %v3756_v61 = vpack.c.bf16 %v3717_v63, %v3716_v23  ;;  %v3722_v18 = vmul.f32 %v9798_v13, %v11727_v17  ;;  %v9800_v24 = vpop.eup %9799 }
 0xe48   :  { %9809 = vrcp.f32 %v3585_v39  ;;  %v3588_v35 = vpop.xlane.xlu0 %3587  ;;  %v3718_v27 = vmul.f32 %v9800_v24, %v11720_v16 }
 0xe49   :  { %v3784_v8 = vsel %vm3315_vm13, %v3756_v61, 0  ;;  %v3759_v4 = vpack.c.bf16 %v3722_v18, %v3721_v42 }
 0xe4a   :  { %9043 = vmatpush3.bf16.xpose.msra.mxu1 %v3784_v8  ;;  %v9802_v50 = vpop.eup %9801 }
 0xe4b   :  { %v3591_v14 = vpop.xlane.xlu1 %3590  ;;  %9044 = vmatprep.subr.bf16.mxu1 %v13657_v43  ;;  %v3836_v25 = vsel %vm3315_vm13, %v3759_v4, 0  ;;  %v3719_v5 = vmul.f32 %v9802_v50, %v11729_v7  ;;  %v9804_v37 = vpop.eup %9803  ;;  %v8294_v50 = vpack.c.bf16 %v11398_v47, %v11398_v47 }
 0xe4c   :  { %9811 = vrcp.f32 %v3591_v14  ;;  %9053 = vmatpush3.bf16.xpose.msra.mxu0 %v3836_v25  ;;  %v3723_v63 = vmul.f32 %v9804_v37, %v11735_v19 }
 0xe4d   :  { %9813 = vrcp.f32 %v3588_v35  ;;  %v3757_v45 = vpack.c.bf16 %v3719_v5, %v3718_v27  ;;  %9054 = vmatprep.subr.bf16.mxu0 %v13657_v43 }
 0xe4e   :  { %v9806_v17 = vpop.eup %9805 }
 0xe4f   :  { %v9808_v57 = vpop.eup %9807  ;;  %v3787_v23 = vsel %vm3315_vm13, %v3757_v45, 0  ;;  %v3720_v39 = vmul.f32 %v9806_v17, %v11737_v11 }
 0xe50   :  { %v3724_v13 = vmul.f32 %v9808_v57, %v11743_v29 }
 0xe51   :  { %v3758_v42 = vpack.c.bf16 %v3720_v39, %v3720_v39 }
 0xe52   :  { %9045 = vmatpush3.bf16.xpose.msra.mxu1 %v3787_v23  ;;  %v3760_v16 = vpack.c.bf16 %v3724_v13, %v3723_v63  ;;  %v9810_v61 = vpop.eup %9809 }
 0xe53   :  { %9046 = vmatprep.subr.bf16.mxu1 %v13657_v43  ;;  %v3725_v35 = vmul.f32 %v9810_v61, %v11751_v30  ;;  %v3790_v29 = vsel %vm3315_vm13, %v3758_v42, 0 }
 0xe54   :  { %v3839_v7 = vsel %vm3315_vm13, %v3760_v16, 0 }
 0xe55   :  { %9055 = vmatpush3.bf16.xpose.msra.mxu0 %v3839_v7  ;;  %v3761_v19 = vpack.c.bf16 %v3725_v35, %v3725_v35 }
 0xe56   :  { %v9812_v18 = vpop.eup %9811  ;;  %9056 = vmatprep.subr.bf16.mxu0 %v13657_v43 }
 0xe57   :  { %v9814_v24 = vpop.eup %9813  ;;  %v3727_v11 = vmul.f32 %v9812_v18, %v11757_v56  ;;  %v3842_v4 = vsel %vm3315_vm13, %v3761_v19, 0  ;;  %v8295_v56 = vpack.c.bf16 %v11405_v60, %v11405_v60 }
 0xe58   :  { %v3726_v8 = vmul.f32 %v9814_v24, %v11745_v15 }
 0xe5a   :  { %9047 = vmatpush3.bf16.xpose.msra.mxu1 %v3790_v29  ;;  %v3762_v30 = vpack.c.bf16 %v3727_v11, %v3726_v8 }
 0xe5b   :  { %9062 = vmatprep.subr.bf16.mxu1 %v13657_v43 }
 0xe5c   :  { %v3888_v14 = vsel %vm3315_vm13, %v3762_v30, 0 }
 0xe5d   :  { %9057 = vmatpush3.bf16.xpose.msra.mxu0 %v3842_v4 }
 0xe5e   :  { %9072 = vmatprep.subr.bf16.mxu0 %v13657_v43 }
 0xe61   :  { %9049 = vmatmul.mubr.msk.bf16.vlgmr.msra.gmra.mrb[116].mxu1 %vm3315_vm13, %v8294_v50 }
 0xe62   :  { %9063 = vmatpush3.bf16.xpose.msra.mxu1 %v3888_v14  ;;  %9068 = vmatprep.mubr.msk.bf16.mxu1 %vm10156_vm2, %v13657_v43 }
 0xe63   :  { %9064 = vmatprep.subr.bf16.mxu1 %v13657_v43 }
 0xe64   :  { %9059 = vmatmul.mubr.msk.bf16.vlgmr.msra.gmra.mrb[164].mxu0 %vm3315_vm13, %v8295_v56 }
 0xe65   :  { %9078 = vmatprep.mubr.msk.bf16.mxu0 %vm10156_vm2, %v13657_v43 }
 0xe6a   :  { %v3603_v15 = vpop.xlane.xlu0 %3602 }
 0xe6b   :  { %9815 = vrcp.f32 %v3603_v15 }
 0xe6c   :  { %v3606_v47 = vpop.xlane.xlu1 %3605 }
 0xe6d   :  { %9817 = vrcp.f32 %v3606_v47 }
 0xe6e   :  { %v3594_v25 = vpop.xlane.xlu0 %3593 }
 0xe6f   :  { %9819 = vrcp.f32 %v3594_v25 }
 0xe70   :  { %v3597_v27 = vpop.xlane.xlu1 %3596 }
 0xe71   :  { %9821 = vrcp.f32 %v3597_v27 }
 0xe72   :  { %v3609_v60 = vpop.xlane.xlu0 %3608 }
 0xe73   :  { %9823 = vrcp.f32 %v3609_v60 }
 0xe74   :  { %v3612_v5 = vpop.xlane.xlu1 %3611 }
 0xe75   :  { %v9816_v37 = vpop.eup %9815  ;;  %9825 = vrcp.f32 %v3612_v5 }
 0xe76   :  { %v3600_v17 = vpop.xlane.xlu0 %3599  ;;  %v3731_v57 = vmul.f32 %v9816_v37, %v11768_v59 }
 0xe77   :  { %v9818_v45 = vpop.eup %9817  ;;  %9827 = vrcp.f32 %v3600_v17 }
 0xe78   :  { %v3732_v23 = vmul.f32 %v9818_v45, %v11772_v41 }
 0xe79   :  { %v9820_v63 = vpop.eup %9819 }
 0xe7a   :  { %v3615_v13 = vpop.xlane.xlu1 %3614  ;;  %v3765_v39 = vpack.c.bf16 %v3732_v23, %v3731_v57  ;;  %v3728_v7 = vmul.f32 %v9820_v63, %v11777_v12 }
 0xe7b   :  { %v9822_v16 = vpop.eup %9821  ;;  %9829 = vrcp.f32 %v3615_v13 }
 0xe7c   :  { %v3940_v61 = vsel %vm3315_vm13, %v3765_v39, 0  ;;  %v3729_v35 = vmul.f32 %v9822_v16, %v11781_v58 }
 0xe7d   :  { %v9824_v42 = vpop.eup %9823  ;;  %9073 = vmatpush3.bf16.xpose.msra.mxu0 %v3940_v61 }
 0xe7e   :  { %v3763_v18 = vpack.c.bf16 %v3729_v35, %v3728_v7  ;;  %9074 = vmatprep.subr.bf16.mxu0 %v13657_v43  ;;  %v3733_v41 = vmul.f32 %v9824_v42, %v11785_v51 }
 0xe7f   :  { %v9826_v24 = vpop.eup %9825 }
 0xe80   :  { %v3891_v59 = vsel %vm3315_vm13, %v3763_v18, 0  ;;  %v3734_v19 = vmul.f32 %v9826_v24, %v11789_v54 }
 0xe81   :  { %v9828_v29 = vpop.eup %9827  ;;  %9065 = vmatpush3.bf16.xpose.msra.mxu1 %v3891_v59 }
 0xe82   :  { %v3766_v11 = vpack.c.bf16 %v3734_v19, %v3733_v41  ;;  %9066 = vmatprep.subr.bf16.mxu1 %v13657_v43  ;;  %v3730_v12 = vmul.f32 %v9828_v29, %v11793_v38  ;;  %v8296_v38 = vpack.c.bf16 %v11410_v28, %v11410_v28 }
 0xe84   :  { %v3943_v58 = vsel %vm3315_vm13, %v3766_v11, 0  ;;  %v3764_v8 = vpack.c.bf16 %v3730_v12, %v3730_v12 }
 0xe85   :  { %v9830_v4 = vpop.eup %9829  ;;  %9075 = vmatpush3.bf16.xpose.msra.mxu0 %v3943_v58 }
 0xe86   :  { %9076 = vmatprep.subr.bf16.mxu0 %v13657_v43  ;;  %v3735_v30 = vmul.f32 %v9830_v4, %v11797_v34  ;;  %v3894_v51 = vsel %vm3315_vm13, %v3764_v8, 0  ;;  %v8297_v34 = vpack.c.bf16 %v11417_v55, %v11417_v55 }
 0xe88   :  { %v3767_v50 = vpack.c.bf16 %v3735_v30, %v3735_v30 }
 0xe89   :  { %9067 = vmatpush3.bf16.xpose.msra.mxu1 %v3894_v51 }
 0xe8a   :  { %9082 = vmatprep.subr.bf16.mxu1 %v13657_v43  ;;  %v3946_v54 = vsel %vm3315_vm13, %v3767_v50, 0 }
 0xe8d   :  { %9077 = vmatpush3.bf16.xpose.msra.mxu0 %v3946_v54 }
 0xe8e   :  { %9092 = vmatprep.subr.bf16.mxu0 %v13657_v43 }
 0xe90   :  { %9069 = vmatmul.mubr.msk.bf16.vlgmr.msra.gmra.mrb[120].mxu1 %vm3315_vm13, %v8296_v38 }
 0xe91   :  { %9088 = vmatprep.mubr.msk.bf16.mxu1 %vm10156_vm2, %v13657_v43 }
 0xe94   :  { %9079 = vmatmul.mubr.msk.bf16.vlgmr.msra.gmra.mrb[168].mxu0 %vm3315_vm13, %v8297_v34 }
 0xe95   :  { %9098 = vmatprep.mubr.msk.bf16.mxu0 %vm10156_vm2, %v13657_v43 }
 0xe9d   :  { %v3618_v14 = vpop.xlane.xlu0 %3617 }
 0xe9e   :  { %9831 = vrcp.f32 %v3618_v14 }
 0xe9f   :  { %v3621_v56 = vpop.xlane.xlu1 %3620 }
 0xea0   :  { %9833 = vrcp.f32 %v3621_v56 }
 0xea8   :  { %v9832_v28 = vpop.eup %9831 }
 0xea9   :  { %v3633_v15 = vpop.xlane.xlu0 %3632  ;;  %v3736_v27 = vmul.f32 %v9832_v28, %v11804_v10 }
 0xeaa   :  { %v9834_v47 = vpop.eup %9833  ;;  %9835 = vrcp.f32 %v3633_v15 }
 0xeab   :  { %v3636_v25 = vpop.xlane.xlu1 %3635  ;;  %v3737_v60 = vmul.f32 %v9834_v47, %v11809_v20 }
 0xeac   :  { %9837 = vrcp.f32 %v3636_v25 }
 0xead   :  { %v3624_v55 = vpop.xlane.xlu0 %3623  ;;  %v3768_v5 = vpack.c.bf16 %v3737_v60, %v3736_v27  ;;  %v8298_v27 = vpack.c.bf16 %v11439_v2, %v11439_v2  ;;  %v8299_v2 = vpack.c.bf16 %v11441_v9, %v11441_v9 }
 0xeae   :  { %9839 = vrcp.f32 %v3624_v55 }
 0xeaf   :  { %v3627_v37 = vpop.xlane.xlu1 %3626  ;;  %v3992_v17 = vsel %vm3315_vm13, %v3768_v5, 0 }
 0xeb0   :  { %9841 = vrcp.f32 %v3627_v37  ;;  %9083 = vmatpush3.bf16.xpose.msra.mxu1 %v3992_v17 }
 0xeb1   :  { %v3639_v45 = vpop.xlane.xlu0 %3638  ;;  %9084 = vmatprep.subr.bf16.mxu1 %v13657_v43 }
 0xeb2   :  { %9843 = vrcp.f32 %v3639_v45 }
 0xeb3   :  { %v3642_v57 = vpop.xlane.xlu1 %3641 }
 0xeb4   :  { %v9836_v23 = vpop.eup %9835  ;;  %9845 = vrcp.f32 %v3642_v57 }
 0xeb5   :  { %v3630_v63 = vpop.xlane.xlu0 %3629  ;;  %v3741_v20 = vmul.f32 %v9836_v23, %v11818_v62 }
 0xeb6   :  { %v9838_v10 = vpop.eup %9837  ;;  %9847 = vrcp.f32 %v3630_v63 }
 0xeb7   :  { %v3742_v13 = vmul.f32 %v9838_v10, %v11822_v36 }
 0xeb8   :  { %v9840_v39 = vpop.eup %9839 }
 0xeb9   :  { %v3771_v16 = vpack.c.bf16 %v3742_v13, %v3741_v20  ;;  %v3648_v7 = vpop.xlane.xlu0 %3647  ;;  %v3738_v18 = vmul.f32 %v9840_v39, %v11828_v26 }
 0xeba   :  { %v9842_v61 = vpop.eup %9841  ;;  %v3645_v35 = vpop.xlane.xlu1 %3644 }
 0xebb   :  { %9849 = vrcp.f32 %v3645_v35  ;;  %v4044_v42 = vsel %vm3315_vm13, %v3771_v16, 0  ;;  %v3739_v24 = vmul.f32 %v9842_v61, %v11832_v22 }
 0xebc   :  { %v9844_v59 = vpop.eup %9843  ;;  %9093 = vmatpush3.bf16.xpose.msra.mxu0 %v4044_v42  ;;  %9851 = vrcp.f32 %v3648_v7 }
 0xebd   :  { %v3769_v41 = vpack.c.bf16 %v3739_v24, %v3738_v18  ;;  %9094 = vmatprep.subr.bf16.mxu0 %v13657_v43  ;;  %v3743_v29 = vmul.f32 %v9844_v59, %v11837_v6 }
 0xebe   :  { %v9846_v62 = vpop.eup %9845  ;;  %v3651_v36 = vpop.xlane.xlu1 %3650 }
 0xebf   :  { %9853 = vrcp.f32 %v3651_v36  ;;  %v3995_v19 = vsel %vm3315_vm13, %v3769_v41, 0  ;;  %v3744_v11 = vmul.f32 %v9846_v62, %v11841_v53 }
 0xec0   :  { %v9848_v12 = vpop.eup %9847  ;;  %9085 = vmatpush3.bf16.xpose.msra.mxu1 %v3995_v19 }
 0xec1   :  { %v3663_v26 = vpop.xlane.xlu0 %3662  ;;  %v3772_v58 = vpack.c.bf16 %v3744_v11, %v3743_v29  ;;  %9086 = vmatprep.subr.bf16.mxu1 %v13657_v43  ;;  %v3740_v22 = vmul.f32 %v9848_v12, %v11846_v44  ;;  %v9587_v12 = vld [vmem:[%s13575_s16] sm:$0xff]  }
 0xec2   :  { %9855 = vrcp.f32 %v3663_v26  ;;  %v9588_v26 = vld [vmem:[%s13575_s16 + $0x8] sm:$0xff]  }
 0xec3   :  { %v3666_v8 = vpop.xlane.xlu1 %3665  ;;  %v4047_v4 = vsel %vm3315_vm13, %v3772_v58, 0  ;;  %v3770_v30 = vpack.c.bf16 %v3740_v22, %v3740_v22 }
 0xec4   :  { %9857 = vrcp.f32 %v3666_v8  ;;  %9095 = vmatpush3.bf16.xpose.msra.mxu0 %v4047_v4 }
 0xec5   :  { %v9850_v51 = vpop.eup %9849  ;;  %v3654_v50 = vpop.xlane.xlu0 %3653  ;;  %9096 = vmatprep.subr.bf16.mxu0 %v13657_v43  ;;  %v3998_v38 = vsel %vm3315_vm13, %v3770_v30, 0 }
 0xec6   :  { %9859 = vrcp.f32 %v3654_v50  ;;  %v3745_v6 = vmul.f32 %v9850_v51, %v11855_v32  ;;  %v9852_v53 = vpop.eup %9851 }
 0xec7   :  { %v3657_v54 = vpop.xlane.xlu1 %3656  ;;  %v3746_v56 = vmul.f32 %v9852_v53, %v11852_v1 }
 0xec8   :  { %9861 = vrcp.f32 %v3657_v54  ;;  %9087 = vmatpush3.bf16.xpose.msra.mxu1 %v3998_v38  ;;  %v3773_v44 = vpack.c.bf16 %v3745_v6, %v3745_v6 }
 0xec9   :  { %v9854_v34 = vpop.eup %9853  ;;  %v3669_v14 = vpop.xlane.xlu0 %3668  ;;  %9102 = vmatprep.subr.bf16.mxu1 %v13657_v43 }
 0xeca   :  { %9863 = vrcp.f32 %v3669_v14  ;;  %v3747_v28 = vmul.f32 %v9854_v34, %v11862_v49  ;;  %v4050_v47 = vsel %vm3315_vm13, %v3773_v44, 0 }
 0xecb   :  { %v3672_v15 = vpop.xlane.xlu1 %3671 }
 0xecc   :  { %v9856_v32 = vpop.eup %9855  ;;  %9865 = vrcp.f32 %v3672_v15  ;;  %9097 = vmatpush3.bf16.xpose.msra.mxu0 %v4050_v47  ;;  %v3774_v25 = vpack.c.bf16 %v3747_v28, %v3746_v56 }
 0xecd   :  { %v3660_v60 = vpop.xlane.xlu0 %3659  ;;  %9112 = vmatprep.subr.bf16.mxu0 %v13657_v43  ;;  %v3751_v49 = vmul.f32 %v9856_v32, %v11868_v21 }
 0xece   :  { %v9858_v55 = vpop.eup %9857  ;;  %9867 = vrcp.f32 %v3660_v60  ;;  %v4096_v1 = vsel %vm3315_vm13, %v3774_v25, 0 }
 0xecf   :  { %9089 = vmatmul.mubr.msk.bf16.vlgmr.msra.gmra.mrb[124].mxu1 %vm3315_vm13, %v8298_v27  ;;  %v3752_v5 = vmul.f32 %v9858_v55, %v11872_v52 }
 0xed0   :  { %v9860_v37 = vpop.eup %9859  ;;  %9103 = vmatpush3.bf16.xpose.msra.mxu1 %v4096_v1  ;;  %9108 = vmatprep.mubr.msk.bf16.mxu1 %vm10156_vm2, %v13657_v43 }
 0xed1   :  { %v3675_v17 = vpop.xlane.xlu1 %3674  ;;  %v3777_v45 = vpack.c.bf16 %v3752_v5, %v3751_v49  ;;  %9104 = vmatprep.subr.bf16.mxu1 %v13657_v43  ;;  %v3748_v52 = vmul.f32 %v9860_v37, %v11877_v46 }
 0xed2   :  { %v9862_v57 = vpop.eup %9861  ;;  %9869 = vrcp.f32 %v3675_v17 }
 0xed3   :  { %9099 = vmatmul.mubr.msk.bf16.vlgmr.msra.gmra.mrb[172].mxu0 %vm3315_vm13, %v8299_v2  ;;  %v4148_v21 = vsel %vm3315_vm13, %v3777_v45, 0  ;;  %v3749_v23 = vmul.f32 %v9862_v57, %v11881_v48 }
 0xed4   :  { %v9864_v63 = vpop.eup %9863  ;;  %9113 = vmatpush3.bf16.xpose.msra.mxu0 %v4148_v21  ;;  %9118 = vmatprep.mubr.msk.bf16.mxu0 %vm10156_vm2, %v13657_v43 }
 0xed5   :  { %v3775_v9 = vpack.c.bf16 %v3749_v23, %v3748_v52  ;;  %9114 = vmatprep.subr.bf16.mxu0 %v13657_v43  ;;  %v3753_v13 = vmul.f32 %v9864_v63, %v11885_v3 }
 0xed6   :  { %v9866_v10 = vpop.eup %9865 }
 0xed7   :  { %v4099_v20 = vsel %vm3315_vm13, %v3775_v9, 0  ;;  %v3754_v39 = vmul.f32 %v9866_v10, %v11889_v0 }
 0xed8   :  { %v9868_v16 = vpop.eup %9867  ;;  %9105 = vmatpush3.bf16.xpose.msra.mxu1 %v4099_v20 }
 0xed9   :  { %v3778_v46 = vpack.c.bf16 %v3754_v39, %v3753_v13  ;;  %9106 = vmatprep.subr.bf16.mxu1 %v13657_v43  ;;  %v3750_v48 = vmul.f32 %v9868_v16, %v11893_v40  ;;  %v8300_v40 = vpack.c.bf16 %v11443_v31, %v11443_v31  ;;  %v8118_v39 = vld [vmem:[%s13576_s17] ss:$0 sm:$0xff] }
 0xedb   :  { %v4151_v61 = vsel %vm3315_vm13, %v3778_v46, 0  ;;  %v3776_v7 = vpack.c.bf16 %v3750_v48, %v3750_v48 }
 0xedc   :  { %v9870_v35 = vpop.eup %9869  ;;  %9115 = vmatpush3.bf16.xpose.msra.mxu0 %v4151_v61 }
 0xedd   :  { %9116 = vmatprep.subr.bf16.mxu0 %v13657_v43  ;;  %v3755_v42 = vmul.f32 %v9870_v35, %v11897_v33  ;;  %v4102_v3 = vsel %vm3315_vm13, %v3776_v7, 0  ;;  %v13658_v33 = vld [vmem:[#allocation12_spill] sm:$0xff]  ;;  %v13659_v7 = vld [vmem:[#allocation2_spill] sm:$0xff] }
 0xede   :  { %v8301_v24 = vpack.c.bf16 %v13658_v33, %v13658_v33 }
 0xedf   :  { %v3779_v18 = vpack.c.bf16 %v3755_v42, %v3755_v42 }
 0xee0   :  { %9107 = vmatpush3.bf16.xpose.msra.mxu1 %v4102_v3 }
 0xee1   :  { %9122 = vmatprep.subr.bf16.mxu1 %v13657_v43  ;;  %v4154_v0 = vsel %vm3315_vm13, %v3779_v18, 0  ;;  %v13660_v18 = vld [vmem:[#allocation3_spill] sm:$0xff] }
 0xee4   :  { %9117 = vmatpush3.bf16.xpose.msra.mxu0 %v4154_v0 }
 0xee5   :  { %9146 = vmatprep.subr.bf16.mxu0 %v13657_v43 }
 0xee7   :  { %9109 = vmatmul.mubr.msk.bf16.vlgmr.msra.gmra.mrb[128].mxu1 %vm3315_vm13, %v8300_v40 }
 0xee8   :  { %9126 = vmatprep.mubr.msk.bf16.mxu1 %vm10156_vm2, %v13657_v43  ;;  %9123 = vmatpush3.bf16.msra.mxu1 %v9587_v12 }
 0xee9   :  { %9124 = vmatprep.subr.bf16.mxu1 %v13657_v43 }
 0xeeb   :  { %9119 = vmatmul.mubr.msk.bf16.vlgmr.msra.gmra.mrb[176].mxu0 %vm3315_vm13, %v8301_v24 }
 0xeec   :  { %9150 = vmatprep.mubr.msk.bf16.mxu0 %vm10156_vm2, %v13657_v43  ;;  %9125 = vmatpush3.bf16.msra.mxu1 %v9588_v26 }
 0xeed   :  { %9170 = vmatprep.subr.bf16.mxu1 %v13657_v43 }
 0xf34   :  { %v3826_v59 = vpop.f32.mrb[116].mxu1 }
 0xf35   :  { %4196 = vxpose.xlu0.b32.start [1/4] (short) (narrow) %v3826_v59, 40  ;;  %v9050_v41 = vpop.f32.mrb[117].mxu1 }
 0xf36   :  { %v3829_v62 = vpop.f32.mrb[118].mxu1 }
 0xf37   :  { %v9051_v31 = vpop.f32.mrb[119].mxu1  ;;  %v3878_v36 = vpop.f32.mrb[164].mxu0 }
 0xf38   :  { %v9060_v19 = vpop.f32.mrb[165].mxu0  ;;  %v13661_v31 = vld [vmem:[#allocation4_spill] sm:$0xff] }
 0xf39   :  { %4197 = vxpose.xlu0.b32.cont [2/4] (short) (narrow) %v3878_v36, 40  ;;  %v3881_v29 = vpop.f32.mrb[166].mxu0 }
 0xf3a   :  { %v9061_v11 = vpop.f32.mrb[167].mxu0 }
 0xf3b   :  { %v13662_v11 = vld [vmem:[#allocation5_spill] sm:$0xff] }
 0xf63   :  { %v3930_v58 = vpop.f32.mrb[120].mxu1 }
 0xf64   :  { %v9070_v22 = vpop.f32.mrb[121].mxu1  ;;  %4198 = vxpose.xlu0.b32.cont [3/4] (short) (narrow) %v3930_v58, 40 }
 0xf65   :  { %v3933_v8 = vpop.f32.mrb[122].mxu1 }
 0xf66   :  { %v9071_v4 = vpop.f32.mrb[123].mxu1 }
 0xf67   :  { %v3982_v30 = vpop.f32.mrb[168].mxu0 }
 0xf68   :  { %4199 = vxpose.xlu0.b32.end [4/4] (short) (narrow) %v3982_v30, 40  ;;  %v9080_v51 = vpop.f32.mrb[169].mxu0 }
 0xf69   :  { %v3985_v50 = vpop.f32.mrb[170].mxu0  ;;  %v13663_v51 = vld [vmem:[#allocation6_spill] sm:$0xff] }
 0xf6a   :  { %v9081_v6 = vpop.f32.mrb[171].mxu0 }
 0xfa2   :  { %v4034_v53 = vpop.f32.mrb[124].mxu1 }
 0xfa3   :  { %4228 = vxpose.xlu1.b32.start [1/4] (short) (narrow) %v4034_v53, 40  ;;  %v9090_v54 = vpop.f32.mrb[125].mxu1 }
 0xfa4   :  { %v4037_v38 = vpop.f32.mrb[126].mxu1  ;;  %v13664_v54 = vld [vmem:[#allocation7_spill] sm:$0xff] }
 0xfa5   :  { %v9091_v44 = vpop.f32.mrb[127].mxu1 }
 0xfa6   :  { %v4086_v34 = vpop.f32.mrb[172].mxu0 }
 0xfa7   :  { %4229 = vxpose.xlu1.b32.cont [2/4] (short) (narrow) %v4086_v34, 40  ;;  %v9100_v14 = vpop.f32.mrb[173].mxu0 }
 0xfa8   :  { %v4089_v56 = vpop.f32.mrb[174].mxu0 }
 0xfa9   :  { %v9101_v28 = vpop.f32.mrb[175].mxu0 }
 0xfba   :  { %v4138_v15 = vpop.f32.mrb[128].mxu1 }
 0xfbb   :  { %v9110_v47 = vpop.f32.mrb[129].mxu1  ;;  %4230 = vxpose.xlu1.b32.cont [3/4] (short) (narrow) %v4138_v15, 40 }
 0xfbc   :  { %v4141_v32 = vpop.f32.mrb[130].mxu1  ;;  %v13665_v47 = vld [vmem:[#allocation8_spill] sm:$0xff] }
 0xfbd   :  { %v9111_v25 = vpop.f32.mrb[131].mxu1 }
 0xfbe   :  { %v4190_v27 = vpop.f32.mrb[176].mxu0 }
 0xfbf   :  { %4231 = vxpose.xlu1.b32.end [4/4] (short) (narrow) %v4190_v27, 40  ;;  %v9120_v60 = vpop.f32.mrb[177].mxu0 }
 0xfc0   :  { %v4193_v55 = vpop.f32.mrb[178].mxu0  ;;  %v13666_v60 = vld [vmem:[#allocation9_spill] sm:$0xff] }
 0xfc1   :  { %v9121_v1 = vpop.f32.mrb[179].mxu0 }
 0xfdc   :  { %v4212_v49 = vpop.trf.xlu0 }
 0xfe0   :  { %v4213_v5 = vpop.trf.xlu0 }
 0xfe1   :  { %v4260_v37 = vpack.c.bf16 %v4213_v5, %v4212_v49 }
 0xfe3   :  { %9127 = vmatmul.mubr.msk.bf16.vlgmr.msra.gmra.mrb[132].mxu1 %vm423_vm5, %v4260_v37 }
 0xfe4   :  { %v4214_v2 = vpop.trf.xlu0  ;;  %9130 = vmatprep.mubr.msk.bf16.mxu1 %vm10156_vm2, %v13657_v43 }
 0xfe8   :  { %v4215_v17 = vpop.trf.xlu0 }
 0xfe9   :  { %v4261_v45 = vpack.c.bf16 %v4215_v17, %v4214_v2 }
 0xfeb   :  { %9131 = vmatmul.mubr.msk.bf16.gmra.mrb[136].mxu1 %vm423_vm5, %v4261_v45  ;;  %v13667_v45 = vld [vmem:[#allocation10_spill] sm:$0xff] }
 0xfec   :  { %9134 = vmatprep.mubr.msk.bf16.mxu1 %vm10156_vm2, %v13657_v43  ;;  %v4216_v57 = vpop.trf.xlu0 }
0x1033   :  { %v4244_v21 = vpop.trf.xlu1 }
0x1034   :  { %v4262_v52 = vpack.c.bf16 %v4244_v21, %v4216_v57 }
0x1036   :  { %9135 = vmatmul.mubr.msk.bf16.gmra.mrb[140].mxu1 %vm423_vm5, %v4262_v52 }
0x1037   :  { %v4245_v23 = vpop.trf.xlu1  ;;  %9138 = vmatprep.mubr.msk.bf16.mxu1 %vm10156_vm2, %v13657_v43 }
0x103b   :  { %v4246_v63 = vpop.trf.xlu1 }
0x103c   :  { %v4263_v9 = vpack.c.bf16 %v4246_v63, %v4245_v23  ;;  %v13668_v23 = vld [vmem:[#allocation11_spill] sm:$0xff] }
0x103e   :  { %9139 = vmatmul.mubr.msk.bf16.gmra.mrb[144].mxu1 %vm423_vm5, %v4263_v9 }
0x103f   :  { %v4247_v10 = vpop.trf.xlu1  ;;  %9142 = vmatprep.mubr.msk.bf16.mxu1 %vm10156_vm2, %v13657_v43 }
0x1043   :  { %v4248_v20 = vpop.trf.xlu1 }
0x1044   :  { %v4264_v13 = vpack.c.bf16 %v4248_v20, %v4247_v10 }
0x1046   :  { %9143 = vmatmul.mubr.msk.bf16.gmra.mrb[148].mxu1 %vm423_vm5, %v4264_v13 }
0x1047   :  { %9178 = vmatprep.mubr.msk.bf16.mxu1 %vm10156_vm2, %v13657_v43 }
0x10b6   :  { %v4337_v16 = vpop.f32.mrb[132].mxu1 }
0x10b7   :  { %v4338_v46 = vadd.f32 %v8118_v39, %v4337_v16  ;;  %v9128_v48 = vpop.f32.mrb[133].mxu1 }
0x10b8   :  { %v4340_v61 = vpop.f32.mrb[134].mxu1 }
0x10b9   :  { %v4376_v35 = vadd.f32 %v4338_v46, %v13659_v7  ;;  %v4341_v42 = vadd.f32 %v8118_v39, %v4340_v61  ;;  %v9129_v3 = vpop.f32.mrb[135].mxu1 }
0x10bb   :  { %v4377_v0 = vadd.f32 %v4341_v42, %v13660_v18  ;;  %v4388_v40 = vsel %vm423_vm5, %v4376_v35, 0.0 }
0x10bc   :  { %4389 = vadd.xlane.f32.xlu0 %v4388_v40 }
0x10bd   :  { %v4391_v33 = vsel %vm423_vm5, %v4377_v0, 0.0 }
0x10be   :  { %v4345_v24 = vpop.f32.mrb[136].mxu1  ;;  %4392 = vadd.xlane.f32.xlu1 %v4391_v33 }
0x10bf   :  { %v4346_v59 = vadd.f32 %v8118_v39, %v4345_v24  ;;  %v9132_v41 = vpop.f32.mrb[137].mxu1 }
0x10c0   :  { %v4348_v62 = vpop.f32.mrb[138].mxu1 }
0x10c1   :  { %v4378_v36 = vadd.f32 %v4346_v59, %v13661_v31  ;;  %v4349_v19 = vadd.f32 %v8118_v39, %v4348_v62  ;;  %v9133_v29 = vpop.f32.mrb[139].mxu1 }
0x10c3   :  { %v4379_v12 = vadd.f32 %v4349_v19, %v13662_v11  ;;  %v4394_v26 = vsel %vm423_vm5, %v4378_v36, 0.0  ;;  %v9590_v19 = vld [vmem:[%s13577_s20 + $0x8] sm:$0xff]  }
0x10c4   :  { %4395 = vadd.xlane.f32.xlu0 %v4394_v26 }
0x10c5   :  { %v4397_v58 = vsel %vm423_vm5, %v4379_v12, 0.0 }
0x10c6   :  { %4398 = vadd.xlane.f32.xlu1 %v4397_v58 }
0x1109   :  { %v4353_v22 = vpop.f32.mrb[140].mxu1 }
0x110a   :  { %v4354_v8 = vadd.f32 %v8118_v39, %v4353_v22  ;;  %v9136_v4 = vpop.f32.mrb[141].mxu1 }
0x110b   :  { %v4356_v30 = vpop.f32.mrb[142].mxu1 }
0x110c   :  { %v12064_v50 = vadd.f32 %v4354_v8, %v13663_v51  ;;  %v4357_v6 = vadd.f32 %v8118_v39, %v4356_v30  ;;  %v9137_v53 = vpop.f32.mrb[143].mxu1 }
0x110e   :  { %v12067_v38 = vadd.f32 %v4357_v6, %v13664_v54  ;;  %v4400_v44 = vsel %vm423_vm5, %v12064_v50, 0.0 }
0x110f   :  { %4401 = vadd.xlane.f32.xlu0 %v4400_v44 }
0x1110   :  { %v4403_v34 = vsel %vm423_vm5, %v12067_v38, 0.0 }
0x1111   :  { %4404 = vadd.xlane.f32.xlu1 %v4403_v34  ;;  %v4361_v14 = vpop.f32.mrb[144].mxu1 }
0x1112   :  { %v4362_v56 = vadd.f32 %v8118_v39, %v4361_v14  ;;  %v9140_v28 = vpop.f32.mrb[145].mxu1 }
0x1113   :  { %v4364_v15 = vpop.f32.mrb[146].mxu1 }
0x1114   :  { %v12074_v32 = vadd.f32 %v4362_v56, %v13665_v47  ;;  %v4365_v25 = vadd.f32 %v8118_v39, %v4364_v15  ;;  %v9141_v27 = vpop.f32.mrb[147].mxu1 }
0x1116   :  { %v12077_v55 = vadd.f32 %v4365_v25, %v13666_v60  ;;  %v4406_v1 = vsel %vm423_vm5, %v12074_v32, 0.0 }
0x1117   :  { %4407 = vadd.xlane.f32.xlu0 %v4406_v1 }
0x1118   :  { %v4409_v49 = vsel %vm423_vm5, %v12077_v55, 0.0 }
0x1119   :  { %4410 = vadd.xlane.f32.xlu1 %v4409_v49  ;;  %v4369_v5 = vpop.f32.mrb[148].mxu1 }
0x111a   :  { %v4370_v37 = vadd.f32 %v8118_v39, %v4369_v5  ;;  %v9144_v2 = vpop.f32.mrb[149].mxu1 }
0x111b   :  { %v4372_v17 = vpop.f32.mrb[150].mxu1 }
0x111c   :  { %v12084_v57 = vadd.f32 %v4370_v37, %v13667_v45  ;;  %v4373_v21 = vadd.f32 %v8118_v39, %v4372_v17  ;;  %v9145_v52 = vpop.f32.mrb[151].mxu1 }
0x111e   :  { %v12087_v63 = vadd.f32 %v4373_v21, %v13668_v23  ;;  %v4412_v9 = vsel %vm423_vm5, %v12084_v57, 0.0 }
0x111f   :  { %4413 = vadd.xlane.f32.xlu0 %v4412_v9 }
0x1120   :  { %v4415_v10 = vsel %vm423_vm5, %v12087_v63, 0.0 }
0x1121   :  { %4416 = vadd.xlane.f32.xlu1 %v4415_v10 }
0x1149   :  { %v4390_v20 = vpop.xlane.xlu0 %4389 }
0x114a   :  { %v4418_v13 = vmul.f32 0.03125, %v4390_v20 }
0x114b   :  { %v4393_v16 = vpop.xlane.xlu1 %4392 }
0x114c   :  { %v12093_v46 = vsub.f32 %v4376_v35, %v4418_v13  ;;  %v4419_v48 = vmul.f32 0.03125, %v4393_v16  ;;  %v12160_v16 = vld [vmem:[%s13578_s18] ss:$0 sm:$0xff] }
0x114e   :  { %v12095_v61 = vsub.f32 %v4377_v0, %v4419_v48  ;;  %v4438_v39 = vmul.f32 %v12093_v46, %v12093_v46 }
0x1150   :  { %v4448_v7 = vsel %vm423_vm5, %v4438_v39, 0.0  ;;  %v4439_v42 = vmul.f32 %v12095_v61, %v12095_v61 }
0x1151   :  { %v4396_v3 = vpop.xlane.xlu0 %4395  ;;  %4449 = vadd.xlane.f32.xlu0 %v4448_v7 }
0x1152   :  { %v4420_v18 = vmul.f32 0.03125, %v4396_v3  ;;  %v4451_v40 = vsel %vm423_vm5, %v4439_v42, 0.0  ;;  %v12168_v3 = vld [vmem:[%s13579_s19] ss:$0 sm:$0xff] }
0x1153   :  { %4452 = vadd.xlane.f32.xlu1 %v4451_v40  ;;  %v4399_v33 = vpop.xlane.xlu1 %4398 }
0x1154   :  { %v12103_v35 = vsub.f32 %v4378_v36, %v4420_v18  ;;  %v4421_v24 = vmul.f32 0.03125, %v4399_v33  ;;  %v9589_v36 = vld [vmem:[%s13577_s20] sm:$0xff]  }
0x1155   :  { %9147 = vmatpush3.bf16.msra.mxu0 %v9589_v36 }
0x1156   :  { %v12105_v0 = vsub.f32 %v4379_v12, %v4421_v24  ;;  %v4440_v59 = vmul.f32 %v12103_v35, %v12103_v35  ;;  %9148 = vmatprep.subr.bf16.mxu0 %v13657_v43 }
0x1158   :  { %v4454_v41 = vsel %vm423_vm5, %v4440_v59, 0.0  ;;  %v4441_v62 = vmul.f32 %v12105_v0, %v12105_v0 }
0x1159   :  { %4455 = vadd.xlane.f32.xlu0 %v4454_v41  ;;  %9149 = vmatpush3.bf16.msra.mxu0 %v9590_v19 }
0x115a   :  { %v4457_v31 = vsel %vm423_vm5, %v4441_v62, 0.0  ;;  %9198 = vmatprep.subr.bf16.mxu0 %v13657_v43 }
0x115b   :  { %4458 = vadd.xlane.f32.xlu1 %v4457_v31 }
0x119c   :  { %v4402_v29 = vpop.xlane.xlu0 %4401 }
0x119d   :  { %v4422_v11 = vmul.f32 0.03125, %v4402_v29 }
0x119e   :  { %v4405_v12 = vpop.xlane.xlu1 %4404 }
0x119f   :  { %v12122_v26 = vsub.f32 %v12064_v50, %v4422_v11  ;;  %v4423_v58 = vmul.f32 0.03125, %v4405_v12 }
0x11a1   :  { %v12125_v22 = vsub.f32 %v12067_v38, %v4423_v58  ;;  %v4442_v8 = vmul.f32 %v12122_v26, %v12122_v26 }
0x11a3   :  { %v4460_v4 = vsel %vm423_vm5, %v4442_v8, 0.0  ;;  %v4443_v30 = vmul.f32 %v12125_v22, %v12125_v22 }
0x11a4   :  { %v4408_v51 = vpop.xlane.xlu0 %4407  ;;  %4461 = vadd.xlane.f32.xlu0 %v4460_v4 }
0x11a5   :  { %v4424_v6 = vmul.f32 0.03125, %v4408_v51  ;;  %v4463_v53 = vsel %vm423_vm5, %v4443_v30, 0.0 }
0x11a6   :  { %4464 = vadd.xlane.f32.xlu1 %v4463_v53  ;;  %v4411_v50 = vpop.xlane.xlu1 %4410 }
0x11a7   :  { %v12134_v54 = vsub.f32 %v12074_v32, %v4424_v6  ;;  %v4425_v38 = vmul.f32 0.03125, %v4411_v50 }
0x11a9   :  { %v12137_v44 = vsub.f32 %v12077_v55, %v4425_v38  ;;  %v4444_v34 = vmul.f32 %v12134_v54, %v12134_v54 }
0x11ab   :  { %v4466_v14 = vsel %vm423_vm5, %v4444_v34, 0.0  ;;  %v4445_v56 = vmul.f32 %v12137_v44, %v12137_v44 }
0x11ac   :  { %4467 = vadd.xlane.f32.xlu0 %v4466_v14  ;;  %v4414_v28 = vpop.xlane.xlu0 %4413 }
0x11ad   :  { %v4426_v15 = vmul.f32 0.03125, %v4414_v28  ;;  %v4469_v47 = vsel %vm423_vm5, %v4445_v56, 0.0 }
0x11ae   :  { %4470 = vadd.xlane.f32.xlu1 %v4469_v47  ;;  %v4417_v32 = vpop.xlane.xlu1 %4416 }
0x11af   :  { %v12146_v25 = vsub.f32 %v12084_v57, %v4426_v15  ;;  %v4427_v27 = vmul.f32 0.03125, %v4417_v32 }
0x11b1   :  { %v12149_v60 = vsub.f32 %v12087_v63, %v4427_v27  ;;  %v4446_v55 = vmul.f32 %v12146_v25, %v12146_v25 }
0x11b3   :  { %v4472_v1 = vsel %vm423_vm5, %v4446_v55, 0.0  ;;  %v4447_v49 = vmul.f32 %v12149_v60, %v12149_v60 }
0x11b4   :  { %4473 = vadd.xlane.f32.xlu0 %v4472_v1 }
0x11b5   :  { %v4475_v5 = vsel %vm423_vm5, %v4447_v49, 0.0 }
0x11b6   :  { %4476 = vadd.xlane.f32.xlu1 %v4475_v5 }
0x11de   :  { %v4450_v37 = vpop.xlane.xlu0 %4449 }
0x11df   :  { %v4478_v2 = vmul.f32 0.03125, %v4450_v37 }
0x11e0   :  { %v4453_v17 = vpop.xlane.xlu1 %4452 }
0x11e1   :  { %v4488_v45 = vadd.f32 1e-05, %v4478_v2  ;;  %v4479_v57 = vmul.f32 0.03125, %v4453_v17 }
0x11e3   :  { %9871 = vrsqrt.f32 %v4488_v45  ;;  %v4489_v21 = vadd.f32 1e-05, %v4479_v57 }
0x11e5   :  { %9873 = vrsqrt.f32 %v4489_v21 }
0x11e6   :  { %v4456_v52 = vpop.xlane.xlu0 %4455 }
0x11e7   :  { %v4480_v23 = vmul.f32 0.03125, %v4456_v52 }
0x11e8   :  { %v4459_v63 = vpop.xlane.xlu1 %4458 }
0x11e9   :  { %v4490_v9 = vadd.f32 1e-05, %v4480_v23  ;;  %v4481_v10 = vmul.f32 0.03125, %v4459_v63 }
0x11eb   :  { %9875 = vrsqrt.f32 %v4490_v9  ;;  %v4491_v20 = vadd.f32 1e-05, %v4481_v10 }
0x11ed   :  { %v9872_v13 = vpop.eup %9871  ;;  %9877 = vrsqrt.f32 %v4491_v20 }
0x11ee   :  { %v4508_v48 = vmul.f32 %v9872_v13, %v12093_v46 }
0x11ef   :  { %v9874_v39 = vpop.eup %9873 }
0x11f0   :  { %v4524_v7 = vmul.f32 %v12160_v16, %v4508_v48  ;;  %v4509_v42 = vmul.f32 %v9874_v39, %v12095_v61 }
0x11f2   :  { %v4525_v18 = vmul.f32 %v12160_v16, %v4509_v42  ;;  %v12172_v40 = vadd.f32 %v12168_v3, %v4524_v7  ;;  %v9593_v7 = vld [vmem:[%s13580_s22 + $0x10] sm:$0xff]   ;;  %v9594_v42 = vld [vmem:[%s13580_s22 + $0x18] sm:$0xff]  }
0x11f4   :  { %v12175_v33 = vadd.f32 %v12168_v3, %v4525_v18 }
0x11f5   :  { %v9876_v24 = vpop.eup %9875 }
0x11f6   :  { %v4550_v46 = vpack.c.bf16 %v12175_v33, %v12172_v40  ;;  %v4510_v59 = vmul.f32 %v9876_v24, %v12103_v35 }
0x11f7   :  { %v9878_v61 = vpop.eup %9877 }
0x11f8   :  { %9151 = vmatmul.mubr.msk.bf16.vlgmr.msra.gmra.mrb[180].mxu0 %vm423_vm5, %v4550_v46  ;;  %v4511_v41 = vmul.f32 %v9878_v61, %v12105_v0  ;;  %v4526_v62 = vmul.f32 %v12160_v16, %v4510_v59 }
0x11f9   :  { %9154 = vmatprep.mubr.msk.bf16.mxu0 %vm10156_vm2, %v13657_v43 }
0x11fa   :  { %v4527_v31 = vmul.f32 %v12160_v16, %v4511_v41  ;;  %v12187_v36 = vadd.f32 %v12168_v3, %v4526_v62 }
0x11fc   :  { %v12190_v19 = vadd.f32 %v12168_v3, %v4527_v31 }
0x11fe   :  { %v4551_v35 = vpack.c.bf16 %v12190_v19, %v12187_v36 }
0x1200   :  { %9155 = vmatmul.mubr.msk.bf16.gmra.mrb[184].mxu0 %vm423_vm5, %v4551_v35 }
0x1201   :  { %9158 = vmatprep.mubr.msk.bf16.mxu0 %vm10156_vm2, %v13657_v43 }
0x1231   :  { %v4462_v0 = vpop.xlane.xlu0 %4461 }
0x1232   :  { %v4482_v29 = vmul.f32 0.03125, %v4462_v0 }
0x1233   :  { %v4465_v11 = vpop.xlane.xlu1 %4464 }
0x1234   :  { %v4492_v12 = vadd.f32 1e-05, %v4482_v29  ;;  %v4483_v58 = vmul.f32 0.03125, %v4465_v11 }
0x1236   :  { %9879 = vrsqrt.f32 %v4492_v12  ;;  %v4493_v8 = vadd.f32 1e-05, %v4483_v58 }
0x1238   :  { %9881 = vrsqrt.f32 %v4493_v8 }
0x1239   :  { %v4468_v4 = vpop.xlane.xlu0 %4467 }
0x123a   :  { %v4484_v30 = vmul.f32 0.03125, %v4468_v4 }
0x123b   :  { %v4471_v51 = vpop.xlane.xlu1 %4470 }
0x123c   :  { %v4494_v6 = vadd.f32 1e-05, %v4484_v30  ;;  %v4485_v53 = vmul.f32 0.03125, %v4471_v51 }
0x123e   :  { %9883 = vrsqrt.f32 %v4494_v6  ;;  %v4495_v50 = vadd.f32 1e-05, %v4485_v53 }
0x1240   :  { %v9880_v38 = vpop.eup %9879  ;;  %9885 = vrsqrt.f32 %v4495_v50 }
0x1241   :  { %v4474_v34 = vpop.xlane.xlu0 %4473  ;;  %v4512_v14 = vmul.f32 %v9880_v38, %v12122_v26 }
0x1242   :  { %v9882_v56 = vpop.eup %9881  ;;  %v4486_v28 = vmul.f32 0.03125, %v4474_v34 }
0x1243   :  { %v4477_v15 = vpop.xlane.xlu1 %4476  ;;  %v4513_v47 = vmul.f32 %v9882_v56, %v12125_v22  ;;  %v4528_v32 = vmul.f32 %v12160_v16, %v4512_v14 }
0x1244   :  { %v4496_v27 = vadd.f32 1e-05, %v4486_v28  ;;  %v4487_v55 = vmul.f32 0.03125, %v4477_v15 }
0x1245   :  { %v4529_v1 = vmul.f32 %v12160_v16, %v4513_v47  ;;  %v12202_v5 = vadd.f32 %v12168_v3, %v4528_v32 }
0x1246   :  { %9887 = vrsqrt.f32 %v4496_v27  ;;  %v4497_v49 = vadd.f32 1e-05, %v4487_v55 }
0x1247   :  { %v12205_v37 = vadd.f32 %v12168_v3, %v4529_v1 }
0x1248   :  { %v9884_v26 = vpop.eup %9883  ;;  %9889 = vrsqrt.f32 %v4497_v49 }
0x1249   :  { %v4552_v2 = vpack.c.bf16 %v12205_v37, %v12202_v5  ;;  %v4514_v22 = vmul.f32 %v9884_v26, %v12134_v54 }
0x124a   :  { %v9886_v17 = vpop.eup %9885 }
0x124b   :  { %9159 = vmatmul.mubr.msk.bf16.gmra.mrb[188].mxu0 %vm423_vm5, %v4552_v2  ;;  %v4515_v45 = vmul.f32 %v9886_v17, %v12137_v44  ;;  %v4530_v57 = vmul.f32 %v12160_v16, %v4514_v22 }
0x124c   :  { %9162 = vmatprep.mubr.msk.bf16.mxu0 %vm10156_vm2, %v13657_v43 }
0x124d   :  { %v4531_v21 = vmul.f32 %v12160_v16, %v4515_v45  ;;  %v12217_v52 = vadd.f32 %v12168_v3, %v4530_v57 }
0x124f   :  { %v12220_v23 = vadd.f32 %v12168_v3, %v4531_v21 }
0x1250   :  { %v9888_v63 = vpop.eup %9887 }
0x1251   :  { %v4553_v54 = vpack.c.bf16 %v12220_v23, %v12217_v52  ;;  %v4516_v9 = vmul.f32 %v9888_v63, %v12146_v25 }
0x1252   :  { %v9890_v44 = vpop.eup %9889 }
0x1253   :  { %9163 = vmatmul.mubr.msk.bf16.gmra.mrb[192].mxu0 %vm423_vm5, %v4553_v54  ;;  %v4517_v10 = vmul.f32 %v9890_v44, %v12149_v60  ;;  %v4532_v20 = vmul.f32 %v12160_v16, %v4516_v9  ;;  %v9591_v60 = vld [vmem:[%s13580_s22] sm:$0xff]  }
0x1254   :  { %9166 = vmatprep.mubr.msk.bf16.mxu0 %vm10156_vm2, %v13657_v43  ;;  %9171 = vmatpush3.bf16.msra.mxu1 %v9591_v60 }
0x1255   :  { %v4533_v13 = vmul.f32 %v12160_v16, %v4517_v10  ;;  %v12232_v48 = vadd.f32 %v12168_v3, %v4532_v20  ;;  %9172 = vmatprep.subr.bf16.mxu1 %v13657_v43  ;;  %v9592_v16 = vld [vmem:[%s13580_s22 + $0x8] sm:$0xff]  }
0x1257   :  { %v12235_v39 = vadd.f32 %v12168_v3, %v4533_v13  ;;  %v12261_v3 = vld [vmem:[%s13581_s21] ss:$0 sm:$0xff] }
0x1258   :  { %9173 = vmatpush3.bf16.msra.mxu1 %v9592_v16 }
0x1259   :  { %v4554_v25 = vpack.c.bf16 %v12235_v39, %v12232_v48  ;;  %9174 = vmatprep.subr.bf16.mxu1 %v13657_v43 }
0x125b   :  { %9167 = vmatmul.mubr.msk.bf16.gmra.mrb[196].mxu0 %vm423_vm5, %v4554_v25 }
0x125c   :  { %9202 = vmatprep.mubr.msk.bf16.mxu0 %vm10156_vm2, %v13657_v43  ;;  %9175 = vmatpush3.bf16.msra.mxu1 %v9593_v7 }
0x125d   :  { %9176 = vmatprep.subr.bf16.mxu1 %v13657_v43 }
0x1260   :  { %9177 = vmatpush3.bf16.msra.mxu1 %v9594_v42 }
0x1261   :  { %9222 = vmatprep.subr.bf16.mxu1 %v13657_v43 }
0x12cb   :  { %v4627_v18 = vpop.f32.mrb[180].mxu0 }
0x12cc   :  { %v4628_v24 = vadd.f32 %v12261_v3, %v4627_v18  ;;  %v9152_v46 = vpop.f32.mrb[181].mxu0 }
0x12cd   :  { %v4630_v59 = vpop.f32.mrb[182].mxu0 }
0x12ce   :  { %v4666_v61 = vmul.f32 %v4628_v24, %v4628_v24  ;;  %v4631_v41 = vadd.f32 %v12261_v3, %v4630_v59  ;;  %v9153_v62 = vpop.f32.mrb[183].mxu0 }
0x12d0   :  { %v4676_v31 = vmul.f32 %v4666_v61, %v4628_v24  ;;  %v4667_v35 = vmul.f32 %v4631_v41, %v4631_v41 }
0x12d2   :  { %v4686_v0 = vmul.f32 0.044715, %v4676_v31  ;;  %v4677_v29 = vmul.f32 %v4667_v35, %v4631_v41 }
0x12d3   :  { %v4635_v11 = vpop.f32.mrb[184].mxu0 }
0x12d4   :  { %v4696_v12 = vadd.f32 %v4686_v0, %v4628_v24  ;;  %v4687_v58 = vmul.f32 0.044715, %v4677_v29  ;;  %v4636_v8 = vadd.f32 %v12261_v3, %v4635_v11  ;;  %v9156_v4 = vpop.f32.mrb[185].mxu0 }
0x12d5   :  { %v4638_v30 = vpop.f32.mrb[186].mxu0 }
0x12d6   :  { %v4706_v51 = vmul.f32 0.7978846, %v4696_v12  ;;  %v4697_v6 = vadd.f32 %v4687_v58, %v4631_v41  ;;  %v4668_v53 = vmul.f32 %v4636_v8, %v4636_v8  ;;  %v4639_v50 = vadd.f32 %v12261_v3, %v4638_v30  ;;  %v9157_v38 = vpop.f32.mrb[187].mxu0 }
0x12d8   :  { %9891 = vtanh.f32 %v4706_v51  ;;  %v4707_v34 = vmul.f32 0.7978846, %v4697_v6  ;;  %v4678_v14 = vmul.f32 %v4668_v53, %v4636_v8  ;;  %v4669_v56 = vmul.f32 %v4639_v50, %v4639_v50 }
0x12da   :  { %9893 = vtanh.f32 %v4707_v34  ;;  %v4688_v28 = vmul.f32 0.044715, %v4678_v14  ;;  %v4679_v15 = vmul.f32 %v4669_v56, %v4639_v50 }
0x12dc   :  { %v4698_v47 = vadd.f32 %v4688_v28, %v4636_v8  ;;  %v4689_v32 = vmul.f32 0.044715, %v4679_v15 }
0x12de   :  { %v4708_v27 = vmul.f32 0.7978846, %v4698_v47  ;;  %v4699_v55 = vadd.f32 %v4689_v32, %v4639_v50 }
0x12e0   :  { %9895 = vtanh.f32 %v4708_v27  ;;  %v4709_v1 = vmul.f32 0.7978846, %v4699_v55 }
0x12e2   :  { %v9892_v49 = vpop.eup %9891  ;;  %9897 = vtanh.f32 %v4709_v1 }
0x12e3   :  { %v4726_v26 = vadd.f32 1.0, %v9892_v49 }
0x12e4   :  { %v9894_v2 = vpop.eup %9893 }
0x12e5   :  { %v4736_v22 = vmul.f32 0.5, %v4726_v26  ;;  %v4727_v17 = vadd.f32 1.0, %v9894_v2 }
0x12e7   :  { %v4737_v45 = vmul.f32 0.5, %v4727_v17  ;;  %v4746_v57 = vmul.f32 %v4736_v22, %v4628_v24 }
0x12e9   :  { %v4747_v21 = vmul.f32 %v4737_v45, %v4631_v41 }
0x12ea   :  { %v9896_v63 = vpop.eup %9895 }
0x12eb   :  { %v4756_v54 = vpack.c.bf16 %v4747_v21, %v4746_v57  ;;  %v4728_v9 = vadd.f32 1.0, %v9896_v63 }
0x12ec   :  { %v9898_v44 = vpop.eup %9897 }
0x12ed   :  { %v4738_v10 = vmul.f32 0.5, %v4728_v9  ;;  %v4729_v20 = vadd.f32 1.0, %v9898_v44  ;;  %9179 = vmatmul.mubr.msk.bf16.vlgmr.msra.gmra.mrb[152].mxu1 %vm4800_vm14, %v4756_v54 }
0x12ee   :  { %9182 = vmatprep.mubr.msk.bf16.mxu1 %vm10156_vm2, %v13657_v43 }
0x12ef   :  { %v4739_v13 = vmul.f32 0.5, %v4729_v20  ;;  %v4748_v25 = vmul.f32 %v4738_v10, %v4636_v8 }
0x12f1   :  { %v4749_v60 = vmul.f32 %v4739_v13, %v4639_v50 }
0x12f3   :  { %v4757_v16 = vpack.c.bf16 %v4749_v60, %v4748_v25 }
0x12f5   :  { %9183 = vmatmul.mubr.msk.bf16.gmra.mrb[156].mxu1 %vm4800_vm14, %v4757_v16 }
0x12f6   :  { %9186 = vmatprep.mubr.msk.bf16.mxu1 %vm10156_vm2, %v13657_v43 }
0x131e   :  { %v4643_v7 = vpop.f32.mrb[188].mxu0 }
0x131f   :  { %v4644_v42 = vadd.f32 %v12261_v3, %v4643_v7  ;;  %v9160_v18 = vpop.f32.mrb[189].mxu0 }
0x1320   :  { %v4646_v24 = vpop.f32.mrb[190].mxu0 }
0x1321   :  { %v4670_v46 = vmul.f32 %v4644_v42, %v4644_v42  ;;  %v4647_v59 = vadd.f32 %v12261_v3, %v4646_v24  ;;  %v9161_v61 = vpop.f32.mrb[191].mxu0 }
0x1323   :  { %v4680_v41 = vmul.f32 %v4670_v46, %v4644_v42  ;;  %v4671_v62 = vmul.f32 %v4647_v59, %v4647_v59 }
0x1325   :  { %v4690_v31 = vmul.f32 0.044715, %v4680_v41  ;;  %v4681_v35 = vmul.f32 %v4671_v62, %v4647_v59 }
0x1326   :  { %v4651_v0 = vpop.f32.mrb[192].mxu0 }
0x1327   :  { %v4700_v29 = vadd.f32 %v4690_v31, %v4644_v42  ;;  %v4691_v11 = vmul.f32 0.044715, %v4681_v35  ;;  %v4652_v12 = vadd.f32 %v12261_v3, %v4651_v0  ;;  %v9164_v58 = vpop.f32.mrb[193].mxu0 }
0x1328   :  { %v4654_v8 = vpop.f32.mrb[194].mxu0 }
0x1329   :  { %v4710_v4 = vmul.f32 0.7978846, %v4700_v29  ;;  %v4701_v30 = vadd.f32 %v4691_v11, %v4647_v59  ;;  %v4672_v51 = vmul.f32 %v4652_v12, %v4652_v12  ;;  %v4655_v6 = vadd.f32 %v12261_v3, %v4654_v8  ;;  %v9165_v53 = vpop.f32.mrb[195].mxu0 }
0x132b   :  { %9899 = vtanh.f32 %v4710_v4  ;;  %v4711_v50 = vmul.f32 0.7978846, %v4701_v30  ;;  %v4682_v38 = vmul.f32 %v4672_v51, %v4652_v12  ;;  %v4673_v34 = vmul.f32 %v4655_v6, %v4655_v6 }
0x132d   :  { %9901 = vtanh.f32 %v4711_v50  ;;  %v4692_v14 = vmul.f32 0.044715, %v4682_v38  ;;  %v4683_v56 = vmul.f32 %v4673_v34, %v4655_v6 }
0x132e   :  { %v4659_v28 = vpop.f32.mrb[196].mxu0 }
0x132f   :  { %v4702_v15 = vadd.f32 %v4692_v14, %v4652_v12  ;;  %v4693_v47 = vmul.f32 0.044715, %v4683_v56  ;;  %v4660_v32 = vadd.f32 %v12261_v3, %v4659_v28  ;;  %v9168_v27 = vpop.f32.mrb[197].mxu0 }
0x1330   :  { %v4662_v55 = vpop.f32.mrb[198].mxu0 }
0x1331   :  { %v4712_v1 = vmul.f32 0.7978846, %v4702_v15  ;;  %v4703_v49 = vadd.f32 %v4693_v47, %v4655_v6  ;;  %v4674_v26 = vmul.f32 %v4660_v32, %v4660_v32  ;;  %v4663_v2 = vadd.f32 %v12261_v3, %v4662_v55  ;;  %v9169_v22 = vpop.f32.mrb[199].mxu0 }
0x1333   :  { %9903 = vtanh.f32 %v4712_v1  ;;  %v4713_v17 = vmul.f32 0.7978846, %v4703_v49  ;;  %v4684_v45 = vmul.f32 %v4674_v26, %v4660_v32  ;;  %v4675_v57 = vmul.f32 %v4663_v2, %v4663_v2 }
0x1335   :  { %v9900_v21 = vpop.eup %9899  ;;  %9905 = vtanh.f32 %v4713_v17  ;;  %v4694_v63 = vmul.f32 0.044715, %v4684_v45  ;;  %v4685_v54 = vmul.f32 %v4675_v57, %v4663_v2 }
0x1336   :  { %v4730_v9 = vadd.f32 1.0, %v9900_v21 }
0x1337   :  { %v9902_v44 = vpop.eup %9901  ;;  %v4704_v10 = vadd.f32 %v4694_v63, %v4660_v32  ;;  %v4695_v20 = vmul.f32 0.044715, %v4685_v54 }
0x1338   :  { %v4740_v13 = vmul.f32 0.5, %v4730_v9  ;;  %v4731_v25 = vadd.f32 1.0, %v9902_v44 }
0x1339   :  { %v4714_v60 = vmul.f32 0.7978846, %v4704_v10  ;;  %v4705_v16 = vadd.f32 %v4695_v20, %v4663_v2 }
0x133a   :  { %v4741_v7 = vmul.f32 0.5, %v4731_v25  ;;  %v4750_v18 = vmul.f32 %v4740_v13, %v4644_v42 }
0x133b   :  { %9907 = vtanh.f32 %v4714_v60  ;;  %v4715_v3 = vmul.f32 0.7978846, %v4705_v16 }
0x133c   :  { %v4751_v24 = vmul.f32 %v4741_v7, %v4647_v59 }
0x133d   :  { %v9904_v46 = vpop.eup %9903  ;;  %9909 = vtanh.f32 %v4715_v3 }
0x133e   :  { %v4732_v61 = vadd.f32 1.0, %v9904_v46  ;;  %v4758_v41 = vpack.c.bf16 %v4751_v24, %v4750_v18 }
0x133f   :  { %v9906_v62 = vpop.eup %9905 }
0x1340   :  { %v4742_v31 = vmul.f32 0.5, %v4732_v61  ;;  %v4733_v35 = vadd.f32 1.0, %v9906_v62  ;;  %9187 = vmatmul.mubr.msk.bf16.gmra.mrb[160].mxu1 %vm4800_vm14, %v4758_v41 }
0x1341   :  { %9190 = vmatprep.mubr.msk.bf16.mxu1 %vm10156_vm2, %v13657_v43 }
0x1342   :  { %v4743_v0 = vmul.f32 0.5, %v4733_v35  ;;  %v4752_v29 = vmul.f32 %v4742_v31, %v4652_v12  ;;  %v8136_v12 = vld [vmem:[%s13582_s23] ss:$0 sm:$0xff] }
0x1344   :  { %v4753_v11 = vmul.f32 %v4743_v0, %v4655_v6 }
0x1345   :  { %v9908_v58 = vpop.eup %9907 }
0x1346   :  { %v4734_v8 = vadd.f32 1.0, %v9908_v58  ;;  %v4759_v4 = vpack.c.bf16 %v4753_v11, %v4752_v29 }
0x1347   :  { %v9910_v42 = vpop.eup %9909 }
0x1348   :  { %v4744_v59 = vmul.f32 0.5, %v4734_v8  ;;  %v4735_v30 = vadd.f32 1.0, %v9910_v42  ;;  %9191 = vmatmul.mubr.msk.bf16.gmra.mrb[164].mxu1 %vm4800_vm14, %v4759_v4 }
0x1349   :  { %9194 = vmatprep.mubr.msk.bf16.mxu1 %vm10156_vm2, %v13657_v43 }
0x134a   :  { %v4745_v51 = vmul.f32 0.5, %v4735_v30  ;;  %v4754_v53 = vmul.f32 %v4744_v59, %v4660_v32 }
0x134c   :  { %v4755_v50 = vmul.f32 %v4745_v51, %v4663_v2 }
0x134e   :  { %v4760_v38 = vpack.c.bf16 %v4755_v50, %v4754_v53 }
0x1350   :  { %9195 = vmatmul.mubr.msk.bf16.gmra.mrb[168].mxu1 %vm4800_vm14, %v4760_v38 }
0x1351   :  { %9224 = vmatprep.mubr.msk.bf16.mxu1 %vm10156_vm2, %v13657_v43 }
0x13c0   :  { %v4850_v6 = vpop.f32.mrb[152].mxu1 }
0x13c1   :  { %v4851_v34 = vadd.f32 %v8136_v12, %v4850_v6  ;;  %v9180_v14 = vpop.f32.mrb[153].mxu1 }
0x13c2   :  { %v4853_v56 = vpop.f32.mrb[154].mxu1 }
0x13c3   :  { %v4889_v28 = vadd.f32 %v4851_v34, %v12172_v40  ;;  %v4854_v15 = vadd.f32 %v8136_v12, %v4853_v56  ;;  %v9181_v47 = vpop.f32.mrb[155].mxu1 }
0x13c5   :  { %v4890_v32 = vadd.f32 %v4854_v15, %v12175_v33  ;;  %v4901_v27 = vsel %vm423_vm5, %v4889_v28, 0.0 }
0x13c6   :  { %4902 = vadd.xlane.f32.xlu0 %v4901_v27  ;;  %v9596_v27 = vld [vmem:[%s13644_s3 + $0x18] sm:$0xff]  }
0x13c7   :  { %v4904_v55 = vsel %vm423_vm5, %v4890_v32, 0.0 }
0x13c8   :  { %4905 = vadd.xlane.f32.xlu1 %v4904_v55  ;;  %v4858_v1 = vpop.f32.mrb[156].mxu1 }
0x13c9   :  { %v4859_v49 = vadd.f32 %v8136_v12, %v4858_v1  ;;  %v9184_v26 = vpop.f32.mrb[157].mxu1 }
0x13ca   :  { %v4861_v2 = vpop.f32.mrb[158].mxu1 }
0x13cb   :  { %v4891_v22 = vadd.f32 %v4859_v49, %v12187_v36  ;;  %v4862_v17 = vadd.f32 %v8136_v12, %v4861_v2  ;;  %v9185_v45 = vpop.f32.mrb[159].mxu1 }
0x13cd   :  { %v4892_v40 = vadd.f32 %v4862_v17, %v12190_v19  ;;  %v4907_v57 = vsel %vm423_vm5, %v4891_v22, 0.0 }
0x13ce   :  { %4908 = vadd.xlane.f32.xlu0 %v4907_v57 }
0x13cf   :  { %v4910_v33 = vsel %vm423_vm5, %v4892_v40, 0.0 }
0x13d0   :  { %4911 = vadd.xlane.f32.xlu1 %v4910_v33 }
0x1413   :  { %v4866_v21 = vpop.f32.mrb[160].mxu1 }
0x1414   :  { %v4867_v63 = vadd.f32 %v8136_v12, %v4866_v21  ;;  %v9188_v54 = vpop.f32.mrb[161].mxu1 }
0x1415   :  { %v4869_v9 = vpop.f32.mrb[162].mxu1 }
0x1416   :  { %v12300_v44 = vadd.f32 %v4867_v63, %v12202_v5  ;;  %v4870_v10 = vadd.f32 %v8136_v12, %v4869_v9  ;;  %v9189_v20 = vpop.f32.mrb[163].mxu1 }
0x1418   :  { %v12303_v36 = vadd.f32 %v4870_v10, %v12205_v37  ;;  %v4913_v19 = vsel %vm423_vm5, %v12300_v44, 0.0 }
0x1419   :  { %4914 = vadd.xlane.f32.xlu0 %v4913_v19 }
0x141a   :  { %v4916_v13 = vsel %vm423_vm5, %v12303_v36, 0.0 }
0x141b   :  { %4917 = vadd.xlane.f32.xlu1 %v4916_v13  ;;  %v4874_v25 = vpop.f32.mrb[164].mxu1 }
0x141c   :  { %v4875_v60 = vadd.f32 %v8136_v12, %v4874_v25  ;;  %v9192_v16 = vpop.f32.mrb[165].mxu1 }
0x141d   :  { %v4877_v7 = vpop.f32.mrb[166].mxu1 }
0x141e   :  { %v12310_v5 = vadd.f32 %v4875_v60, %v12217_v52  ;;  %v4878_v3 = vadd.f32 %v8136_v12, %v4877_v7  ;;  %v9193_v18 = vpop.f32.mrb[167].mxu1 }
0x1420   :  { %v12313_v37 = vadd.f32 %v4878_v3, %v12220_v23  ;;  %v4919_v24 = vsel %vm423_vm5, %v12310_v5, 0.0 }
0x1421   :  { %4920 = vadd.xlane.f32.xlu0 %v4919_v24 }
0x1422   :  { %v4922_v46 = vsel %vm423_vm5, %v12313_v37, 0.0 }
0x1423   :  { %4923 = vadd.xlane.f32.xlu1 %v4922_v46  ;;  %v4882_v61 = vpop.f32.mrb[168].mxu1 }
0x1424   :  { %v4883_v41 = vadd.f32 %v8136_v12, %v4882_v61  ;;  %v9196_v62 = vpop.f32.mrb[169].mxu1 }
0x1425   :  { %v4885_v31 = vpop.f32.mrb[170].mxu1 }
0x1426   :  { %v12320_v52 = vadd.f32 %v4883_v41, %v12232_v48  ;;  %v4886_v35 = vadd.f32 %v8136_v12, %v4885_v31  ;;  %v9197_v0 = vpop.f32.mrb[171].mxu1 }
0x1428   :  { %v12323_v23 = vadd.f32 %v4886_v35, %v12235_v39  ;;  %v4925_v29 = vsel %vm423_vm5, %v12320_v52, 0.0 }
0x1429   :  { %4926 = vadd.xlane.f32.xlu0 %v4925_v29 }
0x142a   :  { %v4928_v11 = vsel %vm423_vm5, %v12323_v23, 0.0 }
0x142b   :  { %4929 = vadd.xlane.f32.xlu1 %v4928_v11 }
0x1453   :  { %v4903_v58 = vpop.xlane.xlu0 %4902 }
0x1454   :  { %v4931_v8 = vmul.f32 0.03125, %v4903_v58 }
0x1455   :  { %v4906_v4 = vpop.xlane.xlu1 %4905 }
0x1456   :  { %v12329_v42 = vsub.f32 %v4889_v28, %v4931_v8  ;;  %v4932_v48 = vmul.f32 0.03125, %v4906_v4  ;;  %v12396_v4 = vld [vmem:[%s13583_s24] ss:$0 sm:$0xff] }
0x1458   :  { %v12331_v59 = vsub.f32 %v4890_v32, %v4932_v48  ;;  %v4951_v39 = vmul.f32 %v12329_v42, %v12329_v42  ;;  %v9595_v32 = vld [vmem:[%s13644_s3 + $0x10] sm:$0xff]  }
0x1459   :  { %9199 = vmatpush3.bf16.msra.mxu0 %v9595_v32 }
0x145a   :  { %v4961_v30 = vsel %vm423_vm5, %v4951_v39, 0.0  ;;  %v4952_v51 = vmul.f32 %v12331_v59, %v12331_v59  ;;  %9200 = vmatprep.subr.bf16.mxu0 %v13657_v43 }
0x145b   :  { %v4909_v53 = vpop.xlane.xlu0 %4908  ;;  %4962 = vadd.xlane.f32.xlu0 %v4961_v30 }
0x145c   :  { %v4933_v50 = vmul.f32 0.03125, %v4909_v53  ;;  %v4964_v38 = vsel %vm423_vm5, %v4952_v51, 0.0  ;;  %v12404_v53 = vld [vmem:[%s13584_s25] ss:$0 sm:$0xff] }
0x145d   :  { %v4912_v12 = vpop.xlane.xlu1 %4911  ;;  %4965 = vadd.xlane.f32.xlu1 %v4964_v38  ;;  %9201 = vmatpush3.bf16.msra.mxu0 %v9596_v27 }
0x145e   :  { %v12339_v6 = vsub.f32 %v4891_v22, %v4933_v50  ;;  %v4934_v34 = vmul.f32 0.03125, %v4912_v12  ;;  %9236 = vmatprep.subr.bf16.mxu0 %v13657_v43 }
0x1460   :  { %v12341_v14 = vsub.f32 %v4892_v40, %v4934_v34  ;;  %v4953_v56 = vmul.f32 %v12339_v6, %v12339_v6 }
0x1462   :  { %v4967_v28 = vsel %vm423_vm5, %v4953_v56, 0.0  ;;  %v4954_v15 = vmul.f32 %v12341_v14, %v12341_v14 }
0x1463   :  { %4968 = vadd.xlane.f32.xlu0 %v4967_v28 }
0x1464   :  { %v4970_v47 = vsel %vm423_vm5, %v4954_v15, 0.0 }
0x1465   :  { %4971 = vadd.xlane.f32.xlu1 %v4970_v47 }
0x14a6   :  { %v4915_v55 = vpop.xlane.xlu0 %4914 }
0x14a7   :  { %v4935_v1 = vmul.f32 0.03125, %v4915_v55 }
0x14a8   :  { %v4918_v49 = vpop.xlane.xlu1 %4917 }
0x14a9   :  { %v12358_v26 = vsub.f32 %v12300_v44, %v4935_v1  ;;  %v4936_v2 = vmul.f32 0.03125, %v4918_v49 }
0x14ab   :  { %v12361_v22 = vsub.f32 %v12303_v36, %v4936_v2  ;;  %v4955_v17 = vmul.f32 %v12358_v26, %v12358_v26 }
0x14ad   :  { %v4973_v45 = vsel %vm423_vm5, %v4955_v17, 0.0  ;;  %v4956_v40 = vmul.f32 %v12361_v22, %v12361_v22 }
0x14ae   :  { %v4921_v57 = vpop.xlane.xlu0 %4920  ;;  %4974 = vadd.xlane.f32.xlu0 %v4973_v45 }
0x14af   :  { %v4937_v33 = vmul.f32 0.03125, %v4921_v57  ;;  %v4976_v21 = vsel %vm423_vm5, %v4956_v40, 0.0 }
0x14b0   :  { %v4924_v63 = vpop.xlane.xlu1 %4923  ;;  %4977 = vadd.xlane.f32.xlu1 %v4976_v21 }
0x14b1   :  { %v12370_v54 = vsub.f32 %v12310_v5, %v4937_v33  ;;  %v4938_v9 = vmul.f32 0.03125, %v4924_v63 }
0x14b3   :  { %v12373_v44 = vsub.f32 %v12313_v37, %v4938_v9  ;;  %v4957_v10 = vmul.f32 %v12370_v54, %v12370_v54 }
0x14b5   :  { %v4979_v20 = vsel %vm423_vm5, %v4957_v10, 0.0  ;;  %v4958_v36 = vmul.f32 %v12373_v44, %v12373_v44 }
0x14b6   :  { %4980 = vadd.xlane.f32.xlu0 %v4979_v20  ;;  %v4927_v19 = vpop.xlane.xlu0 %4926 }
0x14b7   :  { %v4939_v13 = vmul.f32 0.03125, %v4927_v19  ;;  %v4982_v25 = vsel %vm423_vm5, %v4958_v36, 0.0 }
0x14b8   :  { %4983 = vadd.xlane.f32.xlu1 %v4982_v25  ;;  %v4930_v60 = vpop.xlane.xlu1 %4929 }
0x14b9   :  { %v12382_v16 = vsub.f32 %v12320_v52, %v4939_v13  ;;  %v4940_v7 = vmul.f32 0.03125, %v4930_v60 }
0x14bb   :  { %v12385_v5 = vsub.f32 %v12323_v23, %v4940_v7  ;;  %v4959_v3 = vmul.f32 %v12382_v16, %v12382_v16 }
0x14bd   :  { %v4985_v18 = vsel %vm423_vm5, %v4959_v3, 0.0  ;;  %v4960_v37 = vmul.f32 %v12385_v5, %v12385_v5 }
0x14be   :  { %4986 = vadd.xlane.f32.xlu0 %v4985_v18 }
0x14bf   :  { %v4988_v24 = vsel %vm423_vm5, %v4960_v37, 0.0 }
0x14c0   :  { %4989 = vadd.xlane.f32.xlu1 %v4988_v24 }
0x14e8   :  { %v4963_v46 = vpop.xlane.xlu0 %4962 }
0x14e9   :  { %v4991_v61 = vmul.f32 0.03125, %v4963_v46 }
0x14ea   :  { %v4966_v41 = vpop.xlane.xlu1 %4965 }
0x14eb   :  { %v5001_v62 = vadd.f32 1e-05, %v4991_v61  ;;  %v4992_v31 = vmul.f32 0.03125, %v4966_v41 }
0x14ed   :  { %9911 = vrsqrt.f32 %v5001_v62  ;;  %v5002_v52 = vadd.f32 1e-05, %v4992_v31 }
0x14ef   :  { %9913 = vrsqrt.f32 %v5002_v52 }
0x14f0   :  { %v4969_v35 = vpop.xlane.xlu0 %4968 }
0x14f1   :  { %v4993_v0 = vmul.f32 0.03125, %v4969_v35 }
0x14f2   :  { %v4972_v23 = vpop.xlane.xlu1 %4971 }
0x14f3   :  { %v5003_v29 = vadd.f32 1e-05, %v4993_v0  ;;  %v4994_v11 = vmul.f32 0.03125, %v4972_v23 }
0x14f5   :  { %9915 = vrsqrt.f32 %v5003_v29  ;;  %v5004_v58 = vadd.f32 1e-05, %v4994_v11 }
0x14f7   :  { %v9912_v8 = vpop.eup %9911  ;;  %9917 = vrsqrt.f32 %v5004_v58 }
0x14f8   :  { %v5021_v48 = vmul.f32 %v9912_v8, %v12329_v42 }
0x14f9   :  { %v9914_v39 = vpop.eup %9913 }
0x14fa   :  { %v5037_v30 = vmul.f32 %v12396_v4, %v5021_v48  ;;  %v5022_v51 = vmul.f32 %v9914_v39, %v12331_v59 }
0x14fc   :  { %v5038_v50 = vmul.f32 %v12396_v4, %v5022_v51  ;;  %v12408_v38 = vadd.f32 %v12404_v53, %v5037_v30 }
0x14fe   :  { %13669 = vst [vmem:[#allocation12_spill] sm:$0xff] %v12408_v38  ;;  %v12411_v12 = vadd.f32 %v12404_v53, %v5038_v50 }
0x14ff   :  { %v9916_v34 = vpop.eup %9915 }
0x1500   :  { %13670 = vst [vmem:[#allocation2_spill] sm:$0xff] %v12411_v12  ;;  %v5063_v42 = vpack.c.bf16 %v12411_v12, %v12408_v38  ;;  %v5023_v56 = vmul.f32 %v9916_v34, %v12339_v6 }
0x1501   :  { %v9918_v59 = vpop.eup %9917 }
0x1502   :  { %9203 = vmatmul.mubr.msk.bf16.vlgmr.msra.gmra.mrb[200].mxu0 %vm423_vm5, %v5063_v42  ;;  %v5024_v28 = vmul.f32 %v9918_v59, %v12341_v14  ;;  %v5039_v15 = vmul.f32 %v12396_v4, %v5023_v56 }
0x1503   :  { %9206 = vmatprep.mubr.msk.bf16.mxu0 %vm10156_vm2, %v13657_v43 }
0x1504   :  { %v5040_v47 = vmul.f32 %v12396_v4, %v5024_v28  ;;  %v12423_v32 = vadd.f32 %v12404_v53, %v5039_v15 }
0x1506   :  { %13671 = vst [vmem:[#allocation3_spill] sm:$0xff] %v12423_v32  ;;  %v12426_v27 = vadd.f32 %v12404_v53, %v5040_v47 }
0x1508   :  { %13672 = vst [vmem:[#allocation4_spill] sm:$0xff] %v12426_v27  ;;  %v5064_v6 = vpack.c.bf16 %v12426_v27, %v12423_v32 }
0x150a   :  { %9207 = vmatmul.mubr.msk.bf16.gmra.mrb[204].mxu0 %vm423_vm5, %v5064_v6 }
0x150b   :  { %9210 = vmatprep.mubr.msk.bf16.mxu0 %vm10156_vm2, %v13657_v43 }
0x153b   :  { %v4975_v14 = vpop.xlane.xlu0 %4974 }
0x153c   :  { %v4995_v55 = vmul.f32 0.03125, %v4975_v14 }
0x153d   :  { %v4978_v1 = vpop.xlane.xlu1 %4977 }
0x153e   :  { %v5005_v49 = vadd.f32 1e-05, %v4995_v55  ;;  %v4996_v2 = vmul.f32 0.03125, %v4978_v1 }
0x1540   :  { %9919 = vrsqrt.f32 %v5005_v49  ;;  %v5006_v17 = vadd.f32 1e-05, %v4996_v2 }
0x1542   :  { %9921 = vrsqrt.f32 %v5006_v17 }
0x1543   :  { %v4981_v45 = vpop.xlane.xlu0 %4980 }
0x1544   :  { %v4997_v40 = vmul.f32 0.03125, %v4981_v45 }
0x1545   :  { %v4984_v57 = vpop.xlane.xlu1 %4983 }
0x1546   :  { %v5007_v33 = vadd.f32 1e-05, %v4997_v40  ;;  %v4998_v21 = vmul.f32 0.03125, %v4984_v57 }
0x1548   :  { %9923 = vrsqrt.f32 %v5007_v33  ;;  %v5008_v63 = vadd.f32 1e-05, %v4998_v21 }
0x154a   :  { %v9920_v9 = vpop.eup %9919  ;;  %9925 = vrsqrt.f32 %v5008_v63 }
0x154b   :  { %v4987_v10 = vpop.xlane.xlu0 %4986  ;;  %v5025_v20 = vmul.f32 %v9920_v9, %v12358_v26 }
0x154c   :  { %v9922_v36 = vpop.eup %9921  ;;  %v4999_v19 = vmul.f32 0.03125, %v4987_v10 }
0x154d   :  { %v4990_v13 = vpop.xlane.xlu1 %4989  ;;  %v5026_v25 = vmul.f32 %v9922_v36, %v12361_v22  ;;  %v5041_v60 = vmul.f32 %v12396_v4, %v5025_v20 }
0x154e   :  { %v5009_v7 = vadd.f32 1e-05, %v4999_v19  ;;  %v5000_v3 = vmul.f32 0.03125, %v4990_v13 }
0x154f   :  { %v5042_v18 = vmul.f32 %v12396_v4, %v5026_v25  ;;  %v12438_v24 = vadd.f32 %v12404_v53, %v5041_v60 }
0x1550   :  { %9927 = vrsqrt.f32 %v5009_v7  ;;  %v5010_v37 = vadd.f32 1e-05, %v5000_v3 }
0x1551   :  { %13673 = vst [vmem:[#allocation5_spill] sm:$0xff] %v12438_v24  ;;  %v12441_v46 = vadd.f32 %v12404_v53, %v5042_v18 }
0x1552   :  { %v9924_v26 = vpop.eup %9923  ;;  %9929 = vrsqrt.f32 %v5010_v37 }
0x1553   :  { %13674 = vst [vmem:[#allocation6_spill] sm:$0xff] %v12441_v46  ;;  %v5065_v61 = vpack.c.bf16 %v12441_v46, %v12438_v24  ;;  %v5027_v22 = vmul.f32 %v9924_v26, %v12370_v54 }
0x1554   :  { %v9926_v41 = vpop.eup %9925 }
0x1555   :  { %9211 = vmatmul.mubr.msk.bf16.gmra.mrb[208].mxu0 %vm423_vm5, %v5065_v61  ;;  %v5028_v62 = vmul.f32 %v9926_v41, %v12373_v44  ;;  %v5043_v31 = vmul.f32 %v12396_v4, %v5027_v22 }
0x1556   :  { %9214 = vmatprep.mubr.msk.bf16.mxu0 %vm10156_vm2, %v13657_v43 }
0x1557   :  { %v5044_v52 = vmul.f32 %v12396_v4, %v5028_v62  ;;  %v12453_v35 = vadd.f32 %v12404_v53, %v5043_v31 }
0x1559   :  { %13675 = vst [vmem:[#allocation7_spill] sm:$0xff] %v12453_v35  ;;  %v12456_v0 = vadd.f32 %v12404_v53, %v5044_v52 }
0x155a   :  { %v9928_v23 = vpop.eup %9927 }
0x155b   :  { %13676 = vst [vmem:[#allocation8_spill] sm:$0xff] %v12456_v0  ;;  %v5066_v54 = vpack.c.bf16 %v12456_v0, %v12453_v35  ;;  %v5029_v29 = vmul.f32 %v9928_v23, %v12382_v16 }
0x155c   :  { %v9930_v44 = vpop.eup %9929 }
0x155d   :  { %9215 = vmatmul.mubr.msk.bf16.gmra.mrb[212].mxu0 %vm423_vm5, %v5066_v54  ;;  %v5030_v11 = vmul.f32 %v9930_v44, %v12385_v5  ;;  %v5045_v58 = vmul.f32 %v12396_v4, %v5029_v29  ;;  %v8153_v5 = vld [vmem:[%s13574_s15 + $0x1] ss:$0 sm:$0xff] }
0x155e   :  { %9218 = vmatprep.mubr.msk.bf16.mxu0 %vm10156_vm2, %v13657_v43 }
0x155f   :  { %v5046_v8 = vmul.f32 %v12396_v4, %v5030_v11  ;;  %v12468_v48 = vadd.f32 %v12404_v53, %v5045_v58 }
0x1561   :  { %13677 = vst [vmem:[#allocation9_spill] sm:$0xff] %v12468_v48  ;;  %v12471_v39 = vadd.f32 %v12404_v53, %v5046_v8 }
0x1563   :  { %13678 = vst [vmem:[#allocation10_spill] sm:$0xff] %v12471_v39  ;;  %v5067_v16 = vpack.c.bf16 %v12471_v39, %v12468_v48 }
0x1565   :  { %9219 = vmatmul.mubr.msk.bf16.gmra.mrb[216].mxu0 %vm423_vm5, %v5067_v16 }
0x1566   :  { %9238 = vmatprep.mubr.msk.bf16.mxu0 %vm10156_vm2, %v13657_v43 }
0x15d5   :  { %v5142_v30 = vpop.f32.mrb[200].mxu0 }
0x15d6   :  { %v5143_v4 = vadd.f32 %v8153_v5, %v5142_v30  ;;  %v9204_v51 = vpop.f32.mrb[201].mxu0 }
0x15d7   :  { %v5145_v50 = vpop.f32.mrb[202].mxu0 }
0x15d8   :  { %5181 = vxpose.xlu0.b32.start [1/5] (short) (narrow) %v5143_v4, 96  ;;  %v9205_v34 = vpop.f32.mrb[203].mxu0  ;;  %v5146_v53 = vadd.f32 %v8153_v5, %v5145_v50 }
0x15dc   :  { %5182 = vxpose.xlu0.b32.cont [2/5] (short) (narrow) %v5146_v53, 96 }
0x15dd   :  { %v5150_v42 = vpop.f32.mrb[204].mxu0 }
0x15de   :  { %v5151_v56 = vadd.f32 %v8153_v5, %v5150_v42  ;;  %v9208_v59 = vpop.f32.mrb[205].mxu0 }
0x15df   :  { %v5153_v28 = vpop.f32.mrb[206].mxu0 }
0x15e0   :  { %5183 = vxpose.xlu0.b32.cont [3/5] (short) (narrow) %v5151_v56, 96  ;;  %v9209_v15 = vpop.f32.mrb[207].mxu0  ;;  %v5154_v47 = vadd.f32 %v8153_v5, %v5153_v28 }
0x15e4   :  { %5184 = vxpose.xlu0.b32.cont [4/5] (short) (narrow) %v5154_v47, 96 }
0x1628   :  { %v5158_v6 = vpop.f32.mrb[208].mxu0 }
0x1629   :  { %v5159_v14 = vadd.f32 %v8153_v5, %v5158_v6  ;;  %v9212_v55 = vpop.f32.mrb[209].mxu0 }
0x162a   :  { %v5161_v1 = vpop.f32.mrb[210].mxu0 }
0x162b   :  { %5185 = vxpose.xlu0.b32.end [5/5] (short) (narrow) %v5159_v14, 96  ;;  %v9213_v49 = vpop.f32.mrb[211].mxu0  ;;  %v5162_v61 = vadd.f32 %v8153_v5, %v5161_v1 }
0x1630   :  { %v5166_v2 = vpop.f32.mrb[212].mxu0 }
0x1631   :  { %v9216_v17 = vpop.f32.mrb[213].mxu0  ;;  %v5167_v22 = vadd.f32 %v8153_v5, %v5166_v2 }
0x1632   :  { %v5169_v45 = vpop.f32.mrb[214].mxu0 }
0x1633   :  { %v9217_v40 = vpop.f32.mrb[215].mxu0  ;;  %v5170_v41 = vadd.f32 %v8153_v5, %v5169_v45 }
0x1638   :  { %v5174_v57 = vpop.f32.mrb[216].mxu0 }
0x1639   :  { %v9220_v33 = vpop.f32.mrb[217].mxu0  ;;  %v5175_v62 = vadd.f32 %v8153_v5, %v5174_v57 }
0x163a   :  { %v5177_v21 = vpop.f32.mrb[218].mxu0 }
0x163b   :  { %v9221_v63 = vpop.f32.mrb[219].mxu0  ;;  %v5178_v31 = vadd.f32 %v8153_v5, %v5177_v21 }
0x169b   :  { %v5197_v9 = vpop.trf.xlu0 }
0x169c   :  { %v8302_v10 = vpack.c.bf16 %v5197_v9, %v5197_v9 }
0x169e   :  { %5325 = vxpose.xlu1.c.b16.start.end [1/1] (short) (narrow) %v8302_v10, 48 }
0x169f   :  { %v5198_v20 = vpop.trf.xlu0 }
0x16a0   :  { %v8303_v36 = vpack.c.bf16 %v5198_v20, %v5198_v20 }
0x16a3   :  { %v5199_v19 = vpop.trf.xlu0 }
0x16a4   :  { %v8304_v13 = vpack.c.bf16 %v5199_v19, %v5199_v19 }
0x16a6   :  { %5493 = vxpose.xlu0.c.b16.start.end [1/1] (short) (narrow) %v8304_v13, 48 }
0x16a7   :  { %5409 = vxpose.xlu1.c.b16.start.end [1/1] (short) (narrow) %v8303_v36, 48  ;;  %v5200_v25 = vpop.trf.xlu0 }
0x16a8   :  { %v8305_v54 = vpack.c.bf16 %v5200_v25, %v5200_v25 }
0x16ab   :  { %v5201_v60 = vpop.trf.xlu0 }
0x16ac   :  { %v8310_v7 = vpack.c.bf16 %v5201_v60, %v5201_v60 }
0x16ae   :  { %v5351_v3 = vsel %vm2587_vm3, %v8310_v7, 0 }
0x16af   :  { %9223 = vmatpush3.bf16.msra.mxu1 %v5351_v3  ;;  %v5202_v18 = vpop.trf.xlu0 }
0x16b0   :  { %v8311_v37 = vpack.c.bf16 %v5202_v18, %v5202_v18  ;;  %9250 = vmatprep.subr.bf16.mxu1 %v13657_v43 }
0x16b2   :  { %v5435_v26 = vsel %vm2587_vm3, %v8311_v37, 0 }
0x16b3   :  { %9237 = vmatpush3.bf16.msra.mxu0 %v5435_v26  ;;  %v5203_v52 = vpop.trf.xlu0 }
0x16b4   :  { %9264 = vmatprep.subr.bf16.mxu0 %v13657_v43  ;;  %v8312_v29 = vpack.c.bf16 %v5203_v52, %v5203_v52 }
0x16b6   :  { %v5519_v11 = vsel %vm2587_vm3, %v8312_v29, 0 }
0x16b7   :  { %v5204_v23 = vpop.trf.xlu0 }
0x16b8   :  { %v8313_v5 = vpack.c.bf16 %v5204_v23, %v5204_v23 }
0x16b9   :  { %5213 = vxpose.xlu1.b32.start [1/5] (short) (narrow) %v5162_v61, 96 }
0x16ba   :  { %v5603_v51 = vsel %vm2587_vm3, %v8313_v5, 0 }
0x16bb   :  { %v12485_v44 = vpop.trf.xlu0 }
0x16bd   :  { %5214 = vxpose.xlu1.b32.cont [2/5] (short) (narrow) %v5167_v22, 96 }
0x16bf   :  { %v12492_v16 = vpop.trf.xlu0 }
0x16c1   :  { %5215 = vxpose.xlu1.b32.cont [3/5] (short) (narrow) %v5170_v41, 96 }
0x16c3   :  { %v12497_v4 = vpop.trf.xlu0 }
0x16c5   :  { %5216 = vxpose.xlu1.b32.cont [4/5] (short) (narrow) %v5175_v62, 96 }
0x16c7   :  { %v12504_v34 = vpop.trf.xlu0 }
0x16c9   :  { %5217 = vxpose.xlu1.b32.end [5/5] (short) (narrow) %v5178_v31, 96 }
0x1703   :  { %5577 = vxpose.xlu1.c.b16.start.end [1/1] (short) (narrow) %v8305_v54, 48 }
0x1704   :  { %v5333_v58 = vpop.trf.xlu1 }
0x1705   :  { %9225 = vmatmul.mubr.msk.bf16.vlgmr.msra.gmra.mrb[172].mxu1 %vm2577_vm4, %v5333_v58 }
0x1706   :  { %9228 = vmatprep.mubr.msk.bf16.mxu1 %vm10156_vm2, %v13657_v43  ;;  %9251 = vmatpush3.bf16.msra.mxu1 %v5519_v11 }
0x1707   :  { %9278 = vmatprep.subr.bf16.mxu1 %v13657_v43 }
0x1708   :  { %v5334_v8 = vpop.trf.xlu1 }
0x170c   :  { %v5335_v30 = vpop.trf.xlu1  ;;  %v5501_v42 = vpop.trf.xlu0 }
0x170d   :  { %9229 = vmatmul.mubr.msk.bf16.gmra.mrb[176].mxu1 %vm2577_vm4, %v5334_v8 }
0x170e   :  { %9232 = vmatprep.mubr.msk.bf16.mxu1 %vm10156_vm2, %v13657_v43 }
0x1710   :  { %v5417_v50 = vpop.trf.xlu1  ;;  %v5502_v59 = vpop.trf.xlu0 }
0x1711   :  { %9239 = vmatmul.mubr.msk.bf16.vlgmr.msra.gmra.mrb[220].mxu0 %vm2577_vm4, %v5417_v50  ;;  %v13680_v50 = vld [vmem:[#allocation13_spill] sm:$0xff] }
0x1712   :  { %9242 = vmatprep.mubr.msk.bf16.mxu0 %vm10156_vm2, %v13657_v43  ;;  %9265 = vmatpush3.bf16.msra.mxu0 %v5603_v51 }
0x1713   :  { %9292 = vmatprep.subr.bf16.mxu0 %v13657_v43 }
0x1714   :  { %v5418_v53 = vpop.trf.xlu1  ;;  %v5503_v28 = vpop.trf.xlu0 }
0x1715   :  { %9233 = vmatmul.mubr.msk.bf16.gmra.mrb[180].mxu1 %vm2577_vm4, %v5335_v30 }
0x1716   :  { %9252 = vmatprep.mubr.msk.bf16.mxu1 %vm10156_vm2, %v13657_v43 }
0x1718   :  { %v5419_v56 = vpop.trf.xlu1 }
0x1719   :  { %9243 = vmatmul.mubr.msk.bf16.gmra.mrb[224].mxu0 %vm2577_vm4, %v5418_v53 }
0x171a   :  { %9246 = vmatprep.mubr.msk.bf16.mxu0 %vm10156_vm2, %v13657_v43 }
0x171d   :  { %9253 = vmatmul.mubr.msk.bf16.vlgmr.msra.gmra.mrb[184].mxu1 %vm2577_vm4, %v5501_v42 }
0x171e   :  { %9256 = vmatprep.mubr.msk.bf16.mxu1 %vm10156_vm2, %v13657_v43 }
0x1721   :  { %9247 = vmatmul.mubr.msk.bf16.gmra.mrb[228].mxu0 %vm2577_vm4, %v5419_v56 }
0x1722   :  { %9266 = vmatprep.mubr.msk.bf16.mxu0 %vm10156_vm2, %v13657_v43 }
0x1725   :  { %9257 = vmatmul.mubr.msk.bf16.gmra.mrb[188].mxu1 %vm2577_vm4, %v5502_v59 }
0x1726   :  { %9260 = vmatprep.mubr.msk.bf16.mxu1 %vm10156_vm2, %v13657_v43 }
0x172d   :  { %9261 = vmatmul.mubr.msk.bf16.gmra.mrb[192].mxu1 %vm2577_vm4, %v5503_v28 }
0x172e   :  { %9280 = vmatprep.mubr.msk.bf16.mxu1 %vm10156_vm2, %v13657_v43 }
0x1739   :  { %v5229_v15 = vpop.trf.xlu1 }
0x173a   :  { %v8306_v47 = vpack.c.bf16 %v5229_v15, %v5229_v15 }
0x173c   :  { %5661 = vxpose.xlu0.c.b16.start.end [1/1] (short) (narrow) %v8306_v47, 48 }
0x173d   :  { %v5230_v6 = vpop.trf.xlu1 }
0x173e   :  { %v8307_v14 = vpack.c.bf16 %v5230_v6, %v5230_v6 }
0x1741   :  { %v5231_v55 = vpop.trf.xlu1 }
0x1742   :  { %v8308_v17 = vpack.c.bf16 %v5231_v55, %v5231_v55 }
0x1745   :  { %v5232_v1 = vpop.trf.xlu1  ;;  %5745 = vxpose.xlu0.c.b16.start.end [1/1] (short) (narrow) %v8307_v14, 48 }
0x1746   :  { %v8309_v49 = vpack.c.bf16 %v5232_v1, %v5232_v1 }
0x1748   :  { %5913 = vxpose.xlu1.c.b16.start.end [1/1] (short) (narrow) %v8309_v49, 48 }
0x1749   :  { %v5233_v2 = vpop.trf.xlu1 }
0x174a   :  { %v8314_v45 = vpack.c.bf16 %v5233_v2, %v5233_v2 }
0x174c   :  { %v5687_v40 = vsel %vm2587_vm3, %v8314_v45, 0 }
0x174d   :  { %v5234_v57 = vpop.trf.xlu1  ;;  %9279 = vmatpush3.bf16.msra.mxu1 %v5687_v40 }
0x174e   :  { %5829 = vxpose.xlu0.c.b16.start.end [1/1] (short) (narrow) %v8308_v17, 48  ;;  %9306 = vmatprep.subr.bf16.mxu1 %v13657_v43  ;;  %v8315_v20 = vpack.c.bf16 %v5234_v57, %v5234_v57 }
0x1750   :  { %v5771_v19 = vsel %vm2587_vm3, %v8315_v20, 0 }
0x1751   :  { %v5235_v33 = vpop.trf.xlu1 }
0x1752   :  { %v8316_v7 = vpack.c.bf16 %v5235_v33, %v5235_v33 }
0x1754   :  { %v5855_v18 = vsel %vm2587_vm3, %v8316_v7, 0 }
0x1755   :  { %v5236_v21 = vpop.trf.xlu1 }
0x1756   :  { %v8317_v61 = vpack.c.bf16 %v5236_v21, %v5236_v21 }
0x1758   :  { %v5939_v41 = vsel %vm2587_vm3, %v8317_v61, 0 }
0x1759   :  { %v12526_v63 = vpop.trf.xlu1 }
0x175d   :  { %v12528_v9 = vpop.trf.xlu1 }
0x1761   :  { %v12530_v10 = vpop.trf.xlu1 }
0x1765   :  { %v12532_v36 = vpop.trf.xlu1 }
0x1766   :  { %13679 = vst [vmem:[#allocation11_spill] sm:$0xff] %v12532_v36 }
0x1769   :  { %v5585_v13 = vpop.trf.xlu1 }
0x176a   :  { %9267 = vmatmul.mubr.msk.bf16.vlgmr.msra.gmra.mrb[232].mxu0 %vm2577_vm4, %v5585_v13 }
0x176b   :  { %9270 = vmatprep.mubr.msk.bf16.mxu0 %vm10156_vm2, %v13657_v43  ;;  %9293 = vmatpush3.bf16.msra.mxu0 %v5771_v19 }
0x176c   :  { %9320 = vmatprep.subr.bf16.mxu0 %v13657_v43 }
0x176d   :  { %v5586_v25 = vpop.trf.xlu1 }
0x1771   :  { %v5587_v60 = vpop.trf.xlu1 }
0x1772   :  { %9271 = vmatmul.mubr.msk.bf16.gmra.mrb[236].mxu0 %vm2577_vm4, %v5586_v25 }
0x1773   :  { %9274 = vmatprep.mubr.msk.bf16.mxu0 %vm10156_vm2, %v13657_v43 }
0x177a   :  { %9275 = vmatmul.mubr.msk.bf16.gmra.mrb[240].mxu0 %vm2577_vm4, %v5587_v60 }
0x177b   :  { %9294 = vmatprep.mubr.msk.bf16.mxu0 %vm10156_vm2, %v13657_v43 }
0x17a2   :  { %v5669_v3 = vpop.trf.xlu0 }
0x17a3   :  { %9281 = vmatmul.mubr.msk.bf16.vlgmr.msra.gmra.mrb[196].mxu1 %vm2577_vm4, %v5669_v3 }
0x17a4   :  { %9307 = vmatpush3.bf16.msra.mxu1 %v5855_v18  ;;  %9284 = vmatprep.mubr.msk.bf16.mxu1 %vm10156_vm2, %v13657_v43 }
0x17a5   :  { %9334 = vmatprep.subr.bf16.mxu1 %v13657_v43 }
0x17a6   :  { %v5670_v37 = vpop.trf.xlu0 }
0x17aa   :  { %v5671_v26 = vpop.trf.xlu0 }
0x17ab   :  { %9285 = vmatmul.mubr.msk.bf16.gmra.mrb[200].mxu1 %vm2577_vm4, %v5670_v37 }
0x17ac   :  { %9288 = vmatprep.mubr.msk.bf16.mxu1 %vm10156_vm2, %v13657_v43 }
0x17ae   :  { %v5753_v22 = vpop.trf.xlu0  ;;  %v5921_v54 = vpop.trf.xlu1 }
0x17af   :  { %9295 = vmatmul.mubr.msk.bf16.vlgmr.msra.gmra.mrb[244].mxu0 %vm2577_vm4, %v5753_v22 }
0x17b0   :  { %9321 = vmatpush3.bf16.msra.mxu0 %v5939_v41  ;;  %9298 = vmatprep.mubr.msk.bf16.mxu0 %vm10156_vm2, %v13657_v43 }
0x17b1   :  { %9344 = vmatprep.subr.bf16.mxu0 %v13657_v43 }
0x17b2   :  { %v5754_v62 = vpop.trf.xlu0  ;;  %v5922_v11 = vpop.trf.xlu1 }
0x17b3   :  { %9289 = vmatmul.mubr.msk.bf16.gmra.mrb[204].mxu1 %vm2577_vm4, %v5671_v26 }
0x17b4   :  { %9308 = vmatprep.mubr.msk.bf16.mxu1 %vm10156_vm2, %v13657_v43 }
0x17b6   :  { %v5755_v31 = vpop.trf.xlu0  ;;  %v5923_v58 = vpop.trf.xlu1 }
0x17b7   :  { %9299 = vmatmul.mubr.msk.bf16.gmra.mrb[248].mxu0 %vm2577_vm4, %v5754_v62 }
0x17b8   :  { %9302 = vmatprep.mubr.msk.bf16.mxu0 %vm10156_vm2, %v13657_v43 }
0x17ba   :  { %v5837_v52 = vpop.trf.xlu0 }
0x17bb   :  { %9309 = vmatmul.mubr.msk.bf16.vlgmr.msra.gmra.mrb[208].mxu1 %vm2577_vm4, %v5837_v52 }
0x17bc   :  { %9312 = vmatprep.mubr.msk.bf16.mxu1 %vm10156_vm2, %v13657_v43 }
0x17be   :  { %v5838_v23 = vpop.trf.xlu0 }
0x17bf   :  { %9303 = vmatmul.mubr.msk.bf16.gmra.mrb[252].mxu0 %vm2577_vm4, %v5755_v31 }
0x17c0   :  { %9322 = vmatprep.mubr.msk.bf16.mxu0 %vm10156_vm2, %v13657_v43 }
0x17c2   :  { %v5839_v29 = vpop.trf.xlu0 }
0x17c3   :  { %9313 = vmatmul.mubr.msk.bf16.gmra.mrb[212].mxu1 %vm2577_vm4, %v5838_v23 }
0x17c4   :  { %9316 = vmatprep.mubr.msk.bf16.mxu1 %vm10156_vm2, %v13657_v43 }
0x17c7   :  { %9323 = vmatmul.mubr.msk.bf16.vlgmr.msra.gmra.mrb[0].mxu0 %vm2577_vm4, %v5921_v54 }
0x17c8   :  { %9326 = vmatprep.mubr.msk.bf16.mxu0 %vm10156_vm2, %v13657_v43 }
0x17cb   :  { %9317 = vmatmul.mubr.msk.bf16.gmra.mrb[216].mxu1 %vm2577_vm4, %v5839_v29 }
0x17cc   :  { %9340 = vmatprep.mubr.msk.bf16.mxu1 %vm10156_vm2, %v13657_v43 }
0x17cf   :  { %9327 = vmatmul.mubr.msk.bf16.gmra.mrb[4].mxu0 %vm2577_vm4, %v5922_v11 }
0x17d0   :  { %9330 = vmatprep.mubr.msk.bf16.mxu0 %vm10156_vm2, %v13657_v43 }
0x17d7   :  { %9331 = vmatmul.mubr.msk.bf16.gmra.mrb[8].mxu0 %vm2577_vm4, %v5923_v58 }
0x17d8   :  { %v5387_v8 = vpop.f32.mrb[172].mxu1  ;;  %9350 = vmatprep.mubr.msk.bf16.mxu0 %vm10156_vm2, %v13657_v43 }
0x17d9   :  { %v5997_v5 = vmul.f32 0.35355338, %v5387_v8  ;;  %v9226_v30 = vpop.f32.mrb[173].mxu1 }
0x17da   :  { %v5390_v51 = vpop.f32.mrb[174].mxu1 }
0x17db   :  { %v12586_v53 = vadd.f32 %v5997_v5, %v13680_v50  ;;  %v5998_v42 = vmul.f32 0.35355338, %v5390_v51  ;;  %v9227_v56 = vpop.f32.mrb[175].mxu1 }
0x17dd   :  { %v12589_v59 = vadd.f32 %v5998_v42, %v13680_v50  ;;  %v6077_v28 = vsel %vm3315_vm13, %v12586_v53, -inf }
0x17de   :  { %6078 = vmax.xlane.f32.xlu0 %v6077_v28 }
0x17df   :  { %v6080_v15 = vsel %vm3315_vm13, %v12589_v59, -inf }
0x17e0   :  { %v5395_v47 = vpop.f32.mrb[176].mxu1  ;;  %6081 = vmax.xlane.f32.xlu1 %v6080_v15 }
0x17e1   :  { %v5999_v6 = vmul.f32 0.35355338, %v5395_v47  ;;  %v9230_v14 = vpop.f32.mrb[177].mxu1 }
0x17e2   :  { %v5398_v55 = vpop.f32.mrb[178].mxu1 }
0x17e3   :  { %v12596_v1 = vadd.f32 %v5999_v6, %v13680_v50  ;;  %v9231_v49 = vpop.f32.mrb[179].mxu1  ;;  %v6000_v19 = vmul.f32 0.35355338, %v5398_v55 }
0x17e4   :  { %v5471_v2 = vpop.f32.mrb[220].mxu0 }
0x17e5   :  { %v6002_v17 = vmul.f32 0.35355338, %v5471_v2  ;;  %v6083_v45 = vsel %vm3315_vm13, %v12596_v1, -inf  ;;  %v9240_v40 = vpop.f32.mrb[221].mxu0  ;;  %v12609_v18 = vadd.f32 %v6000_v19, %v13680_v50 }
0x17e6   :  { %6084 = vmax.xlane.f32.xlu1 %v6083_v45  ;;  %v5474_v57 = vpop.f32.mrb[222].mxu0 }
0x17e7   :  { %v12601_v33 = vadd.f32 %v6002_v17, %v13680_v50  ;;  %v6003_v21 = vmul.f32 0.35355338, %v5474_v57  ;;  %v9241_v20 = vpop.f32.mrb[223].mxu0  ;;  %v6086_v29 = vsel %vm3315_vm13, %v12609_v18, -inf }
0x17e8   :  { %v5403_v13 = vpop.f32.mrb[180].mxu1 }
0x17e9   :  { %v12604_v25 = vadd.f32 %v6003_v21, %v13680_v50  ;;  %v6092_v60 = vsel %vm3315_vm13, %v12601_v33, -inf  ;;  %v9234_v7 = vpop.f32.mrb[181].mxu1  ;;  %v6001_v26 = vmul.f32 0.35355338, %v5403_v13 }
0x17ea   :  { %6093 = vmax.xlane.f32.xlu0 %v6092_v60  ;;  %v5406_v3 = vpop.f32.mrb[182].mxu1 }
0x17eb   :  { %v6095_v37 = vsel %vm3315_vm13, %v12604_v25, -inf  ;;  %v9235_v61 = vpop.f32.mrb[183].mxu1  ;;  %v12617_v23 = vadd.f32 %v6001_v26, %v13680_v50 }
0x17ec   :  { %v5479_v22 = vpop.f32.mrb[224].mxu0 }
0x17ed   :  { %v6004_v41 = vmul.f32 0.35355338, %v5479_v22  ;;  %v9244_v62 = vpop.f32.mrb[225].mxu0  ;;  %v6089_v28 = vsel %vm3315_vm13, %v12617_v23, -inf }
0x17ee   :  { %6096 = vmax.xlane.f32.xlu0 %v6095_v37  ;;  %v5482_v31 = vpop.f32.mrb[226].mxu0 }
0x17ef   :  { %v12614_v52 = vadd.f32 %v6004_v41, %v13680_v50  ;;  %v6005_v54 = vmul.f32 0.35355338, %v5482_v31  ;;  %v9245_v11 = vpop.f32.mrb[227].mxu0 }
0x17f0   :  { %v5555_v58 = vpop.f32.mrb[184].mxu1 }
0x17f1   :  { %v12622_v8 = vadd.f32 %v6005_v54, %v13680_v50  ;;  %v6098_v5 = vsel %vm3315_vm13, %v12614_v52, -inf  ;;  %v6007_v30 = vmul.f32 0.35355338, %v5555_v58  ;;  %v9254_v51 = vpop.f32.mrb[185].mxu1 }
0x17f2   :  { %6087 = vmax.xlane.f32.xlu0 %v6086_v29  ;;  %6099 = vmax.xlane.f32.xlu1 %v6098_v5  ;;  %v5558_v42 = vpop.f32.mrb[186].mxu1 }
0x17f3   :  { %v12627_v56 = vadd.f32 %v6007_v30, %v13680_v50  ;;  %v6101_v15 = vsel %vm3315_vm13, %v12622_v8, -inf  ;;  %v6008_v47 = vmul.f32 0.35355338, %v5558_v42  ;;  %v9255_v6 = vpop.f32.mrb[187].mxu1 }
0x17f4   :  { %v5487_v14 = vpop.f32.mrb[228].mxu0 }
0x17f5   :  { %v6006_v55 = vmul.f32 0.35355338, %v5487_v14  ;;  %v9248_v49 = vpop.f32.mrb[229].mxu0  ;;  %v12637_v45 = vadd.f32 %v6008_v47, %v13680_v50  ;;  %v6107_v40 = vsel %vm3315_vm13, %v12627_v56, -inf }
0x17f6   :  { %6090 = vmax.xlane.f32.xlu1 %v6089_v28  ;;  %6102 = vmax.xlane.f32.xlu0 %v6101_v15  ;;  %v5490_v2 = vpop.f32.mrb[230].mxu0 }
0x17f7   :  { %v12634_v17 = vadd.f32 %v6006_v55, %v13680_v50  ;;  %v9249_v57 = vpop.f32.mrb[231].mxu0  ;;  %v6110_v60 = vsel %vm3315_vm13, %v12637_v45, -inf }
0x17f8   :  { %v5563_v21 = vpop.f32.mrb[188].mxu1 }
0x17f9   :  { %v6104_v20 = vsel %vm3315_vm13, %v12634_v17, -inf  ;;  %v9258_v19 = vpop.f32.mrb[189].mxu1  ;;  %v6009_v22 = vmul.f32 0.35355338, %v5563_v21 }
0x17fa   :  { %6108 = vmax.xlane.f32.xlu1 %v6107_v40  ;;  %6105 = vmax.xlane.f32.xlu0 %v6104_v20  ;;  %v5566_v13 = vpop.f32.mrb[190].mxu1 }
0x17fb   :  { %v9259_v7 = vpop.f32.mrb[191].mxu1  ;;  %v6010_v54 = vmul.f32 0.35355338, %v5566_v13  ;;  %v12649_v5 = vadd.f32 %v6009_v22, %v13680_v50 }
0x17fd   :  { %v12655_v42 = vadd.f32 %v6010_v54, %v13680_v50  ;;  %v6113_v47 = vsel %vm3315_vm13, %v12649_v5, -inf }
0x17fe   :  { %6111 = vmax.xlane.f32.xlu0 %v6110_v60 }
0x17ff   :  { %v6116_v2 = vsel %vm3315_vm13, %v12655_v42, -inf }
0x1800   :  { %v5571_v3 = vpop.f32.mrb[192].mxu1 }
0x1801   :  { %v9262_v37 = vpop.f32.mrb[193].mxu1  ;;  %v6011_v6 = vmul.f32 0.35355338, %v5571_v3 }
0x1802   :  { %v5574_v26 = vpop.f32.mrb[194].mxu1 }
0x1803   :  { %v9263_v61 = vpop.f32.mrb[195].mxu1  ;;  %v12669_v20 = vadd.f32 %v6011_v6, %v13680_v50 }
0x1805   :  { %v6119_v3 = vsel %vm3315_vm13, %v12669_v20, -inf }
0x183d   :  { %v5639_v41 = vpop.f32.mrb[232].mxu0 }
0x183e   :  { %v6012_v62 = vmul.f32 0.35355338, %v5639_v41  ;;  %v9268_v31 = vpop.f32.mrb[233].mxu0 }
0x183f   :  { %v5642_v29 = vpop.f32.mrb[234].mxu0 }
0x1840   :  { %v12646_v11 = vadd.f32 %v6012_v62, %v13680_v50  ;;  %v6013_v58 = vmul.f32 0.35355338, %v5642_v29  ;;  %v9269_v30 = vpop.f32.mrb[235].mxu0 }
0x1842   :  { %v12652_v51 = vadd.f32 %v6013_v58, %v13680_v50  ;;  %v6122_v28 = vsel %vm3315_vm13, %v12646_v11, -inf }
0x1843   :  { %6123 = vmax.xlane.f32.xlu1 %v6122_v28 }
0x1844   :  { %v6125_v15 = vsel %vm3315_vm13, %v12652_v51, -inf }
0x1845   :  { %6126 = vmax.xlane.f32.xlu0 %v6125_v15  ;;  %v5647_v14 = vpop.f32.mrb[236].mxu0 }
0x1846   :  { %v6014_v55 = vmul.f32 0.35355338, %v5647_v14  ;;  %v9272_v49 = vpop.f32.mrb[237].mxu0 }
0x1847   :  { %6114 = vmax.xlane.f32.xlu1 %v6113_v47  ;;  %v5650_v40 = vpop.f32.mrb[238].mxu0 }
0x1848   :  { %v12666_v57 = vadd.f32 %v6014_v55, %v13680_v50  ;;  %v6015_v21 = vmul.f32 0.35355338, %v5650_v40  ;;  %v9273_v19 = vpop.f32.mrb[239].mxu0 }
0x1849   :  { %6117 = vmax.xlane.f32.xlu0 %v6116_v2 }
0x184a   :  { %v12672_v13 = vadd.f32 %v6015_v21, %v13680_v50  ;;  %v6128_v60 = vsel %vm3315_vm13, %v12666_v57, -inf }
0x184b   :  { %6129 = vmax.xlane.f32.xlu1 %v6128_v60 }
0x184c   :  { %v6131_v7 = vsel %vm3315_vm13, %v12672_v13, -inf }
0x184d   :  { %6132 = vmax.xlane.f32.xlu0 %v6131_v7  ;;  %v5655_v37 = vpop.f32.mrb[240].mxu0 }
0x184e   :  { %v6016_v26 = vmul.f32 0.35355338, %v5655_v37  ;;  %v9276_v61 = vpop.f32.mrb[241].mxu0 }
0x184f   :  { %6120 = vmax.xlane.f32.xlu1 %v6119_v3  ;;  %v5658_v22 = vpop.f32.mrb[242].mxu0 }
0x1850   :  { %v12681_v41 = vadd.f32 %v6016_v26, %v13680_v50  ;;  %v9277_v62 = vpop.f32.mrb[243].mxu0 }
0x1852   :  { %v6134_v31 = vsel %vm3315_vm13, %v12681_v41, -inf }
0x1853   :  { %6135 = vmax.xlane.f32.xlu0 %v6134_v31 }
0x1876   :  { %v5723_v54 = vpop.f32.mrb[196].mxu1 }
0x1877   :  { %v6017_v29 = vmul.f32 0.35355338, %v5723_v54  ;;  %v9282_v58 = vpop.f32.mrb[197].mxu1 }
0x1878   :  { %v5726_v30 = vpop.f32.mrb[198].mxu1 }
0x1879   :  { %v12686_v28 = vadd.f32 %v6017_v29, %v13680_v50  ;;  %v6018_v15 = vmul.f32 0.35355338, %v5726_v30  ;;  %v9283_v47 = vpop.f32.mrb[199].mxu1 }
0x187b   :  { %v12689_v6 = vadd.f32 %v6018_v15, %v13680_v50  ;;  %v6137_v14 = vsel %vm3315_vm13, %v12686_v28, -inf }
0x187c   :  { %6138 = vmax.xlane.f32.xlu1 %v6137_v14 }
0x187d   :  { %v6140_v55 = vsel %vm3315_vm13, %v12689_v6, -inf }
0x187e   :  { %v5731_v49 = vpop.f32.mrb[200].mxu1  ;;  %6141 = vmax.xlane.f32.xlu0 %v6140_v55 }
0x187f   :  { %v9286_v2 = vpop.f32.mrb[201].mxu1  ;;  %v6019_v60 = vmul.f32 0.35355338, %v5731_v49 }
0x1880   :  { %v5734_v40 = vpop.f32.mrb[202].mxu1 }
0x1881   :  { %v9287_v21 = vpop.f32.mrb[203].mxu1  ;;  %v6020_v26 = vmul.f32 0.35355338, %v5734_v40  ;;  %v12699_v54 = vadd.f32 %v6019_v60, %v13680_v50 }
0x1882   :  { %v5807_v19 = vpop.f32.mrb[244].mxu0 }
0x1883   :  { %v6022_v7 = vmul.f32 0.35355338, %v5807_v19  ;;  %v9296_v3 = vpop.f32.mrb[245].mxu0  ;;  %v12707_v47 = vadd.f32 %v6020_v26, %v13680_v50  ;;  %v6143_v19 = vsel %vm3315_vm13, %v12699_v54, -inf }
0x1884   :  { %v5810_v37 = vpop.f32.mrb[246].mxu0 }
0x1885   :  { %v12696_v61 = vadd.f32 %v6022_v7, %v13680_v50  ;;  %v6023_v22 = vmul.f32 0.35355338, %v5810_v37  ;;  %v9297_v62 = vpop.f32.mrb[247].mxu0  ;;  %v6079_v7 = vpop.xlane.xlu0 %6078 }
0x1886   :  { %v5739_v31 = vpop.f32.mrb[204].mxu1  ;;  %v6197_v24 = vsub.f32 %v12586_v53, %v6079_v7 }
0x1887   :  { %v12702_v29 = vadd.f32 %v6023_v22, %v13680_v50  ;;  %v9290_v58 = vpop.f32.mrb[205].mxu1  ;;  %v6152_v30 = vsel %vm3315_vm13, %v12696_v61, -inf  ;;  %v6021_v2 = vmul.f32 0.35355338, %v5739_v31  ;;  %v6146_v22 = vsel %vm3315_vm13, %v12707_v47, -inf }
0x1888   :  { %v5742_v15 = vpop.f32.mrb[206].mxu1  ;;  %6153 = vmax.xlane.f32.xlu1 %v6152_v30 }
0x1889   :  { %v9291_v14 = vpop.f32.mrb[207].mxu1  ;;  %v6155_v55 = vsel %vm3315_vm13, %v12702_v29, -inf  ;;  %v12719_v31 = vadd.f32 %v6021_v2, %v13680_v50 }
0x188a   :  { %6156 = vmax.xlane.f32.xlu0 %v6155_v55  ;;  %v5815_v49 = vpop.f32.mrb[248].mxu0 }
0x188b   :  { %v6024_v40 = vmul.f32 0.35355338, %v5815_v49  ;;  %v9300_v21 = vpop.f32.mrb[249].mxu0  ;;  %v6094_v49 = vpop.xlane.xlu0 %6093 }
0x188c   :  { %6144 = vmax.xlane.f32.xlu1 %v6143_v19  ;;  %v5818_v60 = vpop.f32.mrb[250].mxu0 }
0x188d   :  { %v12714_v3 = vadd.f32 %v6024_v40, %v13680_v50  ;;  %v6025_v37 = vmul.f32 0.35355338, %v5818_v60  ;;  %v9301_v26 = vpop.f32.mrb[251].mxu0 }
0x188e   :  { %6147 = vmax.xlane.f32.xlu0 %v6146_v22  ;;  %v5891_v62 = vpop.f32.mrb[208].mxu1  ;;  %v6149_v22 = vsel %vm3315_vm13, %v12719_v31, -inf }
0x188f   :  { %v12722_v58 = vadd.f32 %v6025_v37, %v13680_v50  ;;  %v6158_v30 = vsel %vm3315_vm13, %v12714_v3, -inf  ;;  %v6027_v15 = vmul.f32 0.35355338, %v5891_v62  ;;  %v9310_v14 = vpop.f32.mrb[209].mxu1  ;;  %v6097_v39 = vpop.xlane.xlu0 %6096 }
0x1890   :  { %6159 = vmax.xlane.f32.xlu1 %v6158_v30  ;;  %v5894_v55 = vpop.f32.mrb[210].mxu1 }
0x1891   :  { %v12727_v40 = vadd.f32 %v6027_v15, %v13680_v50  ;;  %v6161_v21 = vsel %vm3315_vm13, %v12722_v58, -inf  ;;  %v6028_v19 = vmul.f32 0.35355338, %v5894_v55  ;;  %v9311_v2 = vpop.f32.mrb[211].mxu1 }
0x1892   :  { %6162 = vmax.xlane.f32.xlu0 %v6161_v21  ;;  %v5823_v60 = vpop.f32.mrb[252].mxu0  ;;  %v6082_v2 = vpop.xlane.xlu1 %6081 }
0x1893   :  { %v6026_v37 = vmul.f32 0.35355338, %v5823_v60  ;;  %v9304_v26 = vpop.f32.mrb[253].mxu0  ;;  %v12737_v15 = vadd.f32 %v6028_v19, %v13680_v50  ;;  %v6167_v55 = vsel %vm3315_vm13, %v12727_v40, -inf  ;;  %v6198_v19 = vsub.f32 %v12589_v59, %v6082_v2  ;;  %v6088_v32 = vpop.xlane.xlu0 %6087 }
0x1894   :  { %6150 = vmax.xlane.f32.xlu1 %v6149_v22  ;;  %v5826_v62 = vpop.f32.mrb[254].mxu0  ;;  %v6202_v59 = vsub.f32 %v12601_v33, %v6094_v49 }
0x1895   :  { %v12734_v30 = vadd.f32 %v6026_v37, %v13680_v50  ;;  %v9305_v14 = vpop.f32.mrb[255].mxu0  ;;  %v6170_v37 = vsel %vm3315_vm13, %v12737_v15, -inf  ;;  %v6239_v12 = vmul.f32 1.442695, %v6198_v19 }
0x1896   :  { %v5899_v21 = vpop.f32.mrb[212].mxu1  ;;  %v6085_v0 = vpop.xlane.xlu1 %6084 }
0x1897   :  { %v6164_v60 = vsel %vm3315_vm13, %v12734_v30, -inf  ;;  %v9314_v26 = vpop.f32.mrb[213].mxu1  ;;  %v6029_v62 = vmul.f32 0.35355338, %v5899_v21  ;;  %9931 = vpow2.f32 %v6239_v12 }
0x1898   :  { %6168 = vmax.xlane.f32.xlu1 %v6167_v55  ;;  %6165 = vmax.xlane.f32.xlu0 %v6164_v60  ;;  %v5902_v22 = vpop.f32.mrb[214].mxu1 }
0x1899   :  { %v9315_v14 = vpop.f32.mrb[215].mxu1  ;;  %v12751_v21 = vadd.f32 %v6029_v62, %v13680_v50 }
0x189a   :  { %v5975_v48 = vpop.f32.mrb[0].mxu0  ;;  %v6030_v14 = vmul.f32 0.35355338, %v5902_v22 }
0x189b   :  { %v6032_v35 = vmul.f32 0.35355338, %v5975_v48  ;;  %v9324_v46 = vpop.f32.mrb[1].mxu0  ;;  %v6100_v48 = vpop.xlane.xlu1 %6099  ;;  %v6173_v49 = vsel %vm3315_vm13, %v12751_v21, -inf }
0x189c   :  { %6171 = vmax.xlane.f32.xlu0 %v6170_v37  ;;  %v5978_v27 = vpop.f32.mrb[2].mxu0  ;;  %v6199_v37 = vsub.f32 %v12596_v1, %v6085_v0  ;;  %v6103_v0 = vpop.xlane.xlu0 %6102 }
0x189d   :  { %v12748_v55 = vadd.f32 %v6032_v35, %v13680_v50  ;;  %v6033_v60 = vmul.f32 0.35355338, %v5978_v27  ;;  %v9325_v26 = vpop.f32.mrb[3].mxu0  ;;  %v6237_v35 = vmul.f32 1.442695, %v6197_v24  ;;  %v12761_v27 = vadd.f32 %v6030_v14, %v13680_v50 }
0x189e   :  { %v5907_v2 = vpop.f32.mrb[216].mxu1  ;;  %v6203_v26 = vsub.f32 %v12604_v25, %v6097_v39  ;;  %v6241_v14 = vmul.f32 1.442695, %v6199_v37 }
0x189f   :  { %v12755_v46 = vadd.f32 %v6033_v60, %v13680_v50  ;;  %v6182_v53 = vsel %vm3315_vm13, %v12748_v55, -inf  ;;  %v9318_v7 = vpop.f32.mrb[217].mxu1  ;;  %v6031_v22 = vmul.f32 0.35355338, %v5907_v2  ;;  %v6247_v60 = vmul.f32 1.442695, %v6202_v59  ;;  %v6091_v38 = vpop.xlane.xlu1 %6090 }
0x18a0   :  { %6183 = vmax.xlane.f32.xlu1 %v6182_v53  ;;  %v5910_v62 = vpop.f32.mrb[218].mxu1  ;;  %9933 = vpow2.f32 %v6237_v35  ;;  %v6200_v7 = vsub.f32 %v12609_v18, %v6088_v32  ;;  %v6176_v39 = vsel %vm3315_vm13, %v12761_v27, -inf  ;;  %v6249_v25 = vmul.f32 1.442695, %v6203_v26 }
0x18a1   :  { %v6185_v33 = vsel %vm3315_vm13, %v12755_v46, -inf  ;;  %v9319_v19 = vpop.f32.mrb[219].mxu1  ;;  %v12773_v59 = vadd.f32 %v6031_v22, %v13680_v50  ;;  %9935 = vpow2.f32 %v6247_v60  ;;  %v6204_v35 = vsub.f32 %v12614_v52, %v6100_v48 }
0x18a2   :  { %6186 = vmax.xlane.f32.xlu0 %v6185_v33  ;;  %v5983_v24 = vpop.f32.mrb[4].mxu0  ;;  %9937 = vpow2.f32 %v6241_v14  ;;  %v6243_v37 = vmul.f32 1.442695, %v6200_v7  ;;  %v6205_v33 = vsub.f32 %v12622_v8, %v6103_v0  ;;  %v6201_v48 = vsub.f32 %v12617_v23, %v6091_v38 }
0x18a3   :  { %v6034_v1 = vmul.f32 0.35355338, %v5983_v24  ;;  %v9328_v53 = vpop.f32.mrb[5].mxu0  ;;  %v6179_v19 = vsel %vm3315_vm13, %v12773_v59, -inf  ;;  %9939 = vpow2.f32 %v6249_v25  ;;  %v6251_v52 = vmul.f32 1.442695, %v6204_v35  ;;  %v6109_v26 = vpop.xlane.xlu1 %6108 }
0x18a4   :  { %6174 = vmax.xlane.f32.xlu1 %v6173_v49  ;;  %v5986_v62 = vpop.f32.mrb[6].mxu0  ;;  %v6106_v49 = vpop.xlane.xlu0 %6105  ;;  %9941 = vpow2.f32 %v6243_v37  ;;  %v6253_v0 = vmul.f32 1.442695, %v6205_v33  ;;  %v6245_v38 = vmul.f32 1.442695, %v6201_v48  ;;  %v6207_v23 = vsub.f32 %v12627_v56, %v6109_v26 }
0x18a5   :  { %v12770_v36 = vadd.f32 %v6034_v1, %v13680_v50  ;;  %v6035_v2 = vmul.f32 0.35355338, %v5986_v62  ;;  %v9329_v12 = vpop.f32.mrb[7].mxu0  ;;  %v12789_v53 = vpop.eup %9931  ;;  %v6206_v14 = vsub.f32 %v12634_v17, %v6106_v49  ;;  %9943 = vpow2.f32 %v6251_v52 }
0x18a6   :  { %6177 = vmax.xlane.f32.xlu0 %v6176_v39  ;;  %v6320_v39 = vsel %vm3315_vm13, %v12789_v53, 0.0  ;;  %9945 = vpow2.f32 %v6253_v0 }
0x18a7   :  { %v12779_v32 = vadd.f32 %v6035_v2, %v13680_v50  ;;  %v6188_v18 = vsel %vm3315_vm13, %v12770_v36, -inf  ;;  %9947 = vpow2.f32 %v6245_v38 }
0x18a8   :  { %6189 = vmax.xlane.f32.xlu1 %v6188_v18  ;;  %v6112_v12 = vpop.xlane.xlu0 %6111  ;;  %v6257_v18 = vmul.f32 1.442695, %v6207_v23 }
0x18a9   :  { %v6191_v22 = vsel %vm3315_vm13, %v12779_v32, -inf  ;;  %v6208_v37 = vsub.f32 %v12637_v45, %v6112_v12 }
0x18aa   :  { %6192 = vmax.xlane.f32.xlu0 %v6191_v22  ;;  %v5991_v60 = vpop.f32.mrb[8].mxu0  ;;  %v12795_v2 = vpop.eup %9933 }
0x18ab   :  { %v6036_v24 = vmul.f32 0.35355338, %v5991_v60  ;;  %v9332_v1 = vpop.f32.mrb[9].mxu0  ;;  %v12802_v35 = vpop.eup %9935  ;;  %v6317_v33 = vsel %vm3315_vm13, %v12795_v2, 0.0  ;;  %v6259_v22 = vmul.f32 1.442695, %v6208_v37 }
0x18ac   :  { %6180 = vmax.xlane.f32.xlu1 %v6179_v19  ;;  %v5994_v8 = vpop.f32.mrb[10].mxu0  ;;  %v12804_v17 = vpop.eup %9937  ;;  %v6332_v56 = vsel %vm3315_vm13, %v12802_v35, 0.0 }
0x18ad   :  { %v12793_v7 = vadd.f32 %v6036_v24, %v13680_v50  ;;  %v9333_v62 = vpop.f32.mrb[11].mxu0  ;;  %v6255_v50 = vmul.f32 1.442695, %v6206_v14  ;;  %v12811_v49 = vpop.eup %9939  ;;  %v6323_v52 = vsel %vm3315_vm13, %v12804_v17, 0.0 }
0x18ae   :  { %v12813_v19 = vpop.eup %9941  ;;  %v6335_v45 = vsel %vm3315_vm13, %v12811_v49, 0.0 }
0x18af   :  { %v6194_v25 = vsel %vm3315_vm13, %v12793_v7, -inf  ;;  %9949 = vpow2.f32 %v6255_v50  ;;  %v12819_v48 = vpop.eup %9943  ;;  %v6326_v24 = vsel %vm3315_vm13, %v12813_v19, 0.0 }
0x18b0   :  { %6321 = vadd.xlane.f32.xlu1 %v6320_v39  ;;  %6195 = vmax.xlane.f32.xlu0 %v6194_v25  ;;  %9951 = vpow2.f32 %v6257_v18  ;;  %v12821_v60 = vpop.eup %9945  ;;  %v6338_v26 = vsel %vm3315_vm13, %v12819_v48, 0.0 }
0x18b1   :  { %9953 = vpow2.f32 %v6259_v22  ;;  %v12827_v1 = vpop.eup %9947  ;;  %v6341_v14 = vsel %vm3315_vm13, %v12821_v60, 0.0 }
0x18b2   :  { %v6329_v0 = vsel %vm3315_vm13, %v12827_v1, 0.0 }
0x18b4   :  { %6333 = vadd.xlane.f32.xlu1 %v6332_v56  ;;  %6318 = vadd.xlane.f32.xlu0 %v6317_v33 }
0x18b8   :  { %6324 = vadd.xlane.f32.xlu1 %v6323_v52  ;;  %6336 = vadd.xlane.f32.xlu0 %v6335_v45 }
0x18b9   :  { %v12829_v8 = vpop.eup %9949 }
0x18ba   :  { %v12835_v62 = vpop.eup %9951  ;;  %v6344_v23 = vsel %vm3315_vm13, %v12829_v8, 0.0 }
0x18bb   :  { %v6347_v38 = vsel %vm3315_vm13, %v12835_v62, 0.0  ;;  %v12841_v12 = vpop.eup %9953 }
0x18bc   :  { %6339 = vadd.xlane.f32.xlu1 %v6338_v26  ;;  %6327 = vadd.xlane.f32.xlu0 %v6326_v24  ;;  %v6350_v39 = vsel %vm3315_vm13, %v12841_v12, 0.0 }
0x18c0   :  { %6330 = vadd.xlane.f32.xlu1 %v6329_v0  ;;  %6342 = vadd.xlane.f32.xlu0 %v6341_v14 }
0x18c4   :  { %6348 = vadd.xlane.f32.xlu1 %v6347_v38  ;;  %6345 = vadd.xlane.f32.xlu0 %v6344_v23 }
0x18c8   :  { %6351 = vadd.xlane.f32.xlu0 %v6350_v39 }
0x18d0   :  { %v6124_v25 = vpop.xlane.xlu1 %6123 }
0x18d1   :  { %v6212_v50 = vsub.f32 %v12646_v11, %v6124_v25 }
0x18d2   :  { %v6127_v18 = vpop.xlane.xlu0 %6126 }
0x18d3   :  { %v6267_v37 = vmul.f32 1.442695, %v6212_v50  ;;  %v6213_v56 = vsub.f32 %v12652_v51, %v6127_v18 }
0x18d4   :  { %v6115_v33 = vpop.xlane.xlu1 %6114 }
0x18d5   :  { %9955 = vpow2.f32 %v6267_v37  ;;  %v6269_v22 = vmul.f32 1.442695, %v6213_v56  ;;  %v6209_v52 = vsub.f32 %v12649_v5, %v6115_v33 }
0x18d6   :  { %v6118_v45 = vpop.xlane.xlu0 %6117 }
0x18d7   :  { %9957 = vpow2.f32 %v6269_v22  ;;  %v6261_v26 = vmul.f32 1.442695, %v6209_v52  ;;  %v6210_v24 = vsub.f32 %v12655_v42, %v6118_v45 }
0x18d8   :  { %v6130_v0 = vpop.xlane.xlu1 %6129 }
0x18d9   :  { %9959 = vpow2.f32 %v6261_v26  ;;  %v6263_v14 = vmul.f32 1.442695, %v6210_v24  ;;  %v6214_v38 = vsub.f32 %v12666_v57, %v6130_v0 }
0x18da   :  { %v6133_v11 = vpop.xlane.xlu0 %6132 }
0x18db   :  { %9961 = vpow2.f32 %v6263_v14  ;;  %v6271_v23 = vmul.f32 1.442695, %v6214_v38  ;;  %v6215_v51 = vsub.f32 %v12672_v13, %v6133_v11 }
0x18dc   :  { %v6121_v39 = vpop.xlane.xlu1 %6120 }
0x18dd   :  { %9963 = vpow2.f32 %v6271_v23  ;;  %v6273_v25 = vmul.f32 1.442695, %v6215_v51  ;;  %v6211_v5 = vsub.f32 %v12669_v20, %v6121_v39 }
0x18df   :  { %v12852_v50 = vpop.eup %9955  ;;  %9965 = vpow2.f32 %v6273_v25  ;;  %v6265_v18 = vmul.f32 1.442695, %v6211_v5 }
0x18e0   :  { %v6136_v42 = vpop.xlane.xlu0 %6135  ;;  %v6362_v37 = vsel %vm3315_vm13, %v12852_v50, 0.0 }
0x18e1   :  { %v12856_v56 = vpop.eup %9957  ;;  %9967 = vpow2.f32 %v6265_v18  ;;  %v6216_v57 = vsub.f32 %v12681_v41, %v6136_v42  ;;  %6363 = vadd.xlane.f32.xlu1 %v6362_v37 }
0x18e2   :  { %v6365_v13 = vsel %vm3315_vm13, %v12856_v56, 0.0 }
0x18e3   :  { %v12861_v33 = vpop.eup %9959  ;;  %v6275_v20 = vmul.f32 1.442695, %v6216_v57  ;;  %6366 = vadd.xlane.f32.xlu0 %v6365_v13 }
0x18e4   :  { %v6353_v22 = vsel %vm3315_vm13, %v12861_v33, 0.0 }
0x18e5   :  { %v12865_v52 = vpop.eup %9961  ;;  %9969 = vpow2.f32 %v6275_v20  ;;  %6354 = vadd.xlane.f32.xlu1 %v6353_v22 }
0x18e6   :  { %v6356_v45 = vsel %vm3315_vm13, %v12865_v52, 0.0 }
0x18e7   :  { %v12869_v26 = vpop.eup %9963  ;;  %6357 = vadd.xlane.f32.xlu0 %v6356_v45 }
0x18e8   :  { %v6368_v41 = vsel %vm3315_vm13, %v12869_v26, 0.0 }
0x18e9   :  { %v12873_v24 = vpop.eup %9965  ;;  %6369 = vadd.xlane.f32.xlu1 %v6368_v41 }
0x18ea   :  { %v6371_v0 = vsel %vm3315_vm13, %v12873_v24, 0.0 }
0x18eb   :  { %v12877_v14 = vpop.eup %9967  ;;  %6372 = vadd.xlane.f32.xlu0 %v6371_v0 }
0x18ec   :  { %v6359_v38 = vsel %vm3315_vm13, %v12877_v14, 0.0 }
0x18ed   :  { %6360 = vadd.xlane.f32.xlu1 %v6359_v38 }
0x18ef   :  { %v12881_v11 = vpop.eup %9969 }
0x18f0   :  { %v6374_v23 = vsel %vm3315_vm13, %v12881_v11, 0.0 }
0x18f1   :  { %6375 = vadd.xlane.f32.xlu0 %v6374_v23 }
0x1909   :  { %v6139_v51 = vpop.xlane.xlu1 %6138 }
0x190a   :  { %v6217_v39 = vsub.f32 %v12686_v28, %v6139_v51 }
0x190b   :  { %v6142_v25 = vpop.xlane.xlu0 %6141 }
0x190c   :  { %v6277_v5 = vmul.f32 1.442695, %v6217_v39  ;;  %v6218_v18 = vsub.f32 %v12689_v6, %v6142_v25 }
0x190e   :  { %9971 = vpow2.f32 %v6277_v5  ;;  %v6279_v42 = vmul.f32 1.442695, %v6218_v18 }
0x1910   :  { %9973 = vpow2.f32 %v6279_v42 }
0x1915   :  { %v6154_v37 = vpop.xlane.xlu1 %6153 }
0x1916   :  { %v6222_v57 = vsub.f32 %v12696_v61, %v6154_v37 }
0x1917   :  { %v6157_v13 = vpop.xlane.xlu0 %6156 }
0x1918   :  { %v12888_v20 = vpop.eup %9971  ;;  %v6287_v22 = vmul.f32 1.442695, %v6222_v57  ;;  %v6223_v45 = vsub.f32 %v12702_v29, %v6157_v13 }
0x1919   :  { %v6145_v41 = vpop.xlane.xlu1 %6144  ;;  %v6377_v28 = vsel %vm3315_vm13, %v12888_v20, 0.0 }
0x191a   :  { %v12893_v0 = vpop.eup %9973  ;;  %9975 = vpow2.f32 %v6287_v22  ;;  %v6289_v6 = vmul.f32 1.442695, %v6223_v45  ;;  %v6219_v38 = vsub.f32 %v12699_v54, %v6145_v41  ;;  %6378 = vadd.xlane.f32.xlu1 %v6377_v28 }
0x191b   :  { %v6148_v23 = vpop.xlane.xlu0 %6147  ;;  %v6380_v61 = vsel %vm3315_vm13, %v12893_v0, 0.0 }
0x191c   :  { %9977 = vpow2.f32 %v6289_v6  ;;  %v6281_v51 = vmul.f32 1.442695, %v6219_v38  ;;  %v6220_v39 = vsub.f32 %v12707_v47, %v6148_v23  ;;  %6381 = vadd.xlane.f32.xlu0 %v6380_v61 }
0x191d   :  { %v6160_v29 = vpop.xlane.xlu1 %6159 }
0x191e   :  { %9979 = vpow2.f32 %v6281_v51  ;;  %v6283_v25 = vmul.f32 1.442695, %v6220_v39  ;;  %v6224_v5 = vsub.f32 %v12714_v3, %v6160_v29 }
0x191f   :  { %v6163_v18 = vpop.xlane.xlu0 %6162 }
0x1920   :  { %9981 = vpow2.f32 %v6283_v25  ;;  %v6291_v42 = vmul.f32 1.442695, %v6224_v5  ;;  %v6225_v54 = vsub.f32 %v12722_v58, %v6163_v18 }
0x1921   :  { %v6151_v37 = vpop.xlane.xlu1 %6150 }
0x1922   :  { %9983 = vpow2.f32 %v6291_v42  ;;  %v6293_v57 = vmul.f32 1.442695, %v6225_v54  ;;  %v6221_v13 = vsub.f32 %v12719_v31, %v6151_v37 }
0x1924   :  { %v12902_v22 = vpop.eup %9975  ;;  %9985 = vpow2.f32 %v6293_v57  ;;  %v6285_v47 = vmul.f32 1.442695, %v6221_v13 }
0x1925   :  { %v6169_v45 = vpop.xlane.xlu1 %6168  ;;  %v6166_v41 = vpop.xlane.xlu0 %6165  ;;  %v6392_v28 = vsel %vm3315_vm13, %v12902_v22, 0.0 }
0x1926   :  { %v12906_v3 = vpop.eup %9977  ;;  %9987 = vpow2.f32 %v6285_v47  ;;  %v6227_v6 = vsub.f32 %v12727_v40, %v6169_v45  ;;  %v6226_v58 = vsub.f32 %v12734_v30, %v6166_v41  ;;  %6393 = vadd.xlane.f32.xlu1 %v6392_v28 }
0x1927   :  { %v6395_v31 = vsel %vm3315_vm13, %v12906_v3, 0.0 }
0x1928   :  { %v12912_v38 = vpop.eup %9979  ;;  %v6297_v23 = vmul.f32 1.442695, %v6227_v6  ;;  %v6295_v61 = vmul.f32 1.442695, %v6226_v58  ;;  %6396 = vadd.xlane.f32.xlu0 %v6395_v31 }
0x1929   :  { %v6172_v51 = vpop.xlane.xlu0 %6171  ;;  %v6383_v39 = vsel %vm3315_vm13, %v12912_v38, 0.0 }
0x192a   :  { %v12916_v29 = vpop.eup %9981  ;;  %9989 = vpow2.f32 %v6297_v23  ;;  %v6228_v40 = vsub.f32 %v12737_v15, %v6172_v51  ;;  %6384 = vadd.xlane.f32.xlu1 %v6383_v39 }
0x192b   :  { %9991 = vpow2.f32 %v6295_v61  ;;  %v6386_v30 = vsel %vm3315_vm13, %v12916_v29, 0.0 }
0x192c   :  { %v12921_v25 = vpop.eup %9983  ;;  %v6299_v5 = vmul.f32 1.442695, %v6228_v40  ;;  %6387 = vadd.xlane.f32.xlu0 %v6386_v30 }
0x192d   :  { %v6184_v18 = vpop.xlane.xlu1 %6183  ;;  %v6398_v42 = vsel %vm3315_vm13, %v12921_v25, 0.0 }
0x192e   :  { %v12925_v54 = vpop.eup %9985  ;;  %9993 = vpow2.f32 %v6299_v5  ;;  %v6232_v37 = vsub.f32 %v12748_v55, %v6184_v18  ;;  %6399 = vadd.xlane.f32.xlu1 %v6398_v42 }
0x192f   :  { %v6187_v15 = vpop.xlane.xlu0 %6186  ;;  %v6401_v57 = vsel %vm3315_vm13, %v12925_v54, 0.0 }
0x1930   :  { %v12930_v13 = vpop.eup %9987  ;;  %v6307_v47 = vmul.f32 1.442695, %v6232_v37  ;;  %v6233_v45 = vsub.f32 %v12755_v46, %v6187_v15  ;;  %6402 = vadd.xlane.f32.xlu0 %v6401_v57 }
0x1931   :  { %v6175_v41 = vpop.xlane.xlu1 %6174  ;;  %v6389_v28 = vsel %vm3315_vm13, %v12930_v13, 0.0 }
0x1932   :  { %9995 = vpow2.f32 %v6307_v47  ;;  %v6309_v6 = vmul.f32 1.442695, %v6233_v45  ;;  %v6229_v58 = vsub.f32 %v12751_v21, %v6175_v41  ;;  %6390 = vadd.xlane.f32.xlu1 %v6389_v28 }
0x1933   :  { %v6178_v55 = vpop.xlane.xlu0 %6177 }
0x1934   :  { %v12936_v31 = vpop.eup %9989  ;;  %9997 = vpow2.f32 %v6309_v6  ;;  %v6301_v23 = vmul.f32 1.442695, %v6229_v58  ;;  %v6230_v61 = vsub.f32 %v12761_v27, %v6178_v55 }
0x1935   :  { %v12939_v51 = vpop.eup %9991  ;;  %v6190_v46 = vpop.xlane.xlu1 %6189  ;;  %v6407_v39 = vsel %vm3315_vm13, %v12936_v31, 0.0 }
0x1936   :  { %9999 = vpow2.f32 %v6301_v23  ;;  %v6303_v40 = vmul.f32 1.442695, %v6230_v61  ;;  %v6234_v30 = vsub.f32 %v12770_v36, %v6190_v46  ;;  %6408 = vadd.xlane.f32.xlu1 %v6407_v39  ;;  %v6404_v21 = vsel %vm3315_vm13, %v12939_v51, 0.0 }
0x1937   :  { %6405 = vadd.xlane.f32.xlu0 %v6404_v21  ;;  %v6193_v5 = vpop.xlane.xlu0 %6192 }
0x1938   :  { %v12946_v18 = vpop.eup %9993  ;;  %10001 = vpow2.f32 %v6303_v40  ;;  %v6311_v27 = vmul.f32 1.442695, %v6234_v30  ;;  %v6235_v42 = vsub.f32 %v12779_v32, %v6193_v5 }
0x1939   :  { %v6181_v37 = vpop.xlane.xlu1 %6180  ;;  %v6410_v15 = vsel %vm3315_vm13, %v12946_v18, 0.0 }
0x193a   :  { %10003 = vpow2.f32 %v6311_v27  ;;  %v6313_v57 = vmul.f32 1.442695, %v6235_v42  ;;  %v6231_v36 = vsub.f32 %v12773_v59, %v6181_v37 }
0x193b   :  { %6411 = vadd.xlane.f32.xlu0 %v6410_v15 }
0x193c   :  { %v12952_v47 = vpop.eup %9995  ;;  %10005 = vpow2.f32 %v6313_v57  ;;  %v6305_v45 = vmul.f32 1.442695, %v6231_v36 }
0x193d   :  { %v6322_v41 = vpop.xlane.xlu1 %6321  ;;  %v6196_v28 = vpop.xlane.xlu0 %6195  ;;  %v6422_v6 = vsel %vm3315_vm13, %v12952_v47, 0.0 }
0x193e   :  { %v12956_v58 = vpop.eup %9997  ;;  %10007 = vpow2.f32 %v6305_v45  ;;  %v6236_v32 = vsub.f32 %v12793_v7, %v6196_v28  ;;  %6423 = vadd.xlane.f32.xlu1 %v6422_v6 }
0x193f   :  { %v6425_v55 = vsel %vm3315_vm13, %v12956_v58, 0.0  ;;  %10009 = vrcp.f32 %v6322_v41 }
0x1940   :  { %v12961_v59 = vpop.eup %9999  ;;  %v6315_v23 = vmul.f32 1.442695, %v6236_v32  ;;  %6426 = vadd.xlane.f32.xlu0 %v6425_v55 }
0x1941   :  { %v6334_v61 = vpop.xlane.xlu1 %6333  ;;  %v6319_v46 = vpop.xlane.xlu0 %6318  ;;  %v6413_v39 = vsel %vm3315_vm13, %v12961_v59, 0.0 }
0x1942   :  { %v12965_v40 = vpop.eup %10001  ;;  %10011 = vpow2.f32 %v6315_v23  ;;  %6414 = vadd.xlane.f32.xlu1 %v6413_v39 }
0x1943   :  { %v6416_v7 = vsel %vm3315_vm13, %v12965_v40, 0.0  ;;  %10013 = vrcp.f32 %v6319_v46 }
0x1944   :  { %v12969_v30 = vpop.eup %10003  ;;  %6417 = vadd.xlane.f32.xlu0 %v6416_v7  ;;  %10015 = vrcp.f32 %v6334_v61 }
0x1945   :  { %v6325_v21 = vpop.xlane.xlu1 %6324  ;;  %v6337_v5 = vpop.xlane.xlu0 %6336  ;;  %v6428_v27 = vsel %vm3315_vm13, %v12969_v30, 0.0 }
0x1946   :  { %v12973_v42 = vpop.eup %10005  ;;  %6429 = vadd.xlane.f32.xlu1 %v6428_v27  ;;  %10017 = vrcp.f32 %v6337_v5 }
0x1947   :  { %v6431_v37 = vsel %vm3315_vm13, %v12973_v42, 0.0  ;;  %10019 = vrcp.f32 %v6325_v21 }
0x1948   :  { %v12977_v15 = vpop.eup %10007  ;;  %6432 = vadd.xlane.f32.xlu0 %v6431_v37 }
0x1949   :  { %v6340_v57 = vpop.xlane.xlu1 %6339  ;;  %v6328_v36 = vpop.xlane.xlu0 %6327  ;;  %v6419_v45 = vsel %vm3315_vm13, %v12977_v15, 0.0 }
0x194a   :  { %6420 = vadd.xlane.f32.xlu1 %v6419_v45  ;;  %v10010_v41 = vpop.eup %10009  ;;  %10021 = vrcp.f32 %v6328_v36 }
0x194b   :  { %10023 = vrcp.f32 %v6340_v57  ;;  %v6478_v39 = vmul.f32 %v10010_v41, %v12789_v53 }
0x194c   :  { %v12981_v28 = vpop.eup %10011 }
0x194d   :  { %v6331_v6 = vpop.xlane.xlu1 %6330  ;;  %v6343_v32 = vpop.xlane.xlu0 %6342  ;;  %v6434_v55 = vsel %vm3315_vm13, %v12981_v28, 0.0 }
0x194e   :  { %v10014_v23 = vpop.eup %10013  ;;  %10025 = vrcp.f32 %v6331_v6  ;;  %6435 = vadd.xlane.f32.xlu0 %v6434_v55 }
0x194f   :  { %v10016_v61 = vpop.eup %10015  ;;  %10027 = vrcp.f32 %v6343_v32  ;;  %v6477_v46 = vmul.f32 %v10014_v23, %v12795_v2 }
0x1950   :  { %v10018_v7 = vpop.eup %10017  ;;  %v6482_v27 = vmul.f32 %v10016_v61, %v12802_v35 }
0x1951   :  { %v6346_v21 = vpop.xlane.xlu0 %6345  ;;  %v6517_v5 = vpack.c.bf16 %v6478_v39, %v6477_v46  ;;  %v6483_v37 = vmul.f32 %v10018_v7, %v12811_v49  ;;  %v10020_v57 = vpop.eup %10019 }
0x1952   :  { %10029 = vrcp.f32 %v6346_v21  ;;  %v6349_v55 = vpop.xlane.xlu1 %6348  ;;  %v6479_v2 = vmul.f32 %v10020_v57, %v12804_v17 }
0x1953   :  { %v6545_v36 = vsel %vm3315_vm13, %v6517_v5, 0  ;;  %v6520_v45 = vpack.c.bf16 %v6483_v37, %v6482_v27 }
0x1954   :  { %9335 = vmatpush3.bf16.xpose.msra.mxu1 %v6545_v36  ;;  %v10022_v6 = vpop.eup %10021 }
0x1955   :  { %v6352_v32 = vpop.xlane.xlu0 %6351  ;;  %9336 = vmatprep.subr.bf16.mxu1 %v13657_v43  ;;  %v6597_v53 = vsel %vm3315_vm13, %v6520_v45, 0  ;;  %v6480_v35 = vmul.f32 %v10022_v6, %v12813_v19  ;;  %v10024_v41 = vpop.eup %10023 }
0x1956   :  { %10031 = vrcp.f32 %v6352_v32  ;;  %9345 = vmatpush3.bf16.xpose.msra.mxu0 %v6597_v53  ;;  %v6484_v39 = vmul.f32 %v10024_v41, %v12819_v48 }
0x1957   :  { %10033 = vrcp.f32 %v6349_v55  ;;  %v6518_v23 = vpack.c.bf16 %v6480_v35, %v6479_v2  ;;  %9346 = vmatprep.subr.bf16.mxu0 %v13657_v43  ;;  %v8318_v55 = vpack.c.bf16 %v12485_v44, %v12485_v44 }
0x1958   :  { %v10026_v49 = vpop.eup %10025 }
0x1959   :  { %v10028_v61 = vpop.eup %10027  ;;  %v6548_v46 = vsel %vm3315_vm13, %v6518_v23, 0  ;;  %v6481_v21 = vmul.f32 %v10026_v49, %v12827_v1 }
0x195a   :  { %v6485_v7 = vmul.f32 %v10028_v61, %v12821_v60 }
0x195b   :  { %v6519_v37 = vpack.c.bf16 %v6481_v21, %v6481_v21 }
0x195c   :  { %9337 = vmatpush3.bf16.xpose.msra.mxu1 %v6548_v46  ;;  %v6521_v17 = vpack.c.bf16 %v6485_v7, %v6484_v39  ;;  %v10030_v5 = vpop.eup %10029 }
0x195d   :  { %9338 = vmatprep.subr.bf16.mxu1 %v13657_v43  ;;  %v6486_v27 = vmul.f32 %v10030_v5, %v12829_v8  ;;  %v6551_v60 = vsel %vm3315_vm13, %v6519_v37, 0 }
0x195e   :  { %v6600_v19 = vsel %vm3315_vm13, %v6521_v17, 0 }
0x195f   :  { %9347 = vmatpush3.bf16.xpose.msra.mxu0 %v6600_v19  ;;  %v6522_v48 = vpack.c.bf16 %v6486_v27, %v6486_v27 }
0x1960   :  { %v10032_v57 = vpop.eup %10031  ;;  %9348 = vmatprep.subr.bf16.mxu0 %v13657_v43 }
0x1961   :  { %v10034_v36 = vpop.eup %10033  ;;  %v6488_v1 = vmul.f32 %v10032_v57, %v12841_v12  ;;  %v6603_v6 = vsel %vm3315_vm13, %v6522_v48, 0  ;;  %v8319_v12 = vpack.c.bf16 %v12492_v16, %v12492_v16 }
0x1962   :  { %v6487_v45 = vmul.f32 %v10034_v36, %v12835_v62 }
0x1964   :  { %9339 = vmatpush3.bf16.xpose.msra.mxu1 %v6551_v60  ;;  %v6523_v8 = vpack.c.bf16 %v6488_v1, %v6487_v45 }
0x1965   :  { %9354 = vmatprep.subr.bf16.mxu1 %v13657_v43 }
0x1966   :  { %v6649_v32 = vsel %vm3315_vm13, %v6523_v8, 0 }
0x1967   :  { %9349 = vmatpush3.bf16.xpose.msra.mxu0 %v6603_v6 }
0x1968   :  { %9364 = vmatprep.subr.bf16.mxu0 %v13657_v43 }
0x196b   :  { %9341 = vmatmul.mubr.msk.bf16.vlgmr.msra.gmra.mrb[220].mxu1 %vm3315_vm13, %v8318_v55 }
0x196c   :  { %9355 = vmatpush3.bf16.xpose.msra.mxu1 %v6649_v32  ;;  %9360 = vmatprep.mubr.msk.bf16.mxu1 %vm10156_vm2, %v13657_v43 }
0x196d   :  { %9356 = vmatprep.subr.bf16.mxu1 %v13657_v43 }
0x196e   :  { %9351 = vmatmul.mubr.msk.bf16.vlgmr.msra.gmra.mrb[12].mxu0 %vm3315_vm13, %v8319_v12  ;;  %v6364_v62 = vpop.xlane.xlu1 %6363 }
0x196f   :  { %10035 = vrcp.f32 %v6364_v62  ;;  %9370 = vmatprep.mubr.msk.bf16.mxu0 %vm10156_vm2, %v13657_v43 }
0x1970   :  { %v6367_v44 = vpop.xlane.xlu0 %6366 }
0x1971   :  { %10037 = vrcp.f32 %v6367_v44 }
0x1972   :  { %v6355_v53 = vpop.xlane.xlu1 %6354 }
0x1973   :  { %10039 = vrcp.f32 %v6355_v53 }
0x1974   :  { %v6358_v2 = vpop.xlane.xlu0 %6357 }
0x1975   :  { %10041 = vrcp.f32 %v6358_v2 }
0x1976   :  { %v6370_v16 = vpop.xlane.xlu1 %6369 }
0x1977   :  { %10043 = vrcp.f32 %v6370_v16 }
0x1978   :  { %v6373_v35 = vpop.xlane.xlu0 %6372 }
0x1979   :  { %v10036_v41 = vpop.eup %10035  ;;  %10045 = vrcp.f32 %v6373_v35 }
0x197a   :  { %v6361_v49 = vpop.xlane.xlu1 %6360  ;;  %v6492_v61 = vmul.f32 %v10036_v41, %v12852_v50 }
0x197b   :  { %v10038_v23 = vpop.eup %10037  ;;  %10047 = vrcp.f32 %v6361_v49 }
0x197c   :  { %v6493_v46 = vmul.f32 %v10038_v23, %v12856_v56 }
0x197d   :  { %v10040_v39 = vpop.eup %10039 }
0x197e   :  { %v6376_v7 = vpop.xlane.xlu0 %6375  ;;  %v6526_v21 = vpack.c.bf16 %v6493_v46, %v6492_v61  ;;  %v6489_v19 = vmul.f32 %v10040_v39, %v12861_v33 }
0x197f   :  { %v10042_v17 = vpop.eup %10041  ;;  %10049 = vrcp.f32 %v6376_v7 }
0x1980   :  { %v6701_v5 = vsel %vm3315_vm13, %v6526_v21, 0  ;;  %v6490_v27 = vmul.f32 %v10042_v17, %v12865_v52 }
0x1981   :  { %v10044_v37 = vpop.eup %10043  ;;  %9365 = vmatpush3.bf16.xpose.msra.mxu0 %v6701_v5 }
0x1982   :  { %v6524_v57 = vpack.c.bf16 %v6490_v27, %v6489_v19  ;;  %9366 = vmatprep.subr.bf16.mxu0 %v13657_v43  ;;  %v6494_v56 = vmul.f32 %v10044_v37, %v12869_v26 }
0x1983   :  { %v10046_v36 = vpop.eup %10045 }
0x1984   :  { %v6652_v50 = vsel %vm3315_vm13, %v6524_v57, 0  ;;  %v6495_v48 = vmul.f32 %v10046_v36, %v12873_v24 }
0x1985   :  { %v10048_v60 = vpop.eup %10047  ;;  %9357 = vmatpush3.bf16.xpose.msra.mxu1 %v6652_v50 }
0x1986   :  { %v6527_v1 = vpack.c.bf16 %v6495_v48, %v6494_v56  ;;  %9358 = vmatprep.subr.bf16.mxu1 %v13657_v43  ;;  %v6491_v33 = vmul.f32 %v10048_v60, %v12877_v14  ;;  %v8320_v14 = vpack.c.bf16 %v12497_v4, %v12497_v4 }
0x1988   :  { %v6704_v52 = vsel %vm3315_vm13, %v6527_v1, 0  ;;  %v6525_v45 = vpack.c.bf16 %v6491_v33, %v6491_v33 }
0x1989   :  { %v10050_v6 = vpop.eup %10049  ;;  %9367 = vmatpush3.bf16.xpose.msra.mxu0 %v6704_v52 }
0x198a   :  { %9368 = vmatprep.subr.bf16.mxu0 %v13657_v43  ;;  %v6496_v8 = vmul.f32 %v10050_v6, %v12881_v11  ;;  %v6655_v26 = vsel %vm3315_vm13, %v6525_v45, 0  ;;  %v8321_v11 = vpack.c.bf16 %v12504_v34, %v12504_v34 }
0x198c   :  { %v6528_v55 = vpack.c.bf16 %v6496_v8, %v6496_v8 }
0x198d   :  { %9359 = vmatpush3.bf16.xpose.msra.mxu1 %v6655_v26 }
0x198e   :  { %9374 = vmatprep.subr.bf16.mxu1 %v13657_v43  ;;  %v6707_v24 = vsel %vm3315_vm13, %v6528_v55, 0 }
0x1991   :  { %9369 = vmatpush3.bf16.xpose.msra.mxu0 %v6707_v24 }
0x1992   :  { %9384 = vmatprep.subr.bf16.mxu0 %v13657_v43 }
0x1994   :  { %9361 = vmatmul.mubr.msk.bf16.vlgmr.msra.gmra.mrb[224].mxu1 %vm3315_vm13, %v8320_v14 }
0x1995   :  { %9380 = vmatprep.mubr.msk.bf16.mxu1 %vm10156_vm2, %v13657_v43 }
0x1998   :  { %9371 = vmatmul.mubr.msk.bf16.vlgmr.msra.gmra.mrb[16].mxu0 %vm3315_vm13, %v8321_v11 }
0x1999   :  { %9390 = vmatprep.mubr.msk.bf16.mxu0 %vm10156_vm2, %v13657_v43 }
0x19a7   :  { %v6379_v32 = vpop.xlane.xlu1 %6378 }
0x19a8   :  { %10051 = vrcp.f32 %v6379_v32 }
0x19a9   :  { %v6382_v12 = vpop.xlane.xlu0 %6381 }
0x19aa   :  { %10053 = vrcp.f32 %v6382_v12 }
0x19b2   :  { %v10052_v4 = vpop.eup %10051 }
0x19b3   :  { %v6394_v62 = vpop.xlane.xlu1 %6393  ;;  %v6497_v2 = vmul.f32 %v10052_v4, %v12888_v20 }
0x19b4   :  { %v10054_v44 = vpop.eup %10053  ;;  %10055 = vrcp.f32 %v6394_v62 }
0x19b5   :  { %v6397_v53 = vpop.xlane.xlu0 %6396  ;;  %v6498_v16 = vmul.f32 %v10054_v44, %v12893_v0 }
0x19b6   :  { %10057 = vrcp.f32 %v6397_v53 }
0x19b7   :  { %v6385_v34 = vpop.xlane.xlu1 %6384  ;;  %v6529_v35 = vpack.c.bf16 %v6498_v16, %v6497_v2  ;;  %v8322_v2 = vpack.c.bf16 %v12526_v63, %v12526_v63  ;;  %v8323_v63 = vpack.c.bf16 %v12528_v9, %v12528_v9 }
0x19b8   :  { %10059 = vrcp.f32 %v6385_v34 }
0x19b9   :  { %v6388_v41 = vpop.xlane.xlu0 %6387  ;;  %v6753_v49 = vsel %vm3315_vm13, %v6529_v35, 0 }
0x19ba   :  { %10061 = vrcp.f32 %v6388_v41  ;;  %9375 = vmatpush3.bf16.xpose.msra.mxu1 %v6753_v49 }
0x19bb   :  { %v6400_v23 = vpop.xlane.xlu1 %6399  ;;  %9376 = vmatprep.subr.bf16.mxu1 %v13657_v43 }
0x19bc   :  { %10063 = vrcp.f32 %v6400_v23 }
0x19bd   :  { %v6403_v61 = vpop.xlane.xlu0 %6402 }
0x19be   :  { %v10056_v46 = vpop.eup %10055  ;;  %10065 = vrcp.f32 %v6403_v61 }
0x19bf   :  { %v6391_v39 = vpop.xlane.xlu1 %6390  ;;  %v6502_v0 = vmul.f32 %v10056_v46, %v12902_v22 }
0x19c0   :  { %v10058_v20 = vpop.eup %10057  ;;  %10067 = vrcp.f32 %v6391_v39 }
0x19c1   :  { %v6503_v7 = vmul.f32 %v10058_v20, %v12906_v3 }
0x19c2   :  { %v10060_v21 = vpop.eup %10059 }
0x19c3   :  { %v6532_v17 = vpack.c.bf16 %v6503_v7, %v6502_v0  ;;  %v6409_v19 = vpop.xlane.xlu1 %6408  ;;  %v6499_v57 = vmul.f32 %v10060_v21, %v12912_v38 }
0x19c4   :  { %v10062_v5 = vpop.eup %10061  ;;  %v6406_v27 = vpop.xlane.xlu0 %6405 }
0x19c5   :  { %10069 = vrcp.f32 %v6406_v27  ;;  %v6805_v37 = vsel %vm3315_vm13, %v6532_v17, 0  ;;  %v6500_v36 = vmul.f32 %v10062_v5, %v12916_v29 }
0x19c6   :  { %v10064_v50 = vpop.eup %10063  ;;  %9385 = vmatpush3.bf16.xpose.msra.mxu0 %v6805_v37  ;;  %10071 = vrcp.f32 %v6409_v19 }
0x19c7   :  { %v6530_v56 = vpack.c.bf16 %v6500_v36, %v6499_v57  ;;  %9386 = vmatprep.subr.bf16.mxu0 %v13657_v43  ;;  %v6504_v60 = vmul.f32 %v10064_v50, %v12921_v25 }
0x19c8   :  { %v10066_v22 = vpop.eup %10065  ;;  %v6412_v3 = vpop.xlane.xlu0 %6411 }
0x19c9   :  { %10073 = vrcp.f32 %v6412_v3  ;;  %v6756_v48 = vsel %vm3315_vm13, %v6530_v56, 0  ;;  %v6505_v1 = vmul.f32 %v10066_v22, %v12925_v54 }
0x19ca   :  { %v10068_v33 = vpop.eup %10067  ;;  %9377 = vmatpush3.bf16.xpose.msra.mxu1 %v6756_v48 }
0x19cb   :  { %v6424_v38 = vpop.xlane.xlu1 %6423  ;;  %v6533_v52 = vpack.c.bf16 %v6505_v1, %v6504_v60  ;;  %9378 = vmatprep.subr.bf16.mxu1 %v13657_v43  ;;  %v6501_v29 = vmul.f32 %v10068_v33, %v12930_v13  ;;  %v9597_v33 = vld [vmem:[%s13575_s16 + $0x10] sm:$0xff]  }
0x19cc   :  { %10075 = vrcp.f32 %v6424_v38  ;;  %v9598_v38 = vld [vmem:[%s13575_s16 + $0x18] sm:$0xff]  }
0x19cd   :  { %v6427_v45 = vpop.xlane.xlu0 %6426  ;;  %v6808_v6 = vsel %vm3315_vm13, %v6533_v52, 0  ;;  %v6531_v8 = vpack.c.bf16 %v6501_v29, %v6501_v29 }
0x19ce   :  { %10077 = vrcp.f32 %v6427_v45  ;;  %9387 = vmatpush3.bf16.xpose.msra.mxu0 %v6808_v6 }
0x19cf   :  { %v10070_v26 = vpop.eup %10069  ;;  %v6415_v55 = vpop.xlane.xlu1 %6414  ;;  %9388 = vmatprep.subr.bf16.mxu0 %v13657_v43  ;;  %v6759_v14 = vsel %vm3315_vm13, %v6531_v8, 0 }
0x19d0   :  { %10079 = vrcp.f32 %v6415_v55  ;;  %v6506_v25 = vmul.f32 %v10070_v26, %v12939_v51  ;;  %v10072_v54 = vpop.eup %10071 }
0x19d1   :  { %v6418_v24 = vpop.xlane.xlu0 %6417  ;;  %v6507_v12 = vmul.f32 %v10072_v54, %v12936_v31 }
0x19d2   :  { %10081 = vrcp.f32 %v6418_v24  ;;  %9379 = vmatpush3.bf16.xpose.msra.mxu1 %v6759_v14  ;;  %v6534_v13 = vpack.c.bf16 %v6506_v25, %v6506_v25 }
0x19d3   :  { %v10074_v11 = vpop.eup %10073  ;;  %v6430_v32 = vpop.xlane.xlu1 %6429  ;;  %9394 = vmatprep.subr.bf16.mxu1 %v13657_v43 }
0x19d4   :  { %10083 = vrcp.f32 %v6430_v32  ;;  %v6508_v4 = vmul.f32 %v10074_v11, %v12946_v18  ;;  %v6811_v44 = vsel %vm3315_vm13, %v6534_v13, 0 }
0x19d5   :  { %v6433_v62 = vpop.xlane.xlu0 %6432 }
0x19d6   :  { %v10076_v51 = vpop.eup %10075  ;;  %10085 = vrcp.f32 %v6433_v62  ;;  %9389 = vmatpush3.bf16.xpose.msra.mxu0 %v6811_v44  ;;  %v6535_v53 = vpack.c.bf16 %v6508_v4, %v6507_v12 }
0x19d7   :  { %v6421_v16 = vpop.xlane.xlu1 %6420  ;;  %9404 = vmatprep.subr.bf16.mxu0 %v13657_v43  ;;  %v6512_v18 = vmul.f32 %v10076_v51, %v12952_v47 }
0x19d8   :  { %v10078_v34 = vpop.eup %10077  ;;  %10087 = vrcp.f32 %v6421_v16  ;;  %v6857_v31 = vsel %vm3315_vm13, %v6535_v53, 0 }
0x19d9   :  { %9381 = vmatmul.mubr.msk.bf16.vlgmr.msra.gmra.mrb[228].mxu1 %vm3315_vm13, %v8322_v2  ;;  %v6513_v35 = vmul.f32 %v10078_v34, %v12956_v58 }
0x19da   :  { %v10080_v41 = vpop.eup %10079  ;;  %9395 = vmatpush3.bf16.xpose.msra.mxu1 %v6857_v31  ;;  %9400 = vmatprep.mubr.msk.bf16.mxu1 %vm10156_vm2, %v13657_v43 }
0x19db   :  { %v6436_v49 = vpop.xlane.xlu0 %6435  ;;  %v6538_v23 = vpack.c.bf16 %v6513_v35, %v6512_v18  ;;  %9396 = vmatprep.subr.bf16.mxu1 %v13657_v43  ;;  %v6509_v58 = vmul.f32 %v10080_v41, %v12961_v59 }
0x19dc   :  { %v10082_v61 = vpop.eup %10081  ;;  %10089 = vrcp.f32 %v6436_v49 }
0x19dd   :  { %9391 = vmatmul.mubr.msk.bf16.vlgmr.msra.gmra.mrb[20].mxu0 %vm3315_vm13, %v8323_v63  ;;  %v6909_v47 = vsel %vm3315_vm13, %v6538_v23, 0  ;;  %v6510_v46 = vmul.f32 %v10082_v61, %v12965_v40 }
0x19de   :  { %v10084_v39 = vpop.eup %10083  ;;  %9405 = vmatpush3.bf16.xpose.msra.mxu0 %v6909_v47  ;;  %9410 = vmatprep.mubr.msk.bf16.mxu0 %vm10156_vm2, %v13657_v43 }
0x19df   :  { %v6536_v9 = vpack.c.bf16 %v6510_v46, %v6509_v58  ;;  %9406 = vmatprep.subr.bf16.mxu0 %v13657_v43  ;;  %v6514_v7 = vmul.f32 %v10084_v39, %v12969_v30 }
0x19e0   :  { %v10086_v20 = vpop.eup %10085 }
0x19e1   :  { %v6860_v0 = vsel %vm3315_vm13, %v6536_v9, 0  ;;  %v6515_v21 = vmul.f32 %v10086_v20, %v12973_v42 }
0x19e2   :  { %v10088_v17 = vpop.eup %10087  ;;  %9397 = vmatpush3.bf16.xpose.msra.mxu1 %v6860_v0 }
0x19e3   :  { %v6539_v59 = vpack.c.bf16 %v6515_v21, %v6514_v7  ;;  %9398 = vmatprep.subr.bf16.mxu1 %v13657_v43  ;;  %v6511_v40 = vmul.f32 %v10088_v17, %v12977_v15  ;;  %v8324_v15 = vpack.c.bf16 %v12530_v10, %v12530_v10  ;;  %v8222_v21 = vld [vmem:[%s13576_s17 + $0x1] ss:$0 sm:$0xff] }
0x19e5   :  { %v6912_v5 = vsel %vm3315_vm13, %v6539_v59, 0  ;;  %v6537_v19 = vpack.c.bf16 %v6511_v40, %v6511_v40 }
0x19e6   :  { %v10090_v27 = vpop.eup %10089  ;;  %9407 = vmatpush3.bf16.xpose.msra.mxu0 %v6912_v5 }
0x19e7   :  { %9408 = vmatprep.subr.bf16.mxu0 %v13657_v43  ;;  %v6516_v37 = vmul.f32 %v10090_v27, %v12981_v28  ;;  %v6863_v30 = vsel %vm3315_vm13, %v6537_v19, 0  ;;  %v13681_v28 = vld [vmem:[#allocation11_spill] sm:$0xff]  ;;  %v13682_v19 = vld [vmem:[#allocation12_spill] sm:$0xff] }
0x19e8   :  { %v8325_v36 = vpack.c.bf16 %v13681_v28, %v13681_v28 }
0x19e9   :  { %v6540_v57 = vpack.c.bf16 %v6516_v37, %v6516_v37 }
0x19ea   :  { %9399 = vmatpush3.bf16.xpose.msra.mxu1 %v6863_v30 }
0x19eb   :  { %9414 = vmatprep.subr.bf16.mxu1 %v13657_v43  ;;  %v6915_v42 = vsel %vm3315_vm13, %v6540_v57, 0  ;;  %v13683_v57 = vld [vmem:[#allocation2_spill] sm:$0xff] }
0x19ee   :  { %9409 = vmatpush3.bf16.xpose.msra.mxu0 %v6915_v42 }
0x19ef   :  { %9438 = vmatprep.subr.bf16.mxu0 %v13657_v43 }
0x19f1   :  { %9401 = vmatmul.mubr.msk.bf16.vlgmr.msra.gmra.mrb[232].mxu1 %vm3315_vm13, %v8324_v15 }
0x19f2   :  { %9418 = vmatprep.mubr.msk.bf16.mxu1 %vm10156_vm2, %v13657_v43  ;;  %9415 = vmatpush3.bf16.msra.mxu1 %v9597_v33 }
0x19f3   :  { %9416 = vmatprep.subr.bf16.mxu1 %v13657_v43 }
0x19f5   :  { %9411 = vmatmul.mubr.msk.bf16.vlgmr.msra.gmra.mrb[24].mxu0 %vm3315_vm13, %v8325_v36 }
0x19f6   :  { %9442 = vmatprep.mubr.msk.bf16.mxu0 %vm10156_vm2, %v13657_v43  ;;  %9417 = vmatpush3.bf16.msra.mxu1 %v9598_v38 }
0x19f7   :  { %9462 = vmatprep.subr.bf16.mxu1 %v13657_v43 }
0x1a3e   :  { %v6587_v50 = vpop.f32.mrb[220].mxu1 }
0x1a3f   :  { %6957 = vxpose.xlu1.b32.start [1/4] (short) (narrow) %v6587_v50, 40  ;;  %v9342_v56 = vpop.f32.mrb[221].mxu1 }
0x1a40   :  { %v6590_v22 = vpop.f32.mrb[222].mxu1 }
0x1a41   :  { %v9343_v10 = vpop.f32.mrb[223].mxu1  ;;  %v6639_v3 = vpop.f32.mrb[12].mxu0 }
0x1a42   :  { %v9352_v48 = vpop.f32.mrb[13].mxu0  ;;  %v13684_v10 = vld [vmem:[#allocation3_spill] sm:$0xff] }
0x1a43   :  { %6958 = vxpose.xlu1.b32.cont [2/4] (short) (narrow) %v6639_v3, 40  ;;  %v6642_v60 = vpop.f32.mrb[14].mxu0 }
0x1a44   :  { %v9353_v1 = vpop.f32.mrb[15].mxu0 }
0x1a45   :  { %v13685_v1 = vld [vmem:[#allocation4_spill] sm:$0xff] }
0x1a67   :  { %v6691_v52 = vpop.f32.mrb[224].mxu1 }
0x1a68   :  { %v9362_v29 = vpop.f32.mrb[225].mxu1  ;;  %6959 = vxpose.xlu1.b32.cont [3/4] (short) (narrow) %v6691_v52, 40 }
0x1a69   :  { %v6694_v45 = vpop.f32.mrb[226].mxu1 }
0x1a6a   :  { %v9363_v6 = vpop.f32.mrb[227].mxu1 }
0x1a6b   :  { %v6743_v8 = vpop.f32.mrb[16].mxu0 }
0x1a6c   :  { %6960 = vxpose.xlu1.b32.end [4/4] (short) (narrow) %v6743_v8, 40  ;;  %v9372_v26 = vpop.f32.mrb[17].mxu0 }
0x1a6d   :  { %v6746_v55 = vpop.f32.mrb[18].mxu0  ;;  %v13686_v26 = vld [vmem:[#allocation5_spill] sm:$0xff] }
0x1a6e   :  { %v9373_v25 = vpop.f32.mrb[19].mxu0 }
0x1aac   :  { %v6795_v54 = vpop.f32.mrb[228].mxu1 }
0x1aad   :  { %6989 = vxpose.xlu0.b32.start [1/4] (short) (narrow) %v6795_v54, 40  ;;  %v9382_v24 = vpop.f32.mrb[229].mxu1 }
0x1aae   :  { %v6798_v14 = vpop.f32.mrb[230].mxu1  ;;  %v13687_v24 = vld [vmem:[#allocation6_spill] sm:$0xff] }
0x1aaf   :  { %v9383_v13 = vpop.f32.mrb[231].mxu1 }
0x1ab0   :  { %v6847_v11 = vpop.f32.mrb[20].mxu0 }
0x1ab1   :  { %6990 = vxpose.xlu0.b32.cont [2/4] (short) (narrow) %v6847_v11, 40  ;;  %v9392_v32 = vpop.f32.mrb[21].mxu0 }
0x1ab2   :  { %v6850_v12 = vpop.f32.mrb[22].mxu0 }
0x1ab3   :  { %v9393_v4 = vpop.f32.mrb[23].mxu0 }
0x1ac4   :  { %v6899_v62 = vpop.f32.mrb[232].mxu1 }
0x1ac5   :  { %v9402_v44 = vpop.f32.mrb[233].mxu1  ;;  %6991 = vxpose.xlu0.b32.cont [3/4] (short) (narrow) %v6899_v62, 40 }
0x1ac6   :  { %v6902_v51 = vpop.f32.mrb[234].mxu1  ;;  %v13688_v44 = vld [vmem:[#allocation7_spill] sm:$0xff] }
0x1ac7   :  { %v9403_v53 = vpop.f32.mrb[235].mxu1 }
0x1ac8   :  { %v6951_v2 = vpop.f32.mrb[24].mxu0 }
0x1ac9   :  { %6992 = vxpose.xlu0.b32.end [4/4] (short) (narrow) %v6951_v2, 40  ;;  %v9412_v16 = vpop.f32.mrb[25].mxu0 }
0x1aca   :  { %v6954_v34 = vpop.f32.mrb[26].mxu0  ;;  %v13689_v16 = vld [vmem:[#allocation8_spill] sm:$0xff] }
0x1acb   :  { %v9413_v31 = vpop.f32.mrb[27].mxu0 }
0x1ae0   :  { %v6973_v18 = vpop.trf.xlu1 }
0x1ae4   :  { %v6974_v35 = vpop.trf.xlu1 }
0x1ae5   :  { %v7021_v41 = vpack.c.bf16 %v6974_v35, %v6973_v18 }
0x1ae7   :  { %9419 = vmatmul.mubr.msk.bf16.vlgmr.msra.gmra.mrb[236].mxu1 %vm423_vm5, %v7021_v41 }
0x1ae8   :  { %v6975_v63 = vpop.trf.xlu1  ;;  %9422 = vmatprep.mubr.msk.bf16.mxu1 %vm10156_vm2, %v13657_v43 }
0x1aec   :  { %v6976_v49 = vpop.trf.xlu1 }
0x1aed   :  { %v7022_v23 = vpack.c.bf16 %v6976_v49, %v6975_v63 }
0x1aef   :  { %9423 = vmatmul.mubr.msk.bf16.gmra.mrb[240].mxu1 %vm423_vm5, %v7022_v23  ;;  %v13690_v23 = vld [vmem:[#allocation9_spill] sm:$0xff] }
0x1af0   :  { %9426 = vmatprep.mubr.msk.bf16.mxu1 %vm10156_vm2, %v13657_v43  ;;  %v6977_v61 = vpop.trf.xlu1 }
0x1b3d   :  { %v7005_v47 = vpop.trf.xlu0 }
0x1b3e   :  { %v7023_v58 = vpack.c.bf16 %v7005_v47, %v6977_v61 }
0x1b40   :  { %9427 = vmatmul.mubr.msk.bf16.gmra.mrb[244].mxu1 %vm423_vm5, %v7023_v58 }
0x1b41   :  { %v7006_v46 = vpop.trf.xlu0  ;;  %9430 = vmatprep.mubr.msk.bf16.mxu1 %vm10156_vm2, %v13657_v43 }
0x1b45   :  { %v7007_v39 = vpop.trf.xlu0 }
0x1b46   :  { %v7024_v9 = vpack.c.bf16 %v7007_v39, %v7006_v46  ;;  %v13691_v46 = vld [vmem:[#allocation10_spill] sm:$0xff] }
0x1b48   :  { %9431 = vmatmul.mubr.msk.bf16.gmra.mrb[248].mxu1 %vm423_vm5, %v7024_v9 }
0x1b49   :  { %v7008_v20 = vpop.trf.xlu0  ;;  %9434 = vmatprep.mubr.msk.bf16.mxu1 %vm10156_vm2, %v13657_v43 }
0x1b4d   :  { %v7009_v0 = vpop.trf.xlu0 }
0x1b4e   :  { %v7025_v7 = vpack.c.bf16 %v7009_v0, %v7008_v20 }
0x1b50   :  { %9435 = vmatmul.mubr.msk.bf16.gmra.mrb[252].mxu1 %vm423_vm5, %v7025_v7 }
0x1b51   :  { %9470 = vmatprep.mubr.msk.bf16.mxu1 %vm10156_vm2, %v13657_v43 }
0x1bba   :  { %v7100_v17 = vpop.f32.mrb[236].mxu1 }
0x1bbb   :  { %v7101_v59 = vadd.f32 %v8222_v21, %v7100_v17  ;;  %v9420_v40 = vpop.f32.mrb[237].mxu1 }
0x1bbc   :  { %v7103_v5 = vpop.f32.mrb[238].mxu1 }
0x1bbd   :  { %v7139_v27 = vadd.f32 %v7101_v59, %v13682_v19  ;;  %v7104_v37 = vadd.f32 %v8222_v21, %v7103_v5  ;;  %v9421_v30 = vpop.f32.mrb[239].mxu1 }
0x1bbf   :  { %v7140_v42 = vadd.f32 %v7104_v37, %v13683_v57  ;;  %v7153_v15 = vsel %vm423_vm5, %v7139_v27, 0.0 }
0x1bc0   :  { %7154 = vadd.xlane.f32.xlu0 %v7153_v15 }
0x1bc1   :  { %v7156_v28 = vsel %vm423_vm5, %v7140_v42, 0.0 }
0x1bc2   :  { %7157 = vadd.xlane.f32.xlu1 %v7156_v28  ;;  %v7108_v36 = vpop.f32.mrb[240].mxu1 }
0x1bc3   :  { %v7109_v50 = vadd.f32 %v8222_v21, %v7108_v36  ;;  %v9424_v56 = vpop.f32.mrb[241].mxu1 }
0x1bc4   :  { %v7111_v22 = vpop.f32.mrb[242].mxu1 }
0x1bc5   :  { %v7141_v3 = vadd.f32 %v7109_v50, %v13684_v10  ;;  %v7112_v48 = vadd.f32 %v8222_v21, %v7111_v22  ;;  %v9425_v60 = vpop.f32.mrb[243].mxu1 }
0x1bc7   :  { %v7142_v33 = vadd.f32 %v7112_v48, %v13685_v1  ;;  %v7159_v38 = vsel %vm423_vm5, %v7141_v3, 0.0  ;;  %v9600_v48 = vld [vmem:[%s13577_s20 + $0x18] sm:$0xff]  }
0x1bc8   :  { %7160 = vadd.xlane.f32.xlu1 %v7159_v38 }
0x1bc9   :  { %v7162_v52 = vsel %vm423_vm5, %v7142_v33, 0.0 }
0x1bca   :  { %7163 = vadd.xlane.f32.xlu0 %v7162_v52 }
0x1c13   :  { %v7116_v29 = vpop.f32.mrb[244].mxu1 }
0x1c14   :  { %v7117_v45 = vadd.f32 %v8222_v21, %v7116_v29  ;;  %v9428_v6 = vpop.f32.mrb[245].mxu1 }
0x1c15   :  { %v7119_v8 = vpop.f32.mrb[246].mxu1 }
0x1c16   :  { %v13148_v55 = vadd.f32 %v7117_v45, %v13686_v26  ;;  %v7120_v25 = vadd.f32 %v8222_v21, %v7119_v8  ;;  %v9429_v54 = vpop.f32.mrb[247].mxu1 }
0x1c18   :  { %v13151_v14 = vadd.f32 %v7120_v25, %v13687_v24  ;;  %v7165_v13 = vsel %vm423_vm5, %v13148_v55, 0.0 }
0x1c19   :  { %7166 = vadd.xlane.f32.xlu1 %v7165_v13 }
0x1c1a   :  { %v7168_v11 = vsel %vm423_vm5, %v13151_v14, 0.0 }
0x1c1b   :  { %7169 = vadd.xlane.f32.xlu0 %v7168_v11  ;;  %v7124_v32 = vpop.f32.mrb[248].mxu1 }
0x1c1c   :  { %v7125_v12 = vadd.f32 %v8222_v21, %v7124_v32  ;;  %v9432_v4 = vpop.f32.mrb[249].mxu1 }
0x1c1d   :  { %v7127_v62 = vpop.f32.mrb[250].mxu1 }
0x1c1e   :  { %v13158_v51 = vadd.f32 %v7125_v12, %v13688_v44  ;;  %v7128_v53 = vadd.f32 %v8222_v21, %v7127_v62  ;;  %v9433_v2 = vpop.f32.mrb[251].mxu1 }
0x1c20   :  { %v13161_v34 = vadd.f32 %v7128_v53, %v13689_v16  ;;  %v7171_v31 = vsel %vm423_vm5, %v13158_v51, 0.0 }
0x1c21   :  { %7172 = vadd.xlane.f32.xlu1 %v7171_v31 }
0x1c22   :  { %v7174_v18 = vsel %vm423_vm5, %v13161_v34, 0.0 }
0x1c23   :  { %7175 = vadd.xlane.f32.xlu0 %v7174_v18  ;;  %v7132_v35 = vpop.f32.mrb[252].mxu1 }
0x1c24   :  { %v7133_v41 = vadd.f32 %v8222_v21, %v7132_v35  ;;  %v9436_v63 = vpop.f32.mrb[253].mxu1 }
0x1c25   :  { %v7135_v49 = vpop.f32.mrb[254].mxu1 }
0x1c26   :  { %v13168_v61 = vadd.f32 %v7133_v41, %v13690_v23  ;;  %v7136_v47 = vadd.f32 %v8222_v21, %v7135_v49  ;;  %v9437_v58 = vpop.f32.mrb[255].mxu1 }
0x1c28   :  { %v13171_v39 = vadd.f32 %v7136_v47, %v13691_v46  ;;  %v7177_v9 = vsel %vm423_vm5, %v13168_v61, 0.0 }
0x1c29   :  { %7178 = vadd.xlane.f32.xlu1 %v7177_v9 }
0x1c2a   :  { %v7180_v20 = vsel %vm423_vm5, %v13171_v39, 0.0 }
0x1c2b   :  { %7181 = vadd.xlane.f32.xlu0 %v7180_v20 }
0x1c4d   :  { %v7155_v0 = vpop.xlane.xlu0 %7154 }
0x1c4e   :  { %v7183_v7 = vmul.f32 0.03125, %v7155_v0 }
0x1c4f   :  { %v7158_v17 = vpop.xlane.xlu1 %7157 }
0x1c50   :  { %v13177_v59 = vsub.f32 %v7139_v27, %v7183_v7  ;;  %v7184_v40 = vmul.f32 0.03125, %v7158_v17  ;;  %v13244_v17 = vld [vmem:[%s13578_s18 + $0x1] ss:$0 sm:$0xff] }
0x1c52   :  { %v13179_v5 = vsub.f32 %v7140_v42, %v7184_v40  ;;  %v7203_v21 = vmul.f32 %v13177_v59, %v13177_v59 }
0x1c54   :  { %v7213_v19 = vsel %vm423_vm5, %v7203_v21, 0.0  ;;  %v7204_v37 = vmul.f32 %v13179_v5, %v13179_v5 }
0x1c55   :  { %v7161_v30 = vpop.xlane.xlu1 %7160  ;;  %7214 = vadd.xlane.f32.xlu1 %v7213_v19 }
0x1c56   :  { %v7185_v57 = vmul.f32 0.03125, %v7161_v30  ;;  %v7216_v15 = vsel %vm423_vm5, %v7204_v37, 0.0  ;;  %v13252_v30 = vld [vmem:[%s13579_s19 + $0x1] ss:$0 sm:$0xff] }
0x1c57   :  { %7217 = vadd.xlane.f32.xlu0 %v7216_v15  ;;  %v7164_v28 = vpop.xlane.xlu0 %7163 }
0x1c58   :  { %v13187_v27 = vsub.f32 %v7141_v3, %v7185_v57  ;;  %v7186_v36 = vmul.f32 0.03125, %v7164_v28  ;;  %v9599_v3 = vld [vmem:[%s13577_s20 + $0x10] sm:$0xff]  }
0x1c59   :  { %9439 = vmatpush3.bf16.msra.mxu0 %v9599_v3 }
0x1c5a   :  { %v13189_v42 = vsub.f32 %v7142_v33, %v7186_v36  ;;  %v7205_v50 = vmul.f32 %v13187_v27, %v13187_v27  ;;  %9440 = vmatprep.subr.bf16.mxu0 %v13657_v43 }
0x1c5c   :  { %v7219_v56 = vsel %vm423_vm5, %v7205_v50, 0.0  ;;  %v7206_v22 = vmul.f32 %v13189_v42, %v13189_v42 }
0x1c5d   :  { %7220 = vadd.xlane.f32.xlu1 %v7219_v56  ;;  %9441 = vmatpush3.bf16.msra.mxu0 %v9600_v48 }
0x1c5e   :  { %v7222_v10 = vsel %vm423_vm5, %v7206_v22, 0.0  ;;  %9490 = vmatprep.subr.bf16.mxu0 %v13657_v43 }
0x1c5f   :  { %7223 = vadd.xlane.f32.xlu0 %v7222_v10 }
0x1ca6   :  { %v7167_v60 = vpop.xlane.xlu1 %7166 }
0x1ca7   :  { %v7187_v1 = vmul.f32 0.03125, %v7167_v60 }
0x1ca8   :  { %v7170_v33 = vpop.xlane.xlu0 %7169 }
0x1ca9   :  { %v13206_v38 = vsub.f32 %v13148_v55, %v7187_v1  ;;  %v7188_v52 = vmul.f32 0.03125, %v7170_v33 }
0x1cab   :  { %v13209_v29 = vsub.f32 %v13151_v14, %v7188_v52  ;;  %v7207_v45 = vmul.f32 %v13206_v38, %v13206_v38 }
0x1cad   :  { %v7225_v6 = vsel %vm423_vm5, %v7207_v45, 0.0  ;;  %v7208_v8 = vmul.f32 %v13209_v29, %v13209_v29 }
0x1cae   :  { %v7173_v26 = vpop.xlane.xlu1 %7172  ;;  %7226 = vadd.xlane.f32.xlu1 %v7225_v6 }
0x1caf   :  { %v7189_v25 = vmul.f32 0.03125, %v7173_v26  ;;  %v7228_v54 = vsel %vm423_vm5, %v7208_v8, 0.0 }
0x1cb0   :  { %7229 = vadd.xlane.f32.xlu0 %v7228_v54  ;;  %v7176_v55 = vpop.xlane.xlu0 %7175 }
0x1cb1   :  { %v13218_v24 = vsub.f32 %v13158_v51, %v7189_v25  ;;  %v7190_v14 = vmul.f32 0.03125, %v7176_v55 }
0x1cb3   :  { %v13221_v13 = vsub.f32 %v13161_v34, %v7190_v14  ;;  %v7209_v11 = vmul.f32 %v13218_v24, %v13218_v24 }
0x1cb5   :  { %v7231_v32 = vsel %vm423_vm5, %v7209_v11, 0.0  ;;  %v7210_v12 = vmul.f32 %v13221_v13, %v13221_v13 }
0x1cb6   :  { %v7179_v4 = vpop.xlane.xlu1 %7178  ;;  %7232 = vadd.xlane.f32.xlu1 %v7231_v32 }
0x1cb7   :  { %v7191_v62 = vmul.f32 0.03125, %v7179_v4  ;;  %v7234_v44 = vsel %vm423_vm5, %v7210_v12, 0.0 }
0x1cb8   :  { %7235 = vadd.xlane.f32.xlu0 %v7234_v44  ;;  %v7182_v51 = vpop.xlane.xlu0 %7181 }
0x1cb9   :  { %v13230_v53 = vsub.f32 %v13168_v61, %v7191_v62  ;;  %v7192_v2 = vmul.f32 0.03125, %v7182_v51 }
0x1cbb   :  { %v13233_v16 = vsub.f32 %v13171_v39, %v7192_v2  ;;  %v7211_v34 = vmul.f32 %v13230_v53, %v13230_v53 }
0x1cbd   :  { %v7237_v31 = vsel %vm423_vm5, %v7211_v34, 0.0  ;;  %v7212_v18 = vmul.f32 %v13233_v16, %v13233_v16 }
0x1cbe   :  { %7238 = vadd.xlane.f32.xlu1 %v7237_v31 }
0x1cbf   :  { %v7240_v35 = vsel %vm423_vm5, %v7212_v18, 0.0 }
0x1cc0   :  { %7241 = vadd.xlane.f32.xlu0 %v7240_v35 }
0x1ce2   :  { %v7215_v41 = vpop.xlane.xlu1 %7214 }
0x1ce3   :  { %v7243_v63 = vmul.f32 0.03125, %v7215_v41 }
0x1ce4   :  { %v7218_v49 = vpop.xlane.xlu0 %7217 }
0x1ce5   :  { %v7253_v23 = vadd.f32 1e-05, %v7243_v63  ;;  %v7244_v61 = vmul.f32 0.03125, %v7218_v49 }
0x1ce7   :  { %10091 = vrsqrt.f32 %v7253_v23  ;;  %v7254_v47 = vadd.f32 1e-05, %v7244_v61 }
0x1ce9   :  { %10093 = vrsqrt.f32 %v7254_v47 }
0x1cea   :  { %v7221_v58 = vpop.xlane.xlu1 %7220 }
0x1ceb   :  { %v7245_v46 = vmul.f32 0.03125, %v7221_v58 }
0x1cec   :  { %v7224_v39 = vpop.xlane.xlu0 %7223 }
0x1ced   :  { %v7255_v9 = vadd.f32 1e-05, %v7245_v46  ;;  %v7246_v20 = vmul.f32 0.03125, %v7224_v39 }
0x1cef   :  { %10095 = vrsqrt.f32 %v7255_v9  ;;  %v7256_v0 = vadd.f32 1e-05, %v7246_v20 }
0x1cf1   :  { %v10092_v7 = vpop.eup %10091  ;;  %10097 = vrsqrt.f32 %v7256_v0 }
0x1cf2   :  { %v7273_v40 = vmul.f32 %v10092_v7, %v13177_v59 }
0x1cf3   :  { %v10094_v21 = vpop.eup %10093 }
0x1cf4   :  { %v7289_v19 = vmul.f32 %v13244_v17, %v7273_v40  ;;  %v7274_v37 = vmul.f32 %v10094_v21, %v13179_v5 }
0x1cf6   :  { %v7290_v57 = vmul.f32 %v13244_v17, %v7274_v37  ;;  %v13256_v15 = vadd.f32 %v13252_v30, %v7289_v19  ;;  %v9603_v19 = vld [vmem:[%s13580_s22 + $0x30] sm:$0xff]   ;;  %v9604_v37 = vld [vmem:[%s13580_s22 + $0x38] sm:$0xff]  }
0x1cf8   :  { %v13259_v28 = vadd.f32 %v13252_v30, %v7290_v57 }
0x1cf9   :  { %v10096_v36 = vpop.eup %10095 }
0x1cfa   :  { %v7315_v59 = vpack.c.bf16 %v13259_v28, %v13256_v15  ;;  %v7275_v50 = vmul.f32 %v10096_v36, %v13187_v27 }
0x1cfb   :  { %v10098_v5 = vpop.eup %10097 }
0x1cfc   :  { %v7291_v56 = vmul.f32 %v13244_v17, %v7275_v50  ;;  %v7276_v22 = vmul.f32 %v10098_v5, %v13189_v42  ;;  %9443 = vmatmul.mubr.msk.bf16.vlgmr.msra.gmra.mrb[28].mxu0 %vm423_vm5, %v7315_v59 }
0x1cfd   :  { %9446 = vmatprep.mubr.msk.bf16.mxu0 %vm10156_vm2, %v13657_v43 }
0x1cfe   :  { %v7292_v10 = vmul.f32 %v13244_v17, %v7276_v22  ;;  %v13271_v3 = vadd.f32 %v13252_v30, %v7291_v56 }
0x1d00   :  { %v13274_v48 = vadd.f32 %v13252_v30, %v7292_v10 }
0x1d02   :  { %v7316_v27 = vpack.c.bf16 %v13274_v48, %v13271_v3 }
0x1d04   :  { %9447 = vmatmul.mubr.msk.bf16.gmra.mrb[32].mxu0 %vm423_vm5, %v7316_v27 }
0x1d05   :  { %9450 = vmatprep.mubr.msk.bf16.mxu0 %vm10156_vm2, %v13657_v43 }
0x1d3b   :  { %v7227_v42 = vpop.xlane.xlu1 %7226 }
0x1d3c   :  { %v7247_v60 = vmul.f32 0.03125, %v7227_v42 }
0x1d3d   :  { %v7230_v1 = vpop.xlane.xlu0 %7229 }
0x1d3e   :  { %v7257_v33 = vadd.f32 1e-05, %v7247_v60  ;;  %v7248_v52 = vmul.f32 0.03125, %v7230_v1 }
0x1d40   :  { %10099 = vrsqrt.f32 %v7257_v33  ;;  %v7258_v45 = vadd.f32 1e-05, %v7248_v52 }
0x1d42   :  { %10101 = vrsqrt.f32 %v7258_v45 }
0x1d43   :  { %v7233_v6 = vpop.xlane.xlu1 %7232 }
0x1d44   :  { %v7249_v8 = vmul.f32 0.03125, %v7233_v6 }
0x1d45   :  { %v7236_v26 = vpop.xlane.xlu0 %7235 }
0x1d46   :  { %v7259_v25 = vadd.f32 1e-05, %v7249_v8  ;;  %v7250_v54 = vmul.f32 0.03125, %v7236_v26 }
0x1d48   :  { %10103 = vrsqrt.f32 %v7259_v25  ;;  %v7260_v55 = vadd.f32 1e-05, %v7250_v54 }
0x1d4a   :  { %v10100_v14 = vpop.eup %10099  ;;  %10105 = vrsqrt.f32 %v7260_v55 }
0x1d4b   :  { %v7277_v11 = vmul.f32 %v10100_v14, %v13206_v38  ;;  %v7239_v32 = vpop.xlane.xlu1 %7238 }
0x1d4c   :  { %v10102_v12 = vpop.eup %10101  ;;  %v7251_v4 = vmul.f32 0.03125, %v7239_v32 }
0x1d4d   :  { %v7293_v62 = vmul.f32 %v13244_v17, %v7277_v11  ;;  %v7278_v44 = vmul.f32 %v10102_v12, %v13209_v29  ;;  %v7242_v51 = vpop.xlane.xlu0 %7241 }
0x1d4e   :  { %v7261_v2 = vadd.f32 1e-05, %v7251_v4  ;;  %v7252_v34 = vmul.f32 0.03125, %v7242_v51 }
0x1d4f   :  { %v7294_v31 = vmul.f32 %v13244_v17, %v7278_v44  ;;  %v13286_v35 = vadd.f32 %v13252_v30, %v7293_v62 }
0x1d50   :  { %10107 = vrsqrt.f32 %v7261_v2  ;;  %v7262_v18 = vadd.f32 1e-05, %v7252_v34 }
0x1d51   :  { %v13289_v41 = vadd.f32 %v13252_v30, %v7294_v31 }
0x1d52   :  { %v10104_v38 = vpop.eup %10103  ;;  %10109 = vrsqrt.f32 %v7262_v18 }
0x1d53   :  { %v7317_v63 = vpack.c.bf16 %v13289_v41, %v13286_v35  ;;  %v7279_v29 = vmul.f32 %v10104_v38, %v13218_v24 }
0x1d54   :  { %v10106_v49 = vpop.eup %10105 }
0x1d55   :  { %v7295_v23 = vmul.f32 %v13244_v17, %v7279_v29  ;;  %v7280_v61 = vmul.f32 %v10106_v49, %v13221_v13  ;;  %9451 = vmatmul.mubr.msk.bf16.gmra.mrb[36].mxu0 %vm423_vm5, %v7317_v63 }
0x1d56   :  { %9454 = vmatprep.mubr.msk.bf16.mxu0 %vm10156_vm2, %v13657_v43 }
0x1d57   :  { %v7296_v47 = vmul.f32 %v13244_v17, %v7280_v61  ;;  %v13301_v58 = vadd.f32 %v13252_v30, %v7295_v23 }
0x1d59   :  { %v13304_v46 = vadd.f32 %v13252_v30, %v7296_v47 }
0x1d5a   :  { %v10108_v39 = vpop.eup %10107 }
0x1d5b   :  { %v7318_v24 = vpack.c.bf16 %v13304_v46, %v13301_v58  ;;  %v7281_v9 = vmul.f32 %v10108_v39, %v13230_v53 }
0x1d5c   :  { %v10110_v13 = vpop.eup %10109 }
0x1d5d   :  { %v7297_v20 = vmul.f32 %v13244_v17, %v7281_v9  ;;  %v7282_v0 = vmul.f32 %v10110_v13, %v13233_v16  ;;  %9455 = vmatmul.mubr.msk.bf16.gmra.mrb[40].mxu0 %vm423_vm5, %v7318_v24  ;;  %v9601_v16 = vld [vmem:[%s13580_s22 + $0x20] sm:$0xff]  }
0x1d5e   :  { %9458 = vmatprep.mubr.msk.bf16.mxu0 %vm10156_vm2, %v13657_v43  ;;  %9463 = vmatpush3.bf16.msra.mxu1 %v9601_v16 }
0x1d5f   :  { %v7298_v7 = vmul.f32 %v13244_v17, %v7282_v0  ;;  %v13316_v40 = vadd.f32 %v13252_v30, %v7297_v20  ;;  %9464 = vmatprep.subr.bf16.mxu1 %v13657_v43  ;;  %v9602_v17 = vld [vmem:[%s13580_s22 + $0x28] sm:$0xff]  }
0x1d61   :  { %v13319_v21 = vadd.f32 %v13252_v30, %v7298_v7  ;;  %v13344_v30 = vld [vmem:[%s13581_s21 + $0x1] ss:$0 sm:$0xff] }
0x1d62   :  { %9465 = vmatpush3.bf16.msra.mxu1 %v9602_v17 }
0x1d63   :  { %v7319_v53 = vpack.c.bf16 %v13319_v21, %v13316_v40  ;;  %9466 = vmatprep.subr.bf16.mxu1 %v13657_v43 }
0x1d65   :  { %9459 = vmatmul.mubr.msk.bf16.gmra.mrb[44].mxu0 %vm423_vm5, %v7319_v53 }
0x1d66   :  { %9494 = vmatprep.mubr.msk.bf16.mxu0 %vm10156_vm2, %v13657_v43  ;;  %9467 = vmatpush3.bf16.msra.mxu1 %v9603_v19 }
0x1d67   :  { %9468 = vmatprep.subr.bf16.mxu1 %v13657_v43 }
0x1d6a   :  { %9469 = vmatpush3.bf16.msra.mxu1 %v9604_v37 }
0x1dcf   :  { %v7394_v57 = vpop.f32.mrb[28].mxu0 }
0x1dd0   :  { %v7395_v36 = vadd.f32 %v13344_v30, %v7394_v57  ;;  %v9444_v59 = vpop.f32.mrb[29].mxu0 }
0x1dd1   :  { %v7397_v50 = vpop.f32.mrb[30].mxu0 }
0x1dd2   :  { %v7433_v5 = vmul.f32 %v7395_v36, %v7395_v36  ;;  %v7398_v56 = vadd.f32 %v13344_v30, %v7397_v50  ;;  %v9445_v22 = vpop.f32.mrb[31].mxu0 }
0x1dd4   :  { %v7443_v10 = vmul.f32 %v7433_v5, %v7395_v36  ;;  %v7434_v27 = vmul.f32 %v7398_v56, %v7398_v56 }
0x1dd6   :  { %v7453_v42 = vmul.f32 0.044715, %v7443_v10  ;;  %v7444_v60 = vmul.f32 %v7434_v27, %v7398_v56 }
0x1dd7   :  { %v7402_v1 = vpop.f32.mrb[32].mxu0 }
0x1dd8   :  { %v7463_v33 = vadd.f32 %v7453_v42, %v7395_v36  ;;  %v7454_v52 = vmul.f32 0.044715, %v7444_v60  ;;  %v7403_v45 = vadd.f32 %v13344_v30, %v7402_v1  ;;  %v9448_v6 = vpop.f32.mrb[33].mxu0 }
0x1dd9   :  { %v7405_v8 = vpop.f32.mrb[34].mxu0 }
0x1dda   :  { %v7473_v26 = vmul.f32 0.7978846, %v7463_v33  ;;  %v7464_v25 = vadd.f32 %v7454_v52, %v7398_v56  ;;  %v7435_v54 = vmul.f32 %v7403_v45, %v7403_v45  ;;  %v7406_v55 = vadd.f32 %v13344_v30, %v7405_v8  ;;  %v9449_v14 = vpop.f32.mrb[35].mxu0 }
0x1ddc   :  { %10111 = vtanh.f32 %v7473_v26  ;;  %v7474_v11 = vmul.f32 0.7978846, %v7464_v25  ;;  %v7445_v32 = vmul.f32 %v7435_v54, %v7403_v45  ;;  %v7436_v12 = vmul.f32 %v7406_v55, %v7406_v55 }
0x1dde   :  { %10113 = vtanh.f32 %v7474_v11  ;;  %v7455_v4 = vmul.f32 0.044715, %v7445_v32  ;;  %v7446_v62 = vmul.f32 %v7436_v12, %v7406_v55 }
0x1de0   :  { %v7465_v44 = vadd.f32 %v7455_v4, %v7403_v45  ;;  %v7456_v51 = vmul.f32 0.044715, %v7446_v62 }
0x1de2   :  { %v7475_v2 = vmul.f32 0.7978846, %v7465_v44  ;;  %v7466_v34 = vadd.f32 %v7456_v51, %v7406_v55 }
0x1de4   :  { %10115 = vtanh.f32 %v7475_v2  ;;  %v7476_v31 = vmul.f32 0.7978846, %v7466_v34 }
0x1de6   :  { %v10112_v18 = vpop.eup %10111  ;;  %10117 = vtanh.f32 %v7476_v31 }
0x1de7   :  { %v7493_v38 = vadd.f32 1.0, %v10112_v18 }
0x1de8   :  { %v10114_v63 = vpop.eup %10113 }
0x1de9   :  { %v7503_v29 = vmul.f32 0.5, %v7493_v38  ;;  %v7494_v49 = vadd.f32 1.0, %v10114_v63 }
0x1deb   :  { %v7504_v23 = vmul.f32 0.5, %v7494_v49  ;;  %v7513_v61 = vmul.f32 %v7503_v29, %v7395_v36 }
0x1ded   :  { %v7514_v47 = vmul.f32 %v7504_v23, %v7398_v56 }
0x1dee   :  { %v10116_v39 = vpop.eup %10115 }
0x1def   :  { %v7523_v24 = vpack.c.bf16 %v7514_v47, %v7513_v61  ;;  %v7495_v9 = vadd.f32 1.0, %v10116_v39 }
0x1df0   :  { %v10118_v13 = vpop.eup %10117 }
0x1df1   :  { %v7505_v20 = vmul.f32 0.5, %v7495_v9  ;;  %v7496_v0 = vadd.f32 1.0, %v10118_v13  ;;  %9471 = vmatmul.mubr.msk.bf16.vlgmr.msra.gmra.mrb[0].mxu1 %vm4800_vm14, %v7523_v24 }
0x1df2   :  { %9474 = vmatprep.mubr.msk.bf16.mxu1 %vm10156_vm2, %v13657_v43 }
0x1df3   :  { %v7506_v7 = vmul.f32 0.5, %v7496_v0  ;;  %v7515_v53 = vmul.f32 %v7505_v20, %v7403_v45 }
0x1df5   :  { %v7516_v16 = vmul.f32 %v7506_v7, %v7406_v55 }
0x1df7   :  { %v7524_v17 = vpack.c.bf16 %v7516_v16, %v7515_v53 }
0x1df9   :  { %9475 = vmatmul.mubr.msk.bf16.gmra.mrb[4].mxu1 %vm4800_vm14, %v7524_v17 }
0x1dfa   :  { %9478 = vmatprep.mubr.msk.bf16.mxu1 %vm10156_vm2, %v13657_v43 }
0x1e28   :  { %v7410_v19 = vpop.f32.mrb[36].mxu0 }
0x1e29   :  { %v7411_v37 = vadd.f32 %v13344_v30, %v7410_v19  ;;  %v9452_v57 = vpop.f32.mrb[37].mxu0 }
0x1e2a   :  { %v7413_v36 = vpop.f32.mrb[38].mxu0 }
0x1e2b   :  { %v7437_v59 = vmul.f32 %v7411_v37, %v7411_v37  ;;  %v7414_v50 = vadd.f32 %v13344_v30, %v7413_v36  ;;  %v9453_v5 = vpop.f32.mrb[39].mxu0 }
0x1e2d   :  { %v7447_v56 = vmul.f32 %v7437_v59, %v7411_v37  ;;  %v7438_v22 = vmul.f32 %v7414_v50, %v7414_v50 }
0x1e2f   :  { %v7457_v10 = vmul.f32 0.044715, %v7447_v56  ;;  %v7448_v27 = vmul.f32 %v7438_v22, %v7414_v50 }
0x1e30   :  { %v7418_v42 = vpop.f32.mrb[40].mxu0 }
0x1e31   :  { %v7467_v60 = vadd.f32 %v7457_v10, %v7411_v37  ;;  %v7458_v1 = vmul.f32 0.044715, %v7448_v27  ;;  %v7419_v33 = vadd.f32 %v13344_v30, %v7418_v42  ;;  %v9456_v52 = vpop.f32.mrb[41].mxu0 }
0x1e32   :  { %v7421_v45 = vpop.f32.mrb[42].mxu0 }
0x1e33   :  { %v7477_v6 = vmul.f32 0.7978846, %v7467_v60  ;;  %v7468_v8 = vadd.f32 %v7458_v1, %v7414_v50  ;;  %v7439_v26 = vmul.f32 %v7419_v33, %v7419_v33  ;;  %v7422_v25 = vadd.f32 %v13344_v30, %v7421_v45  ;;  %v9457_v54 = vpop.f32.mrb[43].mxu0 }
0x1e35   :  { %10119 = vtanh.f32 %v7477_v6  ;;  %v7478_v55 = vmul.f32 0.7978846, %v7468_v8  ;;  %v7449_v14 = vmul.f32 %v7439_v26, %v7419_v33  ;;  %v7440_v11 = vmul.f32 %v7422_v25, %v7422_v25 }
0x1e37   :  { %10121 = vtanh.f32 %v7478_v55  ;;  %v7459_v32 = vmul.f32 0.044715, %v7449_v14  ;;  %v7450_v12 = vmul.f32 %v7440_v11, %v7422_v25 }
0x1e38   :  { %v7426_v4 = vpop.f32.mrb[44].mxu0 }
0x1e39   :  { %v7469_v62 = vadd.f32 %v7459_v32, %v7419_v33  ;;  %v7460_v44 = vmul.f32 0.044715, %v7450_v12  ;;  %v7427_v51 = vadd.f32 %v13344_v30, %v7426_v4  ;;  %v9460_v2 = vpop.f32.mrb[45].mxu0 }
0x1e3a   :  { %v7429_v34 = vpop.f32.mrb[46].mxu0 }
0x1e3b   :  { %v7479_v31 = vmul.f32 0.7978846, %v7469_v62  ;;  %v7470_v18 = vadd.f32 %v7460_v44, %v7422_v25  ;;  %v7441_v38 = vmul.f32 %v7427_v51, %v7427_v51  ;;  %v7430_v63 = vadd.f32 %v13344_v30, %v7429_v34  ;;  %v9461_v29 = vpop.f32.mrb[47].mxu0 }
0x1e3d   :  { %10123 = vtanh.f32 %v7479_v31  ;;  %v7480_v49 = vmul.f32 0.7978846, %v7470_v18  ;;  %v7451_v23 = vmul.f32 %v7441_v38, %v7427_v51  ;;  %v7442_v61 = vmul.f32 %v7430_v63, %v7430_v63 }
0x1e3f   :  { %v10120_v47 = vpop.eup %10119  ;;  %10125 = vtanh.f32 %v7480_v49  ;;  %v7461_v39 = vmul.f32 0.044715, %v7451_v23  ;;  %v7452_v24 = vmul.f32 %v7442_v61, %v7430_v63 }
0x1e40   :  { %v7497_v9 = vadd.f32 1.0, %v10120_v47 }
0x1e41   :  { %v10122_v13 = vpop.eup %10121  ;;  %v7471_v20 = vadd.f32 %v7461_v39, %v7427_v51  ;;  %v7462_v0 = vmul.f32 0.044715, %v7452_v24 }
0x1e42   :  { %v7507_v7 = vmul.f32 0.5, %v7497_v9  ;;  %v7498_v53 = vadd.f32 1.0, %v10122_v13 }
0x1e43   :  { %v7481_v16 = vmul.f32 0.7978846, %v7471_v20  ;;  %v7472_v17 = vadd.f32 %v7462_v0, %v7430_v63 }
0x1e44   :  { %v7508_v19 = vmul.f32 0.5, %v7498_v53  ;;  %v7517_v57 = vmul.f32 %v7507_v7, %v7411_v37 }
0x1e45   :  { %10127 = vtanh.f32 %v7481_v16  ;;  %v7482_v30 = vmul.f32 0.7978846, %v7472_v17 }
0x1e46   :  { %v7518_v36 = vmul.f32 %v7508_v19, %v7414_v50 }
0x1e47   :  { %v10124_v59 = vpop.eup %10123  ;;  %10129 = vtanh.f32 %v7482_v30 }
0x1e48   :  { %v7525_v5 = vpack.c.bf16 %v7518_v36, %v7517_v57  ;;  %v7499_v56 = vadd.f32 1.0, %v10124_v59 }
0x1e49   :  { %v10126_v22 = vpop.eup %10125 }
0x1e4a   :  { %v7509_v10 = vmul.f32 0.5, %v7499_v56  ;;  %v7500_v27 = vadd.f32 1.0, %v10126_v22  ;;  %9479 = vmatmul.mubr.msk.bf16.gmra.mrb[8].mxu1 %vm4800_vm14, %v7525_v5 }
0x1e4b   :  { %9482 = vmatprep.mubr.msk.bf16.mxu1 %vm10156_vm2, %v13657_v43 }
0x1e4c   :  { %v7510_v42 = vmul.f32 0.5, %v7500_v27  ;;  %v7519_v60 = vmul.f32 %v7509_v10, %v7419_v33  ;;  %v8256_v33 = vld [vmem:[%s13582_s23 + $0x1] ss:$0 sm:$0xff] }
0x1e4e   :  { %v7520_v1 = vmul.f32 %v7510_v42, %v7422_v25 }
0x1e4f   :  { %v10128_v52 = vpop.eup %10127 }
0x1e50   :  { %v7526_v45 = vpack.c.bf16 %v7520_v1, %v7519_v60  ;;  %v7501_v6 = vadd.f32 1.0, %v10128_v52 }
0x1e51   :  { %v10130_v37 = vpop.eup %10129 }
0x1e52   :  { %v7511_v50 = vmul.f32 0.5, %v7501_v6  ;;  %v7502_v8 = vadd.f32 1.0, %v10130_v37  ;;  %9483 = vmatmul.mubr.msk.bf16.gmra.mrb[12].mxu1 %vm4800_vm14, %v7526_v45 }
0x1e53   :  { %9486 = vmatprep.mubr.msk.bf16.mxu1 %vm10156_vm2, %v13657_v43 }
0x1e54   :  { %v7512_v26 = vmul.f32 0.5, %v7502_v8  ;;  %v7521_v54 = vmul.f32 %v7511_v50, %v7427_v51 }
0x1e56   :  { %v7522_v55 = vmul.f32 %v7512_v26, %v7430_v63 }
0x1e58   :  { %v7527_v14 = vpack.c.bf16 %v7522_v55, %v7521_v54 }
0x1e5a   :  { %9487 = vmatmul.mubr.msk.bf16.gmra.mrb[16].mxu1 %vm4800_vm14, %v7527_v14 }
0x1ec4   :  { %v7618_v25 = vpop.f32.mrb[0].mxu1 }
0x1ec5   :  { %v7619_v11 = vadd.f32 %v8256_v33, %v7618_v25  ;;  %v9472_v32 = vpop.f32.mrb[1].mxu1 }
0x1ec6   :  { %v7621_v12 = vpop.f32.mrb[2].mxu1 }
0x1ec7   :  { %v7657_v4 = vadd.f32 %v7619_v11, %v13256_v15  ;;  %v7622_v62 = vadd.f32 %v8256_v33, %v7621_v12  ;;  %v9473_v44 = vpop.f32.mrb[3].mxu1 }
0x1ec9   :  { %v7658_v2 = vadd.f32 %v7622_v62, %v13259_v28  ;;  %v7671_v51 = vsel %vm423_vm5, %v7657_v4, 0.0 }
0x1eca   :  { %7672 = vadd.xlane.f32.xlu1 %v7671_v51  ;;  %v9606_v51 = vld [vmem:[%s13585_s26 + $0x8] sm:$0xff]  }
0x1ecb   :  { %v7674_v34 = vsel %vm423_vm5, %v7658_v2, 0.0 }
0x1ecc   :  { %7675 = vadd.xlane.f32.xlu0 %v7674_v34  ;;  %v7626_v31 = vpop.f32.mrb[4].mxu1 }
0x1ecd   :  { %v7627_v18 = vadd.f32 %v8256_v33, %v7626_v31  ;;  %v9476_v38 = vpop.f32.mrb[5].mxu1 }
0x1ece   :  { %v7629_v63 = vpop.f32.mrb[6].mxu1 }
0x1ecf   :  { %v7659_v29 = vadd.f32 %v7627_v18, %v13271_v3  ;;  %v7630_v49 = vadd.f32 %v8256_v33, %v7629_v63  ;;  %v9477_v23 = vpop.f32.mrb[7].mxu1 }
0x1ed1   :  { %v7660_v15 = vadd.f32 %v7630_v49, %v13274_v48  ;;  %v7677_v61 = vsel %vm423_vm5, %v7659_v29, 0.0 }
0x1ed2   :  { %7678 = vadd.xlane.f32.xlu1 %v7677_v61 }
0x1ed3   :  { %v7680_v28 = vsel %vm423_vm5, %v7660_v15, 0.0 }
0x1ed4   :  { %7681 = vadd.xlane.f32.xlu0 %v7680_v28 }
0x1f1d   :  { %v7634_v47 = vpop.f32.mrb[8].mxu1 }
0x1f1e   :  { %v7635_v39 = vadd.f32 %v8256_v33, %v7634_v47  ;;  %v9480_v24 = vpop.f32.mrb[9].mxu1 }
0x1f1f   :  { %v7637_v9 = vpop.f32.mrb[10].mxu1 }
0x1f20   :  { %v13381_v13 = vadd.f32 %v7635_v39, %v13286_v35  ;;  %v7638_v20 = vadd.f32 %v8256_v33, %v7637_v9  ;;  %v9481_v0 = vpop.f32.mrb[11].mxu1 }
0x1f22   :  { %v13384_v3 = vadd.f32 %v7638_v20, %v13289_v41  ;;  %v7683_v48 = vsel %vm423_vm5, %v13381_v13, 0.0 }
0x1f23   :  { %7684 = vadd.xlane.f32.xlu1 %v7683_v48 }
0x1f24   :  { %v7686_v7 = vsel %vm423_vm5, %v13384_v3, 0.0 }
0x1f25   :  { %7687 = vadd.xlane.f32.xlu0 %v7686_v7  ;;  %v7642_v53 = vpop.f32.mrb[12].mxu1 }
0x1f26   :  { %v7643_v16 = vadd.f32 %v8256_v33, %v7642_v53  ;;  %v9484_v17 = vpop.f32.mrb[13].mxu1 }
0x1f27   :  { %v7645_v19 = vpop.f32.mrb[14].mxu1 }
0x1f28   :  { %v13391_v35 = vadd.f32 %v7643_v16, %v13301_v58  ;;  %v7646_v30 = vadd.f32 %v8256_v33, %v7645_v19  ;;  %v9485_v57 = vpop.f32.mrb[15].mxu1 }
0x1f2a   :  { %v13394_v41 = vadd.f32 %v7646_v30, %v13304_v46  ;;  %v7689_v36 = vsel %vm423_vm5, %v13391_v35, 0.0 }
0x1f2b   :  { %7690 = vadd.xlane.f32.xlu1 %v7689_v36 }
0x1f2c   :  { %v7692_v59 = vsel %vm423_vm5, %v13394_v41, 0.0 }
0x1f2d   :  { %7693 = vadd.xlane.f32.xlu0 %v7692_v59  ;;  %v7650_v5 = vpop.f32.mrb[16].mxu1 }
0x1f2e   :  { %v7651_v56 = vadd.f32 %v8256_v33, %v7650_v5  ;;  %v9488_v22 = vpop.f32.mrb[17].mxu1 }
0x1f2f   :  { %v7653_v10 = vpop.f32.mrb[18].mxu1 }
0x1f30   :  { %v13401_v58 = vadd.f32 %v7651_v56, %v13316_v40  ;;  %v7654_v27 = vadd.f32 %v8256_v33, %v7653_v10  ;;  %v9489_v42 = vpop.f32.mrb[19].mxu1 }
0x1f32   :  { %v13404_v46 = vadd.f32 %v7654_v27, %v13319_v21  ;;  %v7695_v60 = vsel %vm423_vm5, %v13401_v58, 0.0 }
0x1f33   :  { %7696 = vadd.xlane.f32.xlu1 %v7695_v60 }
0x1f34   :  { %v7698_v1 = vsel %vm423_vm5, %v13404_v46, 0.0 }
0x1f35   :  { %7699 = vadd.xlane.f32.xlu0 %v7698_v1 }
0x1f57   :  { %v7673_v52 = vpop.xlane.xlu1 %7672 }
0x1f58   :  { %v7701_v45 = vmul.f32 0.03125, %v7673_v52 }
0x1f59   :  { %v7676_v6 = vpop.xlane.xlu0 %7675 }
0x1f5a   :  { %v13410_v37 = vsub.f32 %v7657_v4, %v7701_v45  ;;  %v7702_v40 = vmul.f32 0.03125, %v7676_v6  ;;  %v13476_v6 = vld [vmem:[%s13583_s24 + $0x1] ss:$0 sm:$0xff] }
0x1f5c   :  { %v13412_v50 = vsub.f32 %v7658_v2, %v7702_v40  ;;  %v7721_v21 = vmul.f32 %v13410_v37, %v13410_v37  ;;  %v9605_v2 = vld [vmem:[%s13585_s26] sm:$0xff]  }
0x1f5d   :  { %9491 = vmatpush3.bf16.msra.mxu0 %v9605_v2 }
0x1f5e   :  { %v7731_v8 = vsel %vm423_vm5, %v7721_v21, 0.0  ;;  %v7722_v26 = vmul.f32 %v13412_v50, %v13412_v50  ;;  %9492 = vmatprep.subr.bf16.mxu0 %v13657_v43 }
0x1f5f   :  { %v7679_v54 = vpop.xlane.xlu1 %7678  ;;  %7732 = vadd.xlane.f32.xlu1 %v7731_v8 }
0x1f60   :  { %v7703_v55 = vmul.f32 0.03125, %v7679_v54  ;;  %v7734_v14 = vsel %vm423_vm5, %v7722_v26, 0.0  ;;  %v13484_v54 = vld [vmem:[%s13584_s25 + $0x1] ss:$0 sm:$0xff] }
0x1f61   :  { %v7682_v33 = vpop.xlane.xlu0 %7681  ;;  %7735 = vadd.xlane.f32.xlu0 %v7734_v14  ;;  %9493 = vmatpush3.bf16.msra.mxu0 %v9606_v51 }
0x1f62   :  { %v13420_v25 = vsub.f32 %v7659_v29, %v7703_v55  ;;  %v7704_v11 = vmul.f32 0.03125, %v7682_v33 }
0x1f64   :  { %v13422_v32 = vsub.f32 %v7660_v15, %v7704_v11  ;;  %v7723_v12 = vmul.f32 %v13420_v25, %v13420_v25 }
0x1f66   :  { %v7737_v4 = vsel %vm423_vm5, %v7723_v12, 0.0  ;;  %v7724_v62 = vmul.f32 %v13422_v32, %v13422_v32 }
0x1f67   :  { %7738 = vadd.xlane.f32.xlu1 %v7737_v4 }
0x1f68   :  { %v7740_v44 = vsel %vm423_vm5, %v7724_v62, 0.0 }
0x1f69   :  { %7741 = vadd.xlane.f32.xlu0 %v7740_v44 }
0x1fb0   :  { %v7685_v34 = vpop.xlane.xlu1 %7684 }
0x1fb1   :  { %v7705_v31 = vmul.f32 0.03125, %v7685_v34 }
0x1fb2   :  { %v7688_v18 = vpop.xlane.xlu0 %7687 }
0x1fb3   :  { %v13438_v38 = vsub.f32 %v13381_v13, %v7705_v31  ;;  %v7706_v63 = vmul.f32 0.03125, %v7688_v18 }
0x1fb5   :  { %v13441_v29 = vsub.f32 %v13384_v3, %v7706_v63  ;;  %v7725_v49 = vmul.f32 %v13438_v38, %v13438_v38 }
0x1fb7   :  { %v7743_v23 = vsel %vm423_vm5, %v7725_v49, 0.0  ;;  %v7726_v15 = vmul.f32 %v13441_v29, %v13441_v29 }
0x1fb8   :  { %v7691_v61 = vpop.xlane.xlu1 %7690  ;;  %7744 = vadd.xlane.f32.xlu1 %v7743_v23 }
0x1fb9   :  { %v7707_v28 = vmul.f32 0.03125, %v7691_v61  ;;  %v7746_v47 = vsel %vm423_vm5, %v7726_v15, 0.0 }
0x1fba   :  { %v7694_v39 = vpop.xlane.xlu0 %7693  ;;  %7747 = vadd.xlane.f32.xlu0 %v7746_v47 }
0x1fbb   :  { %v13450_v24 = vsub.f32 %v13391_v35, %v7707_v28  ;;  %v7708_v9 = vmul.f32 0.03125, %v7694_v39 }
0x1fbd   :  { %v13453_v13 = vsub.f32 %v13394_v41, %v7708_v9  ;;  %v7727_v20 = vmul.f32 %v13450_v24, %v13450_v24 }
0x1fbf   :  { %v7749_v0 = vsel %vm423_vm5, %v7727_v20, 0.0  ;;  %v7728_v3 = vmul.f32 %v13453_v13, %v13453_v13 }
0x1fc0   :  { %7750 = vadd.xlane.f32.xlu1 %v7749_v0  ;;  %v7697_v48 = vpop.xlane.xlu1 %7696 }
0x1fc1   :  { %v7709_v7 = vmul.f32 0.03125, %v7697_v48  ;;  %v7752_v53 = vsel %vm423_vm5, %v7728_v3, 0.0 }
0x1fc2   :  { %7753 = vadd.xlane.f32.xlu0 %v7752_v53  ;;  %v7700_v16 = vpop.xlane.xlu0 %7699 }
0x1fc3   :  { %v13462_v17 = vsub.f32 %v13401_v58, %v7709_v7  ;;  %v7710_v19 = vmul.f32 0.03125, %v7700_v16 }
0x1fc5   :  { %v13465_v35 = vsub.f32 %v13404_v46, %v7710_v19  ;;  %v7729_v30 = vmul.f32 %v13462_v17, %v13462_v17 }
0x1fc7   :  { %v7755_v57 = vsel %vm423_vm5, %v7729_v30, 0.0  ;;  %v7730_v41 = vmul.f32 %v13465_v35, %v13465_v35 }
0x1fc8   :  { %7756 = vadd.xlane.f32.xlu1 %v7755_v57 }
0x1fc9   :  { %v7758_v36 = vsel %vm423_vm5, %v7730_v41, 0.0 }
0x1fca   :  { %7759 = vadd.xlane.f32.xlu0 %v7758_v36 }
0x1fec   :  { %v7733_v59 = vpop.xlane.xlu1 %7732 }
0x1fed   :  { %v7761_v5 = vmul.f32 0.03125, %v7733_v59 }
0x1fee   :  { %v7736_v56 = vpop.xlane.xlu0 %7735 }
0x1fef   :  { %v7771_v22 = vadd.f32 1e-05, %v7761_v5  ;;  %v7762_v10 = vmul.f32 0.03125, %v7736_v56 }
0x1ff1   :  { %10131 = vrsqrt.f32 %v7771_v22  ;;  %v7772_v58 = vadd.f32 1e-05, %v7762_v10 }
0x1ff3   :  { %10133 = vrsqrt.f32 %v7772_v58 }
0x1ff4   :  { %v7739_v27 = vpop.xlane.xlu1 %7738 }
0x1ff5   :  { %v7763_v42 = vmul.f32 0.03125, %v7739_v27 }
0x1ff6   :  { %v7742_v46 = vpop.xlane.xlu0 %7741 }
0x1ff7   :  { %v7773_v60 = vadd.f32 1e-05, %v7763_v42  ;;  %v7764_v1 = vmul.f32 0.03125, %v7742_v46 }
0x1ff9   :  { %10135 = vrsqrt.f32 %v7773_v60  ;;  %v7774_v52 = vadd.f32 1e-05, %v7764_v1 }
0x1ffb   :  { %v10132_v45 = vpop.eup %10131  ;;  %10137 = vrsqrt.f32 %v7774_v52 }
0x1ffc   :  { %v7791_v40 = vmul.f32 %v10132_v45, %v13410_v37 }
0x1ffd   :  { %v10134_v21 = vpop.eup %10133 }
0x1ffe   :  { %v7807_v8 = vmul.f32 %v13476_v6, %v7791_v40  ;;  %v7792_v26 = vmul.f32 %v10134_v21, %v13412_v50 }
0x2000   :  { %v7808_v55 = vmul.f32 %v13476_v6, %v7792_v26  ;;  %v7823_v14 = vadd.f32 %v13484_v54, %v7807_v8 }
0x2002   :  { %v7824_v33 = vadd.f32 %v13484_v54, %v7808_v55 }
0x2003   :  { %v10136_v11 = vpop.eup %10135 }
0x2004   :  { %v7833_v12 = vpack.c.bf16 %v7824_v33, %v7823_v14  ;;  %v7793_v37 = vmul.f32 %v10136_v11, %v13420_v25 }
0x2005   :  { %v10138_v4 = vpop.eup %10137 }
0x2006   :  { %v7809_v62 = vmul.f32 %v13476_v6, %v7793_v37  ;;  %v7794_v50 = vmul.f32 %v10138_v4, %v13422_v32  ;;  %9495 = vmatmul.mubr.msk.bf16.vlgmr.msra.gmra.mrb[48].mxu0 %vm423_vm5, %v7833_v12 }
0x2007   :  { %9498 = vmatprep.mubr.msk.bf16.mxu0 %vm10156_vm2, %v13657_v43 }
0x2008   :  { %v7810_v44 = vmul.f32 %v13476_v6, %v7794_v50  ;;  %v7825_v2 = vadd.f32 %v13484_v54, %v7809_v62 }
0x200a   :  { %v7826_v51 = vadd.f32 %v13484_v54, %v7810_v44 }
0x200c   :  { %v7834_v34 = vpack.c.bf16 %v7826_v51, %v7825_v2 }
0x200e   :  { %9499 = vmatmul.mubr.msk.bf16.gmra.mrb[52].mxu0 %vm423_vm5, %v7834_v34 }
0x200f   :  { %9502 = vmatprep.mubr.msk.bf16.mxu0 %vm10156_vm2, %v13657_v43 }
0x2045   :  { %v7745_v25 = vpop.xlane.xlu1 %7744 }
0x2046   :  { %v7765_v31 = vmul.f32 0.03125, %v7745_v25 }
0x2047   :  { %v7748_v32 = vpop.xlane.xlu0 %7747 }
0x2048   :  { %v7775_v18 = vadd.f32 1e-05, %v7765_v31  ;;  %v7766_v63 = vmul.f32 0.03125, %v7748_v32 }
0x204a   :  { %10139 = vrsqrt.f32 %v7775_v18  ;;  %v7776_v49 = vadd.f32 1e-05, %v7766_v63 }
0x204c   :  { %10141 = vrsqrt.f32 %v7776_v49 }
0x204d   :  { %v7751_v23 = vpop.xlane.xlu1 %7750 }
0x204e   :  { %v7767_v15 = vmul.f32 0.03125, %v7751_v23 }
0x204f   :  { %v7754_v61 = vpop.xlane.xlu0 %7753 }
0x2050   :  { %v7777_v28 = vadd.f32 1e-05, %v7767_v15  ;;  %v7768_v47 = vmul.f32 0.03125, %v7754_v61 }
0x2052   :  { %10143 = vrsqrt.f32 %v7777_v28  ;;  %v7778_v39 = vadd.f32 1e-05, %v7768_v47 }
0x2054   :  { %v10140_v9 = vpop.eup %10139  ;;  %10145 = vrsqrt.f32 %v7778_v39 }
0x2055   :  { %v7795_v20 = vmul.f32 %v10140_v9, %v13438_v38  ;;  %v7757_v0 = vpop.xlane.xlu1 %7756 }
0x2056   :  { %v10142_v3 = vpop.eup %10141  ;;  %v7769_v48 = vmul.f32 0.03125, %v7757_v0 }
0x2057   :  { %v7811_v7 = vmul.f32 %v13476_v6, %v7795_v20  ;;  %v7796_v53 = vmul.f32 %v10142_v3, %v13441_v29  ;;  %v7760_v16 = vpop.xlane.xlu0 %7759 }
0x2058   :  { %v7779_v19 = vadd.f32 1e-05, %v7769_v48  ;;  %v7770_v30 = vmul.f32 0.03125, %v7760_v16 }
0x2059   :  { %v7812_v57 = vmul.f32 %v13476_v6, %v7796_v53  ;;  %v7827_v36 = vadd.f32 %v13484_v54, %v7811_v7 }
0x205a   :  { %10147 = vrsqrt.f32 %v7779_v19  ;;  %v7780_v41 = vadd.f32 1e-05, %v7770_v30 }
0x205b   :  { %v7828_v59 = vadd.f32 %v13484_v54, %v7812_v57 }
0x205c   :  { %v10144_v5 = vpop.eup %10143  ;;  %10149 = vrsqrt.f32 %v7780_v41 }
0x205d   :  { %v7835_v38 = vpack.c.bf16 %v7828_v59, %v7827_v36  ;;  %v7797_v56 = vmul.f32 %v10144_v5, %v13450_v24 }
0x205e   :  { %v10146_v22 = vpop.eup %10145 }
0x205f   :  { %v7813_v10 = vmul.f32 %v13476_v6, %v7797_v56  ;;  %v7798_v29 = vmul.f32 %v10146_v22, %v13453_v13  ;;  %9503 = vmatmul.mubr.msk.bf16.gmra.mrb[56].mxu0 %vm423_vm5, %v7835_v38 }
0x2060   :  { %9506 = vmatprep.mubr.msk.bf16.mxu0 %vm10156_vm2, %v13657_v43 }
0x2061   :  { %v7814_v58 = vmul.f32 %v13476_v6, %v7798_v29  ;;  %v7829_v27 = vadd.f32 %v13484_v54, %v7813_v10 }
0x2063   :  { %v7830_v42 = vadd.f32 %v13484_v54, %v7814_v58 }
0x2064   :  { %v10148_v46 = vpop.eup %10147 }
0x2065   :  { %v7836_v60 = vpack.c.bf16 %v7830_v42, %v7829_v27  ;;  %v7799_v24 = vmul.f32 %v10148_v46, %v13462_v17  ;;  %v8270_v17 = vld [vmem:[%s13586_s27] ss:$0 sm:$0xff] }
0x2066   :  { %v10150_v1 = vpop.eup %10149 }
0x2067   :  { %v7815_v52 = vmul.f32 %v13476_v6, %v7799_v24  ;;  %v7800_v13 = vmul.f32 %v10150_v1, %v13465_v35  ;;  %9507 = vmatmul.mubr.msk.bf16.gmra.mrb[60].mxu0 %vm423_vm5, %v7836_v60 }
0x2068   :  { %9510 = vmatprep.mubr.msk.bf16.mxu0 %vm10156_vm2, %v13657_v43 }
0x2069   :  { %v7816_v45 = vmul.f32 %v13476_v6, %v7800_v13  ;;  %v7831_v40 = vadd.f32 %v13484_v54, %v7815_v52 }
0x206b   :  { %v7832_v21 = vadd.f32 %v13484_v54, %v7816_v45 }
0x206d   :  { %v7837_v8 = vpack.c.bf16 %v7832_v21, %v7831_v40 }
0x206f   :  { %9511 = vmatmul.mubr.msk.bf16.gmra.mrb[64].mxu0 %vm423_vm5, %v7837_v8 }
0x20d9   :  { %v7910_v26 = vpop.f32.mrb[48].mxu0 }
0x20da   :  { %v7911_v35 = vadd.f32 %v8270_v17, %v7910_v26  ;;  %v9496_v55 = vpop.f32.mrb[49].mxu0 }
0x20db   :  { %v7913_v14 = vpop.f32.mrb[50].mxu0 }
0x20dc   :  { %7949 = vst [vmem:[%s13587_s28] sm:$0xff] %v7911_v35  ;;  %v7914_v43 = vadd.f32 %v8270_v17, %v7913_v14  ;;  %v9497_v6 = vpop.f32.mrb[51].mxu0 }
0x20de   :  { %7950 = vst [vmem:[%s13587_s28 + $0x8] sm:$0xff] %v7914_v43 }
0x20e1   :  { %v7918_v54 = vpop.f32.mrb[52].mxu0 }
0x20e2   :  { %v7919_v33 = vadd.f32 %v8270_v17, %v7918_v54  ;;  %v9500_v11 = vpop.f32.mrb[53].mxu0 }
0x20e3   :  { %v7921_v12 = vpop.f32.mrb[54].mxu0 }
0x20e4   :  { %7951 = vst [vmem:[%s13587_s28 + $0x10] sm:$0xff] %v7919_v33  ;;  %v7922_v37 = vadd.f32 %v8270_v17, %v7921_v12  ;;  %v9501_v4 = vpop.f32.mrb[55].mxu0 }
0x20e6   :  { %7952 = vst [vmem:[%s13587_s28 + $0x18] sm:$0xff] %v7922_v37 }
0x2132   :  { %v7926_v62 = vpop.f32.mrb[56].mxu0 }
0x2133   :  { %v7927_v50 = vadd.f32 %v8270_v17, %v7926_v62  ;;  %v9504_v44 = vpop.f32.mrb[57].mxu0 }
0x2134   :  { %v7929_v2 = vpop.f32.mrb[58].mxu0 }
0x2135   :  { %7953 = vst [vmem:[%s13587_s28 + $0x20] sm:$0xff] %v7927_v50  ;;  %v7930_v51 = vadd.f32 %v8270_v17, %v7929_v2  ;;  %v9505_v34 = vpop.f32.mrb[59].mxu0 }
0x2137   :  { %7954 = vst [vmem:[%s13587_s28 + $0x28] sm:$0xff] %v7930_v51 }
0x213a   :  { %v7934_v25 = vpop.f32.mrb[60].mxu0 }
0x213b   :  { %v7935_v31 = vadd.f32 %v8270_v17, %v7934_v25  ;;  %v9508_v32 = vpop.f32.mrb[61].mxu0 }
0x213c   :  { %v7937_v18 = vpop.f32.mrb[62].mxu0 }
0x213d   :  { %7955 = vst [vmem:[%s13587_s28 + $0x30] sm:$0xff] %v7935_v31  ;;  %v7938_v63 = vadd.f32 %v8270_v17, %v7937_v18  ;;  %v9509_v49 = vpop.f32.mrb[63].mxu0 }
0x213f   :  { %7956 = vst [vmem:[%s13587_s28 + $0x38] sm:$0xff] %v7938_v63 }
0x2142   :  { %v7942_v23 = vpop.f32.mrb[64].mxu0 }
0x2143   :  { %v7943_v15 = vadd.f32 %v8270_v17, %v7942_v23  ;;  %v9512_v61 = vpop.f32.mrb[65].mxu0 }
0x2144   :  { %v7945_v28 = vpop.f32.mrb[66].mxu0 }
0x2145   :  { %7957 = vst [vmem:[%s13587_s28 + $0x40] sm:$0xff] %v7943_v15  ;;  %v7946_v47 = vadd.f32 %v8270_v17, %v7945_v28  ;;  %v9513_v39 = vpop.f32.mrb[67].mxu0 }
0x2147   :  { %7958 = vst [vmem:[%s13587_s28 + $0x48] sm:$0xff] %v7946_v47 }

</bundles_post_ra>
